<compile_context>
chip_gen: v7x
topology: tpu7x:2x2x1
jax: 0.10.0
libtpu: 0.0.40
codegen_flags: <defaults>
</compile_context>

<pallas_src>
import functools

import jax
import jax.numpy as jnp
from jax.experimental import pallas as pl
from jax.experimental.pallas import tpu as pltpu


_LANES = 128
_MAX_TILE_ROWS = 8192          # 8192 x 128 x 4B = 4 MiB per f32 buffer
_FAST_PATH_ELEMS = 1 << 20     # below ~1M elems, fused XLA already hits roofline
_VMEM_LIMIT_BYTES = 32 * 1024 * 1024  # raise v5e's 16 MiB default; <= v7x physical


class _Config:
    """Minimal stand-in for the NAS training config."""

    def __init__(self, mode="mul", alpha=0.2, beta=0.6):
        self.mode = mode
        self.alpha = alpha
        self.beta = beta


def _regularizer_kernel(inv_bs_ref, x_ref, o_ref, *, mode, alpha, beta):
    """Elementwise body. inv_bs_ref is a (1,) f32 scalar (1 / batch_size) in SMEM.

    mul: out = alpha * exp(beta * log(log(x * inv_bs)))   (3 transcendentals/elem)
    add: out = alpha * exp(beta * log(      x * inv_bs))  (2 transcendentals/elem)
    """
    x = x_ref[...].astype(jnp.float32)
    t = x * inv_bs_ref[0]
    if mode == "mul":
        t = jnp.log(t)
    y = jnp.float32(alpha) * jnp.exp(jnp.float32(beta) * jnp.log(t))
    o_ref[...] = y.astype(o_ref.dtype)


def _choose_tile_rows(rows):
    """Biggest tile <= 4 MiB/buffer, but keep >= 2 grid steps when possible."""
    half = -(-rows // 2)          # ceil(rows / 2)
    half = -(-half // 8) * 8      # round up to a sublane multiple
    return max(8, min(_MAX_TILE_ROWS, half))


class RegularizerLoss:
    """JAX/Pallas port of nni FBNet RegularizerLoss."""

    def __init__(self, config):
        self.mode = config.mode
        self.alpha = float(config.alpha)
        self.beta = float(config.beta)
        if self.mode not in ("mul", "add"):
            raise NotImplementedError(self.mode)

    # Same folded math as the kernel, for the fast path / ragged tail.
    def _elementwise_f32(self, x_f32, inv_bs):
        t = x_f32 * inv_bs
        if self.mode == "mul":
            t = jnp.log(t)
        return jnp.float32(self.alpha) * jnp.exp(jnp.float32(self.beta) * jnp.log(t))

    def __call__(self, perf_cost, batch_size=1):
        perf_cost = jnp.asarray(perf_cost)
        orig_shape = perf_cost.shape
        orig_dtype = perf_cost.dtype
        inv_bs = jnp.float32(1.0) / jnp.float32(batch_size)

        n = perf_cost.size
        if n < _FAST_PATH_ELEMS:
            # FBNet's perf_cost is typically a scalar; launch overhead dominates.
            out = self._elementwise_f32(perf_cost.astype(jnp.float32), inv_bs)
            return out.astype(orig_dtype)

        # ---------------- Pallas path ----------------
        flat = perf_cost.reshape(-1)
        tail = n % _LANES
        main = n - tail                     # largest 128-aligned prefix
        rows = main // _LANES
        slab = flat[:main].reshape(rows, _LANES)

        tile_rows = _choose_tile_rows(rows)
        num_tiles = pl.cdiv(rows, tile_rows)
        inv_bs_arr = jnp.reshape(inv_bs, (1,)).astype(jnp.float32)

        kernel = functools.partial(
            _regularizer_kernel, mode=self.mode, alpha=self.alpha, beta=self.beta)

        in_bytes = main * slab.dtype.itemsize
        out_bytes = main * jnp.dtype(orig_dtype).itemsize
        trans_per_elem = 3 if self.mode == "mul" else 2
        cost = pl.CostEstimate(
            flops=3 * main,
            transcendentals=trans_per_elem * main,
            bytes_accessed=in_bytes + out_bytes,
        )

        out_main = pl.pallas_call(
            kernel,
            out_shape=jax.ShapeDtypeStruct((rows, _LANES), orig_dtype),
            grid=(num_tiles,),
            in_specs=[
                pl.BlockSpec(memory_space=pltpu.MemorySpace.SMEM),    # 1/batch_size
                pl.BlockSpec((tile_rows, _LANES), lambda i: (i, 0)),  # data tiles
            ],
            out_specs=pl.BlockSpec((tile_rows, _LANES), lambda i: (i, 0)),
            compiler_params=pltpu.CompilerParams(
                dimension_semantics=("parallel",),
                vmem_limit_bytes=_VMEM_LIMIT_BYTES),
            cost_estimate=cost,
        )(inv_bs_arr, slab)

        if tail:
            out_tail = self._elementwise_f32(
                flat[main:].astype(jnp.float32), inv_bs).astype(orig_dtype)
            out = jnp.concatenate([out_main.reshape(-1), out_tail])
        else:
            out = out_main.reshape(-1)
        return out.reshape(orig_shape)


def _reference(perf_cost, mode, alpha, beta, batch_size):
    """Faithful (un-folded) PyTorch-style reference."""
    x = perf_cost.astype(jnp.float32) / jnp.float32(batch_size)
    base = jnp.log(x) if mode == "mul" else x
    return (alpha * jnp.power(base, jnp.float32(beta))).astype(perf_cost.dtype)


if __name__ == "__main__":
    key = jax.random.PRNGKey(0)
    k1, k2 = jax.random.split(key)
    batch_size = 4

    # perf_cost values kept well away from batch_size so log() is well-conditioned.
    big = jax.random.uniform(k1, (8704, 128), jnp.float32, minval=8.0, maxval=40.0)   # aligned, 2 grid steps
    odd = jax.random.uniform(k2, (3000, 350), jnp.float32, minval=8.0, maxval=40.0)   # ragged rows + 16-elem tail
    scalar = jnp.float32(12.5)                                                        # typical FBNet use (fast path)

    ok = True
    for mode in ("mul", "add"):
        cfg = _Config(mode=mode, alpha=0.2, beta=0.6)
        loss_fn = RegularizerLoss(cfg)
        for x in (big, odd, scalar):
            out = jax.block_until_ready(loss_fn(x, batch_size=batch_size))
            ref = _reference(x, mode, cfg.alpha, cfg.beta, batch_size)
            if out.shape != x.shape or not jnp.allclose(out, ref, rtol=3e-5, atol=3e-5):
                ok = False

    print("KERNEL_OK" if ok else "KERNEL_MISMATCH")
</pallas_src>

<mosaic_0001>
module attributes {stable_mosaic.version = 11 : i64} {
  func.func @_regularizer_kernel(%arg0: i32, %arg1: memref<1xf32, #tpu.memory_space<smem>>, %arg2: memref<4352x128xf32, #tpu.memory_space<vmem>>, %arg3: memref<4352x128xf32, #tpu.memory_space<vmem>>) attributes {dimension_semantics = [#tpu.dimension_semantics<parallel>], iteration_bounds = array<i64: 2>, scalar_prefetch = 0 : i64, scratch_operands = 0 : i64, tpu.core_type = #tpu.core_type<tc>, window_params = [{transform_indices = @transform_0, window_bounds = array<i64: 1>}, {transform_indices = @transform_1, window_bounds = array<i64: 4352, 128>}, {transform_indices = @transform_2, window_bounds = array<i64: 4352, 128>}]} {
    %c0 = arith.constant 0 : index
    %c0_0 = arith.constant 0 : index
    %0 = vector.load %arg2[%c0, %c0_0] : memref<4352x128xf32, #tpu.memory_space<vmem>>, vector<4352x128xf32>
    %c0_1 = arith.constant 0 : index
    %1 = memref.load %arg1[%c0_1] : memref<1xf32, #tpu.memory_space<smem>>
    %2 = vector.broadcast %1 : f32 to vector<4352x128xf32>
    %3 = arith.mulf %0, %2 : vector<4352x128xf32>
    %4 = math.log %3 : vector<4352x128xf32>
    %5 = math.log %4 : vector<4352x128xf32>
    %cst = arith.constant 6.000000e-01 : f32
    %6 = vector.broadcast %cst : f32 to vector<4352x128xf32>
    %7 = arith.mulf %6, %5 : vector<4352x128xf32>
    %8 = math.exp %7 : vector<4352x128xf32>
    %cst_2 = arith.constant 2.000000e-01 : f32
    %9 = vector.broadcast %cst_2 : f32 to vector<4352x128xf32>
    %10 = arith.mulf %9, %8 : vector<4352x128xf32>
    %c0_3 = arith.constant 0 : index
    %c0_4 = arith.constant 0 : index
    %11 = vector.load %arg3[%c0_3, %c0_4] : memref<4352x128xf32, #tpu.memory_space<vmem>>, vector<4352x128xf32>
    tpu.vector_store %arg3[%c0_3, %c0_4], %10 {strides = array<i32>} : memref<4352x128xf32, #tpu.memory_space<vmem>>, vector<4352x128xf32>,
    return
  }
  func.func @transform_0(%arg0: i32) -> i32 {
    %c0_i32 = arith.constant 0 : i32
    %c0_i32_0 = arith.constant 0 : i32
    return %c0_i32 : i32
  }
  func.func @transform_1(%arg0: i32) -> (i32, i32) {
    %c0_i32 = arith.constant 0 : i32
    %c0_i32_0 = arith.constant 0 : i32
    return %arg0, %c0_i32 : i32, i32
  }
  func.func @transform_2(%arg0: i32) -> (i32, i32) {
    %c0_i32 = arith.constant 0 : i32
    %c0_i32_0 = arith.constant 0 : i32
    return %arg0, %c0_i32 : i32, i32
  }
}

</mosaic_0001>

<bundles_post_ra>
// kernel: tpu_custom_call.1
= control target key start
LH: loop header
LB: loop body
LE: loop exit
PB: predicated region body
PF: predicated region fallthrough
CT: control target
= control target key end

     0   :  { %s11485_s0 = inlined_call_operand.<no memory space> [shape: f32[1], index: 0, kind: input, shape index: {}]   ;;  %s11486_s1 = inlined_call_operand.hbm [shape: f32[8704,128], index: 1, kind: input, shape index: {}]   ;;  %s11487_s2 = inlined_call_operand.hbm [shape: f32[8704,128], index: 2, kind: output, shape index: {}]  }
   0x1   :  { %7 = sst [smem:[#allocation2]] %s11485_s0 }
   0x2   :  { %8 = vsyncpa [#allocation4], 0 }
   0x3   :  { %10 = vsyncpa [#allocation4 + $0x1], 0 }
   0x4   :  { %11 = vsyncpa [#allocation5], 0 }
   0x5   :  { %13 = vsyncpa [#allocation5 + $0x1], 0  ;;  %s9686_s11 = smov 0   ;;  %s9688_s12 = smov 0  }
   0x6   :  { %s9690_s13 = smov 0   ;;  %s9692_s14 = smov 0  }
   0x7 LB: > { %s9707_s0 = sadd.s32 4294967295, %s9660_s14   ;;  %s6238_s15 = sadd.s32 4294967294, %s9660_s14   ;;  %s9660_s14 = sphi %s9692_s14, %s11499_s14   ;;  %s9656_s13 = sphi %s9690_s13, %s11498_s13   ;;  %s9652_s12 = sphi %s9688_s12, %s11497_s12   ;;  %s9648_s11 = sphi %s9686_s11, %s11496_s11  }
   0x8   : > { %s9711_s16 = sadd.s32 1, %s9660_s14   ;;  %s47_s17 = sadd.s32 1, %s9656_s13 }
   0x9   : > { %s44_s18 = ssub.s32 %s9660_s14, %s9711_s16  ;;  %p54_p0 = scmp.ne.s32.totalorder %s9656_s13, %s9652_s12 }
   0xa   : > { %p45_p1 = scmp.eq.s32.totalorder %s44_s18, 0  ;;  %p55_p2 = scmp.eq.s32.totalorder %s9660_s14, 0 }
   0xb   : > { %p60_p3 = scmp.ne.s32.totalorder %s9652_s12, %s9648_s11  ;;  %p61_p4 = scmp.eq.s32.totalorder %s9707_s0, 0 }
   0xc   : > { %s9723_s19 = scalar_select %p45_p1, %s9656_s13, %s47_s17  }
   0xd   : > { %p56_p5 = por %p55_p2, %p54_p0  ;;  %p9725_p6 = por %p61_p4, %p60_p3 }
   0xe   : > { %p84_p7 = scmp.eq.s32.totalorder %s9707_s0, 1  ;;  %p90_p8 = scmp.eq.s32.totalorder %s6238_s15, 1 }
   0xf   : > { %p6262_p10 = scmp.lt.s32.totalorder %s9660_s14, 2  ;;  %s113_s23 = sand.u32 1, %s9656_s13  }
  0x10   : > { %p9732_p11 = por %p84_p7, %p54_p0  ;;  %p9736_p12 = por %p90_p8, %p60_p3 }
  0x11   : > { %s6246_s24 = smul.u32 69632, %s9660_s14  ;;  %p9747_p13 = pnand %p6262_p10, %p56_p5 }
  0x12   : > { %s11490_s21 = scalar_select %p9732_p11, 1, 0 }
  0x13   : > { %s11491_s22 = scalar_select %p9736_p12, 1, 0 }
  0x14   : > { %s6248_s25 = smul.u32 4352, %s113_s23  ;;  %s9745_s28 = scalar_lea.hbm %s11486_s1, %s6246_s24 }
  0x15   : > { %s9753_s4 = scalar_lea.sflag [#allocation4], %s113_s23  ;;  %s9564_s5 = scalar_lea.hbm %s9745_s28, 69632 }
  0x16   : > { %s117_s30 = scalar_lea.vmem [#allocation3], %s6248_s25  ;;  %p9565_p0 = scmp.ne.s32.totalorder %s9745_s28, %s9564_s5 }
  0x17   : > { %s124_s3 = sshll.u32 %s117_s30, 4  ;;  %p9566_p1 = pneg %p9747_p13  ;;  %s9751_s3 = int_to_ptr.vmem [resolvable:$true] %s124_s3 }
  0x18   : > { %s9569_s8 = scalar_lea.hbm %s11486_s1, 139264  ;;  %p9570_p4 = scmp.lt.u32.totalorder %s9745_s28, %s11486_s1 }
  0x19   : > { %p9567_p2 = pnand %p9566_p1, %p9565_p0  ;;  %p9571_p5 = scmp.lt.u32.totalorder %s9569_s8, %s9564_s5 }
  0x1a   : > { %p9573_p8 = scmp.lt.u32.totalorder %s9564_s5, %s9745_s28 }
  0x1b   : > { %p9568_p3 = pneg %p9567_p2  ;;  %p9572_p7 = por %p9571_p5, %p9570_p4 }
  0x1d   : > { %p9574_p10 = por %p9573_p8, %p9572_p7 }
  0x1f   : > { %p9575_p9 = pnand %p9574_p10, %p9568_p3 }
  0x21   : > { %9578 = shalt.err (!%p9575_p9)
}
  0x22   : > { %s9579_s15 = scalar_lea.vmem %s9751_s3, 69632  ;;  %s9662_s17 = smov [#allocation3]  }
  0x23   : > { %p9580_p0 = scmp.ne.s32.totalorder %s9751_s3, %s9579_s15  ;;  %s9584_s18 = sshll.u32 %s9662_s17, 4  ;;  %s9585_s18 = int_to_ptr.vmem [resolvable:$false] %s9584_s18 }
  0x24   : > { %s9586_s23 = scalar_lea.vmem %s9585_s18, 139264  ;;  %p9587_p11 = scmp.lt.s32.totalorder %s9751_s3, %s9585_s18 }
  0x25   : > { %p9582_p2 = pnand %p9580_p0, %p9566_p1  ;;  %p9588_p4 = scmp.lt.s32.totalorder %s9586_s23, %s9579_s15 }
  0x27   : > { %p9583_p12 = pneg %p9582_p2  ;;  %p9589_p5 = por %p9588_p4, %p9587_p11 }
  0x29   : > { %p9590_p7 = pnand %p9589_p5, %p9583_p12 }
  0x2b   : > { %9593 = shalt.err (!%p9590_p7)
}
  0x2c   : > { %s9663_s24 = smov 128   ;;  %s9664_s25 = smov 8  }
  0x2d   : > { %6257 = dma.hbm_to_vmem [thread:$0]  (!%p9747_p13), %s9745_s28, 69632, %s9751_s3, %s9753_s4, %s9663_s24, %s9663_s24, %s9664_s25  }
  0x2e   : > { %p6242_p9 = scmp.ge.s32.totalorder %s9660_s14, 1  ;;  %p132_p1 = scmp.lt.s32.totalorder %s9660_s14, 3 }
  0x30   : > { %p133_p3 = pnand %p6242_p9, %p132_p1 }
  0x31   : > { %s9784_s26 = sand.u32 (!%p133_p3), 1, %s9652_s12  }
  0x32   : > { %136 = sbr.rel (%p133_p3) target bundleno = 1739 (0x6cb), region = 28  ;;  %s139_s30 = scalar_lea.sflag (!%p133_p3), [#allocation4], %s9784_s26 }
  0x33   : > { %s6249_s27 = smul.u32 (!%p133_p3), 4352, %s9784_s26 }
  0x35   : > { %s9790_s5 = scalar_lea.vmem (!%p133_p3), [#allocation3], %s6249_s27 }
  0x39   : > { %9639 = dma.done.wait (%p9725_p6), %s139_s30, 69632  }
  0x3a   : > { %9641 = vsyncadd (%p9725_p6), %s139_s30, 4294897664  ;;  %s709_s28 = sld [smem:[#allocation2]]  ;;  %v165_v0 = vld [vmem:[%s9790_s5] sm:$0xff]  ;;  %v166_v2 = vld [vmem:[%s9790_s5 + $0x8] sm:$0xff]  ;;  %s9837_s20 = scalar_lea.vmem [#allocation6], %s6249_s27 }
  0x3b   : > { %v167_v3 = vld [vmem:[%s9790_s5 + $0x10] sm:$0xff]  ;;  %v168_v7 = vld [vmem:[%s9790_s5 + $0x18] sm:$0xff]  ;;  %v169_v8 = vld [vmem:[%s9790_s5 + $0x20] sm:$0xff]  ;;  %s6247_s29 = smul.u32 69632, %s9707_s0  ;;  %s6165_s3 = sshll.u32 %s9837_s20, 4  ;;  %s11438_s3 = int_to_ptr.vmem [resolvable:$true] %s6165_s3 }
  0x3c   : > { %v170_v9 = vld [vmem:[%s9790_s5 + $0x28] sm:$0xff]  ;;  %v171_v11 = vld [vmem:[%s9790_s5 + $0x30] sm:$0xff]  ;;  %v172_v13 = vld [vmem:[%s9790_s5 + $0x38] sm:$0xff]  ;;  %s6152_s0 = scalar_lea.sflag [#allocation5], %s9784_s26  ;;  %s9594_s8 = scalar_lea.vmem %s11438_s3, 69632 }
  0x3d   : > { %v173_v15 = vld [vmem:[%s9790_s5 + $0x40] sm:$0xff]  ;;  %v174_v17 = vld [vmem:[%s9790_s5 + $0x48] sm:$0xff]  ;;  %v175_v19 = vld [vmem:[%s9790_s5 + $0x50] sm:$0xff]  ;;  %s11436_s7 = scalar_lea.hbm %s11487_s2, %s6247_s29  ;;  %p9595_p6 = scmp.ne.s32.totalorder %s11438_s3, %s9594_s8 }
  0x3e   : > { %v176_v21 = vld [vmem:[%s9790_s5 + $0x58] sm:$0xff]  ;;  %v177_v23 = vld [vmem:[%s9790_s5 + $0x60] sm:$0xff]  ;;  %v178_v46 = vld [vmem:[%s9790_s5 + $0x68] sm:$0xff]  ;;  %p11493_p11 = scmp.ne.s32.totalorder %s11490_s21, 0  ;;  %s9665_s9 = smov [#allocation6]  }
  0x3f   : > { %v179_v49 = vld [vmem:[%s9790_s5 + $0x70] sm:$0xff]  ;;  %v180_v52 = vld [vmem:[%s9790_s5 + $0x78] sm:$0xff]  ;;  %v181_v56 = vld [vmem:[%s9790_s5 + $0x80] sm:$0xff]  ;;  %s9598_s10 = sshll.u32 %s9665_s9, 4  ;;  %s9599_s10 = int_to_ptr.vmem [resolvable:$false] %s9598_s10 }
  0x40   : > { %v9797_v1 = vstv %s709_s28  ;;  %p9596_p12 = pnand %p9595_p6, %p11493_p11  ;;  %s9600_s15 = scalar_lea.vmem %s9599_s10, 139264 }
  0x41   : > { %v711_v4 = vmul.f32 %v9797_v1, %v165_v0  ;;  %v712_v5 = vmul.f32 %v9797_v1, %v166_v2  ;;  %v713_v6 = vmul.f32 %v9797_v1, %v167_v3  ;;  %v714_v10 = vmul.f32 %v9797_v1, %v168_v7  ;;  %p9601_p8 = scmp.lt.s32.totalorder %s11438_s3, %s9599_s10  ;;  %p9602_p10 = scmp.lt.s32.totalorder %s9600_s15, %s9594_s8 }
  0x42   : > { %v715_v12 = vmul.f32 %v9797_v1, %v169_v8  ;;  %v716_v14 = vmul.f32 %v9797_v1, %v170_v9  ;;  %v717_v16 = vmul.f32 %v9797_v1, %v171_v11  ;;  %v718_v18 = vmul.f32 %v9797_v1, %v172_v13  ;;  %p9597_p13 = pneg %p9596_p12 }
  0x43   : > { %6300 = vlog2.f32 %v711_v4  ;;  %v719_v20 = vmul.f32 %v9797_v1, %v173_v15  ;;  %v720_v22 = vmul.f32 %v9797_v1, %v174_v17  ;;  %v721_v24 = vmul.f32 %v9797_v1, %v175_v19  ;;  %p9603_p0 = por %p9602_p10, %p9601_p8 }
  0x44   : > { %6302 = vlog2.f32 %v712_v5  ;;  %v722_v25 = vmul.f32 %v9797_v1, %v176_v21  ;;  %v723_v26 = vmul.f32 %v9797_v1, %v177_v23  ;;  %v724_v55 = vmul.f32 %v9797_v1, %v178_v46 }
  0x45   : > { %6304 = vlog2.f32 %v713_v6  ;;  %v725_v59 = vmul.f32 %v9797_v1, %v179_v49  ;;  %v726_v62 = vmul.f32 %v9797_v1, %v180_v52  ;;  %v727_v2 = vmul.f32 %v9797_v1, %v181_v56  ;;  %p9604_p2 = pnand %p9603_p0, %p9597_p13 }
  0x46   : > { %6306 = vlog2.f32 %v714_v10 }
  0x47   : > { %6308 = vlog2.f32 %v715_v12 }
  0x48   : > { %6310 = vlog2.f32 %v716_v14 }
  0x49   : > { %6312 = vlog2.f32 %v717_v16 }
  0x4a   : > { %6314 = vlog2.f32 %v718_v18 }
  0x4b   : > { %6316 = vlog2.f32 %v719_v20 }
  0x4c   : > { %6318 = vlog2.f32 %v720_v22 }
  0x4d   : > { %v6301_v27 = vpop.eup %6300  ;;  %6320 = vlog2.f32 %v721_v24 }
  0x4e   : > { %v6303_v28 = vpop.eup %6302  ;;  %v1256_v29 = vmul.f32 0.6931472, %v6301_v27  ;;  %6322 = vlog2.f32 %v722_v25 }
  0x4f   : > { %v6305_v30 = vpop.eup %6304  ;;  %v1258_v31 = vmul.f32 0.6931472, %v6303_v28  ;;  %6324 = vlog2.f32 %v723_v26 }
  0x50   : > { %v6307_v32 = vpop.eup %6306  ;;  %6326 = vlog2.f32 %v1256_v29  ;;  %v1260_v33 = vmul.f32 0.6931472, %v6305_v30 }
  0x51   : > { %v6309_v34 = vpop.eup %6308  ;;  %6328 = vlog2.f32 %v1258_v31  ;;  %v1262_v35 = vmul.f32 0.6931472, %v6307_v32 }
  0x52   : > { %v6311_v36 = vpop.eup %6310  ;;  %6330 = vlog2.f32 %v1260_v33  ;;  %v1264_v37 = vmul.f32 0.6931472, %v6309_v34 }
  0x53   : > { %v6313_v38 = vpop.eup %6312  ;;  %6332 = vlog2.f32 %v1262_v35  ;;  %v1266_v39 = vmul.f32 0.6931472, %v6311_v36 }
  0x54   : > { %v6315_v40 = vpop.eup %6314  ;;  %6334 = vlog2.f32 %v1264_v37  ;;  %v1268_v41 = vmul.f32 0.6931472, %v6313_v38 }
  0x55   : > { %v6317_v42 = vpop.eup %6316  ;;  %6336 = vlog2.f32 %v1266_v39  ;;  %v1270_v43 = vmul.f32 0.6931472, %v6315_v40 }
  0x56   : > { %v6319_v44 = vpop.eup %6318  ;;  %6338 = vlog2.f32 %v1268_v41  ;;  %v1272_v45 = vmul.f32 0.6931472, %v6317_v42 }
  0x57   : > { %v6321_v47 = vpop.eup %6320  ;;  %6340 = vlog2.f32 %v1270_v43  ;;  %v1274_v48 = vmul.f32 0.6931472, %v6319_v44 }
  0x58   : > { %v6323_v50 = vpop.eup %6322  ;;  %6342 = vlog2.f32 %v1272_v45  ;;  %v1276_v51 = vmul.f32 0.6931472, %v6321_v47 }
  0x59   : > { %v6325_v53 = vpop.eup %6324  ;;  %6344 = vlog2.f32 %v1274_v48  ;;  %v1278_v54 = vmul.f32 0.6931472, %v6323_v50 }
  0x5a   : > { %v6327_v57 = vpop.eup %6326  ;;  %6346 = vlog2.f32 %v1276_v51  ;;  %v1280_v58 = vmul.f32 0.6931472, %v6325_v53 }
  0x5b   : > { %v6329_v60 = vpop.eup %6328  ;;  %v2344_v61 = vmul.f32 0.6931472, %v6327_v57  ;;  %6348 = vlog2.f32 %v1278_v54  ;;  %v182_v57 = vld [vmem:[%s9790_s5 + $0x88] sm:$0xff] }
  0x5c   : > { %v6331_v63 = vpop.eup %6330  ;;  %v2346_v0 = vmul.f32 0.6931472, %v6329_v60  ;;  %6350 = vlog2.f32 %v1280_v58 }
  0x5d   : > { %v6333_v3 = vpop.eup %6332  ;;  %v3431_v4 = vmul.f32 0.6, %v2344_v61  ;;  %v2348_v5 = vmul.f32 0.6931472, %v6331_v63  ;;  %6352 = vlog2.f32 %v724_v55  ;;  %v183_v61 = vld [vmem:[%s9790_s5 + $0x90] sm:$0xff] }
  0x5e   : > { %v6335_v6 = vpop.eup %6334  ;;  %v3432_v7 = vmul.f32 0.6, %v2346_v0  ;;  %v2350_v8 = vmul.f32 0.6931472, %v6333_v3  ;;  %6354 = vlog2.f32 %v725_v59 }
  0x5f   : > { %v6337_v9 = vpop.eup %6336  ;;  %v3975_v10 = vmul.f32 1.442695, %v3431_v4  ;;  %v3433_v11 = vmul.f32 0.6, %v2348_v5  ;;  %v2352_v12 = vmul.f32 0.6931472, %v6335_v6  ;;  %6356 = vlog2.f32 %v726_v62 }
  0x60   : > { %v6339_v13 = vpop.eup %6338  ;;  %v3977_v14 = vmul.f32 1.442695, %v3432_v7  ;;  %v3434_v15 = vmul.f32 0.6, %v2350_v8  ;;  %v2354_v16 = vmul.f32 0.6931472, %v6337_v9  ;;  %6358 = vlog2.f32 %v727_v2 }
  0x61   : > { %v6341_v17 = vpop.eup %6340  ;;  %6360 = vpow2.f32 %v3975_v10  ;;  %v3979_v18 = vmul.f32 1.442695, %v3433_v11  ;;  %v3435_v19 = vmul.f32 0.6, %v2352_v12  ;;  %v2356_v20 = vmul.f32 0.6931472, %v6339_v13 }
  0x62   : > { %v6343_v21 = vpop.eup %6342  ;;  %6362 = vpow2.f32 %v3977_v14  ;;  %v3981_v22 = vmul.f32 1.442695, %v3434_v15  ;;  %v3436_v23 = vmul.f32 0.6, %v2354_v16  ;;  %v2358_v24 = vmul.f32 0.6931472, %v6341_v17 }
  0x63   : > { %v6345_v25 = vpop.eup %6344  ;;  %6364 = vpow2.f32 %v3979_v18  ;;  %v3983_v26 = vmul.f32 1.442695, %v3435_v19  ;;  %v3437_v27 = vmul.f32 0.6, %v2356_v20  ;;  %v2360_v28 = vmul.f32 0.6931472, %v6343_v21 }
  0x64   : > { %v6347_v29 = vpop.eup %6346  ;;  %6366 = vpow2.f32 %v3981_v22  ;;  %v3985_v30 = vmul.f32 1.442695, %v3436_v23  ;;  %v3438_v31 = vmul.f32 0.6, %v2358_v24  ;;  %v2362_v32 = vmul.f32 0.6931472, %v6345_v25 }
  0x65   : > { %v6349_v33 = vpop.eup %6348  ;;  %6368 = vpow2.f32 %v3983_v26  ;;  %v3987_v34 = vmul.f32 1.442695, %v3437_v27  ;;  %v3439_v35 = vmul.f32 0.6, %v2360_v28  ;;  %v2364_v36 = vmul.f32 0.6931472, %v6347_v29 }
  0x66   : > { %v6351_v37 = vpop.eup %6350  ;;  %6370 = vpow2.f32 %v3985_v30  ;;  %v3989_v38 = vmul.f32 1.442695, %v3438_v31  ;;  %v3440_v39 = vmul.f32 0.6, %v2362_v32  ;;  %v2366_v40 = vmul.f32 0.6931472, %v6349_v33 }
  0x67   : > { %v6353_v41 = vpop.eup %6352  ;;  %6372 = vpow2.f32 %v3987_v34  ;;  %v3991_v42 = vmul.f32 1.442695, %v3439_v35  ;;  %v3441_v43 = vmul.f32 0.6, %v2364_v36  ;;  %v2368_v44 = vmul.f32 0.6931472, %v6351_v37 }
  0x68   : > { %v6355_v45 = vpop.eup %6354  ;;  %6374 = vpow2.f32 %v3989_v38  ;;  %v3993_v46 = vmul.f32 1.442695, %v3440_v39  ;;  %v3442_v47 = vmul.f32 0.6, %v2366_v40  ;;  %v1282_v53 = vmul.f32 0.6931472, %v6353_v41 }
  0x69   : > { %v6357_v48 = vpop.eup %6356  ;;  %6376 = vpow2.f32 %v3991_v42  ;;  %v3995_v49 = vmul.f32 1.442695, %v3441_v43  ;;  %v3443_v50 = vmul.f32 0.6, %v2368_v44  ;;  %v1284_v56 = vmul.f32 0.6931472, %v6355_v45 }
  0x6a   : > { %v6359_v51 = vpop.eup %6358  ;;  %6378 = vpow2.f32 %v3993_v46  ;;  %v3997_v52 = vmul.f32 1.442695, %v3442_v47  ;;  %v1286_v60 = vmul.f32 0.6931472, %v6357_v48  ;;  %v184_v2 = vld [vmem:[%s9790_s5 + $0x98] sm:$0xff]  ;;  %v728_v5 = vmul.f32 %v9797_v1, %v182_v57  ;;  %v185_v6 = vld [vmem:[%s9790_s5 + $0xa0] sm:$0xff] }
  0x6b   : > { %v6361_v54 = vpop.eup %6360  ;;  %6380 = vpow2.f32 %v3995_v49  ;;  %v3999_v55 = vmul.f32 1.442695, %v3443_v50  ;;  %v1288_v0 = vmul.f32 0.6931472, %v6359_v51  ;;  %v729_v9 = vmul.f32 %v9797_v1, %v183_v61  ;;  %v186_v10 = vld [vmem:[%s9790_s5 + $0xa8] sm:$0xff]  ;;  %v187_v14 = vld [vmem:[%s9790_s5 + $0xb0] sm:$0xff] }
  0x6c   : > { %v6363_v58 = vpop.eup %6362  ;;  %v5063_v59 = vmul.f32 0.2, %v6361_v54  ;;  %6382 = vpow2.f32 %v3997_v52  ;;  %v730_v13 = vmul.f32 %v9797_v1, %v184_v2  ;;  %v731_v17 = vmul.f32 %v9797_v1, %v185_v6  ;;  %v188_v18 = vld [vmem:[%s9790_s5 + $0xb8] sm:$0xff]  ;;  %v189_v22 = vld [vmem:[%s9790_s5 + $0xc0] sm:$0xff]  ;;  %v190_v26 = vld [vmem:[%s9790_s5 + $0xc8] sm:$0xff] }
  0x6d   : > { %v6365_v62 = vpop.eup %6364  ;;  %v5064_v63 = vmul.f32 0.2, %v6363_v58  ;;  %6384 = vpow2.f32 %v3999_v55  ;;  %v732_v21 = vmul.f32 %v9797_v1, %v186_v10  ;;  %v733_v25 = vmul.f32 %v9797_v1, %v187_v14  ;;  %v191_v30 = vld [vmem:[%s9790_s5 + $0xd0] sm:$0xff]  ;;  %v192_v34 = vld [vmem:[%s9790_s5 + $0xd8] sm:$0xff]  ;;  %v193_v38 = vld [vmem:[%s9790_s5 + $0xe0] sm:$0xff] }
  0x6e   : > { %v6367_v3 = vpop.eup %6366  ;;  %5607 = vst [vmem:[%s9837_s20] sm:$0xff] %v5063_v59  ;;  %v5065_v4 = vmul.f32 0.2, %v6365_v62  ;;  %6386 = vlog2.f32 %v1282_v53  ;;  %v734_v29 = vmul.f32 %v9797_v1, %v188_v18  ;;  %v735_v33 = vmul.f32 %v9797_v1, %v189_v22  ;;  %v194_v42 = vld [vmem:[%s9790_s5 + $0xe8] sm:$0xff] }
  0x6f   : > { %v6369_v7 = vpop.eup %6368  ;;  %5608 = vst [vmem:[%s9837_s20 + $0x8] sm:$0xff] %v5064_v63  ;;  %v5066_v8 = vmul.f32 0.2, %v6367_v3  ;;  %6388 = vlog2.f32 %v1284_v56  ;;  %v736_v37 = vmul.f32 %v9797_v1, %v190_v26  ;;  %v737_v41 = vmul.f32 %v9797_v1, %v191_v30 }
  0x70   : > { %v6371_v11 = vpop.eup %6370  ;;  %5609 = vst [vmem:[%s9837_s20 + $0x10] sm:$0xff] %v5065_v4  ;;  %v5067_v12 = vmul.f32 0.2, %v6369_v7  ;;  %6390 = vlog2.f32 %v1286_v60  ;;  %v738_v45 = vmul.f32 %v9797_v1, %v192_v34  ;;  %v739_v48 = vmul.f32 %v9797_v1, %v193_v38 }
  0x71   : > { %v6373_v15 = vpop.eup %6372  ;;  %5610 = vst [vmem:[%s9837_s20 + $0x18] sm:$0xff] %v5066_v8  ;;  %v5068_v16 = vmul.f32 0.2, %v6371_v11  ;;  %6392 = vlog2.f32 %v1288_v0  ;;  %v740_v51 = vmul.f32 %v9797_v1, %v194_v42 }
  0x72   : > { %v6375_v19 = vpop.eup %6374  ;;  %5611 = vst [vmem:[%s9837_s20 + $0x20] sm:$0xff] %v5067_v12  ;;  %v5069_v20 = vmul.f32 0.2, %v6373_v15  ;;  %6394 = vlog2.f32 %v728_v5 }
  0x73   : > { %v6377_v23 = vpop.eup %6376  ;;  %5612 = vst [vmem:[%s9837_s20 + $0x28] sm:$0xff] %v5068_v16  ;;  %v5070_v24 = vmul.f32 0.2, %v6375_v19  ;;  %6396 = vlog2.f32 %v729_v9 }
  0x74   : > { %v6379_v27 = vpop.eup %6378  ;;  %5613 = vst [vmem:[%s9837_s20 + $0x30] sm:$0xff] %v5069_v20  ;;  %v5071_v28 = vmul.f32 0.2, %v6377_v23  ;;  %6398 = vlog2.f32 %v730_v13 }
  0x75   : > { %v6381_v31 = vpop.eup %6380  ;;  %5614 = vst [vmem:[%s9837_s20 + $0x38] sm:$0xff] %v5070_v24  ;;  %v5072_v32 = vmul.f32 0.2, %v6379_v27  ;;  %6400 = vlog2.f32 %v731_v17 }
  0x76   : > { %v6383_v35 = vpop.eup %6382  ;;  %5615 = vst [vmem:[%s9837_s20 + $0x40] sm:$0xff] %v5071_v28  ;;  %v5073_v36 = vmul.f32 0.2, %v6381_v31  ;;  %6402 = vlog2.f32 %v732_v21 }
  0x77   : > { %v6385_v39 = vpop.eup %6384  ;;  %5616 = vst [vmem:[%s9837_s20 + $0x48] sm:$0xff] %v5072_v32  ;;  %v5074_v40 = vmul.f32 0.2, %v6383_v35  ;;  %6404 = vlog2.f32 %v733_v25  ;;  %v195_v25 = vld [vmem:[%s9790_s5 + $0xf0] sm:$0xff] }
  0x78   : > { %v6387_v43 = vpop.eup %6386  ;;  %5617 = vst [vmem:[%s9837_s20 + $0x50] sm:$0xff] %v5073_v36  ;;  %v5075_v44 = vmul.f32 0.2, %v6385_v39  ;;  %6406 = vlog2.f32 %v734_v29  ;;  %v196_v29 = vld [vmem:[%s9790_s5 + $0xf8] sm:$0xff]  ;;  %v741_v36 = vmul.f32 %v9797_v1, %v195_v25 }
  0x79   : > { %v6389_v46 = vpop.eup %6388  ;;  %5618 = vst [vmem:[%s9837_s20 + $0x58] sm:$0xff] %v5074_v40  ;;  %v2370_v47 = vmul.f32 0.6931472, %v6387_v43  ;;  %6408 = vlog2.f32 %v735_v33  ;;  %v197_v33 = vld [vmem:[%s9790_s5 + $0x100] sm:$0xff]  ;;  %v742_v40 = vmul.f32 %v9797_v1, %v196_v29 }
  0x7a   : > { %v6391_v49 = vpop.eup %6390  ;;  %5619 = vst [vmem:[%s9837_s20 + $0x60] sm:$0xff] %v5075_v44  ;;  %v2372_v50 = vmul.f32 0.6931472, %v6389_v46  ;;  %6410 = vlog2.f32 %v736_v37  ;;  %v198_v37 = vld [vmem:[%s9790_s5 + $0x108] sm:$0xff]  ;;  %v743_v43 = vmul.f32 %v9797_v1, %v197_v33 }
  0x7b   : > { %v6393_v52 = vpop.eup %6392  ;;  %v3444_v53 = vmul.f32 0.6, %v2370_v47  ;;  %v2374_v54 = vmul.f32 0.6931472, %v6391_v49  ;;  %6412 = vlog2.f32 %v737_v41  ;;  %v744_v46 = vmul.f32 %v9797_v1, %v198_v37 }
  0x7c   : > { %v6395_v55 = vpop.eup %6394  ;;  %v3445_v56 = vmul.f32 0.6, %v2372_v50  ;;  %v2376_v57 = vmul.f32 0.6931472, %v6393_v52  ;;  %6414 = vlog2.f32 %v738_v45 }
  0x7d   : > { %v6397_v58 = vpop.eup %6396  ;;  %v4001_v59 = vmul.f32 1.442695, %v3444_v53  ;;  %v3446_v60 = vmul.f32 0.6, %v2374_v54  ;;  %6416 = vlog2.f32 %v739_v48  ;;  %v1290_v3 = vmul.f32 0.6931472, %v6395_v55 }
  0x7e   : > { %v6399_v61 = vpop.eup %6398  ;;  %v4003_v62 = vmul.f32 1.442695, %v3445_v56  ;;  %v3447_v63 = vmul.f32 0.6, %v2376_v57  ;;  %6418 = vlog2.f32 %v740_v51  ;;  %v1292_v6 = vmul.f32 0.6931472, %v6397_v58 }
  0x7f   : > { %v6401_v0 = vpop.eup %6400  ;;  %6420 = vpow2.f32 %v4001_v59  ;;  %v4005_v2 = vmul.f32 1.442695, %v3446_v60  ;;  %v1294_v8 = vmul.f32 0.6931472, %v6399_v61 }
  0x80   : > { %v6403_v4 = vpop.eup %6402  ;;  %6422 = vpow2.f32 %v4003_v62  ;;  %v4007_v5 = vmul.f32 1.442695, %v3447_v63  ;;  %v1296_v10 = vmul.f32 0.6931472, %v6401_v0 }
  0x81   : > { %v6405_v7 = vpop.eup %6404  ;;  %6424 = vpow2.f32 %v4005_v2  ;;  %v1298_v12 = vmul.f32 0.6931472, %v6403_v4 }
  0x82   : > { %v6407_v9 = vpop.eup %6406  ;;  %6426 = vpow2.f32 %v4007_v5  ;;  %v1300_v14 = vmul.f32 0.6931472, %v6405_v7 }
  0x83   : > { %v6409_v11 = vpop.eup %6408  ;;  %6428 = vlog2.f32 %v1290_v3  ;;  %v1302_v16 = vmul.f32 0.6931472, %v6407_v9 }
  0x84   : > { %v6411_v13 = vpop.eup %6410  ;;  %6430 = vlog2.f32 %v1292_v6  ;;  %v1304_v18 = vmul.f32 0.6931472, %v6409_v11 }
  0x85   : > { %v6413_v15 = vpop.eup %6412  ;;  %6432 = vlog2.f32 %v1294_v8  ;;  %v1306_v20 = vmul.f32 0.6931472, %v6411_v13 }
  0x86   : > { %v6415_v17 = vpop.eup %6414  ;;  %6434 = vlog2.f32 %v1296_v10  ;;  %v1308_v22 = vmul.f32 0.6931472, %v6413_v15 }
  0x87   : > { %v6417_v19 = vpop.eup %6416  ;;  %6436 = vlog2.f32 %v1298_v12  ;;  %v1310_v24 = vmul.f32 0.6931472, %v6415_v17 }
  0x88   : > { %v6419_v21 = vpop.eup %6418  ;;  %6438 = vlog2.f32 %v1300_v14  ;;  %v1312_v28 = vmul.f32 0.6931472, %v6417_v19 }
  0x89   : > { %v6421_v23 = vpop.eup %6420  ;;  %6440 = vlog2.f32 %v1302_v16  ;;  %v1314_v32 = vmul.f32 0.6931472, %v6419_v21 }
  0x8a   : > { %v6423_v26 = vpop.eup %6422  ;;  %v5076_v27 = vmul.f32 0.2, %v6421_v23  ;;  %6442 = vlog2.f32 %v1304_v18 }
  0x8b   : > { %v6425_v30 = vpop.eup %6424  ;;  %v5077_v31 = vmul.f32 0.2, %v6423_v26  ;;  %6444 = vlog2.f32 %v1306_v20 }
  0x8c   : > { %v6427_v34 = vpop.eup %6426  ;;  %5620 = vst [vmem:[%s9837_s20 + $0x68] sm:$0xff] %v5076_v27  ;;  %v5078_v35 = vmul.f32 0.2, %v6425_v30  ;;  %6446 = vlog2.f32 %v1308_v22 }
  0x8d   : > { %v6429_v38 = vpop.eup %6428  ;;  %5621 = vst [vmem:[%s9837_s20 + $0x70] sm:$0xff] %v5077_v31  ;;  %v5079_v39 = vmul.f32 0.2, %v6427_v34  ;;  %6448 = vlog2.f32 %v1310_v24 }
  0x8e   : > { %v6431_v41 = vpop.eup %6430  ;;  %5622 = vst [vmem:[%s9837_s20 + $0x78] sm:$0xff] %v5078_v35  ;;  %v2378_v42 = vmul.f32 0.6931472, %v6429_v38  ;;  %6450 = vlog2.f32 %v1312_v28  ;;  %v199_v38 = vld [vmem:[%s9790_s5 + $0x110] sm:$0xff] }
  0x8f   : > { %v6433_v44 = vpop.eup %6432  ;;  %5623 = vst [vmem:[%s9837_s20 + $0x80] sm:$0xff] %v5079_v39  ;;  %v2380_v45 = vmul.f32 0.6931472, %v6431_v41  ;;  %6452 = vlog2.f32 %v1314_v32 }
  0x90   : > { %v6435_v47 = vpop.eup %6434  ;;  %v3448_v48 = vmul.f32 0.6, %v2378_v42  ;;  %v2382_v49 = vmul.f32 0.6931472, %v6433_v44  ;;  %6454 = vlog2.f32 %v741_v36  ;;  %v200_v42 = vld [vmem:[%s9790_s5 + $0x118] sm:$0xff] }
  0x91   : > { %v6437_v50 = vpop.eup %6436  ;;  %v3449_v51 = vmul.f32 0.6, %v2380_v45  ;;  %v2384_v52 = vmul.f32 0.6931472, %v6435_v47  ;;  %6456 = vlog2.f32 %v742_v40 }
  0x92   : > { %v6439_v53 = vpop.eup %6438  ;;  %v4009_v54 = vmul.f32 1.442695, %v3448_v48  ;;  %v3450_v55 = vmul.f32 0.6, %v2382_v49  ;;  %v2386_v56 = vmul.f32 0.6931472, %v6437_v50  ;;  %6458 = vlog2.f32 %v743_v43 }
  0x93   : > { %v6441_v57 = vpop.eup %6440  ;;  %v4011_v58 = vmul.f32 1.442695, %v3449_v51  ;;  %v3451_v59 = vmul.f32 0.6, %v2384_v52  ;;  %v2388_v60 = vmul.f32 0.6931472, %v6439_v53  ;;  %6460 = vlog2.f32 %v744_v46 }
  0x94   : > { %v6443_v61 = vpop.eup %6442  ;;  %6462 = vpow2.f32 %v4009_v54  ;;  %v4013_v62 = vmul.f32 1.442695, %v3450_v55  ;;  %v3452_v63 = vmul.f32 0.6, %v2386_v56  ;;  %v2390_v0 = vmul.f32 0.6931472, %v6441_v57 }
  0x95   : > { %v6445_v2 = vpop.eup %6444  ;;  %6464 = vpow2.f32 %v4011_v58  ;;  %v4015_v3 = vmul.f32 1.442695, %v3451_v59  ;;  %v3453_v4 = vmul.f32 0.6, %v2388_v60  ;;  %v2392_v5 = vmul.f32 0.6931472, %v6443_v61 }
  0x96   : > { %v6447_v6 = vpop.eup %6446  ;;  %6466 = vpow2.f32 %v4013_v62  ;;  %v4017_v7 = vmul.f32 1.442695, %v3452_v63  ;;  %v3454_v8 = vmul.f32 0.6, %v2390_v0  ;;  %v2394_v9 = vmul.f32 0.6931472, %v6445_v2 }
  0x97   : > { %v6449_v10 = vpop.eup %6448  ;;  %6468 = vpow2.f32 %v4015_v3  ;;  %v4019_v11 = vmul.f32 1.442695, %v3453_v4  ;;  %v3455_v12 = vmul.f32 0.6, %v2392_v5  ;;  %v2396_v13 = vmul.f32 0.6931472, %v6447_v6 }
  0x98   : > { %v6451_v14 = vpop.eup %6450  ;;  %6470 = vpow2.f32 %v4017_v7  ;;  %v4021_v15 = vmul.f32 1.442695, %v3454_v8  ;;  %v3456_v16 = vmul.f32 0.6, %v2394_v9  ;;  %v2398_v17 = vmul.f32 0.6931472, %v6449_v10 }
  0x99   : > { %v6453_v18 = vpop.eup %6452  ;;  %6472 = vpow2.f32 %v4019_v11  ;;  %v4023_v19 = vmul.f32 1.442695, %v3455_v12  ;;  %v3457_v20 = vmul.f32 0.6, %v2396_v13  ;;  %v2400_v21 = vmul.f32 0.6931472, %v6451_v14 }
  0x9a   : > { %v6455_v22 = vpop.eup %6454  ;;  %6474 = vpow2.f32 %v4021_v15  ;;  %v4025_v23 = vmul.f32 1.442695, %v3456_v16  ;;  %v3458_v24 = vmul.f32 0.6, %v2398_v17  ;;  %v2402_v25 = vmul.f32 0.6931472, %v6453_v18 }
  0x9b   : > { %v6457_v26 = vpop.eup %6456  ;;  %6476 = vpow2.f32 %v4023_v19  ;;  %v4027_v27 = vmul.f32 1.442695, %v3457_v20  ;;  %v3459_v28 = vmul.f32 0.6, %v2400_v21  ;;  %v1316_v34 = vmul.f32 0.6931472, %v6455_v22 }
  0x9c   : > { %v6459_v29 = vpop.eup %6458  ;;  %6478 = vpow2.f32 %v4025_v23  ;;  %v4029_v30 = vmul.f32 1.442695, %v3458_v24  ;;  %v3460_v31 = vmul.f32 0.6, %v2402_v25  ;;  %v1318_v37 = vmul.f32 0.6931472, %v6457_v26 }
  0x9d   : > { %v6461_v32 = vpop.eup %6460  ;;  %6480 = vpow2.f32 %v4027_v27  ;;  %v4031_v33 = vmul.f32 1.442695, %v3459_v28  ;;  %v1320_v41 = vmul.f32 0.6931472, %v6459_v29  ;;  %v201_v46 = vld [vmem:[%s9790_s5 + $0x120] sm:$0xff]  ;;  %v745_v49 = vmul.f32 %v9797_v1, %v199_v38  ;;  %v202_v50 = vld [vmem:[%s9790_s5 + $0x128] sm:$0xff] }
  0x9e   : > { %v6463_v35 = vpop.eup %6462  ;;  %6482 = vpow2.f32 %v4029_v30  ;;  %v4033_v36 = vmul.f32 1.442695, %v3460_v31  ;;  %v1322_v45 = vmul.f32 0.6931472, %v6461_v32  ;;  %v746_v53 = vmul.f32 %v9797_v1, %v200_v42  ;;  %v203_v54 = vld [vmem:[%s9790_s5 + $0x130] sm:$0xff]  ;;  %v204_v58 = vld [vmem:[%s9790_s5 + $0x138] sm:$0xff] }
  0x9f   : > { %v6465_v39 = vpop.eup %6464  ;;  %v5080_v40 = vmul.f32 0.2, %v6463_v35  ;;  %6484 = vpow2.f32 %v4031_v33  ;;  %v747_v57 = vmul.f32 %v9797_v1, %v201_v46  ;;  %v748_v61 = vmul.f32 %v9797_v1, %v202_v50  ;;  %v205_v62 = vld [vmem:[%s9790_s5 + $0x140] sm:$0xff]  ;;  %v206_v3 = vld [vmem:[%s9790_s5 + $0x148] sm:$0xff]  ;;  %v207_v7 = vld [vmem:[%s9790_s5 + $0x150] sm:$0xff] }
  0xa0   : > { %v6467_v43 = vpop.eup %6466  ;;  %v5081_v44 = vmul.f32 0.2, %v6465_v39  ;;  %6486 = vpow2.f32 %v4033_v36  ;;  %v749_v2 = vmul.f32 %v9797_v1, %v203_v54  ;;  %v750_v6 = vmul.f32 %v9797_v1, %v204_v58  ;;  %v208_v11 = vld [vmem:[%s9790_s5 + $0x158] sm:$0xff]  ;;  %v209_v15 = vld [vmem:[%s9790_s5 + $0x160] sm:$0xff]  ;;  %v210_v19 = vld [vmem:[%s9790_s5 + $0x168] sm:$0xff] }
  0xa1   : > { %v6469_v47 = vpop.eup %6468  ;;  %5624 = vst [vmem:[%s9837_s20 + $0x88] sm:$0xff] %v5080_v40  ;;  %v5082_v48 = vmul.f32 0.2, %v6467_v43  ;;  %6488 = vlog2.f32 %v1316_v34  ;;  %v751_v10 = vmul.f32 %v9797_v1, %v205_v62  ;;  %v752_v14 = vmul.f32 %v9797_v1, %v206_v3  ;;  %v211_v23 = vld [vmem:[%s9790_s5 + $0x170] sm:$0xff] }
  0xa2   : > { %v6471_v51 = vpop.eup %6470  ;;  %5625 = vst [vmem:[%s9837_s20 + $0x90] sm:$0xff] %v5081_v44  ;;  %v5083_v52 = vmul.f32 0.2, %v6469_v47  ;;  %6490 = vlog2.f32 %v1318_v37  ;;  %v753_v18 = vmul.f32 %v9797_v1, %v207_v7  ;;  %v754_v22 = vmul.f32 %v9797_v1, %v208_v11 }
  0xa3   : > { %v6473_v55 = vpop.eup %6472  ;;  %5626 = vst [vmem:[%s9837_s20 + $0x98] sm:$0xff] %v5082_v48  ;;  %v5084_v56 = vmul.f32 0.2, %v6471_v51  ;;  %6492 = vlog2.f32 %v1320_v41  ;;  %v755_v26 = vmul.f32 %v9797_v1, %v209_v15  ;;  %v756_v29 = vmul.f32 %v9797_v1, %v210_v19 }
  0xa4   : > { %v6475_v59 = vpop.eup %6474  ;;  %5627 = vst [vmem:[%s9837_s20 + $0xa0] sm:$0xff] %v5083_v52  ;;  %v5085_v60 = vmul.f32 0.2, %v6473_v55  ;;  %6494 = vlog2.f32 %v1322_v45  ;;  %v757_v32 = vmul.f32 %v9797_v1, %v211_v23 }
  0xa5   : > { %v6477_v63 = vpop.eup %6476  ;;  %5628 = vst [vmem:[%s9837_s20 + $0xa8] sm:$0xff] %v5084_v56  ;;  %v5086_v0 = vmul.f32 0.2, %v6475_v59  ;;  %6496 = vlog2.f32 %v745_v49 }
  0xa6   : > { %v6479_v4 = vpop.eup %6478  ;;  %5629 = vst [vmem:[%s9837_s20 + $0xb0] sm:$0xff] %v5085_v60  ;;  %v5087_v5 = vmul.f32 0.2, %v6477_v63  ;;  %6498 = vlog2.f32 %v746_v53 }
  0xa7   : > { %v6481_v8 = vpop.eup %6480  ;;  %5630 = vst [vmem:[%s9837_s20 + $0xb8] sm:$0xff] %v5086_v0  ;;  %v5088_v9 = vmul.f32 0.2, %v6479_v4  ;;  %6500 = vlog2.f32 %v747_v57 }
  0xa8   : > { %v6483_v12 = vpop.eup %6482  ;;  %5631 = vst [vmem:[%s9837_s20 + $0xc0] sm:$0xff] %v5087_v5  ;;  %v5089_v13 = vmul.f32 0.2, %v6481_v8  ;;  %6502 = vlog2.f32 %v748_v61 }
  0xa9   : > { %v6485_v16 = vpop.eup %6484  ;;  %5632 = vst [vmem:[%s9837_s20 + $0xc8] sm:$0xff] %v5088_v9  ;;  %v5090_v17 = vmul.f32 0.2, %v6483_v12  ;;  %6504 = vlog2.f32 %v749_v2 }
  0xaa   : > { %v6487_v20 = vpop.eup %6486  ;;  %5633 = vst [vmem:[%s9837_s20 + $0xd0] sm:$0xff] %v5089_v13  ;;  %v5091_v21 = vmul.f32 0.2, %v6485_v16  ;;  %6506 = vlog2.f32 %v750_v6  ;;  %v212_v6 = vld [vmem:[%s9790_s5 + $0x178] sm:$0xff] }
  0xab   : > { %v6489_v24 = vpop.eup %6488  ;;  %5634 = vst [vmem:[%s9837_s20 + $0xd8] sm:$0xff] %v5090_v17  ;;  %v5092_v25 = vmul.f32 0.2, %v6487_v20  ;;  %6508 = vlog2.f32 %v751_v10  ;;  %v213_v10 = vld [vmem:[%s9790_s5 + $0x180] sm:$0xff]  ;;  %v758_v17 = vmul.f32 %v9797_v1, %v212_v6 }
  0xac   : > { %v6491_v27 = vpop.eup %6490  ;;  %5635 = vst [vmem:[%s9837_s20 + $0xe0] sm:$0xff] %v5091_v21  ;;  %v2404_v28 = vmul.f32 0.6931472, %v6489_v24  ;;  %6510 = vlog2.f32 %v752_v14  ;;  %v214_v14 = vld [vmem:[%s9790_s5 + $0x188] sm:$0xff]  ;;  %v759_v21 = vmul.f32 %v9797_v1, %v213_v10 }
  0xad   : > { %v6493_v30 = vpop.eup %6492  ;;  %5636 = vst [vmem:[%s9837_s20 + $0xe8] sm:$0xff] %v5092_v25  ;;  %v2406_v31 = vmul.f32 0.6931472, %v6491_v27  ;;  %6512 = vlog2.f32 %v753_v18  ;;  %v215_v18 = vld [vmem:[%s9790_s5 + $0x190] sm:$0xff]  ;;  %v760_v24 = vmul.f32 %v9797_v1, %v214_v14 }
  0xae   : > { %v6495_v33 = vpop.eup %6494  ;;  %v3461_v34 = vmul.f32 0.6, %v2404_v28  ;;  %v2408_v35 = vmul.f32 0.6931472, %v6493_v30  ;;  %6514 = vlog2.f32 %v754_v22  ;;  %v761_v27 = vmul.f32 %v9797_v1, %v215_v18 }
  0xaf   : > { %v6497_v36 = vpop.eup %6496  ;;  %v3462_v37 = vmul.f32 0.6, %v2406_v31  ;;  %v2410_v38 = vmul.f32 0.6931472, %v6495_v33  ;;  %6516 = vlog2.f32 %v755_v26 }
  0xb0   : > { %v6499_v39 = vpop.eup %6498  ;;  %v4035_v40 = vmul.f32 1.442695, %v3461_v34  ;;  %v3463_v41 = vmul.f32 0.6, %v2408_v35  ;;  %6518 = vlog2.f32 %v756_v29  ;;  %v1324_v47 = vmul.f32 0.6931472, %v6497_v36 }
  0xb1   : > { %v6501_v42 = vpop.eup %6500  ;;  %v4037_v43 = vmul.f32 1.442695, %v3462_v37  ;;  %v3464_v44 = vmul.f32 0.6, %v2410_v38  ;;  %6520 = vlog2.f32 %v757_v32  ;;  %v1326_v50 = vmul.f32 0.6931472, %v6499_v39 }
  0xb2   : > { %v6503_v45 = vpop.eup %6502  ;;  %6522 = vpow2.f32 %v4035_v40  ;;  %v4039_v46 = vmul.f32 1.442695, %v3463_v41  ;;  %v1328_v52 = vmul.f32 0.6931472, %v6501_v42 }
  0xb3   : > { %v6505_v48 = vpop.eup %6504  ;;  %6524 = vpow2.f32 %v4037_v43  ;;  %v4041_v49 = vmul.f32 1.442695, %v3464_v44  ;;  %v1330_v54 = vmul.f32 0.6931472, %v6503_v45 }
  0xb4   : > { %v6507_v51 = vpop.eup %6506  ;;  %6526 = vpow2.f32 %v4039_v46  ;;  %v1332_v56 = vmul.f32 0.6931472, %v6505_v48 }
  0xb5   : > { %v6509_v53 = vpop.eup %6508  ;;  %6528 = vpow2.f32 %v4041_v49  ;;  %v1334_v58 = vmul.f32 0.6931472, %v6507_v51 }
  0xb6   : > { %v6511_v55 = vpop.eup %6510  ;;  %6530 = vlog2.f32 %v1324_v47  ;;  %v1336_v60 = vmul.f32 0.6931472, %v6509_v53 }
  0xb7   : > { %v6513_v57 = vpop.eup %6512  ;;  %6532 = vlog2.f32 %v1326_v50  ;;  %v1338_v62 = vmul.f32 0.6931472, %v6511_v55 }
  0xb8   : > { %v6515_v59 = vpop.eup %6514  ;;  %6534 = vlog2.f32 %v1328_v52  ;;  %v1340_v0 = vmul.f32 0.6931472, %v6513_v57 }
  0xb9   : > { %v6517_v61 = vpop.eup %6516  ;;  %6536 = vlog2.f32 %v1330_v54  ;;  %v1342_v3 = vmul.f32 0.6931472, %v6515_v59 }
  0xba   : > { %v6519_v63 = vpop.eup %6518  ;;  %6538 = vlog2.f32 %v1332_v56  ;;  %v1344_v5 = vmul.f32 0.6931472, %v6517_v61 }
  0xbb   : > { %v6521_v2 = vpop.eup %6520  ;;  %6540 = vlog2.f32 %v1334_v58  ;;  %v1346_v9 = vmul.f32 0.6931472, %v6519_v63 }
  0xbc   : > { %v6523_v4 = vpop.eup %6522  ;;  %6542 = vlog2.f32 %v1336_v60  ;;  %v1348_v13 = vmul.f32 0.6931472, %v6521_v2 }
  0xbd   : > { %v6525_v7 = vpop.eup %6524  ;;  %v5093_v8 = vmul.f32 0.2, %v6523_v4  ;;  %6544 = vlog2.f32 %v1338_v62 }
  0xbe   : > { %v6527_v11 = vpop.eup %6526  ;;  %v5094_v12 = vmul.f32 0.2, %v6525_v7  ;;  %6546 = vlog2.f32 %v1340_v0 }
  0xbf   : > { %v6529_v15 = vpop.eup %6528  ;;  %5637 = vst [vmem:[%s9837_s20 + $0xf0] sm:$0xff] %v5093_v8  ;;  %v5095_v16 = vmul.f32 0.2, %v6527_v11  ;;  %6548 = vlog2.f32 %v1342_v3 }
  0xc0   : > { %v6531_v19 = vpop.eup %6530  ;;  %5638 = vst [vmem:[%s9837_s20 + $0xf8] sm:$0xff] %v5094_v12  ;;  %v5096_v20 = vmul.f32 0.2, %v6529_v15  ;;  %6550 = vlog2.f32 %v1344_v5 }
  0xc1   : > { %v6533_v22 = vpop.eup %6532  ;;  %5639 = vst [vmem:[%s9837_s20 + $0x100] sm:$0xff] %v5095_v16  ;;  %v2412_v23 = vmul.f32 0.6931472, %v6531_v19  ;;  %6552 = vlog2.f32 %v1346_v9  ;;  %v216_v19 = vld [vmem:[%s9790_s5 + $0x198] sm:$0xff] }
  0xc2   : > { %v6535_v25 = vpop.eup %6534  ;;  %5640 = vst [vmem:[%s9837_s20 + $0x108] sm:$0xff] %v5096_v20  ;;  %v2414_v26 = vmul.f32 0.6931472, %v6533_v22  ;;  %6554 = vlog2.f32 %v1348_v13 }
  0xc3   : > { %v6537_v28 = vpop.eup %6536  ;;  %v3465_v29 = vmul.f32 0.6, %v2412_v23  ;;  %v2416_v30 = vmul.f32 0.6931472, %v6535_v25  ;;  %6556 = vlog2.f32 %v758_v17  ;;  %v217_v23 = vld [vmem:[%s9790_s5 + $0x1a0] sm:$0xff] }
  0xc4   : > { %v6539_v31 = vpop.eup %6538  ;;  %v3466_v32 = vmul.f32 0.6, %v2414_v26  ;;  %v2418_v33 = vmul.f32 0.6931472, %v6537_v28  ;;  %6558 = vlog2.f32 %v759_v21 }
  0xc5   : > { %v6541_v34 = vpop.eup %6540  ;;  %v4043_v35 = vmul.f32 1.442695, %v3465_v29  ;;  %v3467_v36 = vmul.f32 0.6, %v2416_v30  ;;  %v2420_v37 = vmul.f32 0.6931472, %v6539_v31  ;;  %6560 = vlog2.f32 %v760_v24 }
  0xc6   : > { %v6543_v38 = vpop.eup %6542  ;;  %v4045_v39 = vmul.f32 1.442695, %v3466_v32  ;;  %v3468_v40 = vmul.f32 0.6, %v2418_v33  ;;  %v2422_v41 = vmul.f32 0.6931472, %v6541_v34  ;;  %6562 = vlog2.f32 %v761_v27 }
  0xc7   : > { %v6545_v42 = vpop.eup %6544  ;;  %6564 = vpow2.f32 %v4043_v35  ;;  %v4047_v43 = vmul.f32 1.442695, %v3467_v36  ;;  %v3469_v44 = vmul.f32 0.6, %v2420_v37  ;;  %v2424_v45 = vmul.f32 0.6931472, %v6543_v38 }
  0xc8   : > { %v6547_v46 = vpop.eup %6546  ;;  %6566 = vpow2.f32 %v4045_v39  ;;  %v4049_v47 = vmul.f32 1.442695, %v3468_v40  ;;  %v3470_v48 = vmul.f32 0.6, %v2422_v41  ;;  %v2426_v49 = vmul.f32 0.6931472, %v6545_v42 }
  0xc9   : > { %v6549_v50 = vpop.eup %6548  ;;  %6568 = vpow2.f32 %v4047_v43  ;;  %v4051_v51 = vmul.f32 1.442695, %v3469_v44  ;;  %v3471_v52 = vmul.f32 0.6, %v2424_v45  ;;  %v2428_v53 = vmul.f32 0.6931472, %v6547_v46 }
  0xca   : > { %v6551_v54 = vpop.eup %6550  ;;  %6570 = vpow2.f32 %v4049_v47  ;;  %v4053_v55 = vmul.f32 1.442695, %v3470_v48  ;;  %v3472_v56 = vmul.f32 0.6, %v2426_v49  ;;  %v2430_v57 = vmul.f32 0.6931472, %v6549_v50 }
  0xcb   : > { %v6553_v58 = vpop.eup %6552  ;;  %6572 = vpow2.f32 %v4051_v51  ;;  %v4055_v59 = vmul.f32 1.442695, %v3471_v52  ;;  %v3473_v60 = vmul.f32 0.6, %v2428_v53  ;;  %v2432_v61 = vmul.f32 0.6931472, %v6551_v54 }
  0xcc   : > { %v6555_v62 = vpop.eup %6554  ;;  %6574 = vpow2.f32 %v4053_v55  ;;  %v4057_v63 = vmul.f32 1.442695, %v3472_v56  ;;  %v3474_v0 = vmul.f32 0.6, %v2430_v57  ;;  %v2434_v2 = vmul.f32 0.6931472, %v6553_v58 }
  0xcd   : > { %v6557_v3 = vpop.eup %6556  ;;  %6576 = vpow2.f32 %v4055_v59  ;;  %v4059_v4 = vmul.f32 1.442695, %v3473_v60  ;;  %v3475_v5 = vmul.f32 0.6, %v2432_v61  ;;  %v2436_v6 = vmul.f32 0.6931472, %v6555_v62 }
  0xce   : > { %v6559_v7 = vpop.eup %6558  ;;  %6578 = vpow2.f32 %v4057_v63  ;;  %v4061_v8 = vmul.f32 1.442695, %v3474_v0  ;;  %v3476_v9 = vmul.f32 0.6, %v2434_v2  ;;  %v1350_v15 = vmul.f32 0.6931472, %v6557_v3 }
  0xcf   : > { %v6561_v10 = vpop.eup %6560  ;;  %6580 = vpow2.f32 %v4059_v4  ;;  %v4063_v11 = vmul.f32 1.442695, %v3475_v5  ;;  %v3477_v12 = vmul.f32 0.6, %v2436_v6  ;;  %v1352_v18 = vmul.f32 0.6931472, %v6559_v7 }
  0xd0   : > { %v6563_v13 = vpop.eup %6562  ;;  %6582 = vpow2.f32 %v4061_v8  ;;  %v4065_v14 = vmul.f32 1.442695, %v3476_v9  ;;  %v1354_v22 = vmul.f32 0.6931472, %v6561_v10  ;;  %v218_v27 = vld [vmem:[%s9790_s5 + $0x1a8] sm:$0xff]  ;;  %v762_v30 = vmul.f32 %v9797_v1, %v216_v19  ;;  %v219_v31 = vld [vmem:[%s9790_s5 + $0x1b0] sm:$0xff] }
  0xd1   : > { %v6565_v16 = vpop.eup %6564  ;;  %6584 = vpow2.f32 %v4063_v11  ;;  %v4067_v17 = vmul.f32 1.442695, %v3477_v12  ;;  %v1356_v26 = vmul.f32 0.6931472, %v6563_v13  ;;  %v763_v34 = vmul.f32 %v9797_v1, %v217_v23  ;;  %v220_v35 = vld [vmem:[%s9790_s5 + $0x1b8] sm:$0xff]  ;;  %v221_v39 = vld [vmem:[%s9790_s5 + $0x1c0] sm:$0xff] }
  0xd2   : > { %v6567_v20 = vpop.eup %6566  ;;  %v5097_v21 = vmul.f32 0.2, %v6565_v16  ;;  %6586 = vpow2.f32 %v4065_v14  ;;  %v764_v38 = vmul.f32 %v9797_v1, %v218_v27  ;;  %v765_v42 = vmul.f32 %v9797_v1, %v219_v31  ;;  %v222_v43 = vld [vmem:[%s9790_s5 + $0x1c8] sm:$0xff]  ;;  %v223_v47 = vld [vmem:[%s9790_s5 + $0x1d0] sm:$0xff]  ;;  %v224_v51 = vld [vmem:[%s9790_s5 + $0x1d8] sm:$0xff] }
  0xd3   : > { %v6569_v24 = vpop.eup %6568  ;;  %v5098_v25 = vmul.f32 0.2, %v6567_v20  ;;  %6588 = vpow2.f32 %v4067_v17  ;;  %v766_v46 = vmul.f32 %v9797_v1, %v220_v35  ;;  %v767_v50 = vmul.f32 %v9797_v1, %v221_v39  ;;  %v225_v55 = vld [vmem:[%s9790_s5 + $0x1e0] sm:$0xff]  ;;  %v226_v59 = vld [vmem:[%s9790_s5 + $0x1e8] sm:$0xff]  ;;  %v227_v63 = vld [vmem:[%s9790_s5 + $0x1f0] sm:$0xff] }
  0xd4   : > { %v6571_v28 = vpop.eup %6570  ;;  %5641 = vst [vmem:[%s9837_s20 + $0x110] sm:$0xff] %v5097_v21  ;;  %v5099_v29 = vmul.f32 0.2, %v6569_v24  ;;  %6590 = vlog2.f32 %v1350_v15  ;;  %v768_v54 = vmul.f32 %v9797_v1, %v222_v43  ;;  %v769_v58 = vmul.f32 %v9797_v1, %v223_v47  ;;  %v228_v4 = vld [vmem:[%s9790_s5 + $0x1f8] sm:$0xff] }
  0xd5   : > { %v6573_v32 = vpop.eup %6572  ;;  %5642 = vst [vmem:[%s9837_s20 + $0x118] sm:$0xff] %v5098_v25  ;;  %v5100_v33 = vmul.f32 0.2, %v6571_v28  ;;  %6592 = vlog2.f32 %v1352_v18  ;;  %v770_v62 = vmul.f32 %v9797_v1, %v224_v51  ;;  %v771_v3 = vmul.f32 %v9797_v1, %v225_v55 }
  0xd6   : > { %v6575_v36 = vpop.eup %6574  ;;  %5643 = vst [vmem:[%s9837_s20 + $0x120] sm:$0xff] %v5099_v29  ;;  %v5101_v37 = vmul.f32 0.2, %v6573_v32  ;;  %6594 = vlog2.f32 %v1354_v22  ;;  %v772_v7 = vmul.f32 %v9797_v1, %v226_v59  ;;  %v773_v10 = vmul.f32 %v9797_v1, %v227_v63 }
  0xd7   : > { %v6577_v40 = vpop.eup %6576  ;;  %5644 = vst [vmem:[%s9837_s20 + $0x128] sm:$0xff] %v5100_v33  ;;  %v5102_v41 = vmul.f32 0.2, %v6575_v36  ;;  %6596 = vlog2.f32 %v1356_v26  ;;  %v774_v13 = vmul.f32 %v9797_v1, %v228_v4 }
  0xd8   : > { %v6579_v44 = vpop.eup %6578  ;;  %5645 = vst [vmem:[%s9837_s20 + $0x130] sm:$0xff] %v5101_v37  ;;  %v5103_v45 = vmul.f32 0.2, %v6577_v40  ;;  %6598 = vlog2.f32 %v762_v30 }
  0xd9   : > { %v6581_v48 = vpop.eup %6580  ;;  %5646 = vst [vmem:[%s9837_s20 + $0x138] sm:$0xff] %v5102_v41  ;;  %v5104_v49 = vmul.f32 0.2, %v6579_v44  ;;  %6600 = vlog2.f32 %v763_v34 }
  0xda   : > { %v6583_v52 = vpop.eup %6582  ;;  %5647 = vst [vmem:[%s9837_s20 + $0x140] sm:$0xff] %v5103_v45  ;;  %v5105_v53 = vmul.f32 0.2, %v6581_v48  ;;  %6602 = vlog2.f32 %v764_v38 }
  0xdb   : > { %v6585_v56 = vpop.eup %6584  ;;  %5648 = vst [vmem:[%s9837_s20 + $0x148] sm:$0xff] %v5104_v49  ;;  %v5106_v57 = vmul.f32 0.2, %v6583_v52  ;;  %6604 = vlog2.f32 %v765_v42 }
  0xdc   : > { %v6587_v60 = vpop.eup %6586  ;;  %5649 = vst [vmem:[%s9837_s20 + $0x150] sm:$0xff] %v5105_v53  ;;  %v5107_v61 = vmul.f32 0.2, %v6585_v56  ;;  %6606 = vlog2.f32 %v766_v46 }
  0xdd   : > { %v6589_v0 = vpop.eup %6588  ;;  %5650 = vst [vmem:[%s9837_s20 + $0x158] sm:$0xff] %v5106_v57  ;;  %v5108_v2 = vmul.f32 0.2, %v6587_v60  ;;  %6608 = vlog2.f32 %v767_v50  ;;  %v229_v50 = vld [vmem:[%s9790_s5 + $0x200] sm:$0xff] }
  0xde   : > { %v6591_v5 = vpop.eup %6590  ;;  %5651 = vst [vmem:[%s9837_s20 + $0x160] sm:$0xff] %v5107_v61  ;;  %v5109_v6 = vmul.f32 0.2, %v6589_v0  ;;  %6610 = vlog2.f32 %v768_v54  ;;  %v230_v54 = vld [vmem:[%s9790_s5 + $0x208] sm:$0xff]  ;;  %v775_v61 = vmul.f32 %v9797_v1, %v229_v50 }
  0xdf   : > { %v6593_v8 = vpop.eup %6592  ;;  %5652 = vst [vmem:[%s9837_s20 + $0x168] sm:$0xff] %v5108_v2  ;;  %v2438_v9 = vmul.f32 0.6931472, %v6591_v5  ;;  %6612 = vlog2.f32 %v769_v58  ;;  %v231_v58 = vld [vmem:[%s9790_s5 + $0x210] sm:$0xff]  ;;  %v776_v2 = vmul.f32 %v9797_v1, %v230_v54 }
  0xe0   : > { %v6595_v11 = vpop.eup %6594  ;;  %5653 = vst [vmem:[%s9837_s20 + $0x170] sm:$0xff] %v5109_v6  ;;  %v2440_v12 = vmul.f32 0.6931472, %v6593_v8  ;;  %6614 = vlog2.f32 %v770_v62  ;;  %v232_v62 = vld [vmem:[%s9790_s5 + $0x218] sm:$0xff]  ;;  %v777_v5 = vmul.f32 %v9797_v1, %v231_v58 }
  0xe1   : > { %v6597_v14 = vpop.eup %6596  ;;  %v3478_v15 = vmul.f32 0.6, %v2438_v9  ;;  %v2442_v16 = vmul.f32 0.6931472, %v6595_v11  ;;  %6616 = vlog2.f32 %v771_v3  ;;  %v778_v8 = vmul.f32 %v9797_v1, %v232_v62 }
  0xe2   : > { %v6599_v17 = vpop.eup %6598  ;;  %v3479_v18 = vmul.f32 0.6, %v2440_v12  ;;  %v2444_v19 = vmul.f32 0.6931472, %v6597_v14  ;;  %6618 = vlog2.f32 %v772_v7 }
  0xe3   : > { %v6601_v20 = vpop.eup %6600  ;;  %v4069_v21 = vmul.f32 1.442695, %v3478_v15  ;;  %v3480_v22 = vmul.f32 0.6, %v2442_v16  ;;  %6620 = vlog2.f32 %v773_v10  ;;  %v1358_v28 = vmul.f32 0.6931472, %v6599_v17 }
  0xe4   : > { %v6603_v23 = vpop.eup %6602  ;;  %v4071_v24 = vmul.f32 1.442695, %v3479_v18  ;;  %v3481_v25 = vmul.f32 0.6, %v2444_v19  ;;  %6622 = vlog2.f32 %v774_v13  ;;  %v1360_v31 = vmul.f32 0.6931472, %v6601_v20 }
  0xe5   : > { %v6605_v26 = vpop.eup %6604  ;;  %6624 = vpow2.f32 %v4069_v21  ;;  %v4073_v27 = vmul.f32 1.442695, %v3480_v22  ;;  %v1362_v33 = vmul.f32 0.6931472, %v6603_v23 }
  0xe6   : > { %v6607_v29 = vpop.eup %6606  ;;  %6626 = vpow2.f32 %v4071_v24  ;;  %v4075_v30 = vmul.f32 1.442695, %v3481_v25  ;;  %v1364_v35 = vmul.f32 0.6931472, %v6605_v26 }
  0xe7   : > { %v6609_v32 = vpop.eup %6608  ;;  %6628 = vpow2.f32 %v4073_v27  ;;  %v1366_v37 = vmul.f32 0.6931472, %v6607_v29 }
  0xe8   : > { %v6611_v34 = vpop.eup %6610  ;;  %6630 = vpow2.f32 %v4075_v30  ;;  %v1368_v39 = vmul.f32 0.6931472, %v6609_v32 }
  0xe9   : > { %v6613_v36 = vpop.eup %6612  ;;  %6632 = vlog2.f32 %v1358_v28  ;;  %v1370_v41 = vmul.f32 0.6931472, %v6611_v34 }
  0xea   : > { %v6615_v38 = vpop.eup %6614  ;;  %6634 = vlog2.f32 %v1360_v31  ;;  %v1372_v43 = vmul.f32 0.6931472, %v6613_v36 }
  0xeb   : > { %v6617_v40 = vpop.eup %6616  ;;  %6636 = vlog2.f32 %v1362_v33  ;;  %v1374_v45 = vmul.f32 0.6931472, %v6615_v38 }
  0xec   : > { %v6619_v42 = vpop.eup %6618  ;;  %6638 = vlog2.f32 %v1364_v35  ;;  %v1376_v47 = vmul.f32 0.6931472, %v6617_v40 }
  0xed   : > { %v6621_v44 = vpop.eup %6620  ;;  %6640 = vlog2.f32 %v1366_v37  ;;  %v1378_v49 = vmul.f32 0.6931472, %v6619_v42 }
  0xee   : > { %v6623_v46 = vpop.eup %6622  ;;  %6642 = vlog2.f32 %v1368_v39  ;;  %v1380_v53 = vmul.f32 0.6931472, %v6621_v44 }
  0xef   : > { %v6625_v48 = vpop.eup %6624  ;;  %6644 = vlog2.f32 %v1370_v41  ;;  %v1382_v57 = vmul.f32 0.6931472, %v6623_v46 }
  0xf0   : > { %v6627_v51 = vpop.eup %6626  ;;  %v5110_v52 = vmul.f32 0.2, %v6625_v48  ;;  %6646 = vlog2.f32 %v1372_v43 }
  0xf1   : > { %v6629_v55 = vpop.eup %6628  ;;  %v5111_v56 = vmul.f32 0.2, %v6627_v51  ;;  %6648 = vlog2.f32 %v1374_v45 }
  0xf2   : > { %v6631_v59 = vpop.eup %6630  ;;  %5654 = vst [vmem:[%s9837_s20 + $0x178] sm:$0xff] %v5110_v52  ;;  %v5112_v60 = vmul.f32 0.2, %v6629_v55  ;;  %6650 = vlog2.f32 %v1376_v47 }
  0xf3   : > { %v6633_v63 = vpop.eup %6632  ;;  %5655 = vst [vmem:[%s9837_s20 + $0x180] sm:$0xff] %v5111_v56  ;;  %v5113_v0 = vmul.f32 0.2, %v6631_v59  ;;  %6652 = vlog2.f32 %v1378_v49 }
  0xf4   : > { %v6635_v3 = vpop.eup %6634  ;;  %5656 = vst [vmem:[%s9837_s20 + $0x188] sm:$0xff] %v5112_v60  ;;  %v2446_v4 = vmul.f32 0.6931472, %v6633_v63  ;;  %6654 = vlog2.f32 %v1380_v53  ;;  %v233_v63 = vld [vmem:[%s9790_s5 + $0x220] sm:$0xff] }
  0xf5   : > { %v6637_v6 = vpop.eup %6636  ;;  %5657 = vst [vmem:[%s9837_s20 + $0x190] sm:$0xff] %v5113_v0  ;;  %v2448_v7 = vmul.f32 0.6931472, %v6635_v3  ;;  %6656 = vlog2.f32 %v1382_v57 }
  0xf6   : > { %v6639_v9 = vpop.eup %6638  ;;  %v3482_v10 = vmul.f32 0.6, %v2446_v4  ;;  %v2450_v11 = vmul.f32 0.6931472, %v6637_v6  ;;  %6658 = vlog2.f32 %v775_v61  ;;  %v234_v4 = vld [vmem:[%s9790_s5 + $0x228] sm:$0xff] }
  0xf7   : > { %v6641_v12 = vpop.eup %6640  ;;  %v3483_v13 = vmul.f32 0.6, %v2448_v7  ;;  %v2452_v14 = vmul.f32 0.6931472, %v6639_v9  ;;  %6660 = vlog2.f32 %v776_v2 }
  0xf8   : > { %v6643_v15 = vpop.eup %6642  ;;  %v4077_v16 = vmul.f32 1.442695, %v3482_v10  ;;  %v3484_v17 = vmul.f32 0.6, %v2450_v11  ;;  %v2454_v18 = vmul.f32 0.6931472, %v6641_v12  ;;  %6662 = vlog2.f32 %v777_v5 }
  0xf9   : > { %v6645_v19 = vpop.eup %6644  ;;  %v4079_v20 = vmul.f32 1.442695, %v3483_v13  ;;  %v3485_v21 = vmul.f32 0.6, %v2452_v14  ;;  %v2456_v22 = vmul.f32 0.6931472, %v6643_v15  ;;  %6664 = vlog2.f32 %v778_v8 }
  0xfa   : > { %v6647_v23 = vpop.eup %6646  ;;  %6666 = vpow2.f32 %v4077_v16  ;;  %v4081_v24 = vmul.f32 1.442695, %v3484_v17  ;;  %v3486_v25 = vmul.f32 0.6, %v2454_v18  ;;  %v2458_v26 = vmul.f32 0.6931472, %v6645_v19 }
  0xfb   : > { %v6649_v27 = vpop.eup %6648  ;;  %6668 = vpow2.f32 %v4079_v20  ;;  %v4083_v28 = vmul.f32 1.442695, %v3485_v21  ;;  %v3487_v29 = vmul.f32 0.6, %v2456_v22  ;;  %v2460_v30 = vmul.f32 0.6931472, %v6647_v23 }
  0xfc   : > { %v6651_v31 = vpop.eup %6650  ;;  %6670 = vpow2.f32 %v4081_v24  ;;  %v4085_v32 = vmul.f32 1.442695, %v3486_v25  ;;  %v3488_v33 = vmul.f32 0.6, %v2458_v26  ;;  %v2462_v34 = vmul.f32 0.6931472, %v6649_v27 }
  0xfd   : > { %v6653_v35 = vpop.eup %6652  ;;  %6672 = vpow2.f32 %v4083_v28  ;;  %v4087_v36 = vmul.f32 1.442695, %v3487_v29  ;;  %v3489_v37 = vmul.f32 0.6, %v2460_v30  ;;  %v2464_v38 = vmul.f32 0.6931472, %v6651_v31 }
  0xfe   : > { %v6655_v39 = vpop.eup %6654  ;;  %6674 = vpow2.f32 %v4085_v32  ;;  %v4089_v40 = vmul.f32 1.442695, %v3488_v33  ;;  %v3490_v41 = vmul.f32 0.6, %v2462_v34  ;;  %v2466_v42 = vmul.f32 0.6931472, %v6653_v35 }
  0xff   : > { %v6657_v43 = vpop.eup %6656  ;;  %6676 = vpow2.f32 %v4087_v36  ;;  %v4091_v44 = vmul.f32 1.442695, %v3489_v37  ;;  %v3491_v45 = vmul.f32 0.6, %v2464_v38  ;;  %v2468_v46 = vmul.f32 0.6931472, %v6655_v39 }
 0x100   : > { %v6659_v47 = vpop.eup %6658  ;;  %6678 = vpow2.f32 %v4089_v40  ;;  %v4093_v48 = vmul.f32 1.442695, %v3490_v41  ;;  %v3492_v49 = vmul.f32 0.6, %v2466_v42  ;;  %v2470_v50 = vmul.f32 0.6931472, %v6657_v43 }
 0x101   : > { %v6661_v51 = vpop.eup %6660  ;;  %6680 = vpow2.f32 %v4091_v44  ;;  %v4095_v52 = vmul.f32 1.442695, %v3491_v45  ;;  %v3493_v53 = vmul.f32 0.6, %v2468_v46  ;;  %v1384_v59 = vmul.f32 0.6931472, %v6659_v47 }
 0x102   : > { %v6663_v54 = vpop.eup %6662  ;;  %6682 = vpow2.f32 %v4093_v48  ;;  %v4097_v55 = vmul.f32 1.442695, %v3492_v49  ;;  %v3494_v56 = vmul.f32 0.6, %v2470_v50  ;;  %v1386_v62 = vmul.f32 0.6931472, %v6661_v51 }
 0x103   : > { %v6665_v57 = vpop.eup %6664  ;;  %6684 = vpow2.f32 %v4095_v52  ;;  %v4099_v58 = vmul.f32 1.442695, %v3493_v53  ;;  %v1388_v3 = vmul.f32 0.6931472, %v6663_v54  ;;  %v235_v8 = vld [vmem:[%s9790_s5 + $0x230] sm:$0xff]  ;;  %v779_v11 = vmul.f32 %v9797_v1, %v233_v63  ;;  %v236_v12 = vld [vmem:[%s9790_s5 + $0x238] sm:$0xff] }
 0x104   : > { %v6667_v60 = vpop.eup %6666  ;;  %6686 = vpow2.f32 %v4097_v55  ;;  %v4101_v61 = vmul.f32 1.442695, %v3494_v56  ;;  %v1390_v7 = vmul.f32 0.6931472, %v6665_v57  ;;  %v780_v15 = vmul.f32 %v9797_v1, %v234_v4  ;;  %v237_v16 = vld [vmem:[%s9790_s5 + $0x240] sm:$0xff]  ;;  %v238_v20 = vld [vmem:[%s9790_s5 + $0x248] sm:$0xff] }
 0x105   : > { %v6669_v0 = vpop.eup %6668  ;;  %v5114_v2 = vmul.f32 0.2, %v6667_v60  ;;  %6688 = vpow2.f32 %v4099_v58  ;;  %v781_v19 = vmul.f32 %v9797_v1, %v235_v8  ;;  %v782_v23 = vmul.f32 %v9797_v1, %v236_v12  ;;  %v239_v24 = vld [vmem:[%s9790_s5 + $0x250] sm:$0xff]  ;;  %v240_v28 = vld [vmem:[%s9790_s5 + $0x258] sm:$0xff]  ;;  %v241_v32 = vld [vmem:[%s9790_s5 + $0x260] sm:$0xff] }
 0x106   : > { %v6671_v5 = vpop.eup %6670  ;;  %v5115_v6 = vmul.f32 0.2, %v6669_v0  ;;  %6690 = vpow2.f32 %v4101_v61  ;;  %v783_v27 = vmul.f32 %v9797_v1, %v237_v16  ;;  %v784_v31 = vmul.f32 %v9797_v1, %v238_v20  ;;  %v242_v36 = vld [vmem:[%s9790_s5 + $0x268] sm:$0xff]  ;;  %v243_v40 = vld [vmem:[%s9790_s5 + $0x270] sm:$0xff]  ;;  %v244_v44 = vld [vmem:[%s9790_s5 + $0x278] sm:$0xff] }
 0x107   : > { %v6673_v9 = vpop.eup %6672  ;;  %5658 = vst [vmem:[%s9837_s20 + $0x198] sm:$0xff] %v5114_v2  ;;  %v5116_v10 = vmul.f32 0.2, %v6671_v5  ;;  %6692 = vlog2.f32 %v1384_v59  ;;  %v785_v35 = vmul.f32 %v9797_v1, %v239_v24  ;;  %v786_v39 = vmul.f32 %v9797_v1, %v240_v28  ;;  %v245_v48 = vld [vmem:[%s9790_s5 + $0x280] sm:$0xff] }
 0x108   : > { %v6675_v13 = vpop.eup %6674  ;;  %5659 = vst [vmem:[%s9837_s20 + $0x1a0] sm:$0xff] %v5115_v6  ;;  %v5117_v14 = vmul.f32 0.2, %v6673_v9  ;;  %6694 = vlog2.f32 %v1386_v62  ;;  %v787_v43 = vmul.f32 %v9797_v1, %v241_v32  ;;  %v788_v47 = vmul.f32 %v9797_v1, %v242_v36 }
 0x109   : > { %v6677_v17 = vpop.eup %6676  ;;  %5660 = vst [vmem:[%s9837_s20 + $0x1a8] sm:$0xff] %v5116_v10  ;;  %v5118_v18 = vmul.f32 0.2, %v6675_v13  ;;  %6696 = vlog2.f32 %v1388_v3  ;;  %v789_v51 = vmul.f32 %v9797_v1, %v243_v40  ;;  %v790_v54 = vmul.f32 %v9797_v1, %v244_v44 }
 0x10a   : > { %v6679_v21 = vpop.eup %6678  ;;  %5661 = vst [vmem:[%s9837_s20 + $0x1b0] sm:$0xff] %v5117_v14  ;;  %v5119_v22 = vmul.f32 0.2, %v6677_v17  ;;  %6698 = vlog2.f32 %v1390_v7  ;;  %v791_v57 = vmul.f32 %v9797_v1, %v245_v48 }
 0x10b   : > { %v6681_v25 = vpop.eup %6680  ;;  %5662 = vst [vmem:[%s9837_s20 + $0x1b8] sm:$0xff] %v5118_v18  ;;  %v5120_v26 = vmul.f32 0.2, %v6679_v21  ;;  %6700 = vlog2.f32 %v779_v11 }
 0x10c   : > { %v6683_v29 = vpop.eup %6682  ;;  %5663 = vst [vmem:[%s9837_s20 + $0x1c0] sm:$0xff] %v5119_v22  ;;  %v5121_v30 = vmul.f32 0.2, %v6681_v25  ;;  %6702 = vlog2.f32 %v780_v15 }
 0x10d   : > { %v6685_v33 = vpop.eup %6684  ;;  %5664 = vst [vmem:[%s9837_s20 + $0x1c8] sm:$0xff] %v5120_v26  ;;  %v5122_v34 = vmul.f32 0.2, %v6683_v29  ;;  %6704 = vlog2.f32 %v781_v19 }
 0x10e   : > { %v6687_v37 = vpop.eup %6686  ;;  %5665 = vst [vmem:[%s9837_s20 + $0x1d0] sm:$0xff] %v5121_v30  ;;  %v5123_v38 = vmul.f32 0.2, %v6685_v33  ;;  %6706 = vlog2.f32 %v782_v23 }
 0x10f   : > { %v6689_v41 = vpop.eup %6688  ;;  %5666 = vst [vmem:[%s9837_s20 + $0x1d8] sm:$0xff] %v5122_v34  ;;  %v5124_v42 = vmul.f32 0.2, %v6687_v37  ;;  %6708 = vlog2.f32 %v783_v27 }
 0x110   : > { %v6691_v45 = vpop.eup %6690  ;;  %5667 = vst [vmem:[%s9837_s20 + $0x1e0] sm:$0xff] %v5123_v38  ;;  %v5125_v46 = vmul.f32 0.2, %v6689_v41  ;;  %6710 = vlog2.f32 %v784_v31  ;;  %v246_v31 = vld [vmem:[%s9790_s5 + $0x288] sm:$0xff] }
 0x111   : > { %v6693_v49 = vpop.eup %6692  ;;  %5668 = vst [vmem:[%s9837_s20 + $0x1e8] sm:$0xff] %v5124_v42  ;;  %v5126_v50 = vmul.f32 0.2, %v6691_v45  ;;  %6712 = vlog2.f32 %v785_v35  ;;  %v247_v35 = vld [vmem:[%s9790_s5 + $0x290] sm:$0xff]  ;;  %v792_v42 = vmul.f32 %v9797_v1, %v246_v31 }
 0x112   : > { %v6695_v52 = vpop.eup %6694  ;;  %5669 = vst [vmem:[%s9837_s20 + $0x1f0] sm:$0xff] %v5125_v46  ;;  %v2472_v53 = vmul.f32 0.6931472, %v6693_v49  ;;  %6714 = vlog2.f32 %v786_v39  ;;  %v248_v39 = vld [vmem:[%s9790_s5 + $0x298] sm:$0xff]  ;;  %v793_v46 = vmul.f32 %v9797_v1, %v247_v35 }
 0x113   : > { %v6697_v55 = vpop.eup %6696  ;;  %5670 = vst [vmem:[%s9837_s20 + $0x1f8] sm:$0xff] %v5126_v50  ;;  %v2474_v56 = vmul.f32 0.6931472, %v6695_v52  ;;  %6716 = vlog2.f32 %v787_v43  ;;  %v249_v43 = vld [vmem:[%s9790_s5 + $0x2a0] sm:$0xff]  ;;  %v794_v49 = vmul.f32 %v9797_v1, %v248_v39 }
 0x114   : > { %v6699_v58 = vpop.eup %6698  ;;  %v3495_v59 = vmul.f32 0.6, %v2472_v53  ;;  %v2476_v60 = vmul.f32 0.6931472, %v6697_v55  ;;  %6718 = vlog2.f32 %v788_v47  ;;  %v795_v52 = vmul.f32 %v9797_v1, %v249_v43 }
 0x115   : > { %v6701_v61 = vpop.eup %6700  ;;  %v3496_v62 = vmul.f32 0.6, %v2474_v56  ;;  %v2478_v63 = vmul.f32 0.6931472, %v6699_v58  ;;  %6720 = vlog2.f32 %v789_v51 }
 0x116   : > { %v6703_v0 = vpop.eup %6702  ;;  %v4103_v2 = vmul.f32 1.442695, %v3495_v59  ;;  %v3497_v3 = vmul.f32 0.6, %v2476_v60  ;;  %6722 = vlog2.f32 %v790_v54  ;;  %v1392_v9 = vmul.f32 0.6931472, %v6701_v61 }
 0x117   : > { %v6705_v4 = vpop.eup %6704  ;;  %v4105_v5 = vmul.f32 1.442695, %v3496_v62  ;;  %v3498_v6 = vmul.f32 0.6, %v2478_v63  ;;  %6724 = vlog2.f32 %v791_v57  ;;  %v1394_v12 = vmul.f32 0.6931472, %v6703_v0 }
 0x118   : > { %v6707_v7 = vpop.eup %6706  ;;  %6726 = vpow2.f32 %v4103_v2  ;;  %v4107_v8 = vmul.f32 1.442695, %v3497_v3  ;;  %v1396_v14 = vmul.f32 0.6931472, %v6705_v4 }
 0x119   : > { %v6709_v10 = vpop.eup %6708  ;;  %6728 = vpow2.f32 %v4105_v5  ;;  %v4109_v11 = vmul.f32 1.442695, %v3498_v6  ;;  %v1398_v16 = vmul.f32 0.6931472, %v6707_v7 }
 0x11a   : > { %v6711_v13 = vpop.eup %6710  ;;  %6730 = vpow2.f32 %v4107_v8  ;;  %v1400_v18 = vmul.f32 0.6931472, %v6709_v10 }
 0x11b   : > { %v6713_v15 = vpop.eup %6712  ;;  %6732 = vpow2.f32 %v4109_v11  ;;  %v1402_v20 = vmul.f32 0.6931472, %v6711_v13 }
 0x11c   : > { %v6715_v17 = vpop.eup %6714  ;;  %6734 = vlog2.f32 %v1392_v9  ;;  %v1404_v22 = vmul.f32 0.6931472, %v6713_v15 }
 0x11d   : > { %v6717_v19 = vpop.eup %6716  ;;  %6736 = vlog2.f32 %v1394_v12  ;;  %v1406_v24 = vmul.f32 0.6931472, %v6715_v17 }
 0x11e   : > { %v6719_v21 = vpop.eup %6718  ;;  %6738 = vlog2.f32 %v1396_v14  ;;  %v1408_v26 = vmul.f32 0.6931472, %v6717_v19 }
 0x11f   : > { %v6721_v23 = vpop.eup %6720  ;;  %6740 = vlog2.f32 %v1398_v16  ;;  %v1410_v28 = vmul.f32 0.6931472, %v6719_v21 }
 0x120   : > { %v6723_v25 = vpop.eup %6722  ;;  %6742 = vlog2.f32 %v1400_v18  ;;  %v1412_v30 = vmul.f32 0.6931472, %v6721_v23 }
 0x121   : > { %v6725_v27 = vpop.eup %6724  ;;  %6744 = vlog2.f32 %v1402_v20  ;;  %v1414_v34 = vmul.f32 0.6931472, %v6723_v25 }
 0x122   : > { %v6727_v29 = vpop.eup %6726  ;;  %6746 = vlog2.f32 %v1404_v22  ;;  %v1416_v38 = vmul.f32 0.6931472, %v6725_v27 }
 0x123   : > { %v6729_v32 = vpop.eup %6728  ;;  %v5127_v33 = vmul.f32 0.2, %v6727_v29  ;;  %6748 = vlog2.f32 %v1406_v24 }
 0x124   : > { %v6731_v36 = vpop.eup %6730  ;;  %v5128_v37 = vmul.f32 0.2, %v6729_v32  ;;  %6750 = vlog2.f32 %v1408_v26 }
 0x125   : > { %v6733_v40 = vpop.eup %6732  ;;  %5671 = vst [vmem:[%s9837_s20 + $0x200] sm:$0xff] %v5127_v33  ;;  %v5129_v41 = vmul.f32 0.2, %v6731_v36  ;;  %6752 = vlog2.f32 %v1410_v28 }
 0x126   : > { %v6735_v44 = vpop.eup %6734  ;;  %5672 = vst [vmem:[%s9837_s20 + $0x208] sm:$0xff] %v5128_v37  ;;  %v5130_v45 = vmul.f32 0.2, %v6733_v40  ;;  %6754 = vlog2.f32 %v1412_v30 }
 0x127   : > { %v6737_v47 = vpop.eup %6736  ;;  %5673 = vst [vmem:[%s9837_s20 + $0x210] sm:$0xff] %v5129_v41  ;;  %v2480_v48 = vmul.f32 0.6931472, %v6735_v44  ;;  %6756 = vlog2.f32 %v1414_v34  ;;  %v250_v44 = vld [vmem:[%s9790_s5 + $0x2a8] sm:$0xff] }
 0x128   : > { %v6739_v50 = vpop.eup %6738  ;;  %5674 = vst [vmem:[%s9837_s20 + $0x218] sm:$0xff] %v5130_v45  ;;  %v2482_v51 = vmul.f32 0.6931472, %v6737_v47  ;;  %6758 = vlog2.f32 %v1416_v38 }
 0x129   : > { %v6741_v53 = vpop.eup %6740  ;;  %v3499_v54 = vmul.f32 0.6, %v2480_v48  ;;  %v2484_v55 = vmul.f32 0.6931472, %v6739_v50  ;;  %6760 = vlog2.f32 %v792_v42  ;;  %v251_v48 = vld [vmem:[%s9790_s5 + $0x2b0] sm:$0xff] }
 0x12a   : > { %v6743_v56 = vpop.eup %6742  ;;  %v3500_v57 = vmul.f32 0.6, %v2482_v51  ;;  %v2486_v58 = vmul.f32 0.6931472, %v6741_v53  ;;  %6762 = vlog2.f32 %v793_v46 }
 0x12b   : > { %v6745_v59 = vpop.eup %6744  ;;  %v4111_v60 = vmul.f32 1.442695, %v3499_v54  ;;  %v3501_v61 = vmul.f32 0.6, %v2484_v55  ;;  %v2488_v62 = vmul.f32 0.6931472, %v6743_v56  ;;  %6764 = vlog2.f32 %v794_v49 }
 0x12c   : > { %v6747_v63 = vpop.eup %6746  ;;  %v4113_v0 = vmul.f32 1.442695, %v3500_v57  ;;  %v3502_v2 = vmul.f32 0.6, %v2486_v58  ;;  %v2490_v3 = vmul.f32 0.6931472, %v6745_v59  ;;  %6766 = vlog2.f32 %v795_v52 }
 0x12d   : > { %v6749_v4 = vpop.eup %6748  ;;  %6768 = vpow2.f32 %v4111_v60  ;;  %v4115_v5 = vmul.f32 1.442695, %v3501_v61  ;;  %v3503_v6 = vmul.f32 0.6, %v2488_v62  ;;  %v2492_v7 = vmul.f32 0.6931472, %v6747_v63 }
 0x12e   : > { %v6751_v8 = vpop.eup %6750  ;;  %6770 = vpow2.f32 %v4113_v0  ;;  %v4117_v9 = vmul.f32 1.442695, %v3502_v2  ;;  %v3504_v10 = vmul.f32 0.6, %v2490_v3  ;;  %v2494_v11 = vmul.f32 0.6931472, %v6749_v4 }
 0x12f   : > { %v6753_v12 = vpop.eup %6752  ;;  %6772 = vpow2.f32 %v4115_v5  ;;  %v4119_v13 = vmul.f32 1.442695, %v3503_v6  ;;  %v3505_v14 = vmul.f32 0.6, %v2492_v7  ;;  %v2496_v15 = vmul.f32 0.6931472, %v6751_v8 }
 0x130   : > { %v6755_v16 = vpop.eup %6754  ;;  %6774 = vpow2.f32 %v4117_v9  ;;  %v4121_v17 = vmul.f32 1.442695, %v3504_v10  ;;  %v3506_v18 = vmul.f32 0.6, %v2494_v11  ;;  %v2498_v19 = vmul.f32 0.6931472, %v6753_v12 }
 0x131   : > { %v6757_v20 = vpop.eup %6756  ;;  %6776 = vpow2.f32 %v4119_v13  ;;  %v4123_v21 = vmul.f32 1.442695, %v3505_v14  ;;  %v3507_v22 = vmul.f32 0.6, %v2496_v15  ;;  %v2500_v23 = vmul.f32 0.6931472, %v6755_v16 }
 0x132   : > { %v6759_v24 = vpop.eup %6758  ;;  %6778 = vpow2.f32 %v4121_v17  ;;  %v4125_v25 = vmul.f32 1.442695, %v3506_v18  ;;  %v3508_v26 = vmul.f32 0.6, %v2498_v19  ;;  %v2502_v27 = vmul.f32 0.6931472, %v6757_v20 }
 0x133   : > { %v6761_v28 = vpop.eup %6760  ;;  %6780 = vpow2.f32 %v4123_v21  ;;  %v4127_v29 = vmul.f32 1.442695, %v3507_v22  ;;  %v3509_v30 = vmul.f32 0.6, %v2500_v23  ;;  %v2504_v31 = vmul.f32 0.6931472, %v6759_v24 }
 0x134   : > { %v6763_v32 = vpop.eup %6762  ;;  %6782 = vpow2.f32 %v4125_v25  ;;  %v4129_v33 = vmul.f32 1.442695, %v3508_v26  ;;  %v3510_v34 = vmul.f32 0.6, %v2502_v27  ;;  %v1418_v40 = vmul.f32 0.6931472, %v6761_v28 }
 0x135   : > { %v6765_v35 = vpop.eup %6764  ;;  %6784 = vpow2.f32 %v4127_v29  ;;  %v4131_v36 = vmul.f32 1.442695, %v3509_v30  ;;  %v3511_v37 = vmul.f32 0.6, %v2504_v31  ;;  %v1420_v43 = vmul.f32 0.6931472, %v6763_v32 }
 0x136   : > { %v6767_v38 = vpop.eup %6766  ;;  %6786 = vpow2.f32 %v4129_v33  ;;  %v4133_v39 = vmul.f32 1.442695, %v3510_v34  ;;  %v1422_v47 = vmul.f32 0.6931472, %v6765_v35  ;;  %v252_v52 = vld [vmem:[%s9790_s5 + $0x2b8] sm:$0xff]  ;;  %v796_v55 = vmul.f32 %v9797_v1, %v250_v44  ;;  %v253_v56 = vld [vmem:[%s9790_s5 + $0x2c0] sm:$0xff] }
 0x137   : > { %v6769_v41 = vpop.eup %6768  ;;  %6788 = vpow2.f32 %v4131_v36  ;;  %v4135_v42 = vmul.f32 1.442695, %v3511_v37  ;;  %v1424_v51 = vmul.f32 0.6931472, %v6767_v38  ;;  %v797_v59 = vmul.f32 %v9797_v1, %v251_v48  ;;  %v254_v60 = vld [vmem:[%s9790_s5 + $0x2c8] sm:$0xff]  ;;  %v255_v0 = vld [vmem:[%s9790_s5 + $0x2d0] sm:$0xff] }
 0x138   : > { %v6771_v45 = vpop.eup %6770  ;;  %v5131_v46 = vmul.f32 0.2, %v6769_v41  ;;  %6790 = vpow2.f32 %v4133_v39  ;;  %v798_v63 = vmul.f32 %v9797_v1, %v252_v52  ;;  %v799_v4 = vmul.f32 %v9797_v1, %v253_v56  ;;  %v256_v5 = vld [vmem:[%s9790_s5 + $0x2d8] sm:$0xff]  ;;  %v257_v9 = vld [vmem:[%s9790_s5 + $0x2e0] sm:$0xff]  ;;  %v258_v13 = vld [vmem:[%s9790_s5 + $0x2e8] sm:$0xff] }
 0x139   : > { %v6773_v49 = vpop.eup %6772  ;;  %v5132_v50 = vmul.f32 0.2, %v6771_v45  ;;  %6792 = vpow2.f32 %v4135_v42  ;;  %v800_v8 = vmul.f32 %v9797_v1, %v254_v60  ;;  %v801_v12 = vmul.f32 %v9797_v1, %v255_v0  ;;  %v259_v17 = vld [vmem:[%s9790_s5 + $0x2f0] sm:$0xff]  ;;  %v260_v21 = vld [vmem:[%s9790_s5 + $0x2f8] sm:$0xff]  ;;  %v261_v25 = vld [vmem:[%s9790_s5 + $0x300] sm:$0xff] }
 0x13a   : > { %v6775_v53 = vpop.eup %6774  ;;  %5675 = vst [vmem:[%s9837_s20 + $0x220] sm:$0xff] %v5131_v46  ;;  %v5133_v54 = vmul.f32 0.2, %v6773_v49  ;;  %6794 = vlog2.f32 %v1418_v40  ;;  %v802_v16 = vmul.f32 %v9797_v1, %v256_v5  ;;  %v803_v20 = vmul.f32 %v9797_v1, %v257_v9  ;;  %v262_v29 = vld [vmem:[%s9790_s5 + $0x308] sm:$0xff] }
 0x13b   : > { %v6777_v57 = vpop.eup %6776  ;;  %5676 = vst [vmem:[%s9837_s20 + $0x228] sm:$0xff] %v5132_v50  ;;  %v5134_v58 = vmul.f32 0.2, %v6775_v53  ;;  %6796 = vlog2.f32 %v1420_v43  ;;  %v804_v24 = vmul.f32 %v9797_v1, %v258_v13  ;;  %v805_v28 = vmul.f32 %v9797_v1, %v259_v17 }
 0x13c   : > { %v6779_v61 = vpop.eup %6778  ;;  %5677 = vst [vmem:[%s9837_s20 + $0x230] sm:$0xff] %v5133_v54  ;;  %v5135_v62 = vmul.f32 0.2, %v6777_v57  ;;  %6798 = vlog2.f32 %v1422_v47  ;;  %v806_v32 = vmul.f32 %v9797_v1, %v260_v21  ;;  %v807_v35 = vmul.f32 %v9797_v1, %v261_v25 }
 0x13d   : > { %v6781_v2 = vpop.eup %6780  ;;  %5678 = vst [vmem:[%s9837_s20 + $0x238] sm:$0xff] %v5134_v58  ;;  %v5136_v3 = vmul.f32 0.2, %v6779_v61  ;;  %6800 = vlog2.f32 %v1424_v51  ;;  %v808_v38 = vmul.f32 %v9797_v1, %v262_v29 }
 0x13e   : > { %v6783_v6 = vpop.eup %6782  ;;  %5679 = vst [vmem:[%s9837_s20 + $0x240] sm:$0xff] %v5135_v62  ;;  %v5137_v7 = vmul.f32 0.2, %v6781_v2  ;;  %6802 = vlog2.f32 %v796_v55 }
 0x13f   : > { %v6785_v10 = vpop.eup %6784  ;;  %5680 = vst [vmem:[%s9837_s20 + $0x248] sm:$0xff] %v5136_v3  ;;  %v5138_v11 = vmul.f32 0.2, %v6783_v6  ;;  %6804 = vlog2.f32 %v797_v59 }
 0x140   : > { %v6787_v14 = vpop.eup %6786  ;;  %5681 = vst [vmem:[%s9837_s20 + $0x250] sm:$0xff] %v5137_v7  ;;  %v5139_v15 = vmul.f32 0.2, %v6785_v10  ;;  %6806 = vlog2.f32 %v798_v63 }
 0x141   : > { %v6789_v18 = vpop.eup %6788  ;;  %5682 = vst [vmem:[%s9837_s20 + $0x258] sm:$0xff] %v5138_v11  ;;  %v5140_v19 = vmul.f32 0.2, %v6787_v14  ;;  %6808 = vlog2.f32 %v799_v4 }
 0x142   : > { %v6791_v22 = vpop.eup %6790  ;;  %5683 = vst [vmem:[%s9837_s20 + $0x260] sm:$0xff] %v5139_v15  ;;  %v5141_v23 = vmul.f32 0.2, %v6789_v18  ;;  %6810 = vlog2.f32 %v800_v8 }
 0x143   : > { %v6793_v26 = vpop.eup %6792  ;;  %5684 = vst [vmem:[%s9837_s20 + $0x268] sm:$0xff] %v5140_v19  ;;  %v5142_v27 = vmul.f32 0.2, %v6791_v22  ;;  %6812 = vlog2.f32 %v801_v12  ;;  %v263_v12 = vld [vmem:[%s9790_s5 + $0x310] sm:$0xff] }
 0x144   : > { %v6795_v30 = vpop.eup %6794  ;;  %5685 = vst [vmem:[%s9837_s20 + $0x270] sm:$0xff] %v5141_v23  ;;  %v5143_v31 = vmul.f32 0.2, %v6793_v26  ;;  %6814 = vlog2.f32 %v802_v16  ;;  %v264_v16 = vld [vmem:[%s9790_s5 + $0x318] sm:$0xff]  ;;  %v809_v23 = vmul.f32 %v9797_v1, %v263_v12 }
 0x145   : > { %v6797_v33 = vpop.eup %6796  ;;  %5686 = vst [vmem:[%s9837_s20 + $0x278] sm:$0xff] %v5142_v27  ;;  %v2506_v34 = vmul.f32 0.6931472, %v6795_v30  ;;  %6816 = vlog2.f32 %v803_v20  ;;  %v265_v20 = vld [vmem:[%s9790_s5 + $0x320] sm:$0xff]  ;;  %v810_v27 = vmul.f32 %v9797_v1, %v264_v16 }
 0x146   : > { %v6799_v36 = vpop.eup %6798  ;;  %5687 = vst [vmem:[%s9837_s20 + $0x280] sm:$0xff] %v5143_v31  ;;  %v2508_v37 = vmul.f32 0.6931472, %v6797_v33  ;;  %6818 = vlog2.f32 %v804_v24  ;;  %v266_v24 = vld [vmem:[%s9790_s5 + $0x328] sm:$0xff]  ;;  %v811_v30 = vmul.f32 %v9797_v1, %v265_v20 }
 0x147   : > { %v6801_v39 = vpop.eup %6800  ;;  %v3512_v40 = vmul.f32 0.6, %v2506_v34  ;;  %v2510_v41 = vmul.f32 0.6931472, %v6799_v36  ;;  %6820 = vlog2.f32 %v805_v28  ;;  %v812_v33 = vmul.f32 %v9797_v1, %v266_v24 }
 0x148   : > { %v6803_v42 = vpop.eup %6802  ;;  %v3513_v43 = vmul.f32 0.6, %v2508_v37  ;;  %v2512_v44 = vmul.f32 0.6931472, %v6801_v39  ;;  %6822 = vlog2.f32 %v806_v32 }
 0x149   : > { %v6805_v45 = vpop.eup %6804  ;;  %v4137_v46 = vmul.f32 1.442695, %v3512_v40  ;;  %v3514_v47 = vmul.f32 0.6, %v2510_v41  ;;  %6824 = vlog2.f32 %v807_v35  ;;  %v1426_v53 = vmul.f32 0.6931472, %v6803_v42 }
 0x14a   : > { %v6807_v48 = vpop.eup %6806  ;;  %v4139_v49 = vmul.f32 1.442695, %v3513_v43  ;;  %v3515_v50 = vmul.f32 0.6, %v2512_v44  ;;  %6826 = vlog2.f32 %v808_v38  ;;  %v1428_v56 = vmul.f32 0.6931472, %v6805_v45 }
 0x14b   : > { %v6809_v51 = vpop.eup %6808  ;;  %6828 = vpow2.f32 %v4137_v46  ;;  %v4141_v52 = vmul.f32 1.442695, %v3514_v47  ;;  %v1430_v58 = vmul.f32 0.6931472, %v6807_v48 }
 0x14c   : > { %v6811_v54 = vpop.eup %6810  ;;  %6830 = vpow2.f32 %v4139_v49  ;;  %v4143_v55 = vmul.f32 1.442695, %v3515_v50  ;;  %v1432_v60 = vmul.f32 0.6931472, %v6809_v51 }
 0x14d   : > { %v6813_v57 = vpop.eup %6812  ;;  %6832 = vpow2.f32 %v4141_v52  ;;  %v1434_v62 = vmul.f32 0.6931472, %v6811_v54 }
 0x14e   : > { %v6815_v59 = vpop.eup %6814  ;;  %6834 = vpow2.f32 %v4143_v55  ;;  %v1436_v0 = vmul.f32 0.6931472, %v6813_v57 }
 0x14f   : > { %v6817_v61 = vpop.eup %6816  ;;  %6836 = vlog2.f32 %v1426_v53  ;;  %v1438_v3 = vmul.f32 0.6931472, %v6815_v59 }
 0x150   : > { %v6819_v63 = vpop.eup %6818  ;;  %6838 = vlog2.f32 %v1428_v56  ;;  %v1440_v5 = vmul.f32 0.6931472, %v6817_v61 }
 0x151   : > { %v6821_v2 = vpop.eup %6820  ;;  %6840 = vlog2.f32 %v1430_v58  ;;  %v1442_v7 = vmul.f32 0.6931472, %v6819_v63 }
 0x152   : > { %v6823_v4 = vpop.eup %6822  ;;  %6842 = vlog2.f32 %v1432_v60  ;;  %v1444_v9 = vmul.f32 0.6931472, %v6821_v2 }
 0x153   : > { %v6825_v6 = vpop.eup %6824  ;;  %6844 = vlog2.f32 %v1434_v62  ;;  %v1446_v11 = vmul.f32 0.6931472, %v6823_v4 }
 0x154   : > { %v6827_v8 = vpop.eup %6826  ;;  %6846 = vlog2.f32 %v1436_v0  ;;  %v1448_v15 = vmul.f32 0.6931472, %v6825_v6 }
 0x155   : > { %v6829_v10 = vpop.eup %6828  ;;  %6848 = vlog2.f32 %v1438_v3  ;;  %v1450_v19 = vmul.f32 0.6931472, %v6827_v8 }
 0x156   : > { %v6831_v13 = vpop.eup %6830  ;;  %v5144_v14 = vmul.f32 0.2, %v6829_v10  ;;  %6850 = vlog2.f32 %v1440_v5 }
 0x157   : > { %v6833_v17 = vpop.eup %6832  ;;  %v5145_v18 = vmul.f32 0.2, %v6831_v13  ;;  %6852 = vlog2.f32 %v1442_v7 }
 0x158   : > { %v6835_v21 = vpop.eup %6834  ;;  %5688 = vst [vmem:[%s9837_s20 + $0x288] sm:$0xff] %v5144_v14  ;;  %v5146_v22 = vmul.f32 0.2, %v6833_v17  ;;  %6854 = vlog2.f32 %v1444_v9 }
 0x159   : > { %v6837_v25 = vpop.eup %6836  ;;  %5689 = vst [vmem:[%s9837_s20 + $0x290] sm:$0xff] %v5145_v18  ;;  %v5147_v26 = vmul.f32 0.2, %v6835_v21  ;;  %6856 = vlog2.f32 %v1446_v11 }
 0x15a   : > { %v6839_v28 = vpop.eup %6838  ;;  %5690 = vst [vmem:[%s9837_s20 + $0x298] sm:$0xff] %v5146_v22  ;;  %v2514_v29 = vmul.f32 0.6931472, %v6837_v25  ;;  %6858 = vlog2.f32 %v1448_v15  ;;  %v267_v25 = vld [vmem:[%s9790_s5 + $0x330] sm:$0xff] }
 0x15b   : > { %v6841_v31 = vpop.eup %6840  ;;  %5691 = vst [vmem:[%s9837_s20 + $0x2a0] sm:$0xff] %v5147_v26  ;;  %v2516_v32 = vmul.f32 0.6931472, %v6839_v28  ;;  %6860 = vlog2.f32 %v1450_v19 }
 0x15c   : > { %v6843_v34 = vpop.eup %6842  ;;  %v3516_v35 = vmul.f32 0.6, %v2514_v29  ;;  %v2518_v36 = vmul.f32 0.6931472, %v6841_v31  ;;  %6862 = vlog2.f32 %v809_v23  ;;  %v268_v29 = vld [vmem:[%s9790_s5 + $0x338] sm:$0xff] }
 0x15d   : > { %v6845_v37 = vpop.eup %6844  ;;  %v3517_v38 = vmul.f32 0.6, %v2516_v32  ;;  %v2520_v39 = vmul.f32 0.6931472, %v6843_v34  ;;  %6864 = vlog2.f32 %v810_v27 }
 0x15e   : > { %v6847_v40 = vpop.eup %6846  ;;  %v4145_v41 = vmul.f32 1.442695, %v3516_v35  ;;  %v3518_v42 = vmul.f32 0.6, %v2518_v36  ;;  %v2522_v43 = vmul.f32 0.6931472, %v6845_v37  ;;  %6866 = vlog2.f32 %v811_v30 }
 0x15f   : > { %v6849_v44 = vpop.eup %6848  ;;  %v4147_v45 = vmul.f32 1.442695, %v3517_v38  ;;  %v3519_v46 = vmul.f32 0.6, %v2520_v39  ;;  %v2524_v47 = vmul.f32 0.6931472, %v6847_v40  ;;  %6868 = vlog2.f32 %v812_v33 }
 0x160   : > { %v6851_v48 = vpop.eup %6850  ;;  %6870 = vpow2.f32 %v4145_v41  ;;  %v4149_v49 = vmul.f32 1.442695, %v3518_v42  ;;  %v3520_v50 = vmul.f32 0.6, %v2522_v43  ;;  %v2526_v51 = vmul.f32 0.6931472, %v6849_v44 }
 0x161   : > { %v6853_v52 = vpop.eup %6852  ;;  %6872 = vpow2.f32 %v4147_v45  ;;  %v4151_v53 = vmul.f32 1.442695, %v3519_v46  ;;  %v3521_v54 = vmul.f32 0.6, %v2524_v47  ;;  %v2528_v55 = vmul.f32 0.6931472, %v6851_v48 }
 0x162   : > { %v6855_v56 = vpop.eup %6854  ;;  %6874 = vpow2.f32 %v4149_v49  ;;  %v4153_v57 = vmul.f32 1.442695, %v3520_v50  ;;  %v3522_v58 = vmul.f32 0.6, %v2526_v51  ;;  %v2530_v59 = vmul.f32 0.6931472, %v6853_v52 }
 0x163   : > { %v6857_v60 = vpop.eup %6856  ;;  %6876 = vpow2.f32 %v4151_v53  ;;  %v4155_v61 = vmul.f32 1.442695, %v3521_v54  ;;  %v3523_v62 = vmul.f32 0.6, %v2528_v55  ;;  %v2532_v63 = vmul.f32 0.6931472, %v6855_v56 }
 0x164   : > { %v6859_v0 = vpop.eup %6858  ;;  %6878 = vpow2.f32 %v4153_v57  ;;  %v4157_v2 = vmul.f32 1.442695, %v3522_v58  ;;  %v3524_v3 = vmul.f32 0.6, %v2530_v59  ;;  %v2534_v4 = vmul.f32 0.6931472, %v6857_v60 }
 0x165   : > { %v6861_v5 = vpop.eup %6860  ;;  %6880 = vpow2.f32 %v4155_v61  ;;  %v4159_v6 = vmul.f32 1.442695, %v3523_v62  ;;  %v3525_v7 = vmul.f32 0.6, %v2532_v63  ;;  %v2536_v8 = vmul.f32 0.6931472, %v6859_v0 }
 0x166   : > { %v6863_v9 = vpop.eup %6862  ;;  %6882 = vpow2.f32 %v4157_v2  ;;  %v4161_v10 = vmul.f32 1.442695, %v3524_v3  ;;  %v3526_v11 = vmul.f32 0.6, %v2534_v4  ;;  %v2538_v12 = vmul.f32 0.6931472, %v6861_v5 }
 0x167   : > { %v6865_v13 = vpop.eup %6864  ;;  %6884 = vpow2.f32 %v4159_v6  ;;  %v4163_v14 = vmul.f32 1.442695, %v3525_v7  ;;  %v3527_v15 = vmul.f32 0.6, %v2536_v8  ;;  %v1452_v21 = vmul.f32 0.6931472, %v6863_v9 }
 0x168   : > { %v6867_v16 = vpop.eup %6866  ;;  %6886 = vpow2.f32 %v4161_v10  ;;  %v4165_v17 = vmul.f32 1.442695, %v3526_v11  ;;  %v3528_v18 = vmul.f32 0.6, %v2538_v12  ;;  %v1454_v24 = vmul.f32 0.6931472, %v6865_v13 }
 0x169   : > { %v6869_v19 = vpop.eup %6868  ;;  %6888 = vpow2.f32 %v4163_v14  ;;  %v4167_v20 = vmul.f32 1.442695, %v3527_v15  ;;  %v1456_v28 = vmul.f32 0.6931472, %v6867_v16  ;;  %v269_v33 = vld [vmem:[%s9790_s5 + $0x340] sm:$0xff]  ;;  %v813_v36 = vmul.f32 %v9797_v1, %v267_v25  ;;  %v270_v37 = vld [vmem:[%s9790_s5 + $0x348] sm:$0xff] }
 0x16a   : > { %v6871_v22 = vpop.eup %6870  ;;  %6890 = vpow2.f32 %v4165_v17  ;;  %v4169_v23 = vmul.f32 1.442695, %v3528_v18  ;;  %v1458_v32 = vmul.f32 0.6931472, %v6869_v19  ;;  %v814_v40 = vmul.f32 %v9797_v1, %v268_v29  ;;  %v271_v41 = vld [vmem:[%s9790_s5 + $0x350] sm:$0xff]  ;;  %v272_v45 = vld [vmem:[%s9790_s5 + $0x358] sm:$0xff] }
 0x16b   : > { %v6873_v26 = vpop.eup %6872  ;;  %v5148_v27 = vmul.f32 0.2, %v6871_v22  ;;  %6892 = vpow2.f32 %v4167_v20  ;;  %v815_v44 = vmul.f32 %v9797_v1, %v269_v33  ;;  %v816_v48 = vmul.f32 %v9797_v1, %v270_v37  ;;  %v273_v49 = vld [vmem:[%s9790_s5 + $0x360] sm:$0xff]  ;;  %v274_v53 = vld [vmem:[%s9790_s5 + $0x368] sm:$0xff]  ;;  %v275_v57 = vld [vmem:[%s9790_s5 + $0x370] sm:$0xff] }
 0x16c   : > { %v6875_v30 = vpop.eup %6874  ;;  %v5149_v31 = vmul.f32 0.2, %v6873_v26  ;;  %6894 = vpow2.f32 %v4169_v23  ;;  %v817_v52 = vmul.f32 %v9797_v1, %v271_v41  ;;  %v818_v56 = vmul.f32 %v9797_v1, %v272_v45  ;;  %v276_v61 = vld [vmem:[%s9790_s5 + $0x378] sm:$0xff]  ;;  %v277_v2 = vld [vmem:[%s9790_s5 + $0x380] sm:$0xff]  ;;  %v278_v6 = vld [vmem:[%s9790_s5 + $0x388] sm:$0xff] }
 0x16d   : > { %v6877_v34 = vpop.eup %6876  ;;  %5692 = vst [vmem:[%s9837_s20 + $0x2a8] sm:$0xff] %v5148_v27  ;;  %v5150_v35 = vmul.f32 0.2, %v6875_v30  ;;  %6896 = vlog2.f32 %v1452_v21  ;;  %v819_v60 = vmul.f32 %v9797_v1, %v273_v49  ;;  %v820_v0 = vmul.f32 %v9797_v1, %v274_v53  ;;  %v279_v10 = vld [vmem:[%s9790_s5 + $0x390] sm:$0xff] }
 0x16e   : > { %v6879_v38 = vpop.eup %6878  ;;  %5693 = vst [vmem:[%s9837_s20 + $0x2b0] sm:$0xff] %v5149_v31  ;;  %v5151_v39 = vmul.f32 0.2, %v6877_v34  ;;  %6898 = vlog2.f32 %v1454_v24  ;;  %v821_v5 = vmul.f32 %v9797_v1, %v275_v57  ;;  %v822_v9 = vmul.f32 %v9797_v1, %v276_v61 }
 0x16f   : > { %v6881_v42 = vpop.eup %6880  ;;  %5694 = vst [vmem:[%s9837_s20 + $0x2b8] sm:$0xff] %v5150_v35  ;;  %v5152_v43 = vmul.f32 0.2, %v6879_v38  ;;  %6900 = vlog2.f32 %v1456_v28  ;;  %v823_v13 = vmul.f32 %v9797_v1, %v277_v2  ;;  %v824_v16 = vmul.f32 %v9797_v1, %v278_v6 }
 0x170   : > { %v6883_v46 = vpop.eup %6882  ;;  %5695 = vst [vmem:[%s9837_s20 + $0x2c0] sm:$0xff] %v5151_v39  ;;  %v5153_v47 = vmul.f32 0.2, %v6881_v42  ;;  %6902 = vlog2.f32 %v1458_v32  ;;  %v825_v19 = vmul.f32 %v9797_v1, %v279_v10 }
 0x171   : > { %v6885_v50 = vpop.eup %6884  ;;  %5696 = vst [vmem:[%s9837_s20 + $0x2c8] sm:$0xff] %v5152_v43  ;;  %v5154_v51 = vmul.f32 0.2, %v6883_v46  ;;  %6904 = vlog2.f32 %v813_v36 }
 0x172   : > { %v6887_v54 = vpop.eup %6886  ;;  %5697 = vst [vmem:[%s9837_s20 + $0x2d0] sm:$0xff] %v5153_v47  ;;  %v5155_v55 = vmul.f32 0.2, %v6885_v50  ;;  %6906 = vlog2.f32 %v814_v40 }
 0x173   : > { %v6889_v58 = vpop.eup %6888  ;;  %5698 = vst [vmem:[%s9837_s20 + $0x2d8] sm:$0xff] %v5154_v51  ;;  %v5156_v59 = vmul.f32 0.2, %v6887_v54  ;;  %6908 = vlog2.f32 %v815_v44 }
 0x174   : > { %v6891_v62 = vpop.eup %6890  ;;  %5699 = vst [vmem:[%s9837_s20 + $0x2e0] sm:$0xff] %v5155_v55  ;;  %v5157_v63 = vmul.f32 0.2, %v6889_v58  ;;  %6910 = vlog2.f32 %v816_v48 }
 0x175   : > { %v6893_v3 = vpop.eup %6892  ;;  %5700 = vst [vmem:[%s9837_s20 + $0x2e8] sm:$0xff] %v5156_v59  ;;  %v5158_v4 = vmul.f32 0.2, %v6891_v62  ;;  %6912 = vlog2.f32 %v817_v52 }
 0x176   : > { %v6895_v7 = vpop.eup %6894  ;;  %5701 = vst [vmem:[%s9837_s20 + $0x2f0] sm:$0xff] %v5157_v63  ;;  %v5159_v8 = vmul.f32 0.2, %v6893_v3  ;;  %6914 = vlog2.f32 %v818_v56  ;;  %v280_v56 = vld [vmem:[%s9790_s5 + $0x398] sm:$0xff] }
 0x177   : > { %v6897_v11 = vpop.eup %6896  ;;  %5702 = vst [vmem:[%s9837_s20 + $0x2f8] sm:$0xff] %v5158_v4  ;;  %v5160_v12 = vmul.f32 0.2, %v6895_v7  ;;  %6916 = vlog2.f32 %v819_v60  ;;  %v281_v60 = vld [vmem:[%s9790_s5 + $0x3a0] sm:$0xff]  ;;  %v826_v4 = vmul.f32 %v9797_v1, %v280_v56 }
 0x178   : > { %v6899_v14 = vpop.eup %6898  ;;  %5703 = vst [vmem:[%s9837_s20 + $0x300] sm:$0xff] %v5159_v8  ;;  %v2540_v15 = vmul.f32 0.6931472, %v6897_v11  ;;  %6918 = vlog2.f32 %v820_v0  ;;  %v282_v0 = vld [vmem:[%s9790_s5 + $0x3a8] sm:$0xff]  ;;  %v827_v8 = vmul.f32 %v9797_v1, %v281_v60 }
 0x179   : > { %v6901_v17 = vpop.eup %6900  ;;  %5704 = vst [vmem:[%s9837_s20 + $0x308] sm:$0xff] %v5160_v12  ;;  %v2542_v18 = vmul.f32 0.6931472, %v6899_v14  ;;  %6920 = vlog2.f32 %v821_v5  ;;  %v283_v5 = vld [vmem:[%s9790_s5 + $0x3b0] sm:$0xff]  ;;  %v828_v11 = vmul.f32 %v9797_v1, %v282_v0 }
 0x17a   : > { %v6903_v20 = vpop.eup %6902  ;;  %v3529_v21 = vmul.f32 0.6, %v2540_v15  ;;  %v2544_v22 = vmul.f32 0.6931472, %v6901_v17  ;;  %6922 = vlog2.f32 %v822_v9  ;;  %v829_v14 = vmul.f32 %v9797_v1, %v283_v5 }
 0x17b   : > { %v6905_v23 = vpop.eup %6904  ;;  %v3530_v24 = vmul.f32 0.6, %v2542_v18  ;;  %v2546_v25 = vmul.f32 0.6931472, %v6903_v20  ;;  %6924 = vlog2.f32 %v823_v13 }
 0x17c   : > { %v6907_v26 = vpop.eup %6906  ;;  %v4171_v27 = vmul.f32 1.442695, %v3529_v21  ;;  %v3531_v28 = vmul.f32 0.6, %v2544_v22  ;;  %6926 = vlog2.f32 %v824_v16  ;;  %v1460_v34 = vmul.f32 0.6931472, %v6905_v23 }
 0x17d   : > { %v6909_v29 = vpop.eup %6908  ;;  %v4173_v30 = vmul.f32 1.442695, %v3530_v24  ;;  %v3532_v31 = vmul.f32 0.6, %v2546_v25  ;;  %6928 = vlog2.f32 %v825_v19  ;;  %v1462_v37 = vmul.f32 0.6931472, %v6907_v26 }
 0x17e   : > { %v6911_v32 = vpop.eup %6910  ;;  %6930 = vpow2.f32 %v4171_v27  ;;  %v4175_v33 = vmul.f32 1.442695, %v3531_v28  ;;  %v1464_v39 = vmul.f32 0.6931472, %v6909_v29 }
 0x17f   : > { %v6913_v35 = vpop.eup %6912  ;;  %6932 = vpow2.f32 %v4173_v30  ;;  %v4177_v36 = vmul.f32 1.442695, %v3532_v31  ;;  %v1466_v41 = vmul.f32 0.6931472, %v6911_v32 }
 0x180   : > { %v6915_v38 = vpop.eup %6914  ;;  %6934 = vpow2.f32 %v4175_v33  ;;  %v1468_v43 = vmul.f32 0.6931472, %v6913_v35 }
 0x181   : > { %v6917_v40 = vpop.eup %6916  ;;  %6936 = vpow2.f32 %v4177_v36  ;;  %v1470_v45 = vmul.f32 0.6931472, %v6915_v38 }
 0x182   : > { %v6919_v42 = vpop.eup %6918  ;;  %6938 = vlog2.f32 %v1460_v34  ;;  %v1472_v47 = vmul.f32 0.6931472, %v6917_v40 }
 0x183   : > { %v6921_v44 = vpop.eup %6920  ;;  %6940 = vlog2.f32 %v1462_v37  ;;  %v1474_v49 = vmul.f32 0.6931472, %v6919_v42 }
 0x184   : > { %v6923_v46 = vpop.eup %6922  ;;  %6942 = vlog2.f32 %v1464_v39  ;;  %v1476_v51 = vmul.f32 0.6931472, %v6921_v44 }
 0x185   : > { %v6925_v48 = vpop.eup %6924  ;;  %6944 = vlog2.f32 %v1466_v41  ;;  %v1478_v53 = vmul.f32 0.6931472, %v6923_v46 }
 0x186   : > { %v6927_v50 = vpop.eup %6926  ;;  %6946 = vlog2.f32 %v1468_v43  ;;  %v1480_v55 = vmul.f32 0.6931472, %v6925_v48 }
 0x187   : > { %v6929_v52 = vpop.eup %6928  ;;  %6948 = vlog2.f32 %v1470_v45  ;;  %v1482_v59 = vmul.f32 0.6931472, %v6927_v50 }
 0x188   : > { %v6931_v54 = vpop.eup %6930  ;;  %6950 = vlog2.f32 %v1472_v47  ;;  %v1484_v63 = vmul.f32 0.6931472, %v6929_v52 }
 0x189   : > { %v6933_v57 = vpop.eup %6932  ;;  %v5161_v58 = vmul.f32 0.2, %v6931_v54  ;;  %6952 = vlog2.f32 %v1474_v49 }
 0x18a   : > { %v6935_v61 = vpop.eup %6934  ;;  %v5162_v62 = vmul.f32 0.2, %v6933_v57  ;;  %6954 = vlog2.f32 %v1476_v51 }
 0x18b   : > { %v6937_v2 = vpop.eup %6936  ;;  %5705 = vst [vmem:[%s9837_s20 + $0x310] sm:$0xff] %v5161_v58  ;;  %v5163_v3 = vmul.f32 0.2, %v6935_v61  ;;  %6956 = vlog2.f32 %v1478_v53 }
 0x18c   : > { %v6939_v6 = vpop.eup %6938  ;;  %5706 = vst [vmem:[%s9837_s20 + $0x318] sm:$0xff] %v5162_v62  ;;  %v5164_v7 = vmul.f32 0.2, %v6937_v2  ;;  %6958 = vlog2.f32 %v1480_v55 }
 0x18d   : > { %v6941_v9 = vpop.eup %6940  ;;  %5707 = vst [vmem:[%s9837_s20 + $0x320] sm:$0xff] %v5163_v3  ;;  %v2548_v10 = vmul.f32 0.6931472, %v6939_v6  ;;  %6960 = vlog2.f32 %v1482_v59  ;;  %v284_v6 = vld [vmem:[%s9790_s5 + $0x3b8] sm:$0xff] }
 0x18e   : > { %v6943_v12 = vpop.eup %6942  ;;  %5708 = vst [vmem:[%s9837_s20 + $0x328] sm:$0xff] %v5164_v7  ;;  %v2550_v13 = vmul.f32 0.6931472, %v6941_v9  ;;  %6962 = vlog2.f32 %v1484_v63 }
 0x18f   : > { %v6945_v15 = vpop.eup %6944  ;;  %v3533_v16 = vmul.f32 0.6, %v2548_v10  ;;  %v2552_v17 = vmul.f32 0.6931472, %v6943_v12  ;;  %6964 = vlog2.f32 %v826_v4  ;;  %v285_v10 = vld [vmem:[%s9790_s5 + $0x3c0] sm:$0xff] }
 0x190   : > { %v6947_v18 = vpop.eup %6946  ;;  %v3534_v19 = vmul.f32 0.6, %v2550_v13  ;;  %v2554_v20 = vmul.f32 0.6931472, %v6945_v15  ;;  %6966 = vlog2.f32 %v827_v8 }
 0x191   : > { %v6949_v21 = vpop.eup %6948  ;;  %v4179_v22 = vmul.f32 1.442695, %v3533_v16  ;;  %v3535_v23 = vmul.f32 0.6, %v2552_v17  ;;  %v2556_v24 = vmul.f32 0.6931472, %v6947_v18  ;;  %6968 = vlog2.f32 %v828_v11 }
 0x192   : > { %v6951_v25 = vpop.eup %6950  ;;  %v4181_v26 = vmul.f32 1.442695, %v3534_v19  ;;  %v3536_v27 = vmul.f32 0.6, %v2554_v20  ;;  %v2558_v28 = vmul.f32 0.6931472, %v6949_v21  ;;  %6970 = vlog2.f32 %v829_v14 }
 0x193   : > { %v6953_v29 = vpop.eup %6952  ;;  %6972 = vpow2.f32 %v4179_v22  ;;  %v4183_v30 = vmul.f32 1.442695, %v3535_v23  ;;  %v3537_v31 = vmul.f32 0.6, %v2556_v24  ;;  %v2560_v32 = vmul.f32 0.6931472, %v6951_v25 }
 0x194   : > { %v6955_v33 = vpop.eup %6954  ;;  %6974 = vpow2.f32 %v4181_v26  ;;  %v4185_v34 = vmul.f32 1.442695, %v3536_v27  ;;  %v3538_v35 = vmul.f32 0.6, %v2558_v28  ;;  %v2562_v36 = vmul.f32 0.6931472, %v6953_v29 }
 0x195   : > { %v6957_v37 = vpop.eup %6956  ;;  %6976 = vpow2.f32 %v4183_v30  ;;  %v4187_v38 = vmul.f32 1.442695, %v3537_v31  ;;  %v3539_v39 = vmul.f32 0.6, %v2560_v32  ;;  %v2564_v40 = vmul.f32 0.6931472, %v6955_v33 }
 0x196   : > { %v6959_v41 = vpop.eup %6958  ;;  %6978 = vpow2.f32 %v4185_v34  ;;  %v4189_v42 = vmul.f32 1.442695, %v3538_v35  ;;  %v3540_v43 = vmul.f32 0.6, %v2562_v36  ;;  %v2566_v44 = vmul.f32 0.6931472, %v6957_v37 }
 0x197   : > { %v6961_v45 = vpop.eup %6960  ;;  %6980 = vpow2.f32 %v4187_v38  ;;  %v4191_v46 = vmul.f32 1.442695, %v3539_v39  ;;  %v3541_v47 = vmul.f32 0.6, %v2564_v40  ;;  %v2568_v48 = vmul.f32 0.6931472, %v6959_v41 }
 0x198   : > { %v6963_v49 = vpop.eup %6962  ;;  %6982 = vpow2.f32 %v4189_v42  ;;  %v4193_v50 = vmul.f32 1.442695, %v3540_v43  ;;  %v3542_v51 = vmul.f32 0.6, %v2566_v44  ;;  %v2570_v52 = vmul.f32 0.6931472, %v6961_v45 }
 0x199   : > { %v6965_v53 = vpop.eup %6964  ;;  %6984 = vpow2.f32 %v4191_v46  ;;  %v4195_v54 = vmul.f32 1.442695, %v3541_v47  ;;  %v3543_v55 = vmul.f32 0.6, %v2568_v48  ;;  %v2572_v56 = vmul.f32 0.6931472, %v6963_v49 }
 0x19a   : > { %v6967_v57 = vpop.eup %6966  ;;  %6986 = vpow2.f32 %v4193_v50  ;;  %v4197_v58 = vmul.f32 1.442695, %v3542_v51  ;;  %v3544_v59 = vmul.f32 0.6, %v2570_v52  ;;  %v1486_v2 = vmul.f32 0.6931472, %v6965_v53 }
 0x19b   : > { %v6969_v60 = vpop.eup %6968  ;;  %6988 = vpow2.f32 %v4195_v54  ;;  %v4199_v61 = vmul.f32 1.442695, %v3543_v55  ;;  %v3545_v62 = vmul.f32 0.6, %v2572_v56  ;;  %v1488_v5 = vmul.f32 0.6931472, %v6967_v57 }
 0x19c   : > { %v6971_v63 = vpop.eup %6970  ;;  %6990 = vpow2.f32 %v4197_v58  ;;  %v4201_v0 = vmul.f32 1.442695, %v3544_v59  ;;  %v1490_v9 = vmul.f32 0.6931472, %v6969_v60  ;;  %v286_v14 = vld [vmem:[%s9790_s5 + $0x3c8] sm:$0xff]  ;;  %v830_v17 = vmul.f32 %v9797_v1, %v284_v6  ;;  %v287_v18 = vld [vmem:[%s9790_s5 + $0x3d0] sm:$0xff] }
 0x19d   : > { %v6973_v3 = vpop.eup %6972  ;;  %6992 = vpow2.f32 %v4199_v61  ;;  %v4203_v4 = vmul.f32 1.442695, %v3545_v62  ;;  %v1492_v13 = vmul.f32 0.6931472, %v6971_v63  ;;  %v831_v21 = vmul.f32 %v9797_v1, %v285_v10  ;;  %v288_v22 = vld [vmem:[%s9790_s5 + $0x3d8] sm:$0xff]  ;;  %v289_v26 = vld [vmem:[%s9790_s5 + $0x3e0] sm:$0xff] }
 0x19e   : > { %v6975_v7 = vpop.eup %6974  ;;  %v5165_v8 = vmul.f32 0.2, %v6973_v3  ;;  %6994 = vpow2.f32 %v4201_v0  ;;  %v832_v25 = vmul.f32 %v9797_v1, %v286_v14  ;;  %v833_v29 = vmul.f32 %v9797_v1, %v287_v18  ;;  %v290_v30 = vld [vmem:[%s9790_s5 + $0x3e8] sm:$0xff]  ;;  %v291_v34 = vld [vmem:[%s9790_s5 + $0x3f0] sm:$0xff]  ;;  %v292_v38 = vld [vmem:[%s9790_s5 + $0x3f8] sm:$0xff] }
 0x19f   : > { %v6977_v11 = vpop.eup %6976  ;;  %v5166_v12 = vmul.f32 0.2, %v6975_v7  ;;  %6996 = vpow2.f32 %v4203_v4  ;;  %v834_v33 = vmul.f32 %v9797_v1, %v288_v22  ;;  %v835_v37 = vmul.f32 %v9797_v1, %v289_v26  ;;  %v293_v42 = vld [vmem:[%s9790_s5 + $0x400] sm:$0xff]  ;;  %v294_v46 = vld [vmem:[%s9790_s5 + $0x408] sm:$0xff]  ;;  %v295_v50 = vld [vmem:[%s9790_s5 + $0x410] sm:$0xff] }
 0x1a0   : > { %v6979_v15 = vpop.eup %6978  ;;  %5709 = vst [vmem:[%s9837_s20 + $0x330] sm:$0xff] %v5165_v8  ;;  %v5167_v16 = vmul.f32 0.2, %v6977_v11  ;;  %6998 = vlog2.f32 %v1486_v2  ;;  %v836_v41 = vmul.f32 %v9797_v1, %v290_v30  ;;  %v837_v45 = vmul.f32 %v9797_v1, %v291_v34  ;;  %v296_v54 = vld [vmem:[%s9790_s5 + $0x418] sm:$0xff] }
 0x1a1   : > { %v6981_v19 = vpop.eup %6980  ;;  %5710 = vst [vmem:[%s9837_s20 + $0x338] sm:$0xff] %v5166_v12  ;;  %v5168_v20 = vmul.f32 0.2, %v6979_v15  ;;  %7000 = vlog2.f32 %v1488_v5  ;;  %v838_v49 = vmul.f32 %v9797_v1, %v292_v38  ;;  %v839_v53 = vmul.f32 %v9797_v1, %v293_v42 }
 0x1a2   : > { %v6983_v23 = vpop.eup %6982  ;;  %5711 = vst [vmem:[%s9837_s20 + $0x340] sm:$0xff] %v5167_v16  ;;  %v5169_v24 = vmul.f32 0.2, %v6981_v19  ;;  %7002 = vlog2.f32 %v1490_v9  ;;  %v840_v57 = vmul.f32 %v9797_v1, %v294_v46  ;;  %v841_v60 = vmul.f32 %v9797_v1, %v295_v50 }
 0x1a3   : > { %v6985_v27 = vpop.eup %6984  ;;  %5712 = vst [vmem:[%s9837_s20 + $0x348] sm:$0xff] %v5168_v20  ;;  %v5170_v28 = vmul.f32 0.2, %v6983_v23  ;;  %7004 = vlog2.f32 %v1492_v13  ;;  %v842_v63 = vmul.f32 %v9797_v1, %v296_v54 }
 0x1a4   : > { %v6987_v31 = vpop.eup %6986  ;;  %5713 = vst [vmem:[%s9837_s20 + $0x350] sm:$0xff] %v5169_v24  ;;  %v5171_v32 = vmul.f32 0.2, %v6985_v27  ;;  %7006 = vlog2.f32 %v830_v17 }
 0x1a5   : > { %v6989_v35 = vpop.eup %6988  ;;  %5714 = vst [vmem:[%s9837_s20 + $0x358] sm:$0xff] %v5170_v28  ;;  %v5172_v36 = vmul.f32 0.2, %v6987_v31  ;;  %7008 = vlog2.f32 %v831_v21 }
 0x1a6   : > { %v6991_v39 = vpop.eup %6990  ;;  %5715 = vst [vmem:[%s9837_s20 + $0x360] sm:$0xff] %v5171_v32  ;;  %v5173_v40 = vmul.f32 0.2, %v6989_v35  ;;  %7010 = vlog2.f32 %v832_v25 }
 0x1a7   : > { %v6993_v43 = vpop.eup %6992  ;;  %5716 = vst [vmem:[%s9837_s20 + $0x368] sm:$0xff] %v5172_v36  ;;  %v5174_v44 = vmul.f32 0.2, %v6991_v39  ;;  %7012 = vlog2.f32 %v833_v29 }
 0x1a8   : > { %v6995_v47 = vpop.eup %6994  ;;  %5717 = vst [vmem:[%s9837_s20 + $0x370] sm:$0xff] %v5173_v40  ;;  %v5175_v48 = vmul.f32 0.2, %v6993_v43  ;;  %7014 = vlog2.f32 %v834_v33 }
 0x1a9   : > { %v6997_v51 = vpop.eup %6996  ;;  %5718 = vst [vmem:[%s9837_s20 + $0x378] sm:$0xff] %v5174_v44  ;;  %v5176_v52 = vmul.f32 0.2, %v6995_v47  ;;  %7016 = vlog2.f32 %v835_v37  ;;  %v297_v37 = vld [vmem:[%s9790_s5 + $0x420] sm:$0xff] }
 0x1aa   : > { %v6999_v55 = vpop.eup %6998  ;;  %5719 = vst [vmem:[%s9837_s20 + $0x380] sm:$0xff] %v5175_v48  ;;  %v5177_v56 = vmul.f32 0.2, %v6997_v51  ;;  %7018 = vlog2.f32 %v836_v41  ;;  %v298_v41 = vld [vmem:[%s9790_s5 + $0x428] sm:$0xff]  ;;  %v843_v48 = vmul.f32 %v9797_v1, %v297_v37 }
 0x1ab   : > { %v7001_v58 = vpop.eup %7000  ;;  %5720 = vst [vmem:[%s9837_s20 + $0x388] sm:$0xff] %v5176_v52  ;;  %v2574_v59 = vmul.f32 0.6931472, %v6999_v55  ;;  %7020 = vlog2.f32 %v837_v45  ;;  %v299_v45 = vld [vmem:[%s9790_s5 + $0x430] sm:$0xff]  ;;  %v844_v52 = vmul.f32 %v9797_v1, %v298_v41 }
 0x1ac   : > { %v7003_v61 = vpop.eup %7002  ;;  %5721 = vst [vmem:[%s9837_s20 + $0x390] sm:$0xff] %v5177_v56  ;;  %v2576_v62 = vmul.f32 0.6931472, %v7001_v58  ;;  %7022 = vlog2.f32 %v838_v49  ;;  %v300_v49 = vld [vmem:[%s9790_s5 + $0x438] sm:$0xff]  ;;  %v845_v55 = vmul.f32 %v9797_v1, %v299_v45 }
 0x1ad   : > { %v7005_v0 = vpop.eup %7004  ;;  %v3546_v2 = vmul.f32 0.6, %v2574_v59  ;;  %v2578_v3 = vmul.f32 0.6931472, %v7003_v61  ;;  %7024 = vlog2.f32 %v839_v53  ;;  %v846_v58 = vmul.f32 %v9797_v1, %v300_v49 }
 0x1ae   : > { %v7007_v4 = vpop.eup %7006  ;;  %v3547_v5 = vmul.f32 0.6, %v2576_v62  ;;  %v2580_v6 = vmul.f32 0.6931472, %v7005_v0  ;;  %7026 = vlog2.f32 %v840_v57 }
 0x1af   : > { %v7009_v7 = vpop.eup %7008  ;;  %v4205_v8 = vmul.f32 1.442695, %v3546_v2  ;;  %v3548_v9 = vmul.f32 0.6, %v2578_v3  ;;  %7028 = vlog2.f32 %v841_v60  ;;  %v1494_v15 = vmul.f32 0.6931472, %v7007_v4 }
 0x1b0   : > { %v7011_v10 = vpop.eup %7010  ;;  %v4207_v11 = vmul.f32 1.442695, %v3547_v5  ;;  %v3549_v12 = vmul.f32 0.6, %v2580_v6  ;;  %7030 = vlog2.f32 %v842_v63  ;;  %v1496_v18 = vmul.f32 0.6931472, %v7009_v7 }
 0x1b1   : > { %v7013_v13 = vpop.eup %7012  ;;  %7032 = vpow2.f32 %v4205_v8  ;;  %v4209_v14 = vmul.f32 1.442695, %v3548_v9  ;;  %v1498_v20 = vmul.f32 0.6931472, %v7011_v10 }
 0x1b2   : > { %v7015_v16 = vpop.eup %7014  ;;  %7034 = vpow2.f32 %v4207_v11  ;;  %v4211_v17 = vmul.f32 1.442695, %v3549_v12  ;;  %v1500_v22 = vmul.f32 0.6931472, %v7013_v13 }
 0x1b3   : > { %v7017_v19 = vpop.eup %7016  ;;  %7036 = vpow2.f32 %v4209_v14  ;;  %v1502_v24 = vmul.f32 0.6931472, %v7015_v16 }
 0x1b4   : > { %v7019_v21 = vpop.eup %7018  ;;  %7038 = vpow2.f32 %v4211_v17  ;;  %v1504_v26 = vmul.f32 0.6931472, %v7017_v19 }
 0x1b5   : > { %v7021_v23 = vpop.eup %7020  ;;  %7040 = vlog2.f32 %v1494_v15  ;;  %v1506_v28 = vmul.f32 0.6931472, %v7019_v21 }
 0x1b6   : > { %v7023_v25 = vpop.eup %7022  ;;  %7042 = vlog2.f32 %v1496_v18  ;;  %v1508_v30 = vmul.f32 0.6931472, %v7021_v23 }
 0x1b7   : > { %v7025_v27 = vpop.eup %7024  ;;  %7044 = vlog2.f32 %v1498_v20  ;;  %v1510_v32 = vmul.f32 0.6931472, %v7023_v25 }
 0x1b8   : > { %v7027_v29 = vpop.eup %7026  ;;  %7046 = vlog2.f32 %v1500_v22  ;;  %v1512_v34 = vmul.f32 0.6931472, %v7025_v27 }
 0x1b9   : > { %v7029_v31 = vpop.eup %7028  ;;  %7048 = vlog2.f32 %v1502_v24  ;;  %v1514_v36 = vmul.f32 0.6931472, %v7027_v29 }
 0x1ba   : > { %v7031_v33 = vpop.eup %7030  ;;  %7050 = vlog2.f32 %v1504_v26  ;;  %v1516_v40 = vmul.f32 0.6931472, %v7029_v31 }
 0x1bb   : > { %v7033_v35 = vpop.eup %7032  ;;  %7052 = vlog2.f32 %v1506_v28  ;;  %v1518_v44 = vmul.f32 0.6931472, %v7031_v33 }
 0x1bc   : > { %v7035_v38 = vpop.eup %7034  ;;  %v5178_v39 = vmul.f32 0.2, %v7033_v35  ;;  %7054 = vlog2.f32 %v1508_v30 }
 0x1bd   : > { %v7037_v42 = vpop.eup %7036  ;;  %v5179_v43 = vmul.f32 0.2, %v7035_v38  ;;  %7056 = vlog2.f32 %v1510_v32 }
 0x1be   : > { %v7039_v46 = vpop.eup %7038  ;;  %5722 = vst [vmem:[%s9837_s20 + $0x398] sm:$0xff] %v5178_v39  ;;  %v5180_v47 = vmul.f32 0.2, %v7037_v42  ;;  %7058 = vlog2.f32 %v1512_v34 }
 0x1bf   : > { %v7041_v50 = vpop.eup %7040  ;;  %5723 = vst [vmem:[%s9837_s20 + $0x3a0] sm:$0xff] %v5179_v43  ;;  %v5181_v51 = vmul.f32 0.2, %v7039_v46  ;;  %7060 = vlog2.f32 %v1514_v36 }
 0x1c0   : > { %v7043_v53 = vpop.eup %7042  ;;  %5724 = vst [vmem:[%s9837_s20 + $0x3a8] sm:$0xff] %v5180_v47  ;;  %v2582_v54 = vmul.f32 0.6931472, %v7041_v50  ;;  %7062 = vlog2.f32 %v1516_v40  ;;  %v301_v50 = vld [vmem:[%s9790_s5 + $0x440] sm:$0xff] }
 0x1c1   : > { %v7045_v56 = vpop.eup %7044  ;;  %5725 = vst [vmem:[%s9837_s20 + $0x3b0] sm:$0xff] %v5181_v51  ;;  %v2584_v57 = vmul.f32 0.6931472, %v7043_v53  ;;  %7064 = vlog2.f32 %v1518_v44 }
 0x1c2   : > { %v7047_v59 = vpop.eup %7046  ;;  %v3550_v60 = vmul.f32 0.6, %v2582_v54  ;;  %v2586_v61 = vmul.f32 0.6931472, %v7045_v56  ;;  %7066 = vlog2.f32 %v843_v48  ;;  %v302_v54 = vld [vmem:[%s9790_s5 + $0x448] sm:$0xff] }
 0x1c3   : > { %v7049_v62 = vpop.eup %7048  ;;  %v3551_v63 = vmul.f32 0.6, %v2584_v57  ;;  %v2588_v0 = vmul.f32 0.6931472, %v7047_v59  ;;  %7068 = vlog2.f32 %v844_v52 }
 0x1c4   : > { %v7051_v2 = vpop.eup %7050  ;;  %v4213_v3 = vmul.f32 1.442695, %v3550_v60  ;;  %v3552_v4 = vmul.f32 0.6, %v2586_v61  ;;  %v2590_v5 = vmul.f32 0.6931472, %v7049_v62  ;;  %7070 = vlog2.f32 %v845_v55 }
 0x1c5   : > { %v7053_v6 = vpop.eup %7052  ;;  %v4215_v7 = vmul.f32 1.442695, %v3551_v63  ;;  %v3553_v8 = vmul.f32 0.6, %v2588_v0  ;;  %v2592_v9 = vmul.f32 0.6931472, %v7051_v2  ;;  %7072 = vlog2.f32 %v846_v58 }
 0x1c6   : > { %v7055_v10 = vpop.eup %7054  ;;  %7074 = vpow2.f32 %v4213_v3  ;;  %v4217_v11 = vmul.f32 1.442695, %v3552_v4  ;;  %v3554_v12 = vmul.f32 0.6, %v2590_v5  ;;  %v2594_v13 = vmul.f32 0.6931472, %v7053_v6 }
 0x1c7   : > { %v7057_v14 = vpop.eup %7056  ;;  %7076 = vpow2.f32 %v4215_v7  ;;  %v4219_v15 = vmul.f32 1.442695, %v3553_v8  ;;  %v3555_v16 = vmul.f32 0.6, %v2592_v9  ;;  %v2596_v17 = vmul.f32 0.6931472, %v7055_v10 }
 0x1c8   : > { %v7059_v18 = vpop.eup %7058  ;;  %7078 = vpow2.f32 %v4217_v11  ;;  %v4221_v19 = vmul.f32 1.442695, %v3554_v12  ;;  %v3556_v20 = vmul.f32 0.6, %v2594_v13  ;;  %v2598_v21 = vmul.f32 0.6931472, %v7057_v14 }
 0x1c9   : > { %v7061_v22 = vpop.eup %7060  ;;  %7080 = vpow2.f32 %v4219_v15  ;;  %v4223_v23 = vmul.f32 1.442695, %v3555_v16  ;;  %v3557_v24 = vmul.f32 0.6, %v2596_v17  ;;  %v2600_v25 = vmul.f32 0.6931472, %v7059_v18 }
 0x1ca   : > { %v7063_v26 = vpop.eup %7062  ;;  %7082 = vpow2.f32 %v4221_v19  ;;  %v4225_v27 = vmul.f32 1.442695, %v3556_v20  ;;  %v3558_v28 = vmul.f32 0.6, %v2598_v21  ;;  %v2602_v29 = vmul.f32 0.6931472, %v7061_v22 }
 0x1cb   : > { %v7065_v30 = vpop.eup %7064  ;;  %7084 = vpow2.f32 %v4223_v23  ;;  %v4227_v31 = vmul.f32 1.442695, %v3557_v24  ;;  %v3559_v32 = vmul.f32 0.6, %v2600_v25  ;;  %v2604_v33 = vmul.f32 0.6931472, %v7063_v26 }
 0x1cc   : > { %v7067_v34 = vpop.eup %7066  ;;  %7086 = vpow2.f32 %v4225_v27  ;;  %v4229_v35 = vmul.f32 1.442695, %v3558_v28  ;;  %v3560_v36 = vmul.f32 0.6, %v2602_v29  ;;  %v2606_v37 = vmul.f32 0.6931472, %v7065_v30 }
 0x1cd   : > { %v7069_v38 = vpop.eup %7068  ;;  %7088 = vpow2.f32 %v4227_v31  ;;  %v4231_v39 = vmul.f32 1.442695, %v3559_v32  ;;  %v3561_v40 = vmul.f32 0.6, %v2604_v33  ;;  %v1520_v46 = vmul.f32 0.6931472, %v7067_v34 }
 0x1ce   : > { %v7071_v41 = vpop.eup %7070  ;;  %7090 = vpow2.f32 %v4229_v35  ;;  %v4233_v42 = vmul.f32 1.442695, %v3560_v36  ;;  %v3562_v43 = vmul.f32 0.6, %v2606_v37  ;;  %v1522_v49 = vmul.f32 0.6931472, %v7069_v38 }
 0x1cf   : > { %v7073_v44 = vpop.eup %7072  ;;  %7092 = vpow2.f32 %v4231_v39  ;;  %v4235_v45 = vmul.f32 1.442695, %v3561_v40  ;;  %v1524_v53 = vmul.f32 0.6931472, %v7071_v41  ;;  %v303_v58 = vld [vmem:[%s9790_s5 + $0x450] sm:$0xff]  ;;  %v847_v61 = vmul.f32 %v9797_v1, %v301_v50  ;;  %v304_v62 = vld [vmem:[%s9790_s5 + $0x458] sm:$0xff] }
 0x1d0   : > { %v7075_v47 = vpop.eup %7074  ;;  %7094 = vpow2.f32 %v4233_v42  ;;  %v4237_v48 = vmul.f32 1.442695, %v3562_v43  ;;  %v1526_v57 = vmul.f32 0.6931472, %v7073_v44  ;;  %v848_v2 = vmul.f32 %v9797_v1, %v302_v54  ;;  %v305_v3 = vld [vmem:[%s9790_s5 + $0x460] sm:$0xff]  ;;  %v306_v7 = vld [vmem:[%s9790_s5 + $0x468] sm:$0xff] }
 0x1d1   : > { %v7077_v51 = vpop.eup %7076  ;;  %v5182_v52 = vmul.f32 0.2, %v7075_v47  ;;  %7096 = vpow2.f32 %v4235_v45  ;;  %v849_v6 = vmul.f32 %v9797_v1, %v303_v58  ;;  %v850_v10 = vmul.f32 %v9797_v1, %v304_v62  ;;  %v307_v11 = vld [vmem:[%s9790_s5 + $0x470] sm:$0xff]  ;;  %v308_v15 = vld [vmem:[%s9790_s5 + $0x478] sm:$0xff]  ;;  %v309_v19 = vld [vmem:[%s9790_s5 + $0x480] sm:$0xff] }
 0x1d2   : > { %v7079_v55 = vpop.eup %7078  ;;  %v5183_v56 = vmul.f32 0.2, %v7077_v51  ;;  %7098 = vpow2.f32 %v4237_v48  ;;  %v851_v14 = vmul.f32 %v9797_v1, %v305_v3  ;;  %v852_v18 = vmul.f32 %v9797_v1, %v306_v7  ;;  %v310_v23 = vld [vmem:[%s9790_s5 + $0x488] sm:$0xff]  ;;  %v311_v27 = vld [vmem:[%s9790_s5 + $0x490] sm:$0xff]  ;;  %v312_v31 = vld [vmem:[%s9790_s5 + $0x498] sm:$0xff] }
 0x1d3   : > { %v7081_v59 = vpop.eup %7080  ;;  %5726 = vst [vmem:[%s9837_s20 + $0x3b8] sm:$0xff] %v5182_v52  ;;  %v5184_v60 = vmul.f32 0.2, %v7079_v55  ;;  %7100 = vlog2.f32 %v1520_v46  ;;  %v853_v22 = vmul.f32 %v9797_v1, %v307_v11  ;;  %v854_v26 = vmul.f32 %v9797_v1, %v308_v15  ;;  %v313_v35 = vld [vmem:[%s9790_s5 + $0x4a0] sm:$0xff] }
 0x1d4   : > { %v7083_v63 = vpop.eup %7082  ;;  %5727 = vst [vmem:[%s9837_s20 + $0x3c0] sm:$0xff] %v5183_v56  ;;  %v5185_v0 = vmul.f32 0.2, %v7081_v59  ;;  %7102 = vlog2.f32 %v1522_v49  ;;  %v855_v30 = vmul.f32 %v9797_v1, %v309_v19  ;;  %v856_v34 = vmul.f32 %v9797_v1, %v310_v23 }
 0x1d5   : > { %v7085_v4 = vpop.eup %7084  ;;  %5728 = vst [vmem:[%s9837_s20 + $0x3c8] sm:$0xff] %v5184_v60  ;;  %v5186_v5 = vmul.f32 0.2, %v7083_v63  ;;  %7104 = vlog2.f32 %v1524_v53  ;;  %v857_v38 = vmul.f32 %v9797_v1, %v311_v27  ;;  %v858_v41 = vmul.f32 %v9797_v1, %v312_v31 }
 0x1d6   : > { %v7087_v8 = vpop.eup %7086  ;;  %5729 = vst [vmem:[%s9837_s20 + $0x3d0] sm:$0xff] %v5185_v0  ;;  %v5187_v9 = vmul.f32 0.2, %v7085_v4  ;;  %7106 = vlog2.f32 %v1526_v57  ;;  %v859_v44 = vmul.f32 %v9797_v1, %v313_v35 }
 0x1d7   : > { %v7089_v12 = vpop.eup %7088  ;;  %5730 = vst [vmem:[%s9837_s20 + $0x3d8] sm:$0xff] %v5186_v5  ;;  %v5188_v13 = vmul.f32 0.2, %v7087_v8  ;;  %7108 = vlog2.f32 %v847_v61 }
 0x1d8   : > { %v7091_v16 = vpop.eup %7090  ;;  %5731 = vst [vmem:[%s9837_s20 + $0x3e0] sm:$0xff] %v5187_v9  ;;  %v5189_v17 = vmul.f32 0.2, %v7089_v12  ;;  %7110 = vlog2.f32 %v848_v2 }
 0x1d9   : > { %v7093_v20 = vpop.eup %7092  ;;  %5732 = vst [vmem:[%s9837_s20 + $0x3e8] sm:$0xff] %v5188_v13  ;;  %v5190_v21 = vmul.f32 0.2, %v7091_v16  ;;  %7112 = vlog2.f32 %v849_v6 }
 0x1da   : > { %v7095_v24 = vpop.eup %7094  ;;  %5733 = vst [vmem:[%s9837_s20 + $0x3f0] sm:$0xff] %v5189_v17  ;;  %v5191_v25 = vmul.f32 0.2, %v7093_v20  ;;  %7114 = vlog2.f32 %v850_v10 }
 0x1db   : > { %v7097_v28 = vpop.eup %7096  ;;  %5734 = vst [vmem:[%s9837_s20 + $0x3f8] sm:$0xff] %v5190_v21  ;;  %v5192_v29 = vmul.f32 0.2, %v7095_v24  ;;  %7116 = vlog2.f32 %v851_v14 }
 0x1dc   : > { %v7099_v32 = vpop.eup %7098  ;;  %5735 = vst [vmem:[%s9837_s20 + $0x400] sm:$0xff] %v5191_v25  ;;  %v5193_v33 = vmul.f32 0.2, %v7097_v28  ;;  %7118 = vlog2.f32 %v852_v18  ;;  %v314_v18 = vld [vmem:[%s9790_s5 + $0x4a8] sm:$0xff] }
 0x1dd   : > { %v7101_v36 = vpop.eup %7100  ;;  %5736 = vst [vmem:[%s9837_s20 + $0x408] sm:$0xff] %v5192_v29  ;;  %v5194_v37 = vmul.f32 0.2, %v7099_v32  ;;  %7120 = vlog2.f32 %v853_v22  ;;  %v315_v22 = vld [vmem:[%s9790_s5 + $0x4b0] sm:$0xff]  ;;  %v860_v29 = vmul.f32 %v9797_v1, %v314_v18 }
 0x1de   : > { %v7103_v39 = vpop.eup %7102  ;;  %5737 = vst [vmem:[%s9837_s20 + $0x410] sm:$0xff] %v5193_v33  ;;  %v2608_v40 = vmul.f32 0.6931472, %v7101_v36  ;;  %7122 = vlog2.f32 %v854_v26  ;;  %v316_v26 = vld [vmem:[%s9790_s5 + $0x4b8] sm:$0xff]  ;;  %v861_v33 = vmul.f32 %v9797_v1, %v315_v22 }
 0x1df   : > { %v7105_v42 = vpop.eup %7104  ;;  %5738 = vst [vmem:[%s9837_s20 + $0x418] sm:$0xff] %v5194_v37  ;;  %v2610_v43 = vmul.f32 0.6931472, %v7103_v39  ;;  %7124 = vlog2.f32 %v855_v30  ;;  %v317_v30 = vld [vmem:[%s9790_s5 + $0x4c0] sm:$0xff]  ;;  %v862_v36 = vmul.f32 %v9797_v1, %v316_v26 }
 0x1e0   : > { %v7107_v45 = vpop.eup %7106  ;;  %v3563_v46 = vmul.f32 0.6, %v2608_v40  ;;  %v2612_v47 = vmul.f32 0.6931472, %v7105_v42  ;;  %7126 = vlog2.f32 %v856_v34  ;;  %v863_v39 = vmul.f32 %v9797_v1, %v317_v30 }
 0x1e1   : > { %v7109_v48 = vpop.eup %7108  ;;  %v3564_v49 = vmul.f32 0.6, %v2610_v43  ;;  %v2614_v50 = vmul.f32 0.6931472, %v7107_v45  ;;  %7128 = vlog2.f32 %v857_v38 }
 0x1e2   : > { %v7111_v51 = vpop.eup %7110  ;;  %v4239_v52 = vmul.f32 1.442695, %v3563_v46  ;;  %v3565_v53 = vmul.f32 0.6, %v2612_v47  ;;  %7130 = vlog2.f32 %v858_v41  ;;  %v1528_v59 = vmul.f32 0.6931472, %v7109_v48 }
 0x1e3   : > { %v7113_v54 = vpop.eup %7112  ;;  %v4241_v55 = vmul.f32 1.442695, %v3564_v49  ;;  %v3566_v56 = vmul.f32 0.6, %v2614_v50  ;;  %7132 = vlog2.f32 %v859_v44  ;;  %v1530_v62 = vmul.f32 0.6931472, %v7111_v51 }
 0x1e4   : > { %v7115_v57 = vpop.eup %7114  ;;  %7134 = vpow2.f32 %v4239_v52  ;;  %v4243_v58 = vmul.f32 1.442695, %v3565_v53  ;;  %v1532_v0 = vmul.f32 0.6931472, %v7113_v54 }
 0x1e5   : > { %v7117_v60 = vpop.eup %7116  ;;  %7136 = vpow2.f32 %v4241_v55  ;;  %v4245_v61 = vmul.f32 1.442695, %v3566_v56  ;;  %v1534_v3 = vmul.f32 0.6931472, %v7115_v57 }
 0x1e6   : > { %v7119_v63 = vpop.eup %7118  ;;  %7138 = vpow2.f32 %v4243_v58  ;;  %v1536_v5 = vmul.f32 0.6931472, %v7117_v60 }
 0x1e7   : > { %v7121_v2 = vpop.eup %7120  ;;  %7140 = vpow2.f32 %v4245_v61  ;;  %v1538_v7 = vmul.f32 0.6931472, %v7119_v63 }
 0x1e8   : > { %v7123_v4 = vpop.eup %7122  ;;  %7142 = vlog2.f32 %v1528_v59  ;;  %v1540_v9 = vmul.f32 0.6931472, %v7121_v2 }
 0x1e9   : > { %v7125_v6 = vpop.eup %7124  ;;  %7144 = vlog2.f32 %v1530_v62  ;;  %v1542_v11 = vmul.f32 0.6931472, %v7123_v4 }
 0x1ea   : > { %v7127_v8 = vpop.eup %7126  ;;  %7146 = vlog2.f32 %v1532_v0  ;;  %v1544_v13 = vmul.f32 0.6931472, %v7125_v6 }
 0x1eb   : > { %v7129_v10 = vpop.eup %7128  ;;  %7148 = vlog2.f32 %v1534_v3  ;;  %v1546_v15 = vmul.f32 0.6931472, %v7127_v8 }
 0x1ec   : > { %v7131_v12 = vpop.eup %7130  ;;  %7150 = vlog2.f32 %v1536_v5  ;;  %v1548_v17 = vmul.f32 0.6931472, %v7129_v10 }
 0x1ed   : > { %v7133_v14 = vpop.eup %7132  ;;  %7152 = vlog2.f32 %v1538_v7  ;;  %v1550_v21 = vmul.f32 0.6931472, %v7131_v12 }
 0x1ee   : > { %v7135_v16 = vpop.eup %7134  ;;  %7154 = vlog2.f32 %v1540_v9  ;;  %v1552_v25 = vmul.f32 0.6931472, %v7133_v14 }
 0x1ef   : > { %v7137_v19 = vpop.eup %7136  ;;  %v5195_v20 = vmul.f32 0.2, %v7135_v16  ;;  %7156 = vlog2.f32 %v1542_v11 }
 0x1f0   : > { %v7139_v23 = vpop.eup %7138  ;;  %v5196_v24 = vmul.f32 0.2, %v7137_v19  ;;  %7158 = vlog2.f32 %v1544_v13 }
 0x1f1   : > { %v7141_v27 = vpop.eup %7140  ;;  %5739 = vst [vmem:[%s9837_s20 + $0x420] sm:$0xff] %v5195_v20  ;;  %v5197_v28 = vmul.f32 0.2, %v7139_v23  ;;  %7160 = vlog2.f32 %v1546_v15 }
 0x1f2   : > { %v7143_v31 = vpop.eup %7142  ;;  %5740 = vst [vmem:[%s9837_s20 + $0x428] sm:$0xff] %v5196_v24  ;;  %v5198_v32 = vmul.f32 0.2, %v7141_v27  ;;  %7162 = vlog2.f32 %v1548_v17 }
 0x1f3   : > { %v7145_v34 = vpop.eup %7144  ;;  %5741 = vst [vmem:[%s9837_s20 + $0x430] sm:$0xff] %v5197_v28  ;;  %v2616_v35 = vmul.f32 0.6931472, %v7143_v31  ;;  %7164 = vlog2.f32 %v1550_v21  ;;  %v318_v31 = vld [vmem:[%s9790_s5 + $0x4c8] sm:$0xff] }
 0x1f4   : > { %v7147_v37 = vpop.eup %7146  ;;  %5742 = vst [vmem:[%s9837_s20 + $0x438] sm:$0xff] %v5198_v32  ;;  %v2618_v38 = vmul.f32 0.6931472, %v7145_v34  ;;  %7166 = vlog2.f32 %v1552_v25 }
 0x1f5   : > { %v7149_v40 = vpop.eup %7148  ;;  %v3567_v41 = vmul.f32 0.6, %v2616_v35  ;;  %v2620_v42 = vmul.f32 0.6931472, %v7147_v37  ;;  %7168 = vlog2.f32 %v860_v29  ;;  %v319_v35 = vld [vmem:[%s9790_s5 + $0x4d0] sm:$0xff] }
 0x1f6   : > { %v7151_v43 = vpop.eup %7150  ;;  %v3568_v44 = vmul.f32 0.6, %v2618_v38  ;;  %v2622_v45 = vmul.f32 0.6931472, %v7149_v40  ;;  %7170 = vlog2.f32 %v861_v33 }
 0x1f7   : > { %v7153_v46 = vpop.eup %7152  ;;  %v4247_v47 = vmul.f32 1.442695, %v3567_v41  ;;  %v3569_v48 = vmul.f32 0.6, %v2620_v42  ;;  %v2624_v49 = vmul.f32 0.6931472, %v7151_v43  ;;  %7172 = vlog2.f32 %v862_v36 }
 0x1f8   : > { %v7155_v50 = vpop.eup %7154  ;;  %v4249_v51 = vmul.f32 1.442695, %v3568_v44  ;;  %v3570_v52 = vmul.f32 0.6, %v2622_v45  ;;  %v2626_v53 = vmul.f32 0.6931472, %v7153_v46  ;;  %7174 = vlog2.f32 %v863_v39 }
 0x1f9   : > { %v7157_v54 = vpop.eup %7156  ;;  %7176 = vpow2.f32 %v4247_v47  ;;  %v4251_v55 = vmul.f32 1.442695, %v3569_v48  ;;  %v3571_v56 = vmul.f32 0.6, %v2624_v49  ;;  %v2628_v57 = vmul.f32 0.6931472, %v7155_v50 }
 0x1fa   : > { %v7159_v58 = vpop.eup %7158  ;;  %7178 = vpow2.f32 %v4249_v51  ;;  %v4253_v59 = vmul.f32 1.442695, %v3570_v52  ;;  %v3572_v60 = vmul.f32 0.6, %v2626_v53  ;;  %v2630_v61 = vmul.f32 0.6931472, %v7157_v54 }
 0x1fb   : > { %v7161_v62 = vpop.eup %7160  ;;  %7180 = vpow2.f32 %v4251_v55  ;;  %v4255_v63 = vmul.f32 1.442695, %v3571_v56  ;;  %v3573_v0 = vmul.f32 0.6, %v2628_v57  ;;  %v2632_v2 = vmul.f32 0.6931472, %v7159_v58 }
 0x1fc   : > { %v7163_v3 = vpop.eup %7162  ;;  %7182 = vpow2.f32 %v4253_v59  ;;  %v4257_v4 = vmul.f32 1.442695, %v3572_v60  ;;  %v3574_v5 = vmul.f32 0.6, %v2630_v61  ;;  %v2634_v6 = vmul.f32 0.6931472, %v7161_v62 }
 0x1fd   : > { %v7165_v7 = vpop.eup %7164  ;;  %7184 = vpow2.f32 %v4255_v63  ;;  %v4259_v8 = vmul.f32 1.442695, %v3573_v0  ;;  %v3575_v9 = vmul.f32 0.6, %v2632_v2  ;;  %v2636_v10 = vmul.f32 0.6931472, %v7163_v3 }
 0x1fe   : > { %v7167_v11 = vpop.eup %7166  ;;  %7186 = vpow2.f32 %v4257_v4  ;;  %v4261_v12 = vmul.f32 1.442695, %v3574_v5  ;;  %v3576_v13 = vmul.f32 0.6, %v2634_v6  ;;  %v2638_v14 = vmul.f32 0.6931472, %v7165_v7 }
 0x1ff   : > { %v7169_v15 = vpop.eup %7168  ;;  %7188 = vpow2.f32 %v4259_v8  ;;  %v4263_v16 = vmul.f32 1.442695, %v3575_v9  ;;  %v3577_v17 = vmul.f32 0.6, %v2636_v10  ;;  %v2640_v18 = vmul.f32 0.6931472, %v7167_v11 }
 0x200   : > { %v7171_v19 = vpop.eup %7170  ;;  %7190 = vpow2.f32 %v4261_v12  ;;  %v4265_v20 = vmul.f32 1.442695, %v3576_v13  ;;  %v3578_v21 = vmul.f32 0.6, %v2638_v14  ;;  %v1554_v27 = vmul.f32 0.6931472, %v7169_v15 }
 0x201   : > { %v7173_v22 = vpop.eup %7172  ;;  %7192 = vpow2.f32 %v4263_v16  ;;  %v4267_v23 = vmul.f32 1.442695, %v3577_v17  ;;  %v3579_v24 = vmul.f32 0.6, %v2640_v18  ;;  %v1556_v30 = vmul.f32 0.6931472, %v7171_v19 }
 0x202   : > { %v7175_v25 = vpop.eup %7174  ;;  %7194 = vpow2.f32 %v4265_v20  ;;  %v4269_v26 = vmul.f32 1.442695, %v3578_v21  ;;  %v1558_v34 = vmul.f32 0.6931472, %v7173_v22  ;;  %v320_v39 = vld [vmem:[%s9790_s5 + $0x4d8] sm:$0xff]  ;;  %v864_v42 = vmul.f32 %v9797_v1, %v318_v31  ;;  %v321_v43 = vld [vmem:[%s9790_s5 + $0x4e0] sm:$0xff] }
 0x203   : > { %v7177_v28 = vpop.eup %7176  ;;  %7196 = vpow2.f32 %v4267_v23  ;;  %v4271_v29 = vmul.f32 1.442695, %v3579_v24  ;;  %v1560_v38 = vmul.f32 0.6931472, %v7175_v25  ;;  %v865_v46 = vmul.f32 %v9797_v1, %v319_v35  ;;  %v322_v47 = vld [vmem:[%s9790_s5 + $0x4e8] sm:$0xff]  ;;  %v323_v51 = vld [vmem:[%s9790_s5 + $0x4f0] sm:$0xff] }
 0x204   : > { %v7179_v32 = vpop.eup %7178  ;;  %v5199_v33 = vmul.f32 0.2, %v7177_v28  ;;  %7198 = vpow2.f32 %v4269_v26  ;;  %v866_v50 = vmul.f32 %v9797_v1, %v320_v39  ;;  %v867_v54 = vmul.f32 %v9797_v1, %v321_v43  ;;  %v324_v55 = vld [vmem:[%s9790_s5 + $0x4f8] sm:$0xff]  ;;  %v325_v59 = vld [vmem:[%s9790_s5 + $0x500] sm:$0xff]  ;;  %v326_v63 = vld [vmem:[%s9790_s5 + $0x508] sm:$0xff] }
 0x205   : > { %v7181_v36 = vpop.eup %7180  ;;  %v5200_v37 = vmul.f32 0.2, %v7179_v32  ;;  %7200 = vpow2.f32 %v4271_v29  ;;  %v868_v58 = vmul.f32 %v9797_v1, %v322_v47  ;;  %v869_v62 = vmul.f32 %v9797_v1, %v323_v51  ;;  %v327_v4 = vld [vmem:[%s9790_s5 + $0x510] sm:$0xff]  ;;  %v328_v8 = vld [vmem:[%s9790_s5 + $0x518] sm:$0xff]  ;;  %v329_v12 = vld [vmem:[%s9790_s5 + $0x520] sm:$0xff] }
 0x206   : > { %v7183_v40 = vpop.eup %7182  ;;  %5743 = vst [vmem:[%s9837_s20 + $0x440] sm:$0xff] %v5199_v33  ;;  %v5201_v41 = vmul.f32 0.2, %v7181_v36  ;;  %7202 = vlog2.f32 %v1554_v27  ;;  %v870_v3 = vmul.f32 %v9797_v1, %v324_v55  ;;  %v871_v7 = vmul.f32 %v9797_v1, %v325_v59  ;;  %v330_v16 = vld [vmem:[%s9790_s5 + $0x528] sm:$0xff] }
 0x207   : > { %v7185_v44 = vpop.eup %7184  ;;  %5744 = vst [vmem:[%s9837_s20 + $0x448] sm:$0xff] %v5200_v37  ;;  %v5202_v45 = vmul.f32 0.2, %v7183_v40  ;;  %7204 = vlog2.f32 %v1556_v30  ;;  %v872_v11 = vmul.f32 %v9797_v1, %v326_v63  ;;  %v873_v15 = vmul.f32 %v9797_v1, %v327_v4 }
 0x208   : > { %v7187_v48 = vpop.eup %7186  ;;  %5745 = vst [vmem:[%s9837_s20 + $0x450] sm:$0xff] %v5201_v41  ;;  %v5203_v49 = vmul.f32 0.2, %v7185_v44  ;;  %7206 = vlog2.f32 %v1558_v34  ;;  %v874_v19 = vmul.f32 %v9797_v1, %v328_v8  ;;  %v875_v22 = vmul.f32 %v9797_v1, %v329_v12 }
 0x209   : > { %v7189_v52 = vpop.eup %7188  ;;  %5746 = vst [vmem:[%s9837_s20 + $0x458] sm:$0xff] %v5202_v45  ;;  %v5204_v53 = vmul.f32 0.2, %v7187_v48  ;;  %7208 = vlog2.f32 %v1560_v38  ;;  %v876_v25 = vmul.f32 %v9797_v1, %v330_v16 }
 0x20a   : > { %v7191_v56 = vpop.eup %7190  ;;  %5747 = vst [vmem:[%s9837_s20 + $0x460] sm:$0xff] %v5203_v49  ;;  %v5205_v57 = vmul.f32 0.2, %v7189_v52  ;;  %7210 = vlog2.f32 %v864_v42 }
 0x20b   : > { %v7193_v60 = vpop.eup %7192  ;;  %5748 = vst [vmem:[%s9837_s20 + $0x468] sm:$0xff] %v5204_v53  ;;  %v5206_v61 = vmul.f32 0.2, %v7191_v56  ;;  %7212 = vlog2.f32 %v865_v46 }
 0x20c   : > { %v7195_v0 = vpop.eup %7194  ;;  %5749 = vst [vmem:[%s9837_s20 + $0x470] sm:$0xff] %v5205_v57  ;;  %v5207_v2 = vmul.f32 0.2, %v7193_v60  ;;  %7214 = vlog2.f32 %v866_v50 }
 0x20d   : > { %v7197_v5 = vpop.eup %7196  ;;  %5750 = vst [vmem:[%s9837_s20 + $0x478] sm:$0xff] %v5206_v61  ;;  %v5208_v6 = vmul.f32 0.2, %v7195_v0  ;;  %7216 = vlog2.f32 %v867_v54 }
 0x20e   : > { %v7199_v9 = vpop.eup %7198  ;;  %5751 = vst [vmem:[%s9837_s20 + $0x480] sm:$0xff] %v5207_v2  ;;  %v5209_v10 = vmul.f32 0.2, %v7197_v5  ;;  %7218 = vlog2.f32 %v868_v58 }
 0x20f   : > { %v7201_v13 = vpop.eup %7200  ;;  %5752 = vst [vmem:[%s9837_s20 + $0x488] sm:$0xff] %v5208_v6  ;;  %v5210_v14 = vmul.f32 0.2, %v7199_v9  ;;  %7220 = vlog2.f32 %v869_v62  ;;  %v331_v62 = vld [vmem:[%s9790_s5 + $0x530] sm:$0xff] }
 0x210   : > { %v7203_v17 = vpop.eup %7202  ;;  %5753 = vst [vmem:[%s9837_s20 + $0x490] sm:$0xff] %v5209_v10  ;;  %v5211_v18 = vmul.f32 0.2, %v7201_v13  ;;  %7222 = vlog2.f32 %v870_v3  ;;  %v332_v3 = vld [vmem:[%s9790_s5 + $0x538] sm:$0xff]  ;;  %v877_v10 = vmul.f32 %v9797_v1, %v331_v62 }
 0x211   : > { %v7205_v20 = vpop.eup %7204  ;;  %5754 = vst [vmem:[%s9837_s20 + $0x498] sm:$0xff] %v5210_v14  ;;  %v2642_v21 = vmul.f32 0.6931472, %v7203_v17  ;;  %7224 = vlog2.f32 %v871_v7  ;;  %v333_v7 = vld [vmem:[%s9790_s5 + $0x540] sm:$0xff]  ;;  %v878_v14 = vmul.f32 %v9797_v1, %v332_v3 }
 0x212   : > { %v7207_v23 = vpop.eup %7206  ;;  %5755 = vst [vmem:[%s9837_s20 + $0x4a0] sm:$0xff] %v5211_v18  ;;  %v2644_v24 = vmul.f32 0.6931472, %v7205_v20  ;;  %7226 = vlog2.f32 %v872_v11  ;;  %v334_v11 = vld [vmem:[%s9790_s5 + $0x548] sm:$0xff]  ;;  %v879_v17 = vmul.f32 %v9797_v1, %v333_v7 }
 0x213   : > { %v7209_v26 = vpop.eup %7208  ;;  %v3580_v27 = vmul.f32 0.6, %v2642_v21  ;;  %v2646_v28 = vmul.f32 0.6931472, %v7207_v23  ;;  %7228 = vlog2.f32 %v873_v15  ;;  %v880_v20 = vmul.f32 %v9797_v1, %v334_v11 }
 0x214   : > { %v7211_v29 = vpop.eup %7210  ;;  %v3581_v30 = vmul.f32 0.6, %v2644_v24  ;;  %v2648_v31 = vmul.f32 0.6931472, %v7209_v26  ;;  %7230 = vlog2.f32 %v874_v19 }
 0x215   : > { %v7213_v32 = vpop.eup %7212  ;;  %v4273_v33 = vmul.f32 1.442695, %v3580_v27  ;;  %v3582_v34 = vmul.f32 0.6, %v2646_v28  ;;  %7232 = vlog2.f32 %v875_v22  ;;  %v1562_v40 = vmul.f32 0.6931472, %v7211_v29 }
 0x216   : > { %v7215_v35 = vpop.eup %7214  ;;  %v4275_v36 = vmul.f32 1.442695, %v3581_v30  ;;  %v3583_v37 = vmul.f32 0.6, %v2648_v31  ;;  %7234 = vlog2.f32 %v876_v25  ;;  %v1564_v43 = vmul.f32 0.6931472, %v7213_v32 }
 0x217   : > { %v7217_v38 = vpop.eup %7216  ;;  %7236 = vpow2.f32 %v4273_v33  ;;  %v4277_v39 = vmul.f32 1.442695, %v3582_v34  ;;  %v1566_v45 = vmul.f32 0.6931472, %v7215_v35 }
 0x218   : > { %v7219_v41 = vpop.eup %7218  ;;  %7238 = vpow2.f32 %v4275_v36  ;;  %v4279_v42 = vmul.f32 1.442695, %v3583_v37  ;;  %v1568_v47 = vmul.f32 0.6931472, %v7217_v38 }
 0x219   : > { %v7221_v44 = vpop.eup %7220  ;;  %7240 = vpow2.f32 %v4277_v39  ;;  %v1570_v49 = vmul.f32 0.6931472, %v7219_v41 }
 0x21a   : > { %v7223_v46 = vpop.eup %7222  ;;  %7242 = vpow2.f32 %v4279_v42  ;;  %v1572_v51 = vmul.f32 0.6931472, %v7221_v44 }
 0x21b   : > { %v7225_v48 = vpop.eup %7224  ;;  %7244 = vlog2.f32 %v1562_v40  ;;  %v1574_v53 = vmul.f32 0.6931472, %v7223_v46 }
 0x21c   : > { %v7227_v50 = vpop.eup %7226  ;;  %7246 = vlog2.f32 %v1564_v43  ;;  %v1576_v55 = vmul.f32 0.6931472, %v7225_v48 }
 0x21d   : > { %v7229_v52 = vpop.eup %7228  ;;  %7248 = vlog2.f32 %v1566_v45  ;;  %v1578_v57 = vmul.f32 0.6931472, %v7227_v50 }
 0x21e   : > { %v7231_v54 = vpop.eup %7230  ;;  %7250 = vlog2.f32 %v1568_v47  ;;  %v1580_v59 = vmul.f32 0.6931472, %v7229_v52 }
 0x21f   : > { %v7233_v56 = vpop.eup %7232  ;;  %7252 = vlog2.f32 %v1570_v49  ;;  %v1582_v61 = vmul.f32 0.6931472, %v7231_v54 }
 0x220   : > { %v7235_v58 = vpop.eup %7234  ;;  %7254 = vlog2.f32 %v1572_v51  ;;  %v1584_v2 = vmul.f32 0.6931472, %v7233_v56 }
 0x221   : > { %v7237_v60 = vpop.eup %7236  ;;  %7256 = vlog2.f32 %v1574_v53  ;;  %v1586_v6 = vmul.f32 0.6931472, %v7235_v58 }
 0x222   : > { %v7239_v63 = vpop.eup %7238  ;;  %v5212_v0 = vmul.f32 0.2, %v7237_v60  ;;  %7258 = vlog2.f32 %v1576_v55 }
 0x223   : > { %v7241_v4 = vpop.eup %7240  ;;  %v5213_v5 = vmul.f32 0.2, %v7239_v63  ;;  %7260 = vlog2.f32 %v1578_v57 }
 0x224   : > { %v7243_v8 = vpop.eup %7242  ;;  %5756 = vst [vmem:[%s9837_s20 + $0x4a8] sm:$0xff] %v5212_v0  ;;  %v5214_v9 = vmul.f32 0.2, %v7241_v4  ;;  %7262 = vlog2.f32 %v1580_v59 }
 0x225   : > { %v7245_v12 = vpop.eup %7244  ;;  %5757 = vst [vmem:[%s9837_s20 + $0x4b0] sm:$0xff] %v5213_v5  ;;  %v5215_v13 = vmul.f32 0.2, %v7243_v8  ;;  %7264 = vlog2.f32 %v1582_v61 }
 0x226   : > { %v7247_v15 = vpop.eup %7246  ;;  %5758 = vst [vmem:[%s9837_s20 + $0x4b8] sm:$0xff] %v5214_v9  ;;  %v2650_v16 = vmul.f32 0.6931472, %v7245_v12  ;;  %7266 = vlog2.f32 %v1584_v2  ;;  %v335_v12 = vld [vmem:[%s9790_s5 + $0x550] sm:$0xff] }
 0x227   : > { %v7249_v18 = vpop.eup %7248  ;;  %5759 = vst [vmem:[%s9837_s20 + $0x4c0] sm:$0xff] %v5215_v13  ;;  %v2652_v19 = vmul.f32 0.6931472, %v7247_v15  ;;  %7268 = vlog2.f32 %v1586_v6 }
 0x228   : > { %v7251_v21 = vpop.eup %7250  ;;  %v3584_v22 = vmul.f32 0.6, %v2650_v16  ;;  %v2654_v23 = vmul.f32 0.6931472, %v7249_v18  ;;  %7270 = vlog2.f32 %v877_v10  ;;  %v336_v16 = vld [vmem:[%s9790_s5 + $0x558] sm:$0xff] }
 0x229   : > { %v7253_v24 = vpop.eup %7252  ;;  %v3585_v25 = vmul.f32 0.6, %v2652_v19  ;;  %v2656_v26 = vmul.f32 0.6931472, %v7251_v21  ;;  %7272 = vlog2.f32 %v878_v14 }
 0x22a   : > { %v7255_v27 = vpop.eup %7254  ;;  %v4281_v28 = vmul.f32 1.442695, %v3584_v22  ;;  %v3586_v29 = vmul.f32 0.6, %v2654_v23  ;;  %v2658_v30 = vmul.f32 0.6931472, %v7253_v24  ;;  %7274 = vlog2.f32 %v879_v17 }
 0x22b   : > { %v7257_v31 = vpop.eup %7256  ;;  %v4283_v32 = vmul.f32 1.442695, %v3585_v25  ;;  %v3587_v33 = vmul.f32 0.6, %v2656_v26  ;;  %v2660_v34 = vmul.f32 0.6931472, %v7255_v27  ;;  %7276 = vlog2.f32 %v880_v20 }
 0x22c   : > { %v7259_v35 = vpop.eup %7258  ;;  %7278 = vpow2.f32 %v4281_v28  ;;  %v4285_v36 = vmul.f32 1.442695, %v3586_v29  ;;  %v3588_v37 = vmul.f32 0.6, %v2658_v30  ;;  %v2662_v38 = vmul.f32 0.6931472, %v7257_v31 }
 0x22d   : > { %v7261_v39 = vpop.eup %7260  ;;  %7280 = vpow2.f32 %v4283_v32  ;;  %v4287_v40 = vmul.f32 1.442695, %v3587_v33  ;;  %v3589_v41 = vmul.f32 0.6, %v2660_v34  ;;  %v2664_v42 = vmul.f32 0.6931472, %v7259_v35 }
 0x22e   : > { %v7263_v43 = vpop.eup %7262  ;;  %7282 = vpow2.f32 %v4285_v36  ;;  %v4289_v44 = vmul.f32 1.442695, %v3588_v37  ;;  %v3590_v45 = vmul.f32 0.6, %v2662_v38  ;;  %v2666_v46 = vmul.f32 0.6931472, %v7261_v39 }
 0x22f   : > { %v7265_v47 = vpop.eup %7264  ;;  %7284 = vpow2.f32 %v4287_v40  ;;  %v4291_v48 = vmul.f32 1.442695, %v3589_v41  ;;  %v3591_v49 = vmul.f32 0.6, %v2664_v42  ;;  %v2668_v50 = vmul.f32 0.6931472, %v7263_v43 }
 0x230   : > { %v7267_v51 = vpop.eup %7266  ;;  %7286 = vpow2.f32 %v4289_v44  ;;  %v4293_v52 = vmul.f32 1.442695, %v3590_v45  ;;  %v3592_v53 = vmul.f32 0.6, %v2666_v46  ;;  %v2670_v54 = vmul.f32 0.6931472, %v7265_v47 }
 0x231   : > { %v7269_v55 = vpop.eup %7268  ;;  %7288 = vpow2.f32 %v4291_v48  ;;  %v4295_v56 = vmul.f32 1.442695, %v3591_v49  ;;  %v3593_v57 = vmul.f32 0.6, %v2668_v50  ;;  %v2672_v58 = vmul.f32 0.6931472, %v7267_v51 }
 0x232   : > { %v7271_v59 = vpop.eup %7270  ;;  %7290 = vpow2.f32 %v4293_v52  ;;  %v4297_v60 = vmul.f32 1.442695, %v3592_v53  ;;  %v3594_v61 = vmul.f32 0.6, %v2670_v54  ;;  %v2674_v62 = vmul.f32 0.6931472, %v7269_v55 }
 0x233   : > { %v7273_v63 = vpop.eup %7272  ;;  %7292 = vpow2.f32 %v4295_v56  ;;  %v4299_v0 = vmul.f32 1.442695, %v3593_v57  ;;  %v3595_v2 = vmul.f32 0.6, %v2672_v58  ;;  %v1588_v8 = vmul.f32 0.6931472, %v7271_v59 }
 0x234   : > { %v7275_v3 = vpop.eup %7274  ;;  %7294 = vpow2.f32 %v4297_v60  ;;  %v4301_v4 = vmul.f32 1.442695, %v3594_v61  ;;  %v3596_v5 = vmul.f32 0.6, %v2674_v62  ;;  %v1590_v11 = vmul.f32 0.6931472, %v7273_v63 }
 0x235   : > { %v7277_v6 = vpop.eup %7276  ;;  %7296 = vpow2.f32 %v4299_v0  ;;  %v4303_v7 = vmul.f32 1.442695, %v3595_v2  ;;  %v1592_v15 = vmul.f32 0.6931472, %v7275_v3  ;;  %v337_v20 = vld [vmem:[%s9790_s5 + $0x560] sm:$0xff]  ;;  %v881_v23 = vmul.f32 %v9797_v1, %v335_v12  ;;  %v338_v24 = vld [vmem:[%s9790_s5 + $0x568] sm:$0xff] }
 0x236   : > { %v7279_v9 = vpop.eup %7278  ;;  %7298 = vpow2.f32 %v4301_v4  ;;  %v4305_v10 = vmul.f32 1.442695, %v3596_v5  ;;  %v1594_v19 = vmul.f32 0.6931472, %v7277_v6  ;;  %v882_v27 = vmul.f32 %v9797_v1, %v336_v16  ;;  %v339_v28 = vld [vmem:[%s9790_s5 + $0x570] sm:$0xff]  ;;  %v340_v32 = vld [vmem:[%s9790_s5 + $0x578] sm:$0xff] }
 0x237   : > { %v7281_v13 = vpop.eup %7280  ;;  %v5216_v14 = vmul.f32 0.2, %v7279_v9  ;;  %7300 = vpow2.f32 %v4303_v7  ;;  %v883_v31 = vmul.f32 %v9797_v1, %v337_v20  ;;  %v884_v35 = vmul.f32 %v9797_v1, %v338_v24  ;;  %v341_v36 = vld [vmem:[%s9790_s5 + $0x580] sm:$0xff]  ;;  %v342_v40 = vld [vmem:[%s9790_s5 + $0x588] sm:$0xff]  ;;  %v343_v44 = vld [vmem:[%s9790_s5 + $0x590] sm:$0xff] }
 0x238   : > { %v7283_v17 = vpop.eup %7282  ;;  %v5217_v18 = vmul.f32 0.2, %v7281_v13  ;;  %7302 = vpow2.f32 %v4305_v10  ;;  %v885_v39 = vmul.f32 %v9797_v1, %v339_v28  ;;  %v886_v43 = vmul.f32 %v9797_v1, %v340_v32  ;;  %v344_v48 = vld [vmem:[%s9790_s5 + $0x598] sm:$0xff]  ;;  %v345_v52 = vld [vmem:[%s9790_s5 + $0x5a0] sm:$0xff]  ;;  %v346_v56 = vld [vmem:[%s9790_s5 + $0x5a8] sm:$0xff] }
 0x239   : > { %v7285_v21 = vpop.eup %7284  ;;  %5760 = vst [vmem:[%s9837_s20 + $0x4c8] sm:$0xff] %v5216_v14  ;;  %v5218_v22 = vmul.f32 0.2, %v7283_v17  ;;  %7304 = vlog2.f32 %v1588_v8  ;;  %v887_v47 = vmul.f32 %v9797_v1, %v341_v36  ;;  %v888_v51 = vmul.f32 %v9797_v1, %v342_v40  ;;  %v347_v60 = vld [vmem:[%s9790_s5 + $0x5b0] sm:$0xff] }
 0x23a   : > { %v7287_v25 = vpop.eup %7286  ;;  %5761 = vst [vmem:[%s9837_s20 + $0x4d0] sm:$0xff] %v5217_v18  ;;  %v5219_v26 = vmul.f32 0.2, %v7285_v21  ;;  %7306 = vlog2.f32 %v1590_v11  ;;  %v889_v55 = vmul.f32 %v9797_v1, %v343_v44  ;;  %v890_v59 = vmul.f32 %v9797_v1, %v344_v48 }
 0x23b   : > { %v7289_v29 = vpop.eup %7288  ;;  %5762 = vst [vmem:[%s9837_s20 + $0x4d8] sm:$0xff] %v5218_v22  ;;  %v5220_v30 = vmul.f32 0.2, %v7287_v25  ;;  %7308 = vlog2.f32 %v1592_v15  ;;  %v891_v63 = vmul.f32 %v9797_v1, %v345_v52  ;;  %v892_v3 = vmul.f32 %v9797_v1, %v346_v56 }
 0x23c   : > { %v7291_v33 = vpop.eup %7290  ;;  %5763 = vst [vmem:[%s9837_s20 + $0x4e0] sm:$0xff] %v5219_v26  ;;  %v5221_v34 = vmul.f32 0.2, %v7289_v29  ;;  %7310 = vlog2.f32 %v1594_v19  ;;  %v893_v6 = vmul.f32 %v9797_v1, %v347_v60 }
 0x23d   : > { %v7293_v37 = vpop.eup %7292  ;;  %5764 = vst [vmem:[%s9837_s20 + $0x4e8] sm:$0xff] %v5220_v30  ;;  %v5222_v38 = vmul.f32 0.2, %v7291_v33  ;;  %7312 = vlog2.f32 %v881_v23 }
 0x23e   : > { %v7295_v41 = vpop.eup %7294  ;;  %5765 = vst [vmem:[%s9837_s20 + $0x4f0] sm:$0xff] %v5221_v34  ;;  %v5223_v42 = vmul.f32 0.2, %v7293_v37  ;;  %7314 = vlog2.f32 %v882_v27 }
 0x23f   : > { %v7297_v45 = vpop.eup %7296  ;;  %5766 = vst [vmem:[%s9837_s20 + $0x4f8] sm:$0xff] %v5222_v38  ;;  %v5224_v46 = vmul.f32 0.2, %v7295_v41  ;;  %7316 = vlog2.f32 %v883_v31 }
 0x240   : > { %v7299_v49 = vpop.eup %7298  ;;  %5767 = vst [vmem:[%s9837_s20 + $0x500] sm:$0xff] %v5223_v42  ;;  %v5225_v50 = vmul.f32 0.2, %v7297_v45  ;;  %7318 = vlog2.f32 %v884_v35 }
 0x241   : > { %v7301_v53 = vpop.eup %7300  ;;  %5768 = vst [vmem:[%s9837_s20 + $0x508] sm:$0xff] %v5224_v46  ;;  %v5226_v54 = vmul.f32 0.2, %v7299_v49  ;;  %7320 = vlog2.f32 %v885_v39 }
 0x242   : > { %v7303_v57 = vpop.eup %7302  ;;  %5769 = vst [vmem:[%s9837_s20 + $0x510] sm:$0xff] %v5225_v50  ;;  %v5227_v58 = vmul.f32 0.2, %v7301_v53  ;;  %7322 = vlog2.f32 %v886_v43  ;;  %v348_v43 = vld [vmem:[%s9790_s5 + $0x5b8] sm:$0xff] }
 0x243   : > { %v7305_v61 = vpop.eup %7304  ;;  %5770 = vst [vmem:[%s9837_s20 + $0x518] sm:$0xff] %v5226_v54  ;;  %v5228_v62 = vmul.f32 0.2, %v7303_v57  ;;  %7324 = vlog2.f32 %v887_v47  ;;  %v349_v47 = vld [vmem:[%s9790_s5 + $0x5c0] sm:$0xff]  ;;  %v894_v54 = vmul.f32 %v9797_v1, %v348_v43 }
 0x244   : > { %v7307_v0 = vpop.eup %7306  ;;  %5771 = vst [vmem:[%s9837_s20 + $0x520] sm:$0xff] %v5227_v58  ;;  %v2676_v2 = vmul.f32 0.6931472, %v7305_v61  ;;  %7326 = vlog2.f32 %v888_v51  ;;  %v350_v51 = vld [vmem:[%s9790_s5 + $0x5c8] sm:$0xff]  ;;  %v895_v58 = vmul.f32 %v9797_v1, %v349_v47 }
 0x245   : > { %v7309_v4 = vpop.eup %7308  ;;  %5772 = vst [vmem:[%s9837_s20 + $0x528] sm:$0xff] %v5228_v62  ;;  %v2678_v5 = vmul.f32 0.6931472, %v7307_v0  ;;  %7328 = vlog2.f32 %v889_v55  ;;  %v351_v55 = vld [vmem:[%s9790_s5 + $0x5d0] sm:$0xff]  ;;  %v896_v61 = vmul.f32 %v9797_v1, %v350_v51 }
 0x246   : > { %v7311_v7 = vpop.eup %7310  ;;  %v3597_v8 = vmul.f32 0.6, %v2676_v2  ;;  %v2680_v9 = vmul.f32 0.6931472, %v7309_v4  ;;  %7330 = vlog2.f32 %v890_v59  ;;  %v897_v0 = vmul.f32 %v9797_v1, %v351_v55 }
 0x247   : > { %v7313_v10 = vpop.eup %7312  ;;  %v3598_v11 = vmul.f32 0.6, %v2678_v5  ;;  %v2682_v12 = vmul.f32 0.6931472, %v7311_v7  ;;  %7332 = vlog2.f32 %v891_v63 }
 0x248   : > { %v7315_v13 = vpop.eup %7314  ;;  %v4307_v14 = vmul.f32 1.442695, %v3597_v8  ;;  %v3599_v15 = vmul.f32 0.6, %v2680_v9  ;;  %7334 = vlog2.f32 %v892_v3  ;;  %v1596_v21 = vmul.f32 0.6931472, %v7313_v10 }
 0x249   : > { %v7317_v16 = vpop.eup %7316  ;;  %v4309_v17 = vmul.f32 1.442695, %v3598_v11  ;;  %v3600_v18 = vmul.f32 0.6, %v2682_v12  ;;  %7336 = vlog2.f32 %v893_v6  ;;  %v1598_v24 = vmul.f32 0.6931472, %v7315_v13 }
 0x24a   : > { %v7319_v19 = vpop.eup %7318  ;;  %7338 = vpow2.f32 %v4307_v14  ;;  %v4311_v20 = vmul.f32 1.442695, %v3599_v15  ;;  %v1600_v26 = vmul.f32 0.6931472, %v7317_v16 }
 0x24b   : > { %v7321_v22 = vpop.eup %7320  ;;  %7340 = vpow2.f32 %v4309_v17  ;;  %v4313_v23 = vmul.f32 1.442695, %v3600_v18  ;;  %v1602_v28 = vmul.f32 0.6931472, %v7319_v19 }
 0x24c   : > { %v7323_v25 = vpop.eup %7322  ;;  %7342 = vpow2.f32 %v4311_v20  ;;  %v1604_v30 = vmul.f32 0.6931472, %v7321_v22 }
 0x24d   : > { %v7325_v27 = vpop.eup %7324  ;;  %7344 = vpow2.f32 %v4313_v23  ;;  %v1606_v32 = vmul.f32 0.6931472, %v7323_v25 }
 0x24e   : > { %v7327_v29 = vpop.eup %7326  ;;  %7346 = vlog2.f32 %v1596_v21  ;;  %v1608_v34 = vmul.f32 0.6931472, %v7325_v27 }
 0x24f   : > { %v7329_v31 = vpop.eup %7328  ;;  %7348 = vlog2.f32 %v1598_v24  ;;  %v1610_v36 = vmul.f32 0.6931472, %v7327_v29 }
 0x250   : > { %v7331_v33 = vpop.eup %7330  ;;  %7350 = vlog2.f32 %v1600_v26  ;;  %v1612_v38 = vmul.f32 0.6931472, %v7329_v31 }
 0x251   : > { %v7333_v35 = vpop.eup %7332  ;;  %7352 = vlog2.f32 %v1602_v28  ;;  %v1614_v40 = vmul.f32 0.6931472, %v7331_v33 }
 0x252   : > { %v7335_v37 = vpop.eup %7334  ;;  %7354 = vlog2.f32 %v1604_v30  ;;  %v1616_v42 = vmul.f32 0.6931472, %v7333_v35 }
 0x253   : > { %v7337_v39 = vpop.eup %7336  ;;  %7356 = vlog2.f32 %v1606_v32  ;;  %v1618_v46 = vmul.f32 0.6931472, %v7335_v37 }
 0x254   : > { %v7339_v41 = vpop.eup %7338  ;;  %7358 = vlog2.f32 %v1608_v34  ;;  %v1620_v50 = vmul.f32 0.6931472, %v7337_v39 }
 0x255   : > { %v7341_v44 = vpop.eup %7340  ;;  %v5229_v45 = vmul.f32 0.2, %v7339_v41  ;;  %7360 = vlog2.f32 %v1610_v36 }
 0x256   : > { %v7343_v48 = vpop.eup %7342  ;;  %v5230_v49 = vmul.f32 0.2, %v7341_v44  ;;  %7362 = vlog2.f32 %v1612_v38 }
 0x257   : > { %v7345_v52 = vpop.eup %7344  ;;  %5773 = vst [vmem:[%s9837_s20 + $0x530] sm:$0xff] %v5229_v45  ;;  %v5231_v53 = vmul.f32 0.2, %v7343_v48  ;;  %7364 = vlog2.f32 %v1614_v40 }
 0x258   : > { %v7347_v56 = vpop.eup %7346  ;;  %5774 = vst [vmem:[%s9837_s20 + $0x538] sm:$0xff] %v5230_v49  ;;  %v5232_v57 = vmul.f32 0.2, %v7345_v52  ;;  %7366 = vlog2.f32 %v1616_v42 }
 0x259   : > { %v7349_v59 = vpop.eup %7348  ;;  %5775 = vst [vmem:[%s9837_s20 + $0x540] sm:$0xff] %v5231_v53  ;;  %v2684_v60 = vmul.f32 0.6931472, %v7347_v56  ;;  %7368 = vlog2.f32 %v1618_v46  ;;  %v352_v56 = vld [vmem:[%s9790_s5 + $0x5d8] sm:$0xff] }
 0x25a   : > { %v7351_v62 = vpop.eup %7350  ;;  %5776 = vst [vmem:[%s9837_s20 + $0x548] sm:$0xff] %v5232_v57  ;;  %v2686_v63 = vmul.f32 0.6931472, %v7349_v59  ;;  %7370 = vlog2.f32 %v1620_v50 }
 0x25b   : > { %v7353_v2 = vpop.eup %7352  ;;  %v3601_v3 = vmul.f32 0.6, %v2684_v60  ;;  %v2688_v4 = vmul.f32 0.6931472, %v7351_v62  ;;  %7372 = vlog2.f32 %v894_v54  ;;  %v353_v60 = vld [vmem:[%s9790_s5 + $0x5e0] sm:$0xff] }
 0x25c   : > { %v7355_v5 = vpop.eup %7354  ;;  %v3602_v6 = vmul.f32 0.6, %v2686_v63  ;;  %v2690_v7 = vmul.f32 0.6931472, %v7353_v2  ;;  %7374 = vlog2.f32 %v895_v58 }
 0x25d   : > { %v7357_v8 = vpop.eup %7356  ;;  %v4315_v9 = vmul.f32 1.442695, %v3601_v3  ;;  %v3603_v10 = vmul.f32 0.6, %v2688_v4  ;;  %v2692_v11 = vmul.f32 0.6931472, %v7355_v5  ;;  %7376 = vlog2.f32 %v896_v61 }
 0x25e   : > { %v7359_v12 = vpop.eup %7358  ;;  %v4317_v13 = vmul.f32 1.442695, %v3602_v6  ;;  %v3604_v14 = vmul.f32 0.6, %v2690_v7  ;;  %v2694_v15 = vmul.f32 0.6931472, %v7357_v8  ;;  %7378 = vlog2.f32 %v897_v0 }
 0x25f   : > { %v7361_v16 = vpop.eup %7360  ;;  %7380 = vpow2.f32 %v4315_v9  ;;  %v4319_v17 = vmul.f32 1.442695, %v3603_v10  ;;  %v3605_v18 = vmul.f32 0.6, %v2692_v11  ;;  %v2696_v19 = vmul.f32 0.6931472, %v7359_v12 }
 0x260   : > { %v7363_v20 = vpop.eup %7362  ;;  %7382 = vpow2.f32 %v4317_v13  ;;  %v4321_v21 = vmul.f32 1.442695, %v3604_v14  ;;  %v3606_v22 = vmul.f32 0.6, %v2694_v15  ;;  %v2698_v23 = vmul.f32 0.6931472, %v7361_v16 }
 0x261   : > { %v7365_v24 = vpop.eup %7364  ;;  %7384 = vpow2.f32 %v4319_v17  ;;  %v4323_v25 = vmul.f32 1.442695, %v3605_v18  ;;  %v3607_v26 = vmul.f32 0.6, %v2696_v19  ;;  %v2700_v27 = vmul.f32 0.6931472, %v7363_v20 }
 0x262   : > { %v7367_v28 = vpop.eup %7366  ;;  %7386 = vpow2.f32 %v4321_v21  ;;  %v4325_v29 = vmul.f32 1.442695, %v3606_v22  ;;  %v3608_v30 = vmul.f32 0.6, %v2698_v23  ;;  %v2702_v31 = vmul.f32 0.6931472, %v7365_v24 }
 0x263   : > { %v7369_v32 = vpop.eup %7368  ;;  %7388 = vpow2.f32 %v4323_v25  ;;  %v4327_v33 = vmul.f32 1.442695, %v3607_v26  ;;  %v3609_v34 = vmul.f32 0.6, %v2700_v27  ;;  %v2704_v35 = vmul.f32 0.6931472, %v7367_v28 }
 0x264   : > { %v7371_v36 = vpop.eup %7370  ;;  %7390 = vpow2.f32 %v4325_v29  ;;  %v4329_v37 = vmul.f32 1.442695, %v3608_v30  ;;  %v3610_v38 = vmul.f32 0.6, %v2702_v31  ;;  %v2706_v39 = vmul.f32 0.6931472, %v7369_v32 }
 0x265   : > { %v7373_v40 = vpop.eup %7372  ;;  %7392 = vpow2.f32 %v4327_v33  ;;  %v4331_v41 = vmul.f32 1.442695, %v3609_v34  ;;  %v3611_v42 = vmul.f32 0.6, %v2704_v35  ;;  %v2708_v43 = vmul.f32 0.6931472, %v7371_v36 }
 0x266   : > { %v7375_v44 = vpop.eup %7374  ;;  %7394 = vpow2.f32 %v4329_v37  ;;  %v4333_v45 = vmul.f32 1.442695, %v3610_v38  ;;  %v3612_v46 = vmul.f32 0.6, %v2706_v39  ;;  %v1622_v52 = vmul.f32 0.6931472, %v7373_v40 }
 0x267   : > { %v7377_v47 = vpop.eup %7376  ;;  %7396 = vpow2.f32 %v4331_v41  ;;  %v4335_v48 = vmul.f32 1.442695, %v3611_v42  ;;  %v3613_v49 = vmul.f32 0.6, %v2708_v43  ;;  %v1624_v55 = vmul.f32 0.6931472, %v7375_v44 }
 0x268   : > { %v7379_v50 = vpop.eup %7378  ;;  %7398 = vpow2.f32 %v4333_v45  ;;  %v4337_v51 = vmul.f32 1.442695, %v3612_v46  ;;  %v1626_v59 = vmul.f32 0.6931472, %v7377_v47  ;;  %v354_v0 = vld [vmem:[%s9790_s5 + $0x5e8] sm:$0xff]  ;;  %v898_v4 = vmul.f32 %v9797_v1, %v352_v56  ;;  %v355_v5 = vld [vmem:[%s9790_s5 + $0x5f0] sm:$0xff] }
 0x269   : > { %v7381_v53 = vpop.eup %7380  ;;  %7400 = vpow2.f32 %v4335_v48  ;;  %v4339_v54 = vmul.f32 1.442695, %v3613_v49  ;;  %v1628_v63 = vmul.f32 0.6931472, %v7379_v50  ;;  %v899_v8 = vmul.f32 %v9797_v1, %v353_v60  ;;  %v356_v9 = vld [vmem:[%s9790_s5 + $0x5f8] sm:$0xff]  ;;  %v357_v13 = vld [vmem:[%s9790_s5 + $0x600] sm:$0xff] }
 0x26a   : > { %v7383_v57 = vpop.eup %7382  ;;  %v5233_v58 = vmul.f32 0.2, %v7381_v53  ;;  %7402 = vpow2.f32 %v4337_v51  ;;  %v900_v12 = vmul.f32 %v9797_v1, %v354_v0  ;;  %v901_v16 = vmul.f32 %v9797_v1, %v355_v5  ;;  %v358_v17 = vld [vmem:[%s9790_s5 + $0x608] sm:$0xff]  ;;  %v359_v21 = vld [vmem:[%s9790_s5 + $0x610] sm:$0xff]  ;;  %v360_v25 = vld [vmem:[%s9790_s5 + $0x618] sm:$0xff] }
 0x26b   : > { %v7385_v61 = vpop.eup %7384  ;;  %v5234_v62 = vmul.f32 0.2, %v7383_v57  ;;  %7404 = vpow2.f32 %v4339_v54  ;;  %v902_v20 = vmul.f32 %v9797_v1, %v356_v9  ;;  %v903_v24 = vmul.f32 %v9797_v1, %v357_v13  ;;  %v361_v29 = vld [vmem:[%s9790_s5 + $0x620] sm:$0xff]  ;;  %v362_v33 = vld [vmem:[%s9790_s5 + $0x628] sm:$0xff]  ;;  %v363_v37 = vld [vmem:[%s9790_s5 + $0x630] sm:$0xff] }
 0x26c   : > { %v7387_v2 = vpop.eup %7386  ;;  %5777 = vst [vmem:[%s9837_s20 + $0x550] sm:$0xff] %v5233_v58  ;;  %v5235_v3 = vmul.f32 0.2, %v7385_v61  ;;  %7406 = vlog2.f32 %v1622_v52  ;;  %v904_v28 = vmul.f32 %v9797_v1, %v358_v17  ;;  %v905_v32 = vmul.f32 %v9797_v1, %v359_v21  ;;  %v364_v41 = vld [vmem:[%s9790_s5 + $0x638] sm:$0xff] }
 0x26d   : > { %v7389_v6 = vpop.eup %7388  ;;  %5778 = vst [vmem:[%s9837_s20 + $0x558] sm:$0xff] %v5234_v62  ;;  %v5236_v7 = vmul.f32 0.2, %v7387_v2  ;;  %7408 = vlog2.f32 %v1624_v55  ;;  %v906_v36 = vmul.f32 %v9797_v1, %v360_v25  ;;  %v907_v40 = vmul.f32 %v9797_v1, %v361_v29 }
 0x26e   : > { %v7391_v10 = vpop.eup %7390  ;;  %5779 = vst [vmem:[%s9837_s20 + $0x560] sm:$0xff] %v5235_v3  ;;  %v5237_v11 = vmul.f32 0.2, %v7389_v6  ;;  %7410 = vlog2.f32 %v1626_v59  ;;  %v908_v44 = vmul.f32 %v9797_v1, %v362_v33  ;;  %v909_v47 = vmul.f32 %v9797_v1, %v363_v37 }
 0x26f   : > { %v7393_v14 = vpop.eup %7392  ;;  %5780 = vst [vmem:[%s9837_s20 + $0x568] sm:$0xff] %v5236_v7  ;;  %v5238_v15 = vmul.f32 0.2, %v7391_v10  ;;  %7412 = vlog2.f32 %v1628_v63  ;;  %v910_v50 = vmul.f32 %v9797_v1, %v364_v41 }
 0x270   : > { %v7395_v18 = vpop.eup %7394  ;;  %5781 = vst [vmem:[%s9837_s20 + $0x570] sm:$0xff] %v5237_v11  ;;  %v5239_v19 = vmul.f32 0.2, %v7393_v14  ;;  %7414 = vlog2.f32 %v898_v4 }
 0x271   : > { %v7397_v22 = vpop.eup %7396  ;;  %5782 = vst [vmem:[%s9837_s20 + $0x578] sm:$0xff] %v5238_v15  ;;  %v5240_v23 = vmul.f32 0.2, %v7395_v18  ;;  %7416 = vlog2.f32 %v899_v8 }
 0x272   : > { %v7399_v26 = vpop.eup %7398  ;;  %5783 = vst [vmem:[%s9837_s20 + $0x580] sm:$0xff] %v5239_v19  ;;  %v5241_v27 = vmul.f32 0.2, %v7397_v22  ;;  %7418 = vlog2.f32 %v900_v12 }
 0x273   : > { %v7401_v30 = vpop.eup %7400  ;;  %5784 = vst [vmem:[%s9837_s20 + $0x588] sm:$0xff] %v5240_v23  ;;  %v5242_v31 = vmul.f32 0.2, %v7399_v26  ;;  %7420 = vlog2.f32 %v901_v16 }
 0x274   : > { %v7403_v34 = vpop.eup %7402  ;;  %5785 = vst [vmem:[%s9837_s20 + $0x590] sm:$0xff] %v5241_v27  ;;  %v5243_v35 = vmul.f32 0.2, %v7401_v30  ;;  %7422 = vlog2.f32 %v902_v20 }
 0x275   : > { %v7405_v38 = vpop.eup %7404  ;;  %5786 = vst [vmem:[%s9837_s20 + $0x598] sm:$0xff] %v5242_v31  ;;  %v5244_v39 = vmul.f32 0.2, %v7403_v34  ;;  %7424 = vlog2.f32 %v903_v24  ;;  %v365_v24 = vld [vmem:[%s9790_s5 + $0x640] sm:$0xff] }
 0x276   : > { %v7407_v42 = vpop.eup %7406  ;;  %5787 = vst [vmem:[%s9837_s20 + $0x5a0] sm:$0xff] %v5243_v35  ;;  %v5245_v43 = vmul.f32 0.2, %v7405_v38  ;;  %7426 = vlog2.f32 %v904_v28  ;;  %v366_v28 = vld [vmem:[%s9790_s5 + $0x648] sm:$0xff]  ;;  %v911_v35 = vmul.f32 %v9797_v1, %v365_v24 }
 0x277   : > { %v7409_v45 = vpop.eup %7408  ;;  %5788 = vst [vmem:[%s9837_s20 + $0x5a8] sm:$0xff] %v5244_v39  ;;  %v2710_v46 = vmul.f32 0.6931472, %v7407_v42  ;;  %7428 = vlog2.f32 %v905_v32  ;;  %v367_v32 = vld [vmem:[%s9790_s5 + $0x650] sm:$0xff]  ;;  %v912_v39 = vmul.f32 %v9797_v1, %v366_v28 }
 0x278   : > { %v7411_v48 = vpop.eup %7410  ;;  %5789 = vst [vmem:[%s9837_s20 + $0x5b0] sm:$0xff] %v5245_v43  ;;  %v2712_v49 = vmul.f32 0.6931472, %v7409_v45  ;;  %7430 = vlog2.f32 %v906_v36  ;;  %v368_v36 = vld [vmem:[%s9790_s5 + $0x658] sm:$0xff]  ;;  %v913_v42 = vmul.f32 %v9797_v1, %v367_v32 }
 0x279   : > { %v7413_v51 = vpop.eup %7412  ;;  %v3614_v52 = vmul.f32 0.6, %v2710_v46  ;;  %v2714_v53 = vmul.f32 0.6931472, %v7411_v48  ;;  %7432 = vlog2.f32 %v907_v40  ;;  %v914_v45 = vmul.f32 %v9797_v1, %v368_v36 }
 0x27a   : > { %v7415_v54 = vpop.eup %7414  ;;  %v3615_v55 = vmul.f32 0.6, %v2712_v49  ;;  %v2716_v56 = vmul.f32 0.6931472, %v7413_v51  ;;  %7434 = vlog2.f32 %v908_v44 }
 0x27b   : > { %v7417_v57 = vpop.eup %7416  ;;  %v4341_v58 = vmul.f32 1.442695, %v3614_v52  ;;  %v3616_v59 = vmul.f32 0.6, %v2714_v53  ;;  %7436 = vlog2.f32 %v909_v47  ;;  %v1630_v2 = vmul.f32 0.6931472, %v7415_v54 }
 0x27c   : > { %v7419_v60 = vpop.eup %7418  ;;  %v4343_v61 = vmul.f32 1.442695, %v3615_v55  ;;  %v3617_v62 = vmul.f32 0.6, %v2716_v56  ;;  %7438 = vlog2.f32 %v910_v50  ;;  %v1632_v5 = vmul.f32 0.6931472, %v7417_v57 }
 0x27d   : > { %v7421_v63 = vpop.eup %7420  ;;  %7440 = vpow2.f32 %v4341_v58  ;;  %v4345_v0 = vmul.f32 1.442695, %v3616_v59  ;;  %v1634_v7 = vmul.f32 0.6931472, %v7419_v60 }
 0x27e   : > { %v7423_v3 = vpop.eup %7422  ;;  %7442 = vpow2.f32 %v4343_v61  ;;  %v4347_v4 = vmul.f32 1.442695, %v3617_v62  ;;  %v1636_v9 = vmul.f32 0.6931472, %v7421_v63 }
 0x27f   : > { %v7425_v6 = vpop.eup %7424  ;;  %7444 = vpow2.f32 %v4345_v0  ;;  %v1638_v11 = vmul.f32 0.6931472, %v7423_v3 }
 0x280   : > { %v7427_v8 = vpop.eup %7426  ;;  %7446 = vpow2.f32 %v4347_v4  ;;  %v1640_v13 = vmul.f32 0.6931472, %v7425_v6 }
 0x281   : > { %v7429_v10 = vpop.eup %7428  ;;  %7448 = vlog2.f32 %v1630_v2  ;;  %v1642_v15 = vmul.f32 0.6931472, %v7427_v8 }
 0x282   : > { %v7431_v12 = vpop.eup %7430  ;;  %7450 = vlog2.f32 %v1632_v5  ;;  %v1644_v17 = vmul.f32 0.6931472, %v7429_v10 }
 0x283   : > { %v7433_v14 = vpop.eup %7432  ;;  %7452 = vlog2.f32 %v1634_v7  ;;  %v1646_v19 = vmul.f32 0.6931472, %v7431_v12 }
 0x284   : > { %v7435_v16 = vpop.eup %7434  ;;  %7454 = vlog2.f32 %v1636_v9  ;;  %v1648_v21 = vmul.f32 0.6931472, %v7433_v14 }
 0x285   : > { %v7437_v18 = vpop.eup %7436  ;;  %7456 = vlog2.f32 %v1638_v11  ;;  %v1650_v23 = vmul.f32 0.6931472, %v7435_v16 }
 0x286   : > { %v7439_v20 = vpop.eup %7438  ;;  %7458 = vlog2.f32 %v1640_v13  ;;  %v1652_v27 = vmul.f32 0.6931472, %v7437_v18 }
 0x287   : > { %v7441_v22 = vpop.eup %7440  ;;  %7460 = vlog2.f32 %v1642_v15  ;;  %v1654_v31 = vmul.f32 0.6931472, %v7439_v20 }
 0x288   : > { %v7443_v25 = vpop.eup %7442  ;;  %v5246_v26 = vmul.f32 0.2, %v7441_v22  ;;  %7462 = vlog2.f32 %v1644_v17 }
 0x289   : > { %v7445_v29 = vpop.eup %7444  ;;  %v5247_v30 = vmul.f32 0.2, %v7443_v25  ;;  %7464 = vlog2.f32 %v1646_v19 }
 0x28a   : > { %v7447_v33 = vpop.eup %7446  ;;  %5790 = vst [vmem:[%s9837_s20 + $0x5b8] sm:$0xff] %v5246_v26  ;;  %v5248_v34 = vmul.f32 0.2, %v7445_v29  ;;  %7466 = vlog2.f32 %v1648_v21 }
 0x28b   : > { %v7449_v37 = vpop.eup %7448  ;;  %5791 = vst [vmem:[%s9837_s20 + $0x5c0] sm:$0xff] %v5247_v30  ;;  %v5249_v38 = vmul.f32 0.2, %v7447_v33  ;;  %7468 = vlog2.f32 %v1650_v23 }
 0x28c   : > { %v7451_v40 = vpop.eup %7450  ;;  %5792 = vst [vmem:[%s9837_s20 + $0x5c8] sm:$0xff] %v5248_v34  ;;  %v2718_v41 = vmul.f32 0.6931472, %v7449_v37  ;;  %7470 = vlog2.f32 %v1652_v27  ;;  %v369_v37 = vld [vmem:[%s9790_s5 + $0x660] sm:$0xff] }
 0x28d   : > { %v7453_v43 = vpop.eup %7452  ;;  %5793 = vst [vmem:[%s9837_s20 + $0x5d0] sm:$0xff] %v5249_v38  ;;  %v2720_v44 = vmul.f32 0.6931472, %v7451_v40  ;;  %7472 = vlog2.f32 %v1654_v31 }
 0x28e   : > { %v7455_v46 = vpop.eup %7454  ;;  %v3618_v47 = vmul.f32 0.6, %v2718_v41  ;;  %v2722_v48 = vmul.f32 0.6931472, %v7453_v43  ;;  %7474 = vlog2.f32 %v911_v35  ;;  %v370_v41 = vld [vmem:[%s9790_s5 + $0x668] sm:$0xff] }
 0x28f   : > { %v7457_v49 = vpop.eup %7456  ;;  %v3619_v50 = vmul.f32 0.6, %v2720_v44  ;;  %v2724_v51 = vmul.f32 0.6931472, %v7455_v46  ;;  %7476 = vlog2.f32 %v912_v39 }
 0x290   : > { %v7459_v52 = vpop.eup %7458  ;;  %v4349_v53 = vmul.f32 1.442695, %v3618_v47  ;;  %v3620_v54 = vmul.f32 0.6, %v2722_v48  ;;  %v2726_v55 = vmul.f32 0.6931472, %v7457_v49  ;;  %7478 = vlog2.f32 %v913_v42 }
 0x291   : > { %v7461_v56 = vpop.eup %7460  ;;  %v4351_v57 = vmul.f32 1.442695, %v3619_v50  ;;  %v3621_v58 = vmul.f32 0.6, %v2724_v51  ;;  %v2728_v59 = vmul.f32 0.6931472, %v7459_v52  ;;  %7480 = vlog2.f32 %v914_v45 }
 0x292   : > { %v7463_v60 = vpop.eup %7462  ;;  %7482 = vpow2.f32 %v4349_v53  ;;  %v4353_v61 = vmul.f32 1.442695, %v3620_v54  ;;  %v3622_v62 = vmul.f32 0.6, %v2726_v55  ;;  %v2730_v63 = vmul.f32 0.6931472, %v7461_v56 }
 0x293   : > { %v7465_v0 = vpop.eup %7464  ;;  %7484 = vpow2.f32 %v4351_v57  ;;  %v4355_v2 = vmul.f32 1.442695, %v3621_v58  ;;  %v3623_v3 = vmul.f32 0.6, %v2728_v59  ;;  %v2732_v4 = vmul.f32 0.6931472, %v7463_v60 }
 0x294   : > { %v7467_v5 = vpop.eup %7466  ;;  %7486 = vpow2.f32 %v4353_v61  ;;  %v4357_v6 = vmul.f32 1.442695, %v3622_v62  ;;  %v3624_v7 = vmul.f32 0.6, %v2730_v63  ;;  %v2734_v8 = vmul.f32 0.6931472, %v7465_v0 }
 0x295   : > { %v7469_v9 = vpop.eup %7468  ;;  %7488 = vpow2.f32 %v4355_v2  ;;  %v4359_v10 = vmul.f32 1.442695, %v3623_v3  ;;  %v3625_v11 = vmul.f32 0.6, %v2732_v4  ;;  %v2736_v12 = vmul.f32 0.6931472, %v7467_v5 }
 0x296   : > { %v7471_v13 = vpop.eup %7470  ;;  %7490 = vpow2.f32 %v4357_v6  ;;  %v4361_v14 = vmul.f32 1.442695, %v3624_v7  ;;  %v3626_v15 = vmul.f32 0.6, %v2734_v8  ;;  %v2738_v16 = vmul.f32 0.6931472, %v7469_v9 }
 0x297   : > { %v7473_v17 = vpop.eup %7472  ;;  %7492 = vpow2.f32 %v4359_v10  ;;  %v4363_v18 = vmul.f32 1.442695, %v3625_v11  ;;  %v3627_v19 = vmul.f32 0.6, %v2736_v12  ;;  %v2740_v20 = vmul.f32 0.6931472, %v7471_v13 }
 0x298   : > { %v7475_v21 = vpop.eup %7474  ;;  %7494 = vpow2.f32 %v4361_v14  ;;  %v4365_v22 = vmul.f32 1.442695, %v3626_v15  ;;  %v3628_v23 = vmul.f32 0.6, %v2738_v16  ;;  %v2742_v24 = vmul.f32 0.6931472, %v7473_v17 }
 0x299   : > { %v7477_v25 = vpop.eup %7476  ;;  %7496 = vpow2.f32 %v4363_v18  ;;  %v4367_v26 = vmul.f32 1.442695, %v3627_v19  ;;  %v3629_v27 = vmul.f32 0.6, %v2740_v20  ;;  %v1656_v33 = vmul.f32 0.6931472, %v7475_v21 }
 0x29a   : > { %v7479_v28 = vpop.eup %7478  ;;  %7498 = vpow2.f32 %v4365_v22  ;;  %v4369_v29 = vmul.f32 1.442695, %v3628_v23  ;;  %v3630_v30 = vmul.f32 0.6, %v2742_v24  ;;  %v1658_v36 = vmul.f32 0.6931472, %v7477_v25 }
 0x29b   : > { %v7481_v31 = vpop.eup %7480  ;;  %7500 = vpow2.f32 %v4367_v26  ;;  %v4371_v32 = vmul.f32 1.442695, %v3629_v27  ;;  %v1660_v40 = vmul.f32 0.6931472, %v7479_v28  ;;  %v371_v45 = vld [vmem:[%s9790_s5 + $0x670] sm:$0xff]  ;;  %v915_v48 = vmul.f32 %v9797_v1, %v369_v37  ;;  %v372_v49 = vld [vmem:[%s9790_s5 + $0x678] sm:$0xff] }
 0x29c   : > { %v7483_v34 = vpop.eup %7482  ;;  %7502 = vpow2.f32 %v4369_v29  ;;  %v4373_v35 = vmul.f32 1.442695, %v3630_v30  ;;  %v1662_v44 = vmul.f32 0.6931472, %v7481_v31  ;;  %v916_v52 = vmul.f32 %v9797_v1, %v370_v41  ;;  %v373_v53 = vld [vmem:[%s9790_s5 + $0x680] sm:$0xff]  ;;  %v374_v57 = vld [vmem:[%s9790_s5 + $0x688] sm:$0xff] }
 0x29d   : > { %v7485_v38 = vpop.eup %7484  ;;  %v5250_v39 = vmul.f32 0.2, %v7483_v34  ;;  %7504 = vpow2.f32 %v4371_v32  ;;  %v917_v56 = vmul.f32 %v9797_v1, %v371_v45  ;;  %v918_v60 = vmul.f32 %v9797_v1, %v372_v49  ;;  %v375_v61 = vld [vmem:[%s9790_s5 + $0x690] sm:$0xff]  ;;  %v376_v2 = vld [vmem:[%s9790_s5 + $0x698] sm:$0xff]  ;;  %v377_v6 = vld [vmem:[%s9790_s5 + $0x6a0] sm:$0xff] }
 0x29e   : > { %v7487_v42 = vpop.eup %7486  ;;  %v5251_v43 = vmul.f32 0.2, %v7485_v38  ;;  %7506 = vpow2.f32 %v4373_v35  ;;  %v919_v0 = vmul.f32 %v9797_v1, %v373_v53  ;;  %v920_v5 = vmul.f32 %v9797_v1, %v374_v57  ;;  %v378_v10 = vld [vmem:[%s9790_s5 + $0x6a8] sm:$0xff]  ;;  %v379_v14 = vld [vmem:[%s9790_s5 + $0x6b0] sm:$0xff]  ;;  %v380_v18 = vld [vmem:[%s9790_s5 + $0x6b8] sm:$0xff] }
 0x29f   : > { %v7489_v46 = vpop.eup %7488  ;;  %5794 = vst [vmem:[%s9837_s20 + $0x5d8] sm:$0xff] %v5250_v39  ;;  %v5252_v47 = vmul.f32 0.2, %v7487_v42  ;;  %7508 = vlog2.f32 %v1656_v33  ;;  %v921_v9 = vmul.f32 %v9797_v1, %v375_v61  ;;  %v922_v13 = vmul.f32 %v9797_v1, %v376_v2  ;;  %v381_v22 = vld [vmem:[%s9790_s5 + $0x6c0] sm:$0xff] }
 0x2a0   : > { %v7491_v50 = vpop.eup %7490  ;;  %5795 = vst [vmem:[%s9837_s20 + $0x5e0] sm:$0xff] %v5251_v43  ;;  %v5253_v51 = vmul.f32 0.2, %v7489_v46  ;;  %7510 = vlog2.f32 %v1658_v36  ;;  %v923_v17 = vmul.f32 %v9797_v1, %v377_v6  ;;  %v924_v21 = vmul.f32 %v9797_v1, %v378_v10 }
 0x2a1   : > { %v7493_v54 = vpop.eup %7492  ;;  %5796 = vst [vmem:[%s9837_s20 + $0x5e8] sm:$0xff] %v5252_v47  ;;  %v5254_v55 = vmul.f32 0.2, %v7491_v50  ;;  %7512 = vlog2.f32 %v1660_v40  ;;  %v925_v25 = vmul.f32 %v9797_v1, %v379_v14  ;;  %v926_v28 = vmul.f32 %v9797_v1, %v380_v18 }
 0x2a2   : > { %v7495_v58 = vpop.eup %7494  ;;  %5797 = vst [vmem:[%s9837_s20 + $0x5f0] sm:$0xff] %v5253_v51  ;;  %v5255_v59 = vmul.f32 0.2, %v7493_v54  ;;  %7514 = vlog2.f32 %v1662_v44  ;;  %v927_v31 = vmul.f32 %v9797_v1, %v381_v22 }
 0x2a3   : > { %v7497_v62 = vpop.eup %7496  ;;  %5798 = vst [vmem:[%s9837_s20 + $0x5f8] sm:$0xff] %v5254_v55  ;;  %v5256_v63 = vmul.f32 0.2, %v7495_v58  ;;  %7516 = vlog2.f32 %v915_v48 }
 0x2a4   : > { %v7499_v3 = vpop.eup %7498  ;;  %5799 = vst [vmem:[%s9837_s20 + $0x600] sm:$0xff] %v5255_v59  ;;  %v5257_v4 = vmul.f32 0.2, %v7497_v62  ;;  %7518 = vlog2.f32 %v916_v52 }
 0x2a5   : > { %v7501_v7 = vpop.eup %7500  ;;  %5800 = vst [vmem:[%s9837_s20 + $0x608] sm:$0xff] %v5256_v63  ;;  %v5258_v8 = vmul.f32 0.2, %v7499_v3  ;;  %7520 = vlog2.f32 %v917_v56 }
 0x2a6   : > { %v7503_v11 = vpop.eup %7502  ;;  %5801 = vst [vmem:[%s9837_s20 + $0x610] sm:$0xff] %v5257_v4  ;;  %v5259_v12 = vmul.f32 0.2, %v7501_v7  ;;  %7522 = vlog2.f32 %v918_v60 }
 0x2a7   : > { %v7505_v15 = vpop.eup %7504  ;;  %5802 = vst [vmem:[%s9837_s20 + $0x618] sm:$0xff] %v5258_v8  ;;  %v5260_v16 = vmul.f32 0.2, %v7503_v11  ;;  %7524 = vlog2.f32 %v919_v0 }
 0x2a8   : > { %v7507_v19 = vpop.eup %7506  ;;  %5803 = vst [vmem:[%s9837_s20 + $0x620] sm:$0xff] %v5259_v12  ;;  %v5261_v20 = vmul.f32 0.2, %v7505_v15  ;;  %7526 = vlog2.f32 %v920_v5  ;;  %v382_v5 = vld [vmem:[%s9790_s5 + $0x6c8] sm:$0xff] }
 0x2a9   : > { %v7509_v23 = vpop.eup %7508  ;;  %5804 = vst [vmem:[%s9837_s20 + $0x628] sm:$0xff] %v5260_v16  ;;  %v5262_v24 = vmul.f32 0.2, %v7507_v19  ;;  %7528 = vlog2.f32 %v921_v9  ;;  %v383_v9 = vld [vmem:[%s9790_s5 + $0x6d0] sm:$0xff]  ;;  %v928_v16 = vmul.f32 %v9797_v1, %v382_v5 }
 0x2aa   : > { %v7511_v26 = vpop.eup %7510  ;;  %5805 = vst [vmem:[%s9837_s20 + $0x630] sm:$0xff] %v5261_v20  ;;  %v2744_v27 = vmul.f32 0.6931472, %v7509_v23  ;;  %7530 = vlog2.f32 %v922_v13  ;;  %v384_v13 = vld [vmem:[%s9790_s5 + $0x6d8] sm:$0xff]  ;;  %v929_v20 = vmul.f32 %v9797_v1, %v383_v9 }
 0x2ab   : > { %v7513_v29 = vpop.eup %7512  ;;  %5806 = vst [vmem:[%s9837_s20 + $0x638] sm:$0xff] %v5262_v24  ;;  %v2746_v30 = vmul.f32 0.6931472, %v7511_v26  ;;  %7532 = vlog2.f32 %v923_v17  ;;  %v385_v17 = vld [vmem:[%s9790_s5 + $0x6e0] sm:$0xff]  ;;  %v930_v23 = vmul.f32 %v9797_v1, %v384_v13 }
 0x2ac   : > { %v7515_v32 = vpop.eup %7514  ;;  %v3631_v33 = vmul.f32 0.6, %v2744_v27  ;;  %v2748_v34 = vmul.f32 0.6931472, %v7513_v29  ;;  %7534 = vlog2.f32 %v924_v21  ;;  %v931_v26 = vmul.f32 %v9797_v1, %v385_v17 }
 0x2ad   : > { %v7517_v35 = vpop.eup %7516  ;;  %v3632_v36 = vmul.f32 0.6, %v2746_v30  ;;  %v2750_v37 = vmul.f32 0.6931472, %v7515_v32  ;;  %7536 = vlog2.f32 %v925_v25 }
 0x2ae   : > { %v7519_v38 = vpop.eup %7518  ;;  %v4375_v39 = vmul.f32 1.442695, %v3631_v33  ;;  %v3633_v40 = vmul.f32 0.6, %v2748_v34  ;;  %7538 = vlog2.f32 %v926_v28  ;;  %v1664_v46 = vmul.f32 0.6931472, %v7517_v35 }
 0x2af   : > { %v7521_v41 = vpop.eup %7520  ;;  %v4377_v42 = vmul.f32 1.442695, %v3632_v36  ;;  %v3634_v43 = vmul.f32 0.6, %v2750_v37  ;;  %7540 = vlog2.f32 %v927_v31  ;;  %v1666_v49 = vmul.f32 0.6931472, %v7519_v38 }
 0x2b0   : > { %v7523_v44 = vpop.eup %7522  ;;  %7542 = vpow2.f32 %v4375_v39  ;;  %v4379_v45 = vmul.f32 1.442695, %v3633_v40  ;;  %v1668_v51 = vmul.f32 0.6931472, %v7521_v41 }
 0x2b1   : > { %v7525_v47 = vpop.eup %7524  ;;  %7544 = vpow2.f32 %v4377_v42  ;;  %v4381_v48 = vmul.f32 1.442695, %v3634_v43  ;;  %v1670_v53 = vmul.f32 0.6931472, %v7523_v44 }
 0x2b2   : > { %v7527_v50 = vpop.eup %7526  ;;  %7546 = vpow2.f32 %v4379_v45  ;;  %v1672_v55 = vmul.f32 0.6931472, %v7525_v47 }
 0x2b3   : > { %v7529_v52 = vpop.eup %7528  ;;  %7548 = vpow2.f32 %v4381_v48  ;;  %v1674_v57 = vmul.f32 0.6931472, %v7527_v50 }
 0x2b4   : > { %v7531_v54 = vpop.eup %7530  ;;  %7550 = vlog2.f32 %v1664_v46  ;;  %v1676_v59 = vmul.f32 0.6931472, %v7529_v52 }
 0x2b5   : > { %v7533_v56 = vpop.eup %7532  ;;  %7552 = vlog2.f32 %v1666_v49  ;;  %v1678_v61 = vmul.f32 0.6931472, %v7531_v54 }
 0x2b6   : > { %v7535_v58 = vpop.eup %7534  ;;  %7554 = vlog2.f32 %v1668_v51  ;;  %v1680_v63 = vmul.f32 0.6931472, %v7533_v56 }
 0x2b7   : > { %v7537_v60 = vpop.eup %7536  ;;  %7556 = vlog2.f32 %v1670_v53  ;;  %v1682_v2 = vmul.f32 0.6931472, %v7535_v58 }
 0x2b8   : > { %v7539_v62 = vpop.eup %7538  ;;  %7558 = vlog2.f32 %v1672_v55  ;;  %v1684_v4 = vmul.f32 0.6931472, %v7537_v60 }
 0x2b9   : > { %v7541_v0 = vpop.eup %7540  ;;  %7560 = vlog2.f32 %v1674_v57  ;;  %v1686_v8 = vmul.f32 0.6931472, %v7539_v62 }
 0x2ba   : > { %v7543_v3 = vpop.eup %7542  ;;  %7562 = vlog2.f32 %v1676_v59  ;;  %v1688_v12 = vmul.f32 0.6931472, %v7541_v0 }
 0x2bb   : > { %v7545_v6 = vpop.eup %7544  ;;  %v5263_v7 = vmul.f32 0.2, %v7543_v3  ;;  %7564 = vlog2.f32 %v1678_v61 }
 0x2bc   : > { %v7547_v10 = vpop.eup %7546  ;;  %v5264_v11 = vmul.f32 0.2, %v7545_v6  ;;  %7566 = vlog2.f32 %v1680_v63 }
 0x2bd   : > { %v7549_v14 = vpop.eup %7548  ;;  %5807 = vst [vmem:[%s9837_s20 + $0x640] sm:$0xff] %v5263_v7  ;;  %v5265_v15 = vmul.f32 0.2, %v7547_v10  ;;  %7568 = vlog2.f32 %v1682_v2 }
 0x2be   : > { %v7551_v18 = vpop.eup %7550  ;;  %5808 = vst [vmem:[%s9837_s20 + $0x648] sm:$0xff] %v5264_v11  ;;  %v5266_v19 = vmul.f32 0.2, %v7549_v14  ;;  %7570 = vlog2.f32 %v1684_v4 }
 0x2bf   : > { %v7553_v21 = vpop.eup %7552  ;;  %5809 = vst [vmem:[%s9837_s20 + $0x650] sm:$0xff] %v5265_v15  ;;  %v2752_v22 = vmul.f32 0.6931472, %v7551_v18  ;;  %7572 = vlog2.f32 %v1686_v8  ;;  %v386_v18 = vld [vmem:[%s9790_s5 + $0x6e8] sm:$0xff] }
 0x2c0   : > { %v7555_v24 = vpop.eup %7554  ;;  %5810 = vst [vmem:[%s9837_s20 + $0x658] sm:$0xff] %v5266_v19  ;;  %v2754_v25 = vmul.f32 0.6931472, %v7553_v21  ;;  %7574 = vlog2.f32 %v1688_v12 }
 0x2c1   : > { %v7557_v27 = vpop.eup %7556  ;;  %v3635_v28 = vmul.f32 0.6, %v2752_v22  ;;  %v2756_v29 = vmul.f32 0.6931472, %v7555_v24  ;;  %7576 = vlog2.f32 %v928_v16  ;;  %v387_v22 = vld [vmem:[%s9790_s5 + $0x6f0] sm:$0xff] }
 0x2c2   : > { %v7559_v30 = vpop.eup %7558  ;;  %v3636_v31 = vmul.f32 0.6, %v2754_v25  ;;  %v2758_v32 = vmul.f32 0.6931472, %v7557_v27  ;;  %7578 = vlog2.f32 %v929_v20 }
 0x2c3   : > { %v7561_v33 = vpop.eup %7560  ;;  %v4383_v34 = vmul.f32 1.442695, %v3635_v28  ;;  %v3637_v35 = vmul.f32 0.6, %v2756_v29  ;;  %v2760_v36 = vmul.f32 0.6931472, %v7559_v30  ;;  %7580 = vlog2.f32 %v930_v23 }
 0x2c4   : > { %v7563_v37 = vpop.eup %7562  ;;  %v4385_v38 = vmul.f32 1.442695, %v3636_v31  ;;  %v3638_v39 = vmul.f32 0.6, %v2758_v32  ;;  %v2762_v40 = vmul.f32 0.6931472, %v7561_v33  ;;  %7582 = vlog2.f32 %v931_v26 }
 0x2c5   : > { %v7565_v41 = vpop.eup %7564  ;;  %7584 = vpow2.f32 %v4383_v34  ;;  %v4387_v42 = vmul.f32 1.442695, %v3637_v35  ;;  %v3639_v43 = vmul.f32 0.6, %v2760_v36  ;;  %v2764_v44 = vmul.f32 0.6931472, %v7563_v37 }
 0x2c6   : > { %v7567_v45 = vpop.eup %7566  ;;  %7586 = vpow2.f32 %v4385_v38  ;;  %v4389_v46 = vmul.f32 1.442695, %v3638_v39  ;;  %v3640_v47 = vmul.f32 0.6, %v2762_v40  ;;  %v2766_v48 = vmul.f32 0.6931472, %v7565_v41 }
 0x2c7   : > { %v7569_v49 = vpop.eup %7568  ;;  %7588 = vpow2.f32 %v4387_v42  ;;  %v4391_v50 = vmul.f32 1.442695, %v3639_v43  ;;  %v3641_v51 = vmul.f32 0.6, %v2764_v44  ;;  %v2768_v52 = vmul.f32 0.6931472, %v7567_v45 }
 0x2c8   : > { %v7571_v53 = vpop.eup %7570  ;;  %7590 = vpow2.f32 %v4389_v46  ;;  %v4393_v54 = vmul.f32 1.442695, %v3640_v47  ;;  %v3642_v55 = vmul.f32 0.6, %v2766_v48  ;;  %v2770_v56 = vmul.f32 0.6931472, %v7569_v49 }
 0x2c9   : > { %v7573_v57 = vpop.eup %7572  ;;  %7592 = vpow2.f32 %v4391_v50  ;;  %v4395_v58 = vmul.f32 1.442695, %v3641_v51  ;;  %v3643_v59 = vmul.f32 0.6, %v2768_v52  ;;  %v2772_v60 = vmul.f32 0.6931472, %v7571_v53 }
 0x2ca   : > { %v7575_v61 = vpop.eup %7574  ;;  %7594 = vpow2.f32 %v4393_v54  ;;  %v4397_v62 = vmul.f32 1.442695, %v3642_v55  ;;  %v3644_v63 = vmul.f32 0.6, %v2770_v56  ;;  %v2774_v0 = vmul.f32 0.6931472, %v7573_v57 }
 0x2cb   : > { %v7577_v2 = vpop.eup %7576  ;;  %7596 = vpow2.f32 %v4395_v58  ;;  %v4399_v3 = vmul.f32 1.442695, %v3643_v59  ;;  %v3645_v4 = vmul.f32 0.6, %v2772_v60  ;;  %v2776_v5 = vmul.f32 0.6931472, %v7575_v61 }
 0x2cc   : > { %v7579_v6 = vpop.eup %7578  ;;  %7598 = vpow2.f32 %v4397_v62  ;;  %v4401_v7 = vmul.f32 1.442695, %v3644_v63  ;;  %v3646_v8 = vmul.f32 0.6, %v2774_v0  ;;  %v1690_v14 = vmul.f32 0.6931472, %v7577_v2 }
 0x2cd   : > { %v7581_v9 = vpop.eup %7580  ;;  %7600 = vpow2.f32 %v4399_v3  ;;  %v4403_v10 = vmul.f32 1.442695, %v3645_v4  ;;  %v3647_v11 = vmul.f32 0.6, %v2776_v5  ;;  %v1692_v17 = vmul.f32 0.6931472, %v7579_v6 }
 0x2ce   : > { %v7583_v12 = vpop.eup %7582  ;;  %7602 = vpow2.f32 %v4401_v7  ;;  %v4405_v13 = vmul.f32 1.442695, %v3646_v8  ;;  %v1694_v21 = vmul.f32 0.6931472, %v7581_v9  ;;  %v388_v26 = vld [vmem:[%s9790_s5 + $0x6f8] sm:$0xff]  ;;  %v932_v29 = vmul.f32 %v9797_v1, %v386_v18  ;;  %v389_v30 = vld [vmem:[%s9790_s5 + $0x700] sm:$0xff] }
 0x2cf   : > { %v7585_v15 = vpop.eup %7584  ;;  %7604 = vpow2.f32 %v4403_v10  ;;  %v4407_v16 = vmul.f32 1.442695, %v3647_v11  ;;  %v1696_v25 = vmul.f32 0.6931472, %v7583_v12  ;;  %v933_v33 = vmul.f32 %v9797_v1, %v387_v22  ;;  %v390_v34 = vld [vmem:[%s9790_s5 + $0x708] sm:$0xff]  ;;  %v391_v38 = vld [vmem:[%s9790_s5 + $0x710] sm:$0xff] }
 0x2d0   : > { %v7587_v19 = vpop.eup %7586  ;;  %v5267_v20 = vmul.f32 0.2, %v7585_v15  ;;  %7606 = vpow2.f32 %v4405_v13  ;;  %v934_v37 = vmul.f32 %v9797_v1, %v388_v26  ;;  %v935_v41 = vmul.f32 %v9797_v1, %v389_v30  ;;  %v392_v42 = vld [vmem:[%s9790_s5 + $0x718] sm:$0xff]  ;;  %v393_v46 = vld [vmem:[%s9790_s5 + $0x720] sm:$0xff]  ;;  %v394_v50 = vld [vmem:[%s9790_s5 + $0x728] sm:$0xff] }
 0x2d1   : > { %v7589_v23 = vpop.eup %7588  ;;  %v5268_v24 = vmul.f32 0.2, %v7587_v19  ;;  %7608 = vpow2.f32 %v4407_v16  ;;  %v936_v45 = vmul.f32 %v9797_v1, %v390_v34  ;;  %v937_v49 = vmul.f32 %v9797_v1, %v391_v38  ;;  %v395_v54 = vld [vmem:[%s9790_s5 + $0x730] sm:$0xff]  ;;  %v396_v58 = vld [vmem:[%s9790_s5 + $0x738] sm:$0xff]  ;;  %v397_v62 = vld [vmem:[%s9790_s5 + $0x740] sm:$0xff] }
 0x2d2   : > { %v7591_v27 = vpop.eup %7590  ;;  %5811 = vst [vmem:[%s9837_s20 + $0x660] sm:$0xff] %v5267_v20  ;;  %v5269_v28 = vmul.f32 0.2, %v7589_v23  ;;  %7610 = vlog2.f32 %v1690_v14  ;;  %v938_v53 = vmul.f32 %v9797_v1, %v392_v42  ;;  %v939_v57 = vmul.f32 %v9797_v1, %v393_v46  ;;  %v398_v3 = vld [vmem:[%s9790_s5 + $0x748] sm:$0xff] }
 0x2d3   : > { %v7593_v31 = vpop.eup %7592  ;;  %5812 = vst [vmem:[%s9837_s20 + $0x668] sm:$0xff] %v5268_v24  ;;  %v5270_v32 = vmul.f32 0.2, %v7591_v27  ;;  %7612 = vlog2.f32 %v1692_v17  ;;  %v940_v61 = vmul.f32 %v9797_v1, %v394_v50  ;;  %v941_v2 = vmul.f32 %v9797_v1, %v395_v54 }
 0x2d4   : > { %v7595_v35 = vpop.eup %7594  ;;  %5813 = vst [vmem:[%s9837_s20 + $0x670] sm:$0xff] %v5269_v28  ;;  %v5271_v36 = vmul.f32 0.2, %v7593_v31  ;;  %7614 = vlog2.f32 %v1694_v21  ;;  %v942_v6 = vmul.f32 %v9797_v1, %v396_v58  ;;  %v943_v9 = vmul.f32 %v9797_v1, %v397_v62 }
 0x2d5   : > { %v7597_v39 = vpop.eup %7596  ;;  %5814 = vst [vmem:[%s9837_s20 + $0x678] sm:$0xff] %v5270_v32  ;;  %v5272_v40 = vmul.f32 0.2, %v7595_v35  ;;  %7616 = vlog2.f32 %v1696_v25  ;;  %v944_v12 = vmul.f32 %v9797_v1, %v398_v3 }
 0x2d6   : > { %v7599_v43 = vpop.eup %7598  ;;  %5815 = vst [vmem:[%s9837_s20 + $0x680] sm:$0xff] %v5271_v36  ;;  %v5273_v44 = vmul.f32 0.2, %v7597_v39  ;;  %7618 = vlog2.f32 %v932_v29 }
 0x2d7   : > { %v7601_v47 = vpop.eup %7600  ;;  %5816 = vst [vmem:[%s9837_s20 + $0x688] sm:$0xff] %v5272_v40  ;;  %v5274_v48 = vmul.f32 0.2, %v7599_v43  ;;  %7620 = vlog2.f32 %v933_v33 }
 0x2d8   : > { %v7603_v51 = vpop.eup %7602  ;;  %5817 = vst [vmem:[%s9837_s20 + $0x690] sm:$0xff] %v5273_v44  ;;  %v5275_v52 = vmul.f32 0.2, %v7601_v47  ;;  %7622 = vlog2.f32 %v934_v37 }
 0x2d9   : > { %v7605_v55 = vpop.eup %7604  ;;  %5818 = vst [vmem:[%s9837_s20 + $0x698] sm:$0xff] %v5274_v48  ;;  %v5276_v56 = vmul.f32 0.2, %v7603_v51  ;;  %7624 = vlog2.f32 %v935_v41 }
 0x2da   : > { %v7607_v59 = vpop.eup %7606  ;;  %5819 = vst [vmem:[%s9837_s20 + $0x6a0] sm:$0xff] %v5275_v52  ;;  %v5277_v60 = vmul.f32 0.2, %v7605_v55  ;;  %7626 = vlog2.f32 %v936_v45 }
 0x2db   : > { %v7609_v63 = vpop.eup %7608  ;;  %5820 = vst [vmem:[%s9837_s20 + $0x6a8] sm:$0xff] %v5276_v56  ;;  %v5278_v0 = vmul.f32 0.2, %v7607_v59  ;;  %7628 = vlog2.f32 %v937_v49  ;;  %v399_v49 = vld [vmem:[%s9790_s5 + $0x750] sm:$0xff] }
 0x2dc   : > { %v7611_v4 = vpop.eup %7610  ;;  %5821 = vst [vmem:[%s9837_s20 + $0x6b0] sm:$0xff] %v5277_v60  ;;  %v5279_v5 = vmul.f32 0.2, %v7609_v63  ;;  %7630 = vlog2.f32 %v938_v53  ;;  %v400_v53 = vld [vmem:[%s9790_s5 + $0x758] sm:$0xff]  ;;  %v945_v60 = vmul.f32 %v9797_v1, %v399_v49 }
 0x2dd   : > { %v7613_v7 = vpop.eup %7612  ;;  %5822 = vst [vmem:[%s9837_s20 + $0x6b8] sm:$0xff] %v5278_v0  ;;  %v2778_v8 = vmul.f32 0.6931472, %v7611_v4  ;;  %7632 = vlog2.f32 %v939_v57  ;;  %v401_v57 = vld [vmem:[%s9790_s5 + $0x760] sm:$0xff]  ;;  %v946_v0 = vmul.f32 %v9797_v1, %v400_v53 }
 0x2de   : > { %v7615_v10 = vpop.eup %7614  ;;  %5823 = vst [vmem:[%s9837_s20 + $0x6c0] sm:$0xff] %v5279_v5  ;;  %v2780_v11 = vmul.f32 0.6931472, %v7613_v7  ;;  %7634 = vlog2.f32 %v940_v61  ;;  %v402_v61 = vld [vmem:[%s9790_s5 + $0x768] sm:$0xff]  ;;  %v947_v4 = vmul.f32 %v9797_v1, %v401_v57 }
 0x2df   : > { %v7617_v13 = vpop.eup %7616  ;;  %v3648_v14 = vmul.f32 0.6, %v2778_v8  ;;  %v2782_v15 = vmul.f32 0.6931472, %v7615_v10  ;;  %7636 = vlog2.f32 %v941_v2  ;;  %v948_v7 = vmul.f32 %v9797_v1, %v402_v61 }
 0x2e0   : > { %v7619_v16 = vpop.eup %7618  ;;  %v3649_v17 = vmul.f32 0.6, %v2780_v11  ;;  %v2784_v18 = vmul.f32 0.6931472, %v7617_v13  ;;  %7638 = vlog2.f32 %v942_v6 }
 0x2e1   : > { %v7621_v19 = vpop.eup %7620  ;;  %v4409_v20 = vmul.f32 1.442695, %v3648_v14  ;;  %v3650_v21 = vmul.f32 0.6, %v2782_v15  ;;  %7640 = vlog2.f32 %v943_v9  ;;  %v1698_v27 = vmul.f32 0.6931472, %v7619_v16 }
 0x2e2   : > { %v7623_v22 = vpop.eup %7622  ;;  %v4411_v23 = vmul.f32 1.442695, %v3649_v17  ;;  %v3651_v24 = vmul.f32 0.6, %v2784_v18  ;;  %7642 = vlog2.f32 %v944_v12  ;;  %v1700_v30 = vmul.f32 0.6931472, %v7621_v19 }
 0x2e3   : > { %v7625_v25 = vpop.eup %7624  ;;  %7644 = vpow2.f32 %v4409_v20  ;;  %v4413_v26 = vmul.f32 1.442695, %v3650_v21  ;;  %v1702_v32 = vmul.f32 0.6931472, %v7623_v22 }
 0x2e4   : > { %v7627_v28 = vpop.eup %7626  ;;  %7646 = vpow2.f32 %v4411_v23  ;;  %v4415_v29 = vmul.f32 1.442695, %v3651_v24  ;;  %v1704_v34 = vmul.f32 0.6931472, %v7625_v25 }
 0x2e5   : > { %v7629_v31 = vpop.eup %7628  ;;  %7648 = vpow2.f32 %v4413_v26  ;;  %v1706_v36 = vmul.f32 0.6931472, %v7627_v28 }
 0x2e6   : > { %v7631_v33 = vpop.eup %7630  ;;  %7650 = vpow2.f32 %v4415_v29  ;;  %v1708_v38 = vmul.f32 0.6931472, %v7629_v31 }
 0x2e7   : > { %v7633_v35 = vpop.eup %7632  ;;  %7652 = vlog2.f32 %v1698_v27  ;;  %v1710_v40 = vmul.f32 0.6931472, %v7631_v33 }
 0x2e8   : > { %v7635_v37 = vpop.eup %7634  ;;  %7654 = vlog2.f32 %v1700_v30  ;;  %v1712_v42 = vmul.f32 0.6931472, %v7633_v35 }
 0x2e9   : > { %v7637_v39 = vpop.eup %7636  ;;  %7656 = vlog2.f32 %v1702_v32  ;;  %v1714_v44 = vmul.f32 0.6931472, %v7635_v37 }
 0x2ea   : > { %v7639_v41 = vpop.eup %7638  ;;  %7658 = vlog2.f32 %v1704_v34  ;;  %v1716_v46 = vmul.f32 0.6931472, %v7637_v39 }
 0x2eb   : > { %v7641_v43 = vpop.eup %7640  ;;  %7660 = vlog2.f32 %v1706_v36  ;;  %v1718_v48 = vmul.f32 0.6931472, %v7639_v41 }
 0x2ec   : > { %v7643_v45 = vpop.eup %7642  ;;  %7662 = vlog2.f32 %v1708_v38  ;;  %v1720_v52 = vmul.f32 0.6931472, %v7641_v43 }
 0x2ed   : > { %v7645_v47 = vpop.eup %7644  ;;  %7664 = vlog2.f32 %v1710_v40  ;;  %v1722_v56 = vmul.f32 0.6931472, %v7643_v45 }
 0x2ee   : > { %v7647_v50 = vpop.eup %7646  ;;  %v5280_v51 = vmul.f32 0.2, %v7645_v47  ;;  %7666 = vlog2.f32 %v1712_v42 }
 0x2ef   : > { %v7649_v54 = vpop.eup %7648  ;;  %v5281_v55 = vmul.f32 0.2, %v7647_v50  ;;  %7668 = vlog2.f32 %v1714_v44 }
 0x2f0   : > { %v7651_v58 = vpop.eup %7650  ;;  %5824 = vst [vmem:[%s9837_s20 + $0x6c8] sm:$0xff] %v5280_v51  ;;  %v5282_v59 = vmul.f32 0.2, %v7649_v54  ;;  %7670 = vlog2.f32 %v1716_v46 }
 0x2f1   : > { %v7653_v62 = vpop.eup %7652  ;;  %5825 = vst [vmem:[%s9837_s20 + $0x6d0] sm:$0xff] %v5281_v55  ;;  %v5283_v63 = vmul.f32 0.2, %v7651_v58  ;;  %7672 = vlog2.f32 %v1718_v48 }
 0x2f2   : > { %v7655_v2 = vpop.eup %7654  ;;  %5826 = vst [vmem:[%s9837_s20 + $0x6d8] sm:$0xff] %v5282_v59  ;;  %v2786_v3 = vmul.f32 0.6931472, %v7653_v62  ;;  %7674 = vlog2.f32 %v1720_v52  ;;  %v403_v62 = vld [vmem:[%s9790_s5 + $0x770] sm:$0xff] }
 0x2f3   : > { %v7657_v5 = vpop.eup %7656  ;;  %5827 = vst [vmem:[%s9837_s20 + $0x6e0] sm:$0xff] %v5283_v63  ;;  %v2788_v6 = vmul.f32 0.6931472, %v7655_v2  ;;  %7676 = vlog2.f32 %v1722_v56 }
 0x2f4   : > { %v7659_v8 = vpop.eup %7658  ;;  %v3652_v9 = vmul.f32 0.6, %v2786_v3  ;;  %v2790_v10 = vmul.f32 0.6931472, %v7657_v5  ;;  %7678 = vlog2.f32 %v945_v60  ;;  %v404_v3 = vld [vmem:[%s9790_s5 + $0x778] sm:$0xff] }
 0x2f5   : > { %v7661_v11 = vpop.eup %7660  ;;  %v3653_v12 = vmul.f32 0.6, %v2788_v6  ;;  %v2792_v13 = vmul.f32 0.6931472, %v7659_v8  ;;  %7680 = vlog2.f32 %v946_v0 }
 0x2f6   : > { %v7663_v14 = vpop.eup %7662  ;;  %v4417_v15 = vmul.f32 1.442695, %v3652_v9  ;;  %v3654_v16 = vmul.f32 0.6, %v2790_v10  ;;  %v2794_v17 = vmul.f32 0.6931472, %v7661_v11  ;;  %7682 = vlog2.f32 %v947_v4 }
 0x2f7   : > { %v7665_v18 = vpop.eup %7664  ;;  %v4419_v19 = vmul.f32 1.442695, %v3653_v12  ;;  %v3655_v20 = vmul.f32 0.6, %v2792_v13  ;;  %v2796_v21 = vmul.f32 0.6931472, %v7663_v14  ;;  %7684 = vlog2.f32 %v948_v7 }
 0x2f8   : > { %v7667_v22 = vpop.eup %7666  ;;  %7686 = vpow2.f32 %v4417_v15  ;;  %v4421_v23 = vmul.f32 1.442695, %v3654_v16  ;;  %v3656_v24 = vmul.f32 0.6, %v2794_v17  ;;  %v2798_v25 = vmul.f32 0.6931472, %v7665_v18 }
 0x2f9   : > { %v7669_v26 = vpop.eup %7668  ;;  %7688 = vpow2.f32 %v4419_v19  ;;  %v4423_v27 = vmul.f32 1.442695, %v3655_v20  ;;  %v3657_v28 = vmul.f32 0.6, %v2796_v21  ;;  %v2800_v29 = vmul.f32 0.6931472, %v7667_v22 }
 0x2fa   : > { %v7671_v30 = vpop.eup %7670  ;;  %7690 = vpow2.f32 %v4421_v23  ;;  %v4425_v31 = vmul.f32 1.442695, %v3656_v24  ;;  %v3658_v32 = vmul.f32 0.6, %v2798_v25  ;;  %v2802_v33 = vmul.f32 0.6931472, %v7669_v26 }
 0x2fb   : > { %v7673_v34 = vpop.eup %7672  ;;  %7692 = vpow2.f32 %v4423_v27  ;;  %v4427_v35 = vmul.f32 1.442695, %v3657_v28  ;;  %v3659_v36 = vmul.f32 0.6, %v2800_v29  ;;  %v2804_v37 = vmul.f32 0.6931472, %v7671_v30 }
 0x2fc   : > { %v7675_v38 = vpop.eup %7674  ;;  %7694 = vpow2.f32 %v4425_v31  ;;  %v4429_v39 = vmul.f32 1.442695, %v3658_v32  ;;  %v3660_v40 = vmul.f32 0.6, %v2802_v33  ;;  %v2806_v41 = vmul.f32 0.6931472, %v7673_v34 }
 0x2fd   : > { %v7677_v42 = vpop.eup %7676  ;;  %7696 = vpow2.f32 %v4427_v35  ;;  %v4431_v43 = vmul.f32 1.442695, %v3659_v36  ;;  %v3661_v44 = vmul.f32 0.6, %v2804_v37  ;;  %v2808_v45 = vmul.f32 0.6931472, %v7675_v38 }
 0x2fe   : > { %v7679_v46 = vpop.eup %7678  ;;  %7698 = vpow2.f32 %v4429_v39  ;;  %v4433_v47 = vmul.f32 1.442695, %v3660_v40  ;;  %v3662_v48 = vmul.f32 0.6, %v2806_v41  ;;  %v2810_v49 = vmul.f32 0.6931472, %v7677_v42 }
 0x2ff   : > { %v7681_v50 = vpop.eup %7680  ;;  %7700 = vpow2.f32 %v4431_v43  ;;  %v4435_v51 = vmul.f32 1.442695, %v3661_v44  ;;  %v3663_v52 = vmul.f32 0.6, %v2808_v45  ;;  %v1724_v58 = vmul.f32 0.6931472, %v7679_v46 }
 0x300   : > { %v7683_v53 = vpop.eup %7682  ;;  %7702 = vpow2.f32 %v4433_v47  ;;  %v4437_v54 = vmul.f32 1.442695, %v3662_v48  ;;  %v3664_v55 = vmul.f32 0.6, %v2810_v49  ;;  %v1726_v61 = vmul.f32 0.6931472, %v7681_v50 }
 0x301   : > { %v7685_v56 = vpop.eup %7684  ;;  %7704 = vpow2.f32 %v4435_v51  ;;  %v4439_v57 = vmul.f32 1.442695, %v3663_v52  ;;  %v1728_v2 = vmul.f32 0.6931472, %v7683_v53  ;;  %v405_v7 = vld [vmem:[%s9790_s5 + $0x780] sm:$0xff]  ;;  %v949_v10 = vmul.f32 %v9797_v1, %v403_v62  ;;  %v406_v11 = vld [vmem:[%s9790_s5 + $0x788] sm:$0xff] }
 0x302   : > { %v7687_v59 = vpop.eup %7686  ;;  %7706 = vpow2.f32 %v4437_v54  ;;  %v4441_v60 = vmul.f32 1.442695, %v3664_v55  ;;  %v1730_v6 = vmul.f32 0.6931472, %v7685_v56  ;;  %v950_v14 = vmul.f32 %v9797_v1, %v404_v3  ;;  %v407_v15 = vld [vmem:[%s9790_s5 + $0x790] sm:$0xff]  ;;  %v408_v19 = vld [vmem:[%s9790_s5 + $0x798] sm:$0xff] }
 0x303   : > { %v7689_v63 = vpop.eup %7688  ;;  %v5284_v0 = vmul.f32 0.2, %v7687_v59  ;;  %7708 = vpow2.f32 %v4439_v57  ;;  %v951_v18 = vmul.f32 %v9797_v1, %v405_v7  ;;  %v952_v22 = vmul.f32 %v9797_v1, %v406_v11  ;;  %v409_v23 = vld [vmem:[%s9790_s5 + $0x7a0] sm:$0xff]  ;;  %v410_v27 = vld [vmem:[%s9790_s5 + $0x7a8] sm:$0xff]  ;;  %v411_v31 = vld [vmem:[%s9790_s5 + $0x7b0] sm:$0xff] }
 0x304   : > { %v7691_v4 = vpop.eup %7690  ;;  %v5285_v5 = vmul.f32 0.2, %v7689_v63  ;;  %7710 = vpow2.f32 %v4441_v60  ;;  %v953_v26 = vmul.f32 %v9797_v1, %v407_v15  ;;  %v954_v30 = vmul.f32 %v9797_v1, %v408_v19  ;;  %v412_v35 = vld [vmem:[%s9790_s5 + $0x7b8] sm:$0xff]  ;;  %v413_v39 = vld [vmem:[%s9790_s5 + $0x7c0] sm:$0xff]  ;;  %v414_v43 = vld [vmem:[%s9790_s5 + $0x7c8] sm:$0xff] }
 0x305   : > { %v7693_v8 = vpop.eup %7692  ;;  %5828 = vst [vmem:[%s9837_s20 + $0x6e8] sm:$0xff] %v5284_v0  ;;  %v5286_v9 = vmul.f32 0.2, %v7691_v4  ;;  %7712 = vlog2.f32 %v1724_v58  ;;  %v955_v34 = vmul.f32 %v9797_v1, %v409_v23  ;;  %v956_v38 = vmul.f32 %v9797_v1, %v410_v27  ;;  %v415_v47 = vld [vmem:[%s9790_s5 + $0x7d0] sm:$0xff] }
 0x306   : > { %v7695_v12 = vpop.eup %7694  ;;  %5829 = vst [vmem:[%s9837_s20 + $0x6f0] sm:$0xff] %v5285_v5  ;;  %v5287_v13 = vmul.f32 0.2, %v7693_v8  ;;  %7714 = vlog2.f32 %v1726_v61  ;;  %v957_v42 = vmul.f32 %v9797_v1, %v411_v31  ;;  %v958_v46 = vmul.f32 %v9797_v1, %v412_v35 }
 0x307   : > { %v7697_v16 = vpop.eup %7696  ;;  %5830 = vst [vmem:[%s9837_s20 + $0x6f8] sm:$0xff] %v5286_v9  ;;  %v5288_v17 = vmul.f32 0.2, %v7695_v12  ;;  %7716 = vlog2.f32 %v1728_v2  ;;  %v959_v50 = vmul.f32 %v9797_v1, %v413_v39  ;;  %v960_v53 = vmul.f32 %v9797_v1, %v414_v43 }
 0x308   : > { %v7699_v20 = vpop.eup %7698  ;;  %5831 = vst [vmem:[%s9837_s20 + $0x700] sm:$0xff] %v5287_v13  ;;  %v5289_v21 = vmul.f32 0.2, %v7697_v16  ;;  %7718 = vlog2.f32 %v1730_v6  ;;  %v961_v56 = vmul.f32 %v9797_v1, %v415_v47 }
 0x309   : > { %v7701_v24 = vpop.eup %7700  ;;  %5832 = vst [vmem:[%s9837_s20 + $0x708] sm:$0xff] %v5288_v17  ;;  %v5290_v25 = vmul.f32 0.2, %v7699_v20  ;;  %7720 = vlog2.f32 %v949_v10 }
 0x30a   : > { %v7703_v28 = vpop.eup %7702  ;;  %5833 = vst [vmem:[%s9837_s20 + $0x710] sm:$0xff] %v5289_v21  ;;  %v5291_v29 = vmul.f32 0.2, %v7701_v24  ;;  %7722 = vlog2.f32 %v950_v14 }
 0x30b   : > { %v7705_v32 = vpop.eup %7704  ;;  %5834 = vst [vmem:[%s9837_s20 + $0x718] sm:$0xff] %v5290_v25  ;;  %v5292_v33 = vmul.f32 0.2, %v7703_v28  ;;  %7724 = vlog2.f32 %v951_v18 }
 0x30c   : > { %v7707_v36 = vpop.eup %7706  ;;  %5835 = vst [vmem:[%s9837_s20 + $0x720] sm:$0xff] %v5291_v29  ;;  %v5293_v37 = vmul.f32 0.2, %v7705_v32  ;;  %7726 = vlog2.f32 %v952_v22 }
 0x30d   : > { %v7709_v40 = vpop.eup %7708  ;;  %5836 = vst [vmem:[%s9837_s20 + $0x728] sm:$0xff] %v5292_v33  ;;  %v5294_v41 = vmul.f32 0.2, %v7707_v36  ;;  %7728 = vlog2.f32 %v953_v26 }
 0x30e   : > { %v7711_v44 = vpop.eup %7710  ;;  %5837 = vst [vmem:[%s9837_s20 + $0x730] sm:$0xff] %v5293_v37  ;;  %v5295_v45 = vmul.f32 0.2, %v7709_v40  ;;  %7730 = vlog2.f32 %v954_v30  ;;  %v416_v30 = vld [vmem:[%s9790_s5 + $0x7d8] sm:$0xff] }
 0x30f   : > { %v7713_v48 = vpop.eup %7712  ;;  %5838 = vst [vmem:[%s9837_s20 + $0x738] sm:$0xff] %v5294_v41  ;;  %v5296_v49 = vmul.f32 0.2, %v7711_v44  ;;  %7732 = vlog2.f32 %v955_v34  ;;  %v417_v34 = vld [vmem:[%s9790_s5 + $0x7e0] sm:$0xff]  ;;  %v962_v41 = vmul.f32 %v9797_v1, %v416_v30 }
 0x310   : > { %v7715_v51 = vpop.eup %7714  ;;  %5839 = vst [vmem:[%s9837_s20 + $0x740] sm:$0xff] %v5295_v45  ;;  %v2812_v52 = vmul.f32 0.6931472, %v7713_v48  ;;  %7734 = vlog2.f32 %v956_v38  ;;  %v418_v38 = vld [vmem:[%s9790_s5 + $0x7e8] sm:$0xff]  ;;  %v963_v45 = vmul.f32 %v9797_v1, %v417_v34 }
 0x311   : > { %v7717_v54 = vpop.eup %7716  ;;  %5840 = vst [vmem:[%s9837_s20 + $0x748] sm:$0xff] %v5296_v49  ;;  %v2814_v55 = vmul.f32 0.6931472, %v7715_v51  ;;  %7736 = vlog2.f32 %v957_v42  ;;  %v419_v42 = vld [vmem:[%s9790_s5 + $0x7f0] sm:$0xff]  ;;  %v964_v48 = vmul.f32 %v9797_v1, %v418_v38 }
 0x312   : > { %v7719_v57 = vpop.eup %7718  ;;  %v3665_v58 = vmul.f32 0.6, %v2812_v52  ;;  %v2816_v59 = vmul.f32 0.6931472, %v7717_v54  ;;  %7738 = vlog2.f32 %v958_v46  ;;  %v965_v51 = vmul.f32 %v9797_v1, %v419_v42 }
 0x313   : > { %v7721_v60 = vpop.eup %7720  ;;  %v3666_v61 = vmul.f32 0.6, %v2814_v55  ;;  %v2818_v62 = vmul.f32 0.6931472, %v7719_v57  ;;  %7740 = vlog2.f32 %v959_v50 }
 0x314   : > { %v7723_v63 = vpop.eup %7722  ;;  %v4443_v0 = vmul.f32 1.442695, %v3665_v58  ;;  %v3667_v2 = vmul.f32 0.6, %v2816_v59  ;;  %7742 = vlog2.f32 %v960_v53  ;;  %v1732_v8 = vmul.f32 0.6931472, %v7721_v60 }
 0x315   : > { %v7725_v3 = vpop.eup %7724  ;;  %v4445_v4 = vmul.f32 1.442695, %v3666_v61  ;;  %v3668_v5 = vmul.f32 0.6, %v2818_v62  ;;  %7744 = vlog2.f32 %v961_v56  ;;  %v1734_v11 = vmul.f32 0.6931472, %v7723_v63 }
 0x316   : > { %v7727_v6 = vpop.eup %7726  ;;  %7746 = vpow2.f32 %v4443_v0  ;;  %v4447_v7 = vmul.f32 1.442695, %v3667_v2  ;;  %v1736_v13 = vmul.f32 0.6931472, %v7725_v3 }
 0x317   : > { %v7729_v9 = vpop.eup %7728  ;;  %7748 = vpow2.f32 %v4445_v4  ;;  %v4449_v10 = vmul.f32 1.442695, %v3668_v5  ;;  %v1738_v15 = vmul.f32 0.6931472, %v7727_v6 }
 0x318   : > { %v7731_v12 = vpop.eup %7730  ;;  %7750 = vpow2.f32 %v4447_v7  ;;  %v1740_v17 = vmul.f32 0.6931472, %v7729_v9 }
 0x319   : > { %v7733_v14 = vpop.eup %7732  ;;  %7752 = vpow2.f32 %v4449_v10  ;;  %v1742_v19 = vmul.f32 0.6931472, %v7731_v12 }
 0x31a   : > { %v7735_v16 = vpop.eup %7734  ;;  %7754 = vlog2.f32 %v1732_v8  ;;  %v1744_v21 = vmul.f32 0.6931472, %v7733_v14 }
 0x31b   : > { %v7737_v18 = vpop.eup %7736  ;;  %7756 = vlog2.f32 %v1734_v11  ;;  %v1746_v23 = vmul.f32 0.6931472, %v7735_v16 }
 0x31c   : > { %v7739_v20 = vpop.eup %7738  ;;  %7758 = vlog2.f32 %v1736_v13  ;;  %v1748_v25 = vmul.f32 0.6931472, %v7737_v18 }
 0x31d   : > { %v7741_v22 = vpop.eup %7740  ;;  %7760 = vlog2.f32 %v1738_v15  ;;  %v1750_v27 = vmul.f32 0.6931472, %v7739_v20 }
 0x31e   : > { %v7743_v24 = vpop.eup %7742  ;;  %7762 = vlog2.f32 %v1740_v17  ;;  %v1752_v29 = vmul.f32 0.6931472, %v7741_v22 }
 0x31f   : > { %v7745_v26 = vpop.eup %7744  ;;  %7764 = vlog2.f32 %v1742_v19  ;;  %v1754_v33 = vmul.f32 0.6931472, %v7743_v24 }
 0x320   : > { %v7747_v28 = vpop.eup %7746  ;;  %7766 = vlog2.f32 %v1744_v21  ;;  %v1756_v37 = vmul.f32 0.6931472, %v7745_v26 }
 0x321   : > { %v7749_v31 = vpop.eup %7748  ;;  %v5297_v32 = vmul.f32 0.2, %v7747_v28  ;;  %7768 = vlog2.f32 %v1746_v23 }
 0x322   : > { %v7751_v35 = vpop.eup %7750  ;;  %v5298_v36 = vmul.f32 0.2, %v7749_v31  ;;  %7770 = vlog2.f32 %v1748_v25 }
 0x323   : > { %v7753_v39 = vpop.eup %7752  ;;  %5841 = vst [vmem:[%s9837_s20 + $0x750] sm:$0xff] %v5297_v32  ;;  %v5299_v40 = vmul.f32 0.2, %v7751_v35  ;;  %7772 = vlog2.f32 %v1750_v27 }
 0x324   : > { %v7755_v43 = vpop.eup %7754  ;;  %5842 = vst [vmem:[%s9837_s20 + $0x758] sm:$0xff] %v5298_v36  ;;  %v5300_v44 = vmul.f32 0.2, %v7753_v39  ;;  %7774 = vlog2.f32 %v1752_v29 }
 0x325   : > { %v7757_v46 = vpop.eup %7756  ;;  %5843 = vst [vmem:[%s9837_s20 + $0x760] sm:$0xff] %v5299_v40  ;;  %v2820_v47 = vmul.f32 0.6931472, %v7755_v43  ;;  %7776 = vlog2.f32 %v1754_v33  ;;  %v420_v43 = vld [vmem:[%s9790_s5 + $0x7f8] sm:$0xff] }
 0x326   : > { %v7759_v49 = vpop.eup %7758  ;;  %5844 = vst [vmem:[%s9837_s20 + $0x768] sm:$0xff] %v5300_v44  ;;  %v2822_v50 = vmul.f32 0.6931472, %v7757_v46  ;;  %7778 = vlog2.f32 %v1756_v37 }
 0x327   : > { %v7761_v52 = vpop.eup %7760  ;;  %v3669_v53 = vmul.f32 0.6, %v2820_v47  ;;  %v2824_v54 = vmul.f32 0.6931472, %v7759_v49  ;;  %7780 = vlog2.f32 %v962_v41  ;;  %v421_v47 = vld [vmem:[%s9790_s5 + $0x800] sm:$0xff] }
 0x328   : > { %v7763_v55 = vpop.eup %7762  ;;  %v3670_v56 = vmul.f32 0.6, %v2822_v50  ;;  %v2826_v57 = vmul.f32 0.6931472, %v7761_v52  ;;  %7782 = vlog2.f32 %v963_v45 }
 0x329   : > { %v7765_v58 = vpop.eup %7764  ;;  %v4451_v59 = vmul.f32 1.442695, %v3669_v53  ;;  %v3671_v60 = vmul.f32 0.6, %v2824_v54  ;;  %v2828_v61 = vmul.f32 0.6931472, %v7763_v55  ;;  %7784 = vlog2.f32 %v964_v48 }
 0x32a   : > { %v7767_v62 = vpop.eup %7766  ;;  %v4453_v63 = vmul.f32 1.442695, %v3670_v56  ;;  %v3672_v0 = vmul.f32 0.6, %v2826_v57  ;;  %v2830_v2 = vmul.f32 0.6931472, %v7765_v58  ;;  %7786 = vlog2.f32 %v965_v51 }
 0x32b   : > { %v7769_v3 = vpop.eup %7768  ;;  %7788 = vpow2.f32 %v4451_v59  ;;  %v4455_v4 = vmul.f32 1.442695, %v3671_v60  ;;  %v3673_v5 = vmul.f32 0.6, %v2828_v61  ;;  %v2832_v6 = vmul.f32 0.6931472, %v7767_v62 }
 0x32c   : > { %v7771_v7 = vpop.eup %7770  ;;  %7790 = vpow2.f32 %v4453_v63  ;;  %v4457_v8 = vmul.f32 1.442695, %v3672_v0  ;;  %v3674_v9 = vmul.f32 0.6, %v2830_v2  ;;  %v2834_v10 = vmul.f32 0.6931472, %v7769_v3 }
 0x32d   : > { %v7773_v11 = vpop.eup %7772  ;;  %7792 = vpow2.f32 %v4455_v4  ;;  %v4459_v12 = vmul.f32 1.442695, %v3673_v5  ;;  %v3675_v13 = vmul.f32 0.6, %v2832_v6  ;;  %v2836_v14 = vmul.f32 0.6931472, %v7771_v7 }
 0x32e   : > { %v7775_v15 = vpop.eup %7774  ;;  %7794 = vpow2.f32 %v4457_v8  ;;  %v4461_v16 = vmul.f32 1.442695, %v3674_v9  ;;  %v3676_v17 = vmul.f32 0.6, %v2834_v10  ;;  %v2838_v18 = vmul.f32 0.6931472, %v7773_v11 }
 0x32f   : > { %v7777_v19 = vpop.eup %7776  ;;  %7796 = vpow2.f32 %v4459_v12  ;;  %v4463_v20 = vmul.f32 1.442695, %v3675_v13  ;;  %v3677_v21 = vmul.f32 0.6, %v2836_v14  ;;  %v2840_v22 = vmul.f32 0.6931472, %v7775_v15 }
 0x330   : > { %v7779_v23 = vpop.eup %7778  ;;  %7798 = vpow2.f32 %v4461_v16  ;;  %v4465_v24 = vmul.f32 1.442695, %v3676_v17  ;;  %v3678_v25 = vmul.f32 0.6, %v2838_v18  ;;  %v2842_v26 = vmul.f32 0.6931472, %v7777_v19 }
 0x331   : > { %v7781_v27 = vpop.eup %7780  ;;  %7800 = vpow2.f32 %v4463_v20  ;;  %v4467_v28 = vmul.f32 1.442695, %v3677_v21  ;;  %v3679_v29 = vmul.f32 0.6, %v2840_v22  ;;  %v2844_v30 = vmul.f32 0.6931472, %v7779_v23 }
 0x332   : > { %v7783_v31 = vpop.eup %7782  ;;  %7802 = vpow2.f32 %v4465_v24  ;;  %v4469_v32 = vmul.f32 1.442695, %v3678_v25  ;;  %v3680_v33 = vmul.f32 0.6, %v2842_v26  ;;  %v1758_v39 = vmul.f32 0.6931472, %v7781_v27 }
 0x333   : > { %v7785_v34 = vpop.eup %7784  ;;  %7804 = vpow2.f32 %v4467_v28  ;;  %v4471_v35 = vmul.f32 1.442695, %v3679_v29  ;;  %v3681_v36 = vmul.f32 0.6, %v2844_v30  ;;  %v1760_v42 = vmul.f32 0.6931472, %v7783_v31 }
 0x334   : > { %v7787_v37 = vpop.eup %7786  ;;  %7806 = vpow2.f32 %v4469_v32  ;;  %v4473_v38 = vmul.f32 1.442695, %v3680_v33  ;;  %v1762_v46 = vmul.f32 0.6931472, %v7785_v34  ;;  %v422_v51 = vld [vmem:[%s9790_s5 + $0x808] sm:$0xff]  ;;  %v966_v54 = vmul.f32 %v9797_v1, %v420_v43  ;;  %v423_v55 = vld [vmem:[%s9790_s5 + $0x810] sm:$0xff] }
 0x335   : > { %v7789_v40 = vpop.eup %7788  ;;  %7808 = vpow2.f32 %v4471_v35  ;;  %v4475_v41 = vmul.f32 1.442695, %v3681_v36  ;;  %v1764_v50 = vmul.f32 0.6931472, %v7787_v37  ;;  %v967_v58 = vmul.f32 %v9797_v1, %v421_v47  ;;  %v424_v59 = vld [vmem:[%s9790_s5 + $0x818] sm:$0xff]  ;;  %v425_v63 = vld [vmem:[%s9790_s5 + $0x820] sm:$0xff] }
 0x336   : > { %v7791_v44 = vpop.eup %7790  ;;  %v5301_v45 = vmul.f32 0.2, %v7789_v40  ;;  %7810 = vpow2.f32 %v4473_v38  ;;  %v968_v62 = vmul.f32 %v9797_v1, %v422_v51  ;;  %v969_v3 = vmul.f32 %v9797_v1, %v423_v55  ;;  %v426_v4 = vld [vmem:[%s9790_s5 + $0x828] sm:$0xff]  ;;  %v427_v8 = vld [vmem:[%s9790_s5 + $0x830] sm:$0xff]  ;;  %v428_v12 = vld [vmem:[%s9790_s5 + $0x838] sm:$0xff] }
 0x337   : > { %v7793_v48 = vpop.eup %7792  ;;  %v5302_v49 = vmul.f32 0.2, %v7791_v44  ;;  %7812 = vpow2.f32 %v4475_v41  ;;  %v970_v7 = vmul.f32 %v9797_v1, %v424_v59  ;;  %v971_v11 = vmul.f32 %v9797_v1, %v425_v63  ;;  %v429_v16 = vld [vmem:[%s9790_s5 + $0x840] sm:$0xff]  ;;  %v430_v20 = vld [vmem:[%s9790_s5 + $0x848] sm:$0xff]  ;;  %v431_v24 = vld [vmem:[%s9790_s5 + $0x850] sm:$0xff] }
 0x338   : > { %v7795_v52 = vpop.eup %7794  ;;  %5845 = vst [vmem:[%s9837_s20 + $0x770] sm:$0xff] %v5301_v45  ;;  %v5303_v53 = vmul.f32 0.2, %v7793_v48  ;;  %7814 = vlog2.f32 %v1758_v39  ;;  %v972_v15 = vmul.f32 %v9797_v1, %v426_v4  ;;  %v973_v19 = vmul.f32 %v9797_v1, %v427_v8  ;;  %v432_v28 = vld [vmem:[%s9790_s5 + $0x858] sm:$0xff] }
 0x339   : > { %v7797_v56 = vpop.eup %7796  ;;  %5846 = vst [vmem:[%s9837_s20 + $0x778] sm:$0xff] %v5302_v49  ;;  %v5304_v57 = vmul.f32 0.2, %v7795_v52  ;;  %7816 = vlog2.f32 %v1760_v42  ;;  %v974_v23 = vmul.f32 %v9797_v1, %v428_v12  ;;  %v975_v27 = vmul.f32 %v9797_v1, %v429_v16 }
 0x33a   : > { %v7799_v60 = vpop.eup %7798  ;;  %5847 = vst [vmem:[%s9837_s20 + $0x780] sm:$0xff] %v5303_v53  ;;  %v5305_v61 = vmul.f32 0.2, %v7797_v56  ;;  %7818 = vlog2.f32 %v1762_v46  ;;  %v976_v31 = vmul.f32 %v9797_v1, %v430_v20  ;;  %v977_v34 = vmul.f32 %v9797_v1, %v431_v24 }
 0x33b   : > { %v7801_v0 = vpop.eup %7800  ;;  %5848 = vst [vmem:[%s9837_s20 + $0x788] sm:$0xff] %v5304_v57  ;;  %v5306_v2 = vmul.f32 0.2, %v7799_v60  ;;  %7820 = vlog2.f32 %v1764_v50  ;;  %v978_v37 = vmul.f32 %v9797_v1, %v432_v28 }
 0x33c   : > { %v7803_v5 = vpop.eup %7802  ;;  %5849 = vst [vmem:[%s9837_s20 + $0x790] sm:$0xff] %v5305_v61  ;;  %v5307_v6 = vmul.f32 0.2, %v7801_v0  ;;  %7822 = vlog2.f32 %v966_v54 }
 0x33d   : > { %v7805_v9 = vpop.eup %7804  ;;  %5850 = vst [vmem:[%s9837_s20 + $0x798] sm:$0xff] %v5306_v2  ;;  %v5308_v10 = vmul.f32 0.2, %v7803_v5  ;;  %7824 = vlog2.f32 %v967_v58 }
 0x33e   : > { %v7807_v13 = vpop.eup %7806  ;;  %5851 = vst [vmem:[%s9837_s20 + $0x7a0] sm:$0xff] %v5307_v6  ;;  %v5309_v14 = vmul.f32 0.2, %v7805_v9  ;;  %7826 = vlog2.f32 %v968_v62 }
 0x33f   : > { %v7809_v17 = vpop.eup %7808  ;;  %5852 = vst [vmem:[%s9837_s20 + $0x7a8] sm:$0xff] %v5308_v10  ;;  %v5310_v18 = vmul.f32 0.2, %v7807_v13  ;;  %7828 = vlog2.f32 %v969_v3 }
 0x340   : > { %v7811_v21 = vpop.eup %7810  ;;  %5853 = vst [vmem:[%s9837_s20 + $0x7b0] sm:$0xff] %v5309_v14  ;;  %v5311_v22 = vmul.f32 0.2, %v7809_v17  ;;  %7830 = vlog2.f32 %v970_v7 }
 0x341   : > { %v7813_v25 = vpop.eup %7812  ;;  %5854 = vst [vmem:[%s9837_s20 + $0x7b8] sm:$0xff] %v5310_v18  ;;  %v5312_v26 = vmul.f32 0.2, %v7811_v21  ;;  %7832 = vlog2.f32 %v971_v11  ;;  %v433_v11 = vld [vmem:[%s9790_s5 + $0x860] sm:$0xff] }
 0x342   : > { %v7815_v29 = vpop.eup %7814  ;;  %5855 = vst [vmem:[%s9837_s20 + $0x7c0] sm:$0xff] %v5311_v22  ;;  %v5313_v30 = vmul.f32 0.2, %v7813_v25  ;;  %7834 = vlog2.f32 %v972_v15  ;;  %v434_v15 = vld [vmem:[%s9790_s5 + $0x868] sm:$0xff]  ;;  %v979_v22 = vmul.f32 %v9797_v1, %v433_v11 }
 0x343   : > { %v7817_v32 = vpop.eup %7816  ;;  %5856 = vst [vmem:[%s9837_s20 + $0x7c8] sm:$0xff] %v5312_v26  ;;  %v2846_v33 = vmul.f32 0.6931472, %v7815_v29  ;;  %7836 = vlog2.f32 %v973_v19  ;;  %v435_v19 = vld [vmem:[%s9790_s5 + $0x870] sm:$0xff]  ;;  %v980_v26 = vmul.f32 %v9797_v1, %v434_v15 }
 0x344   : > { %v7819_v35 = vpop.eup %7818  ;;  %5857 = vst [vmem:[%s9837_s20 + $0x7d0] sm:$0xff] %v5313_v30  ;;  %v2848_v36 = vmul.f32 0.6931472, %v7817_v32  ;;  %7838 = vlog2.f32 %v974_v23  ;;  %v436_v23 = vld [vmem:[%s9790_s5 + $0x878] sm:$0xff]  ;;  %v981_v29 = vmul.f32 %v9797_v1, %v435_v19 }
 0x345   : > { %v7821_v38 = vpop.eup %7820  ;;  %v3682_v39 = vmul.f32 0.6, %v2846_v33  ;;  %v2850_v40 = vmul.f32 0.6931472, %v7819_v35  ;;  %7840 = vlog2.f32 %v975_v27  ;;  %v982_v32 = vmul.f32 %v9797_v1, %v436_v23 }
 0x346   : > { %v7823_v41 = vpop.eup %7822  ;;  %v3683_v42 = vmul.f32 0.6, %v2848_v36  ;;  %v2852_v43 = vmul.f32 0.6931472, %v7821_v38  ;;  %7842 = vlog2.f32 %v976_v31 }
 0x347   : > { %v7825_v44 = vpop.eup %7824  ;;  %v4477_v45 = vmul.f32 1.442695, %v3682_v39  ;;  %v3684_v46 = vmul.f32 0.6, %v2850_v40  ;;  %7844 = vlog2.f32 %v977_v34  ;;  %v1766_v52 = vmul.f32 0.6931472, %v7823_v41 }
 0x348   : > { %v7827_v47 = vpop.eup %7826  ;;  %v4479_v48 = vmul.f32 1.442695, %v3683_v42  ;;  %v3685_v49 = vmul.f32 0.6, %v2852_v43  ;;  %7846 = vlog2.f32 %v978_v37  ;;  %v1768_v55 = vmul.f32 0.6931472, %v7825_v44 }
 0x349   : > { %v7829_v50 = vpop.eup %7828  ;;  %7848 = vpow2.f32 %v4477_v45  ;;  %v4481_v51 = vmul.f32 1.442695, %v3684_v46  ;;  %v1770_v57 = vmul.f32 0.6931472, %v7827_v47 }
 0x34a   : > { %v7831_v53 = vpop.eup %7830  ;;  %7850 = vpow2.f32 %v4479_v48  ;;  %v4483_v54 = vmul.f32 1.442695, %v3685_v49  ;;  %v1772_v59 = vmul.f32 0.6931472, %v7829_v50 }
 0x34b   : > { %v7833_v56 = vpop.eup %7832  ;;  %7852 = vpow2.f32 %v4481_v51  ;;  %v1774_v61 = vmul.f32 0.6931472, %v7831_v53 }
 0x34c   : > { %v7835_v58 = vpop.eup %7834  ;;  %7854 = vpow2.f32 %v4483_v54  ;;  %v1776_v63 = vmul.f32 0.6931472, %v7833_v56 }
 0x34d   : > { %v7837_v60 = vpop.eup %7836  ;;  %7856 = vlog2.f32 %v1766_v52  ;;  %v1778_v2 = vmul.f32 0.6931472, %v7835_v58 }
 0x34e   : > { %v7839_v62 = vpop.eup %7838  ;;  %7858 = vlog2.f32 %v1768_v55  ;;  %v1780_v4 = vmul.f32 0.6931472, %v7837_v60 }
 0x34f   : > { %v7841_v0 = vpop.eup %7840  ;;  %7860 = vlog2.f32 %v1770_v57  ;;  %v1782_v6 = vmul.f32 0.6931472, %v7839_v62 }
 0x350   : > { %v7843_v3 = vpop.eup %7842  ;;  %7862 = vlog2.f32 %v1772_v59  ;;  %v1784_v8 = vmul.f32 0.6931472, %v7841_v0 }
 0x351   : > { %v7845_v5 = vpop.eup %7844  ;;  %7864 = vlog2.f32 %v1774_v61  ;;  %v1786_v10 = vmul.f32 0.6931472, %v7843_v3 }
 0x352   : > { %v7847_v7 = vpop.eup %7846  ;;  %7866 = vlog2.f32 %v1776_v63  ;;  %v1788_v14 = vmul.f32 0.6931472, %v7845_v5 }
 0x353   : > { %v7849_v9 = vpop.eup %7848  ;;  %7868 = vlog2.f32 %v1778_v2  ;;  %v1790_v18 = vmul.f32 0.6931472, %v7847_v7 }
 0x354   : > { %v7851_v12 = vpop.eup %7850  ;;  %v5314_v13 = vmul.f32 0.2, %v7849_v9  ;;  %7870 = vlog2.f32 %v1780_v4 }
 0x355   : > { %v7853_v16 = vpop.eup %7852  ;;  %v5315_v17 = vmul.f32 0.2, %v7851_v12  ;;  %7872 = vlog2.f32 %v1782_v6 }
 0x356   : > { %v7855_v20 = vpop.eup %7854  ;;  %5858 = vst [vmem:[%s9837_s20 + $0x7d8] sm:$0xff] %v5314_v13  ;;  %v5316_v21 = vmul.f32 0.2, %v7853_v16  ;;  %7874 = vlog2.f32 %v1784_v8 }
 0x357   : > { %v7857_v24 = vpop.eup %7856  ;;  %5859 = vst [vmem:[%s9837_s20 + $0x7e0] sm:$0xff] %v5315_v17  ;;  %v5317_v25 = vmul.f32 0.2, %v7855_v20  ;;  %7876 = vlog2.f32 %v1786_v10 }
 0x358   : > { %v7859_v27 = vpop.eup %7858  ;;  %5860 = vst [vmem:[%s9837_s20 + $0x7e8] sm:$0xff] %v5316_v21  ;;  %v2854_v28 = vmul.f32 0.6931472, %v7857_v24  ;;  %7878 = vlog2.f32 %v1788_v14  ;;  %v437_v24 = vld [vmem:[%s9790_s5 + $0x880] sm:$0xff] }
 0x359   : > { %v7861_v30 = vpop.eup %7860  ;;  %5861 = vst [vmem:[%s9837_s20 + $0x7f0] sm:$0xff] %v5317_v25  ;;  %v2856_v31 = vmul.f32 0.6931472, %v7859_v27  ;;  %7880 = vlog2.f32 %v1790_v18 }
 0x35a   : > { %v7863_v33 = vpop.eup %7862  ;;  %v3686_v34 = vmul.f32 0.6, %v2854_v28  ;;  %v2858_v35 = vmul.f32 0.6931472, %v7861_v30  ;;  %7882 = vlog2.f32 %v979_v22  ;;  %v438_v28 = vld [vmem:[%s9790_s5 + $0x888] sm:$0xff] }
 0x35b   : > { %v7865_v36 = vpop.eup %7864  ;;  %v3687_v37 = vmul.f32 0.6, %v2856_v31  ;;  %v2860_v38 = vmul.f32 0.6931472, %v7863_v33  ;;  %7884 = vlog2.f32 %v980_v26 }
 0x35c   : > { %v7867_v39 = vpop.eup %7866  ;;  %v4485_v40 = vmul.f32 1.442695, %v3686_v34  ;;  %v3688_v41 = vmul.f32 0.6, %v2858_v35  ;;  %v2862_v42 = vmul.f32 0.6931472, %v7865_v36  ;;  %7886 = vlog2.f32 %v981_v29 }
 0x35d   : > { %v7869_v43 = vpop.eup %7868  ;;  %v4487_v44 = vmul.f32 1.442695, %v3687_v37  ;;  %v3689_v45 = vmul.f32 0.6, %v2860_v38  ;;  %v2864_v46 = vmul.f32 0.6931472, %v7867_v39  ;;  %7888 = vlog2.f32 %v982_v32 }
 0x35e   : > { %v7871_v47 = vpop.eup %7870  ;;  %7890 = vpow2.f32 %v4485_v40  ;;  %v4489_v48 = vmul.f32 1.442695, %v3688_v41  ;;  %v3690_v49 = vmul.f32 0.6, %v2862_v42  ;;  %v2866_v50 = vmul.f32 0.6931472, %v7869_v43 }
 0x35f   : > { %v7873_v51 = vpop.eup %7872  ;;  %7892 = vpow2.f32 %v4487_v44  ;;  %v4491_v52 = vmul.f32 1.442695, %v3689_v45  ;;  %v3691_v53 = vmul.f32 0.6, %v2864_v46  ;;  %v2868_v54 = vmul.f32 0.6931472, %v7871_v47 }
 0x360   : > { %v7875_v55 = vpop.eup %7874  ;;  %7894 = vpow2.f32 %v4489_v48  ;;  %v4493_v56 = vmul.f32 1.442695, %v3690_v49  ;;  %v3692_v57 = vmul.f32 0.6, %v2866_v50  ;;  %v2870_v58 = vmul.f32 0.6931472, %v7873_v51 }
 0x361   : > { %v7877_v59 = vpop.eup %7876  ;;  %7896 = vpow2.f32 %v4491_v52  ;;  %v4495_v60 = vmul.f32 1.442695, %v3691_v53  ;;  %v3693_v61 = vmul.f32 0.6, %v2868_v54  ;;  %v2872_v62 = vmul.f32 0.6931472, %v7875_v55 }
 0x362   : > { %v7879_v63 = vpop.eup %7878  ;;  %7898 = vpow2.f32 %v4493_v56  ;;  %v4497_v0 = vmul.f32 1.442695, %v3692_v57  ;;  %v3694_v2 = vmul.f32 0.6, %v2870_v58  ;;  %v2874_v3 = vmul.f32 0.6931472, %v7877_v59 }
 0x363   : > { %v7881_v4 = vpop.eup %7880  ;;  %7900 = vpow2.f32 %v4495_v60  ;;  %v4499_v5 = vmul.f32 1.442695, %v3693_v61  ;;  %v3695_v6 = vmul.f32 0.6, %v2872_v62  ;;  %v2876_v7 = vmul.f32 0.6931472, %v7879_v63 }
 0x364   : > { %v7883_v8 = vpop.eup %7882  ;;  %7902 = vpow2.f32 %v4497_v0  ;;  %v4501_v9 = vmul.f32 1.442695, %v3694_v2  ;;  %v3696_v10 = vmul.f32 0.6, %v2874_v3  ;;  %v2878_v11 = vmul.f32 0.6931472, %v7881_v4 }
 0x365   : > { %v7885_v12 = vpop.eup %7884  ;;  %7904 = vpow2.f32 %v4499_v5  ;;  %v4503_v13 = vmul.f32 1.442695, %v3695_v6  ;;  %v3697_v14 = vmul.f32 0.6, %v2876_v7  ;;  %v1792_v20 = vmul.f32 0.6931472, %v7883_v8 }
 0x366   : > { %v7887_v15 = vpop.eup %7886  ;;  %7906 = vpow2.f32 %v4501_v9  ;;  %v4505_v16 = vmul.f32 1.442695, %v3696_v10  ;;  %v3698_v17 = vmul.f32 0.6, %v2878_v11  ;;  %v1794_v23 = vmul.f32 0.6931472, %v7885_v12 }
 0x367   : > { %v7889_v18 = vpop.eup %7888  ;;  %7908 = vpow2.f32 %v4503_v13  ;;  %v4507_v19 = vmul.f32 1.442695, %v3697_v14  ;;  %v1796_v27 = vmul.f32 0.6931472, %v7887_v15  ;;  %v439_v32 = vld [vmem:[%s9790_s5 + $0x890] sm:$0xff]  ;;  %v983_v35 = vmul.f32 %v9797_v1, %v437_v24  ;;  %v440_v36 = vld [vmem:[%s9790_s5 + $0x898] sm:$0xff] }
 0x368   : > { %v7891_v21 = vpop.eup %7890  ;;  %7910 = vpow2.f32 %v4505_v16  ;;  %v4509_v22 = vmul.f32 1.442695, %v3698_v17  ;;  %v1798_v31 = vmul.f32 0.6931472, %v7889_v18  ;;  %v984_v39 = vmul.f32 %v9797_v1, %v438_v28  ;;  %v441_v40 = vld [vmem:[%s9790_s5 + $0x8a0] sm:$0xff]  ;;  %v442_v44 = vld [vmem:[%s9790_s5 + $0x8a8] sm:$0xff] }
 0x369   : > { %v7893_v25 = vpop.eup %7892  ;;  %v5318_v26 = vmul.f32 0.2, %v7891_v21  ;;  %7912 = vpow2.f32 %v4507_v19  ;;  %v985_v43 = vmul.f32 %v9797_v1, %v439_v32  ;;  %v986_v47 = vmul.f32 %v9797_v1, %v440_v36  ;;  %v443_v48 = vld [vmem:[%s9790_s5 + $0x8b0] sm:$0xff]  ;;  %v444_v52 = vld [vmem:[%s9790_s5 + $0x8b8] sm:$0xff]  ;;  %v445_v56 = vld [vmem:[%s9790_s5 + $0x8c0] sm:$0xff] }
 0x36a   : > { %v7895_v29 = vpop.eup %7894  ;;  %v5319_v30 = vmul.f32 0.2, %v7893_v25  ;;  %7914 = vpow2.f32 %v4509_v22  ;;  %v987_v51 = vmul.f32 %v9797_v1, %v441_v40  ;;  %v988_v55 = vmul.f32 %v9797_v1, %v442_v44  ;;  %v446_v60 = vld [vmem:[%s9790_s5 + $0x8c8] sm:$0xff]  ;;  %v447_v0 = vld [vmem:[%s9790_s5 + $0x8d0] sm:$0xff]  ;;  %v448_v5 = vld [vmem:[%s9790_s5 + $0x8d8] sm:$0xff] }
 0x36b   : > { %v7897_v33 = vpop.eup %7896  ;;  %5862 = vst [vmem:[%s9837_s20 + $0x7f8] sm:$0xff] %v5318_v26  ;;  %v5320_v34 = vmul.f32 0.2, %v7895_v29  ;;  %7916 = vlog2.f32 %v1792_v20  ;;  %v989_v59 = vmul.f32 %v9797_v1, %v443_v48  ;;  %v990_v63 = vmul.f32 %v9797_v1, %v444_v52  ;;  %v449_v9 = vld [vmem:[%s9790_s5 + $0x8e0] sm:$0xff] }
 0x36c   : > { %v7899_v37 = vpop.eup %7898  ;;  %5863 = vst [vmem:[%s9837_s20 + $0x800] sm:$0xff] %v5319_v30  ;;  %v5321_v38 = vmul.f32 0.2, %v7897_v33  ;;  %7918 = vlog2.f32 %v1794_v23  ;;  %v991_v4 = vmul.f32 %v9797_v1, %v445_v56  ;;  %v992_v8 = vmul.f32 %v9797_v1, %v446_v60 }
 0x36d   : > { %v7901_v41 = vpop.eup %7900  ;;  %5864 = vst [vmem:[%s9837_s20 + $0x808] sm:$0xff] %v5320_v34  ;;  %v5322_v42 = vmul.f32 0.2, %v7899_v37  ;;  %7920 = vlog2.f32 %v1796_v27  ;;  %v993_v12 = vmul.f32 %v9797_v1, %v447_v0  ;;  %v994_v15 = vmul.f32 %v9797_v1, %v448_v5 }
 0x36e   : > { %v7903_v45 = vpop.eup %7902  ;;  %5865 = vst [vmem:[%s9837_s20 + $0x810] sm:$0xff] %v5321_v38  ;;  %v5323_v46 = vmul.f32 0.2, %v7901_v41  ;;  %7922 = vlog2.f32 %v1798_v31  ;;  %v995_v18 = vmul.f32 %v9797_v1, %v449_v9 }
 0x36f   : > { %v7905_v49 = vpop.eup %7904  ;;  %5866 = vst [vmem:[%s9837_s20 + $0x818] sm:$0xff] %v5322_v42  ;;  %v5324_v50 = vmul.f32 0.2, %v7903_v45  ;;  %7924 = vlog2.f32 %v983_v35 }
 0x370   : > { %v7907_v53 = vpop.eup %7906  ;;  %5867 = vst [vmem:[%s9837_s20 + $0x820] sm:$0xff] %v5323_v46  ;;  %v5325_v54 = vmul.f32 0.2, %v7905_v49  ;;  %7926 = vlog2.f32 %v984_v39 }
 0x371   : > { %v7909_v57 = vpop.eup %7908  ;;  %5868 = vst [vmem:[%s9837_s20 + $0x828] sm:$0xff] %v5324_v50  ;;  %v5326_v58 = vmul.f32 0.2, %v7907_v53  ;;  %7928 = vlog2.f32 %v985_v43 }
 0x372   : > { %v7911_v61 = vpop.eup %7910  ;;  %5869 = vst [vmem:[%s9837_s20 + $0x830] sm:$0xff] %v5325_v54  ;;  %v5327_v62 = vmul.f32 0.2, %v7909_v57  ;;  %7930 = vlog2.f32 %v986_v47 }
 0x373   : > { %v7913_v2 = vpop.eup %7912  ;;  %5870 = vst [vmem:[%s9837_s20 + $0x838] sm:$0xff] %v5326_v58  ;;  %v5328_v3 = vmul.f32 0.2, %v7911_v61  ;;  %7932 = vlog2.f32 %v987_v51 }
 0x374   : > { %v7915_v6 = vpop.eup %7914  ;;  %5871 = vst [vmem:[%s9837_s20 + $0x840] sm:$0xff] %v5327_v62  ;;  %v5329_v7 = vmul.f32 0.2, %v7913_v2  ;;  %7934 = vlog2.f32 %v988_v55  ;;  %v450_v55 = vld [vmem:[%s9790_s5 + $0x8e8] sm:$0xff] }
 0x375   : > { %v7917_v10 = vpop.eup %7916  ;;  %5872 = vst [vmem:[%s9837_s20 + $0x848] sm:$0xff] %v5328_v3  ;;  %v5330_v11 = vmul.f32 0.2, %v7915_v6  ;;  %7936 = vlog2.f32 %v989_v59  ;;  %v451_v59 = vld [vmem:[%s9790_s5 + $0x8f0] sm:$0xff]  ;;  %v996_v3 = vmul.f32 %v9797_v1, %v450_v55 }
 0x376   : > { %v7919_v13 = vpop.eup %7918  ;;  %5873 = vst [vmem:[%s9837_s20 + $0x850] sm:$0xff] %v5329_v7  ;;  %v2880_v14 = vmul.f32 0.6931472, %v7917_v10  ;;  %7938 = vlog2.f32 %v990_v63  ;;  %v452_v63 = vld [vmem:[%s9790_s5 + $0x8f8] sm:$0xff]  ;;  %v997_v7 = vmul.f32 %v9797_v1, %v451_v59 }
 0x377   : > { %v7921_v16 = vpop.eup %7920  ;;  %5874 = vst [vmem:[%s9837_s20 + $0x858] sm:$0xff] %v5330_v11  ;;  %v2882_v17 = vmul.f32 0.6931472, %v7919_v13  ;;  %7940 = vlog2.f32 %v991_v4  ;;  %v453_v4 = vld [vmem:[%s9790_s5 + $0x900] sm:$0xff]  ;;  %v998_v10 = vmul.f32 %v9797_v1, %v452_v63 }
 0x378   : > { %v7923_v19 = vpop.eup %7922  ;;  %v3699_v20 = vmul.f32 0.6, %v2880_v14  ;;  %v2884_v21 = vmul.f32 0.6931472, %v7921_v16  ;;  %7942 = vlog2.f32 %v992_v8  ;;  %v999_v13 = vmul.f32 %v9797_v1, %v453_v4 }
 0x379   : > { %v7925_v22 = vpop.eup %7924  ;;  %v3700_v23 = vmul.f32 0.6, %v2882_v17  ;;  %v2886_v24 = vmul.f32 0.6931472, %v7923_v19  ;;  %7944 = vlog2.f32 %v993_v12 }
 0x37a   : > { %v7927_v25 = vpop.eup %7926  ;;  %v4511_v26 = vmul.f32 1.442695, %v3699_v20  ;;  %v3701_v27 = vmul.f32 0.6, %v2884_v21  ;;  %7946 = vlog2.f32 %v994_v15  ;;  %v1800_v33 = vmul.f32 0.6931472, %v7925_v22 }
 0x37b   : > { %v7929_v28 = vpop.eup %7928  ;;  %v4513_v29 = vmul.f32 1.442695, %v3700_v23  ;;  %v3702_v30 = vmul.f32 0.6, %v2886_v24  ;;  %7948 = vlog2.f32 %v995_v18  ;;  %v1802_v36 = vmul.f32 0.6931472, %v7927_v25 }
 0x37c   : > { %v7931_v31 = vpop.eup %7930  ;;  %7950 = vpow2.f32 %v4511_v26  ;;  %v4515_v32 = vmul.f32 1.442695, %v3701_v27  ;;  %v1804_v38 = vmul.f32 0.6931472, %v7929_v28 }
 0x37d   : > { %v7933_v34 = vpop.eup %7932  ;;  %7952 = vpow2.f32 %v4513_v29  ;;  %v4517_v35 = vmul.f32 1.442695, %v3702_v30  ;;  %v1806_v40 = vmul.f32 0.6931472, %v7931_v31 }
 0x37e   : > { %v7935_v37 = vpop.eup %7934  ;;  %7954 = vpow2.f32 %v4515_v32  ;;  %v1808_v42 = vmul.f32 0.6931472, %v7933_v34 }
 0x37f   : > { %v7937_v39 = vpop.eup %7936  ;;  %7956 = vpow2.f32 %v4517_v35  ;;  %v1810_v44 = vmul.f32 0.6931472, %v7935_v37 }
 0x380   : > { %v7939_v41 = vpop.eup %7938  ;;  %7958 = vlog2.f32 %v1800_v33  ;;  %v1812_v46 = vmul.f32 0.6931472, %v7937_v39 }
 0x381   : > { %v7941_v43 = vpop.eup %7940  ;;  %7960 = vlog2.f32 %v1802_v36  ;;  %v1814_v48 = vmul.f32 0.6931472, %v7939_v41 }
 0x382   : > { %v7943_v45 = vpop.eup %7942  ;;  %7962 = vlog2.f32 %v1804_v38  ;;  %v1816_v50 = vmul.f32 0.6931472, %v7941_v43 }
 0x383   : > { %v7945_v47 = vpop.eup %7944  ;;  %7964 = vlog2.f32 %v1806_v40  ;;  %v1818_v52 = vmul.f32 0.6931472, %v7943_v45 }
 0x384   : > { %v7947_v49 = vpop.eup %7946  ;;  %7966 = vlog2.f32 %v1808_v42  ;;  %v1820_v54 = vmul.f32 0.6931472, %v7945_v47 }
 0x385   : > { %v7949_v51 = vpop.eup %7948  ;;  %7968 = vlog2.f32 %v1810_v44  ;;  %v1822_v58 = vmul.f32 0.6931472, %v7947_v49 }
 0x386   : > { %v7951_v53 = vpop.eup %7950  ;;  %7970 = vlog2.f32 %v1812_v46  ;;  %v1824_v62 = vmul.f32 0.6931472, %v7949_v51 }
 0x387   : > { %v7953_v56 = vpop.eup %7952  ;;  %v5331_v57 = vmul.f32 0.2, %v7951_v53  ;;  %7972 = vlog2.f32 %v1814_v48 }
 0x388   : > { %v7955_v60 = vpop.eup %7954  ;;  %v5332_v61 = vmul.f32 0.2, %v7953_v56  ;;  %7974 = vlog2.f32 %v1816_v50 }
 0x389   : > { %v7957_v0 = vpop.eup %7956  ;;  %5875 = vst [vmem:[%s9837_s20 + $0x860] sm:$0xff] %v5331_v57  ;;  %v5333_v2 = vmul.f32 0.2, %v7955_v60  ;;  %7976 = vlog2.f32 %v1818_v52 }
 0x38a   : > { %v7959_v5 = vpop.eup %7958  ;;  %5876 = vst [vmem:[%s9837_s20 + $0x868] sm:$0xff] %v5332_v61  ;;  %v5334_v6 = vmul.f32 0.2, %v7957_v0  ;;  %7978 = vlog2.f32 %v1820_v54 }
 0x38b   : > { %v7961_v8 = vpop.eup %7960  ;;  %5877 = vst [vmem:[%s9837_s20 + $0x870] sm:$0xff] %v5333_v2  ;;  %v2888_v9 = vmul.f32 0.6931472, %v7959_v5  ;;  %7980 = vlog2.f32 %v1822_v58  ;;  %v454_v5 = vld [vmem:[%s9790_s5 + $0x908] sm:$0xff] }
 0x38c   : > { %v7963_v11 = vpop.eup %7962  ;;  %5878 = vst [vmem:[%s9837_s20 + $0x878] sm:$0xff] %v5334_v6  ;;  %v2890_v12 = vmul.f32 0.6931472, %v7961_v8  ;;  %7982 = vlog2.f32 %v1824_v62 }
 0x38d   : > { %v7965_v14 = vpop.eup %7964  ;;  %v3703_v15 = vmul.f32 0.6, %v2888_v9  ;;  %v2892_v16 = vmul.f32 0.6931472, %v7963_v11  ;;  %7984 = vlog2.f32 %v996_v3  ;;  %v455_v9 = vld [vmem:[%s9790_s5 + $0x910] sm:$0xff] }
 0x38e   : > { %v7967_v17 = vpop.eup %7966  ;;  %v3704_v18 = vmul.f32 0.6, %v2890_v12  ;;  %v2894_v19 = vmul.f32 0.6931472, %v7965_v14  ;;  %7986 = vlog2.f32 %v997_v7 }
 0x38f   : > { %v7969_v20 = vpop.eup %7968  ;;  %v4519_v21 = vmul.f32 1.442695, %v3703_v15  ;;  %v3705_v22 = vmul.f32 0.6, %v2892_v16  ;;  %v2896_v23 = vmul.f32 0.6931472, %v7967_v17  ;;  %7988 = vlog2.f32 %v998_v10 }
 0x390   : > { %v7971_v24 = vpop.eup %7970  ;;  %v4521_v25 = vmul.f32 1.442695, %v3704_v18  ;;  %v3706_v26 = vmul.f32 0.6, %v2894_v19  ;;  %v2898_v27 = vmul.f32 0.6931472, %v7969_v20  ;;  %7990 = vlog2.f32 %v999_v13 }
 0x391   : > { %v7973_v28 = vpop.eup %7972  ;;  %7992 = vpow2.f32 %v4519_v21  ;;  %v4523_v29 = vmul.f32 1.442695, %v3705_v22  ;;  %v3707_v30 = vmul.f32 0.6, %v2896_v23  ;;  %v2900_v31 = vmul.f32 0.6931472, %v7971_v24 }
 0x392   : > { %v7975_v32 = vpop.eup %7974  ;;  %7994 = vpow2.f32 %v4521_v25  ;;  %v4525_v33 = vmul.f32 1.442695, %v3706_v26  ;;  %v3708_v34 = vmul.f32 0.6, %v2898_v27  ;;  %v2902_v35 = vmul.f32 0.6931472, %v7973_v28 }
 0x393   : > { %v7977_v36 = vpop.eup %7976  ;;  %7996 = vpow2.f32 %v4523_v29  ;;  %v4527_v37 = vmul.f32 1.442695, %v3707_v30  ;;  %v3709_v38 = vmul.f32 0.6, %v2900_v31  ;;  %v2904_v39 = vmul.f32 0.6931472, %v7975_v32 }
 0x394   : > { %v7979_v40 = vpop.eup %7978  ;;  %7998 = vpow2.f32 %v4525_v33  ;;  %v4529_v41 = vmul.f32 1.442695, %v3708_v34  ;;  %v3710_v42 = vmul.f32 0.6, %v2902_v35  ;;  %v2906_v43 = vmul.f32 0.6931472, %v7977_v36 }
 0x395   : > { %v7981_v44 = vpop.eup %7980  ;;  %8000 = vpow2.f32 %v4527_v37  ;;  %v4531_v45 = vmul.f32 1.442695, %v3709_v38  ;;  %v3711_v46 = vmul.f32 0.6, %v2904_v39  ;;  %v2908_v47 = vmul.f32 0.6931472, %v7979_v40 }
 0x396   : > { %v7983_v48 = vpop.eup %7982  ;;  %8002 = vpow2.f32 %v4529_v41  ;;  %v4533_v49 = vmul.f32 1.442695, %v3710_v42  ;;  %v3712_v50 = vmul.f32 0.6, %v2906_v43  ;;  %v2910_v51 = vmul.f32 0.6931472, %v7981_v44 }
 0x397   : > { %v7985_v52 = vpop.eup %7984  ;;  %8004 = vpow2.f32 %v4531_v45  ;;  %v4535_v53 = vmul.f32 1.442695, %v3711_v46  ;;  %v3713_v54 = vmul.f32 0.6, %v2908_v47  ;;  %v2912_v55 = vmul.f32 0.6931472, %v7983_v48 }
 0x398   : > { %v7987_v56 = vpop.eup %7986  ;;  %8006 = vpow2.f32 %v4533_v49  ;;  %v4537_v57 = vmul.f32 1.442695, %v3712_v50  ;;  %v3714_v58 = vmul.f32 0.6, %v2910_v51  ;;  %v1826_v0 = vmul.f32 0.6931472, %v7985_v52 }
 0x399   : > { %v7989_v59 = vpop.eup %7988  ;;  %8008 = vpow2.f32 %v4535_v53  ;;  %v4539_v60 = vmul.f32 1.442695, %v3713_v54  ;;  %v3715_v61 = vmul.f32 0.6, %v2912_v55  ;;  %v1828_v4 = vmul.f32 0.6931472, %v7987_v56 }
 0x39a   : > { %v7991_v62 = vpop.eup %7990  ;;  %8010 = vpow2.f32 %v4537_v57  ;;  %v4541_v63 = vmul.f32 1.442695, %v3714_v58  ;;  %v1830_v8 = vmul.f32 0.6931472, %v7989_v59  ;;  %v456_v13 = vld [vmem:[%s9790_s5 + $0x918] sm:$0xff]  ;;  %v1000_v16 = vmul.f32 %v9797_v1, %v454_v5  ;;  %v457_v17 = vld [vmem:[%s9790_s5 + $0x920] sm:$0xff] }
 0x39b   : > { %v7993_v2 = vpop.eup %7992  ;;  %8012 = vpow2.f32 %v4539_v60  ;;  %v4543_v3 = vmul.f32 1.442695, %v3715_v61  ;;  %v1832_v12 = vmul.f32 0.6931472, %v7991_v62  ;;  %v1001_v20 = vmul.f32 %v9797_v1, %v455_v9  ;;  %v458_v21 = vld [vmem:[%s9790_s5 + $0x928] sm:$0xff]  ;;  %v459_v25 = vld [vmem:[%s9790_s5 + $0x930] sm:$0xff] }
 0x39c   : > { %v7995_v6 = vpop.eup %7994  ;;  %v5335_v7 = vmul.f32 0.2, %v7993_v2  ;;  %8014 = vpow2.f32 %v4541_v63  ;;  %v1002_v24 = vmul.f32 %v9797_v1, %v456_v13  ;;  %v1003_v28 = vmul.f32 %v9797_v1, %v457_v17  ;;  %v460_v29 = vld [vmem:[%s9790_s5 + $0x938] sm:$0xff]  ;;  %v461_v33 = vld [vmem:[%s9790_s5 + $0x940] sm:$0xff]  ;;  %v462_v37 = vld [vmem:[%s9790_s5 + $0x948] sm:$0xff] }
 0x39d   : > { %v7997_v10 = vpop.eup %7996  ;;  %v5336_v11 = vmul.f32 0.2, %v7995_v6  ;;  %8016 = vpow2.f32 %v4543_v3  ;;  %v1004_v32 = vmul.f32 %v9797_v1, %v458_v21  ;;  %v1005_v36 = vmul.f32 %v9797_v1, %v459_v25  ;;  %v463_v41 = vld [vmem:[%s9790_s5 + $0x950] sm:$0xff]  ;;  %v464_v45 = vld [vmem:[%s9790_s5 + $0x958] sm:$0xff]  ;;  %v465_v49 = vld [vmem:[%s9790_s5 + $0x960] sm:$0xff] }
 0x39e   : > { %v7999_v14 = vpop.eup %7998  ;;  %5879 = vst [vmem:[%s9837_s20 + $0x880] sm:$0xff] %v5335_v7  ;;  %v5337_v15 = vmul.f32 0.2, %v7997_v10  ;;  %8018 = vlog2.f32 %v1826_v0  ;;  %v1006_v40 = vmul.f32 %v9797_v1, %v460_v29  ;;  %v1007_v44 = vmul.f32 %v9797_v1, %v461_v33  ;;  %v466_v53 = vld [vmem:[%s9790_s5 + $0x968] sm:$0xff] }
 0x39f   : > { %v8001_v18 = vpop.eup %8000  ;;  %5880 = vst [vmem:[%s9837_s20 + $0x888] sm:$0xff] %v5336_v11  ;;  %v5338_v19 = vmul.f32 0.2, %v7999_v14  ;;  %8020 = vlog2.f32 %v1828_v4  ;;  %v1008_v48 = vmul.f32 %v9797_v1, %v462_v37  ;;  %v1009_v52 = vmul.f32 %v9797_v1, %v463_v41 }
 0x3a0   : > { %v8003_v22 = vpop.eup %8002  ;;  %5881 = vst [vmem:[%s9837_s20 + $0x890] sm:$0xff] %v5337_v15  ;;  %v5339_v23 = vmul.f32 0.2, %v8001_v18  ;;  %8022 = vlog2.f32 %v1830_v8  ;;  %v1010_v56 = vmul.f32 %v9797_v1, %v464_v45  ;;  %v1011_v59 = vmul.f32 %v9797_v1, %v465_v49 }
 0x3a1   : > { %v8005_v26 = vpop.eup %8004  ;;  %5882 = vst [vmem:[%s9837_s20 + $0x898] sm:$0xff] %v5338_v19  ;;  %v5340_v27 = vmul.f32 0.2, %v8003_v22  ;;  %8024 = vlog2.f32 %v1832_v12  ;;  %v1012_v62 = vmul.f32 %v9797_v1, %v466_v53 }
 0x3a2   : > { %v8007_v30 = vpop.eup %8006  ;;  %5883 = vst [vmem:[%s9837_s20 + $0x8a0] sm:$0xff] %v5339_v23  ;;  %v5341_v31 = vmul.f32 0.2, %v8005_v26  ;;  %8026 = vlog2.f32 %v1000_v16 }
 0x3a3   : > { %v8009_v34 = vpop.eup %8008  ;;  %5884 = vst [vmem:[%s9837_s20 + $0x8a8] sm:$0xff] %v5340_v27  ;;  %v5342_v35 = vmul.f32 0.2, %v8007_v30  ;;  %8028 = vlog2.f32 %v1001_v20 }
 0x3a4   : > { %v8011_v38 = vpop.eup %8010  ;;  %5885 = vst [vmem:[%s9837_s20 + $0x8b0] sm:$0xff] %v5341_v31  ;;  %v5343_v39 = vmul.f32 0.2, %v8009_v34  ;;  %8030 = vlog2.f32 %v1002_v24 }
 0x3a5   : > { %v8013_v42 = vpop.eup %8012  ;;  %5886 = vst [vmem:[%s9837_s20 + $0x8b8] sm:$0xff] %v5342_v35  ;;  %v5344_v43 = vmul.f32 0.2, %v8011_v38  ;;  %8032 = vlog2.f32 %v1003_v28 }
 0x3a6   : > { %v8015_v46 = vpop.eup %8014  ;;  %5887 = vst [vmem:[%s9837_s20 + $0x8c0] sm:$0xff] %v5343_v39  ;;  %v5345_v47 = vmul.f32 0.2, %v8013_v42  ;;  %8034 = vlog2.f32 %v1004_v32 }
 0x3a7   : > { %v8017_v50 = vpop.eup %8016  ;;  %5888 = vst [vmem:[%s9837_s20 + $0x8c8] sm:$0xff] %v5344_v43  ;;  %v5346_v51 = vmul.f32 0.2, %v8015_v46  ;;  %8036 = vlog2.f32 %v1005_v36  ;;  %v467_v36 = vld [vmem:[%s9790_s5 + $0x970] sm:$0xff] }
 0x3a8   : > { %v8019_v54 = vpop.eup %8018  ;;  %5889 = vst [vmem:[%s9837_s20 + $0x8d0] sm:$0xff] %v5345_v47  ;;  %v5347_v55 = vmul.f32 0.2, %v8017_v50  ;;  %8038 = vlog2.f32 %v1006_v40  ;;  %v468_v40 = vld [vmem:[%s9790_s5 + $0x978] sm:$0xff]  ;;  %v1013_v47 = vmul.f32 %v9797_v1, %v467_v36 }
 0x3a9   : > { %v8021_v57 = vpop.eup %8020  ;;  %5890 = vst [vmem:[%s9837_s20 + $0x8d8] sm:$0xff] %v5346_v51  ;;  %v2914_v58 = vmul.f32 0.6931472, %v8019_v54  ;;  %8040 = vlog2.f32 %v1007_v44  ;;  %v469_v44 = vld [vmem:[%s9790_s5 + $0x980] sm:$0xff]  ;;  %v1014_v51 = vmul.f32 %v9797_v1, %v468_v40 }
 0x3aa   : > { %v8023_v60 = vpop.eup %8022  ;;  %5891 = vst [vmem:[%s9837_s20 + $0x8e0] sm:$0xff] %v5347_v55  ;;  %v2916_v61 = vmul.f32 0.6931472, %v8021_v57  ;;  %8042 = vlog2.f32 %v1008_v48  ;;  %v470_v48 = vld [vmem:[%s9790_s5 + $0x988] sm:$0xff]  ;;  %v1015_v54 = vmul.f32 %v9797_v1, %v469_v44 }
 0x3ab   : > { %v8025_v63 = vpop.eup %8024  ;;  %v3716_v0 = vmul.f32 0.6, %v2914_v58  ;;  %v2918_v2 = vmul.f32 0.6931472, %v8023_v60  ;;  %8044 = vlog2.f32 %v1009_v52  ;;  %v1016_v57 = vmul.f32 %v9797_v1, %v470_v48 }
 0x3ac   : > { %v8027_v3 = vpop.eup %8026  ;;  %v3717_v4 = vmul.f32 0.6, %v2916_v61  ;;  %v2920_v5 = vmul.f32 0.6931472, %v8025_v63  ;;  %8046 = vlog2.f32 %v1010_v56 }
 0x3ad   : > { %v8029_v6 = vpop.eup %8028  ;;  %v4545_v7 = vmul.f32 1.442695, %v3716_v0  ;;  %v3718_v8 = vmul.f32 0.6, %v2918_v2  ;;  %8048 = vlog2.f32 %v1011_v59  ;;  %v1834_v14 = vmul.f32 0.6931472, %v8027_v3 }
 0x3ae   : > { %v8031_v9 = vpop.eup %8030  ;;  %v4547_v10 = vmul.f32 1.442695, %v3717_v4  ;;  %v3719_v11 = vmul.f32 0.6, %v2920_v5  ;;  %8050 = vlog2.f32 %v1012_v62  ;;  %v1836_v17 = vmul.f32 0.6931472, %v8029_v6 }
 0x3af   : > { %v8033_v12 = vpop.eup %8032  ;;  %8052 = vpow2.f32 %v4545_v7  ;;  %v4549_v13 = vmul.f32 1.442695, %v3718_v8  ;;  %v1838_v19 = vmul.f32 0.6931472, %v8031_v9 }
 0x3b0   : > { %v8035_v15 = vpop.eup %8034  ;;  %8054 = vpow2.f32 %v4547_v10  ;;  %v4551_v16 = vmul.f32 1.442695, %v3719_v11  ;;  %v1840_v21 = vmul.f32 0.6931472, %v8033_v12 }
 0x3b1   : > { %v8037_v18 = vpop.eup %8036  ;;  %8056 = vpow2.f32 %v4549_v13  ;;  %v1842_v23 = vmul.f32 0.6931472, %v8035_v15 }
 0x3b2   : > { %v8039_v20 = vpop.eup %8038  ;;  %8058 = vpow2.f32 %v4551_v16  ;;  %v1844_v25 = vmul.f32 0.6931472, %v8037_v18 }
 0x3b3   : > { %v8041_v22 = vpop.eup %8040  ;;  %8060 = vlog2.f32 %v1834_v14  ;;  %v1846_v27 = vmul.f32 0.6931472, %v8039_v20 }
 0x3b4   : > { %v8043_v24 = vpop.eup %8042  ;;  %8062 = vlog2.f32 %v1836_v17  ;;  %v1848_v29 = vmul.f32 0.6931472, %v8041_v22 }
 0x3b5   : > { %v8045_v26 = vpop.eup %8044  ;;  %8064 = vlog2.f32 %v1838_v19  ;;  %v1850_v31 = vmul.f32 0.6931472, %v8043_v24 }
 0x3b6   : > { %v8047_v28 = vpop.eup %8046  ;;  %8066 = vlog2.f32 %v1840_v21  ;;  %v1852_v33 = vmul.f32 0.6931472, %v8045_v26 }
 0x3b7   : > { %v8049_v30 = vpop.eup %8048  ;;  %8068 = vlog2.f32 %v1842_v23  ;;  %v1854_v35 = vmul.f32 0.6931472, %v8047_v28 }
 0x3b8   : > { %v8051_v32 = vpop.eup %8050  ;;  %8070 = vlog2.f32 %v1844_v25  ;;  %v1856_v39 = vmul.f32 0.6931472, %v8049_v30 }
 0x3b9   : > { %v8053_v34 = vpop.eup %8052  ;;  %8072 = vlog2.f32 %v1846_v27  ;;  %v1858_v43 = vmul.f32 0.6931472, %v8051_v32 }
 0x3ba   : > { %v8055_v37 = vpop.eup %8054  ;;  %v5348_v38 = vmul.f32 0.2, %v8053_v34  ;;  %8074 = vlog2.f32 %v1848_v29 }
 0x3bb   : > { %v8057_v41 = vpop.eup %8056  ;;  %v5349_v42 = vmul.f32 0.2, %v8055_v37  ;;  %8076 = vlog2.f32 %v1850_v31 }
 0x3bc   : > { %v8059_v45 = vpop.eup %8058  ;;  %5892 = vst [vmem:[%s9837_s20 + $0x8e8] sm:$0xff] %v5348_v38  ;;  %v5350_v46 = vmul.f32 0.2, %v8057_v41  ;;  %8078 = vlog2.f32 %v1852_v33 }
 0x3bd   : > { %v8061_v49 = vpop.eup %8060  ;;  %5893 = vst [vmem:[%s9837_s20 + $0x8f0] sm:$0xff] %v5349_v42  ;;  %v5351_v50 = vmul.f32 0.2, %v8059_v45  ;;  %8080 = vlog2.f32 %v1854_v35 }
 0x3be   : > { %v8063_v52 = vpop.eup %8062  ;;  %5894 = vst [vmem:[%s9837_s20 + $0x8f8] sm:$0xff] %v5350_v46  ;;  %v2922_v53 = vmul.f32 0.6931472, %v8061_v49  ;;  %8082 = vlog2.f32 %v1856_v39  ;;  %v471_v49 = vld [vmem:[%s9790_s5 + $0x990] sm:$0xff] }
 0x3bf   : > { %v8065_v55 = vpop.eup %8064  ;;  %5895 = vst [vmem:[%s9837_s20 + $0x900] sm:$0xff] %v5351_v50  ;;  %v2924_v56 = vmul.f32 0.6931472, %v8063_v52  ;;  %8084 = vlog2.f32 %v1858_v43 }
 0x3c0   : > { %v8067_v58 = vpop.eup %8066  ;;  %v3720_v59 = vmul.f32 0.6, %v2922_v53  ;;  %v2926_v60 = vmul.f32 0.6931472, %v8065_v55  ;;  %8086 = vlog2.f32 %v1013_v47  ;;  %v472_v53 = vld [vmem:[%s9790_s5 + $0x998] sm:$0xff] }
 0x3c1   : > { %v8069_v61 = vpop.eup %8068  ;;  %v3721_v62 = vmul.f32 0.6, %v2924_v56  ;;  %v2928_v63 = vmul.f32 0.6931472, %v8067_v58  ;;  %8088 = vlog2.f32 %v1014_v51 }
 0x3c2   : > { %v8071_v0 = vpop.eup %8070  ;;  %v4553_v2 = vmul.f32 1.442695, %v3720_v59  ;;  %v3722_v3 = vmul.f32 0.6, %v2926_v60  ;;  %v2930_v4 = vmul.f32 0.6931472, %v8069_v61  ;;  %8090 = vlog2.f32 %v1015_v54 }
 0x3c3   : > { %v8073_v5 = vpop.eup %8072  ;;  %v4555_v6 = vmul.f32 1.442695, %v3721_v62  ;;  %v3723_v7 = vmul.f32 0.6, %v2928_v63  ;;  %v2932_v8 = vmul.f32 0.6931472, %v8071_v0  ;;  %8092 = vlog2.f32 %v1016_v57 }
 0x3c4   : > { %v8075_v9 = vpop.eup %8074  ;;  %8094 = vpow2.f32 %v4553_v2  ;;  %v4557_v10 = vmul.f32 1.442695, %v3722_v3  ;;  %v3724_v11 = vmul.f32 0.6, %v2930_v4  ;;  %v2934_v12 = vmul.f32 0.6931472, %v8073_v5 }
 0x3c5   : > { %v8077_v13 = vpop.eup %8076  ;;  %8096 = vpow2.f32 %v4555_v6  ;;  %v4559_v14 = vmul.f32 1.442695, %v3723_v7  ;;  %v3725_v15 = vmul.f32 0.6, %v2932_v8  ;;  %v2936_v16 = vmul.f32 0.6931472, %v8075_v9 }
 0x3c6   : > { %v8079_v17 = vpop.eup %8078  ;;  %8098 = vpow2.f32 %v4557_v10  ;;  %v4561_v18 = vmul.f32 1.442695, %v3724_v11  ;;  %v3726_v19 = vmul.f32 0.6, %v2934_v12  ;;  %v2938_v20 = vmul.f32 0.6931472, %v8077_v13 }
 0x3c7   : > { %v8081_v21 = vpop.eup %8080  ;;  %8100 = vpow2.f32 %v4559_v14  ;;  %v4563_v22 = vmul.f32 1.442695, %v3725_v15  ;;  %v3727_v23 = vmul.f32 0.6, %v2936_v16  ;;  %v2940_v24 = vmul.f32 0.6931472, %v8079_v17 }
 0x3c8   : > { %v8083_v25 = vpop.eup %8082  ;;  %8102 = vpow2.f32 %v4561_v18  ;;  %v4565_v26 = vmul.f32 1.442695, %v3726_v19  ;;  %v3728_v27 = vmul.f32 0.6, %v2938_v20  ;;  %v2942_v28 = vmul.f32 0.6931472, %v8081_v21 }
 0x3c9   : > { %v8085_v29 = vpop.eup %8084  ;;  %8104 = vpow2.f32 %v4563_v22  ;;  %v4567_v30 = vmul.f32 1.442695, %v3727_v23  ;;  %v3729_v31 = vmul.f32 0.6, %v2940_v24  ;;  %v2944_v32 = vmul.f32 0.6931472, %v8083_v25 }
 0x3ca   : > { %v8087_v33 = vpop.eup %8086  ;;  %8106 = vpow2.f32 %v4565_v26  ;;  %v4569_v34 = vmul.f32 1.442695, %v3728_v27  ;;  %v3730_v35 = vmul.f32 0.6, %v2942_v28  ;;  %v2946_v36 = vmul.f32 0.6931472, %v8085_v29 }
 0x3cb   : > { %v8089_v37 = vpop.eup %8088  ;;  %8108 = vpow2.f32 %v4567_v30  ;;  %v4571_v38 = vmul.f32 1.442695, %v3729_v31  ;;  %v3731_v39 = vmul.f32 0.6, %v2944_v32  ;;  %v1860_v45 = vmul.f32 0.6931472, %v8087_v33 }
 0x3cc   : > { %v8091_v40 = vpop.eup %8090  ;;  %8110 = vpow2.f32 %v4569_v34  ;;  %v4573_v41 = vmul.f32 1.442695, %v3730_v35  ;;  %v3732_v42 = vmul.f32 0.6, %v2946_v36  ;;  %v1862_v48 = vmul.f32 0.6931472, %v8089_v37 }
 0x3cd   : > { %v8093_v43 = vpop.eup %8092  ;;  %8112 = vpow2.f32 %v4571_v38  ;;  %v4575_v44 = vmul.f32 1.442695, %v3731_v39  ;;  %v1864_v52 = vmul.f32 0.6931472, %v8091_v40  ;;  %v473_v57 = vld [vmem:[%s9790_s5 + $0x9a0] sm:$0xff]  ;;  %v1017_v60 = vmul.f32 %v9797_v1, %v471_v49  ;;  %v474_v61 = vld [vmem:[%s9790_s5 + $0x9a8] sm:$0xff] }
 0x3ce   : > { %v8095_v46 = vpop.eup %8094  ;;  %8114 = vpow2.f32 %v4573_v41  ;;  %v4577_v47 = vmul.f32 1.442695, %v3732_v42  ;;  %v1866_v56 = vmul.f32 0.6931472, %v8093_v43  ;;  %v1018_v0 = vmul.f32 %v9797_v1, %v472_v53  ;;  %v475_v2 = vld [vmem:[%s9790_s5 + $0x9b0] sm:$0xff]  ;;  %v476_v6 = vld [vmem:[%s9790_s5 + $0x9b8] sm:$0xff] }
 0x3cf   : > { %v8097_v50 = vpop.eup %8096  ;;  %v5352_v51 = vmul.f32 0.2, %v8095_v46  ;;  %8116 = vpow2.f32 %v4575_v44  ;;  %v1019_v5 = vmul.f32 %v9797_v1, %v473_v57  ;;  %v1020_v9 = vmul.f32 %v9797_v1, %v474_v61  ;;  %v477_v10 = vld [vmem:[%s9790_s5 + $0x9c0] sm:$0xff]  ;;  %v478_v14 = vld [vmem:[%s9790_s5 + $0x9c8] sm:$0xff]  ;;  %v479_v18 = vld [vmem:[%s9790_s5 + $0x9d0] sm:$0xff] }
 0x3d0   : > { %v8099_v54 = vpop.eup %8098  ;;  %v5353_v55 = vmul.f32 0.2, %v8097_v50  ;;  %8118 = vpow2.f32 %v4577_v47  ;;  %v1021_v13 = vmul.f32 %v9797_v1, %v475_v2  ;;  %v1022_v17 = vmul.f32 %v9797_v1, %v476_v6  ;;  %v480_v22 = vld [vmem:[%s9790_s5 + $0x9d8] sm:$0xff]  ;;  %v481_v26 = vld [vmem:[%s9790_s5 + $0x9e0] sm:$0xff]  ;;  %v482_v30 = vld [vmem:[%s9790_s5 + $0x9e8] sm:$0xff] }
 0x3d1   : > { %v8101_v58 = vpop.eup %8100  ;;  %5896 = vst [vmem:[%s9837_s20 + $0x908] sm:$0xff] %v5352_v51  ;;  %v5354_v59 = vmul.f32 0.2, %v8099_v54  ;;  %8120 = vlog2.f32 %v1860_v45  ;;  %v1023_v21 = vmul.f32 %v9797_v1, %v477_v10  ;;  %v1024_v25 = vmul.f32 %v9797_v1, %v478_v14  ;;  %v483_v34 = vld [vmem:[%s9790_s5 + $0x9f0] sm:$0xff] }
 0x3d2   : > { %v8103_v62 = vpop.eup %8102  ;;  %5897 = vst [vmem:[%s9837_s20 + $0x910] sm:$0xff] %v5353_v55  ;;  %v5355_v63 = vmul.f32 0.2, %v8101_v58  ;;  %8122 = vlog2.f32 %v1862_v48  ;;  %v1025_v29 = vmul.f32 %v9797_v1, %v479_v18  ;;  %v1026_v33 = vmul.f32 %v9797_v1, %v480_v22 }
 0x3d3   : > { %v8105_v3 = vpop.eup %8104  ;;  %5898 = vst [vmem:[%s9837_s20 + $0x918] sm:$0xff] %v5354_v59  ;;  %v5356_v4 = vmul.f32 0.2, %v8103_v62  ;;  %8124 = vlog2.f32 %v1864_v52  ;;  %v1027_v37 = vmul.f32 %v9797_v1, %v481_v26  ;;  %v1028_v40 = vmul.f32 %v9797_v1, %v482_v30 }
 0x3d4   : > { %v8107_v7 = vpop.eup %8106  ;;  %5899 = vst [vmem:[%s9837_s20 + $0x920] sm:$0xff] %v5355_v63  ;;  %v5357_v8 = vmul.f32 0.2, %v8105_v3  ;;  %8126 = vlog2.f32 %v1866_v56  ;;  %v1029_v43 = vmul.f32 %v9797_v1, %v483_v34 }
 0x3d5   : > { %v8109_v11 = vpop.eup %8108  ;;  %5900 = vst [vmem:[%s9837_s20 + $0x928] sm:$0xff] %v5356_v4  ;;  %v5358_v12 = vmul.f32 0.2, %v8107_v7  ;;  %8128 = vlog2.f32 %v1017_v60 }
 0x3d6   : > { %v8111_v15 = vpop.eup %8110  ;;  %5901 = vst [vmem:[%s9837_s20 + $0x930] sm:$0xff] %v5357_v8  ;;  %v5359_v16 = vmul.f32 0.2, %v8109_v11  ;;  %8130 = vlog2.f32 %v1018_v0 }
 0x3d7   : > { %v8113_v19 = vpop.eup %8112  ;;  %5902 = vst [vmem:[%s9837_s20 + $0x938] sm:$0xff] %v5358_v12  ;;  %v5360_v20 = vmul.f32 0.2, %v8111_v15  ;;  %8132 = vlog2.f32 %v1019_v5 }
 0x3d8   : > { %v8115_v23 = vpop.eup %8114  ;;  %5903 = vst [vmem:[%s9837_s20 + $0x940] sm:$0xff] %v5359_v16  ;;  %v5361_v24 = vmul.f32 0.2, %v8113_v19  ;;  %8134 = vlog2.f32 %v1020_v9 }
 0x3d9   : > { %v8117_v27 = vpop.eup %8116  ;;  %5904 = vst [vmem:[%s9837_s20 + $0x948] sm:$0xff] %v5360_v20  ;;  %v5362_v28 = vmul.f32 0.2, %v8115_v23  ;;  %8136 = vlog2.f32 %v1021_v13 }
 0x3da   : > { %v8119_v31 = vpop.eup %8118  ;;  %5905 = vst [vmem:[%s9837_s20 + $0x950] sm:$0xff] %v5361_v24  ;;  %v5363_v32 = vmul.f32 0.2, %v8117_v27  ;;  %8138 = vlog2.f32 %v1022_v17  ;;  %v484_v17 = vld [vmem:[%s9790_s5 + $0x9f8] sm:$0xff] }
 0x3db   : > { %v8121_v35 = vpop.eup %8120  ;;  %5906 = vst [vmem:[%s9837_s20 + $0x958] sm:$0xff] %v5362_v28  ;;  %v5364_v36 = vmul.f32 0.2, %v8119_v31  ;;  %8140 = vlog2.f32 %v1023_v21  ;;  %v485_v21 = vld [vmem:[%s9790_s5 + $0xa00] sm:$0xff]  ;;  %v1030_v28 = vmul.f32 %v9797_v1, %v484_v17 }
 0x3dc   : > { %v8123_v38 = vpop.eup %8122  ;;  %5907 = vst [vmem:[%s9837_s20 + $0x960] sm:$0xff] %v5363_v32  ;;  %v2948_v39 = vmul.f32 0.6931472, %v8121_v35  ;;  %8142 = vlog2.f32 %v1024_v25  ;;  %v486_v25 = vld [vmem:[%s9790_s5 + $0xa08] sm:$0xff]  ;;  %v1031_v32 = vmul.f32 %v9797_v1, %v485_v21 }
 0x3dd   : > { %v8125_v41 = vpop.eup %8124  ;;  %5908 = vst [vmem:[%s9837_s20 + $0x968] sm:$0xff] %v5364_v36  ;;  %v2950_v42 = vmul.f32 0.6931472, %v8123_v38  ;;  %8144 = vlog2.f32 %v1025_v29  ;;  %v487_v29 = vld [vmem:[%s9790_s5 + $0xa10] sm:$0xff]  ;;  %v1032_v35 = vmul.f32 %v9797_v1, %v486_v25 }
 0x3de   : > { %v8127_v44 = vpop.eup %8126  ;;  %v3733_v45 = vmul.f32 0.6, %v2948_v39  ;;  %v2952_v46 = vmul.f32 0.6931472, %v8125_v41  ;;  %8146 = vlog2.f32 %v1026_v33  ;;  %v1033_v38 = vmul.f32 %v9797_v1, %v487_v29 }
 0x3df   : > { %v8129_v47 = vpop.eup %8128  ;;  %v3734_v48 = vmul.f32 0.6, %v2950_v42  ;;  %v2954_v49 = vmul.f32 0.6931472, %v8127_v44  ;;  %8148 = vlog2.f32 %v1027_v37 }
 0x3e0   : > { %v8131_v50 = vpop.eup %8130  ;;  %v4579_v51 = vmul.f32 1.442695, %v3733_v45  ;;  %v3735_v52 = vmul.f32 0.6, %v2952_v46  ;;  %8150 = vlog2.f32 %v1028_v40  ;;  %v1868_v58 = vmul.f32 0.6931472, %v8129_v47 }
 0x3e1   : > { %v8133_v53 = vpop.eup %8132  ;;  %v4581_v54 = vmul.f32 1.442695, %v3734_v48  ;;  %v3736_v55 = vmul.f32 0.6, %v2954_v49  ;;  %8152 = vlog2.f32 %v1029_v43  ;;  %v1870_v61 = vmul.f32 0.6931472, %v8131_v50 }
 0x3e2   : > { %v8135_v56 = vpop.eup %8134  ;;  %8154 = vpow2.f32 %v4579_v51  ;;  %v4583_v57 = vmul.f32 1.442695, %v3735_v52  ;;  %v1872_v63 = vmul.f32 0.6931472, %v8133_v53 }
 0x3e3   : > { %v8137_v59 = vpop.eup %8136  ;;  %8156 = vpow2.f32 %v4581_v54  ;;  %v4585_v60 = vmul.f32 1.442695, %v3736_v55  ;;  %v1874_v2 = vmul.f32 0.6931472, %v8135_v56 }
 0x3e4   : > { %v8139_v62 = vpop.eup %8138  ;;  %8158 = vpow2.f32 %v4583_v57  ;;  %v1876_v4 = vmul.f32 0.6931472, %v8137_v59 }
 0x3e5   : > { %v8141_v0 = vpop.eup %8140  ;;  %8160 = vpow2.f32 %v4585_v60  ;;  %v1878_v6 = vmul.f32 0.6931472, %v8139_v62 }
 0x3e6   : > { %v8143_v3 = vpop.eup %8142  ;;  %8162 = vlog2.f32 %v1868_v58  ;;  %v1880_v8 = vmul.f32 0.6931472, %v8141_v0 }
 0x3e7   : > { %v8145_v5 = vpop.eup %8144  ;;  %8164 = vlog2.f32 %v1870_v61  ;;  %v1882_v10 = vmul.f32 0.6931472, %v8143_v3 }
 0x3e8   : > { %v8147_v7 = vpop.eup %8146  ;;  %8166 = vlog2.f32 %v1872_v63  ;;  %v1884_v12 = vmul.f32 0.6931472, %v8145_v5 }
 0x3e9   : > { %v8149_v9 = vpop.eup %8148  ;;  %8168 = vlog2.f32 %v1874_v2  ;;  %v1886_v14 = vmul.f32 0.6931472, %v8147_v7 }
 0x3ea   : > { %v8151_v11 = vpop.eup %8150  ;;  %8170 = vlog2.f32 %v1876_v4  ;;  %v1888_v16 = vmul.f32 0.6931472, %v8149_v9 }
 0x3eb   : > { %v8153_v13 = vpop.eup %8152  ;;  %8172 = vlog2.f32 %v1878_v6  ;;  %v1890_v20 = vmul.f32 0.6931472, %v8151_v11 }
 0x3ec   : > { %v8155_v15 = vpop.eup %8154  ;;  %8174 = vlog2.f32 %v1880_v8  ;;  %v1892_v24 = vmul.f32 0.6931472, %v8153_v13 }
 0x3ed   : > { %v8157_v18 = vpop.eup %8156  ;;  %v5365_v19 = vmul.f32 0.2, %v8155_v15  ;;  %8176 = vlog2.f32 %v1882_v10 }
 0x3ee   : > { %v8159_v22 = vpop.eup %8158  ;;  %v5366_v23 = vmul.f32 0.2, %v8157_v18  ;;  %8178 = vlog2.f32 %v1884_v12 }
 0x3ef   : > { %v8161_v26 = vpop.eup %8160  ;;  %5909 = vst [vmem:[%s9837_s20 + $0x970] sm:$0xff] %v5365_v19  ;;  %v5367_v27 = vmul.f32 0.2, %v8159_v22  ;;  %8180 = vlog2.f32 %v1886_v14 }
 0x3f0   : > { %v8163_v30 = vpop.eup %8162  ;;  %5910 = vst [vmem:[%s9837_s20 + $0x978] sm:$0xff] %v5366_v23  ;;  %v5368_v31 = vmul.f32 0.2, %v8161_v26  ;;  %8182 = vlog2.f32 %v1888_v16 }
 0x3f1   : > { %v8165_v33 = vpop.eup %8164  ;;  %5911 = vst [vmem:[%s9837_s20 + $0x980] sm:$0xff] %v5367_v27  ;;  %v2956_v34 = vmul.f32 0.6931472, %v8163_v30  ;;  %8184 = vlog2.f32 %v1890_v20  ;;  %v488_v30 = vld [vmem:[%s9790_s5 + $0xa18] sm:$0xff] }
 0x3f2   : > { %v8167_v36 = vpop.eup %8166  ;;  %5912 = vst [vmem:[%s9837_s20 + $0x988] sm:$0xff] %v5368_v31  ;;  %v2958_v37 = vmul.f32 0.6931472, %v8165_v33  ;;  %8186 = vlog2.f32 %v1892_v24 }
 0x3f3   : > { %v8169_v39 = vpop.eup %8168  ;;  %v3737_v40 = vmul.f32 0.6, %v2956_v34  ;;  %v2960_v41 = vmul.f32 0.6931472, %v8167_v36  ;;  %8188 = vlog2.f32 %v1030_v28  ;;  %v489_v34 = vld [vmem:[%s9790_s5 + $0xa20] sm:$0xff] }
 0x3f4   : > { %v8171_v42 = vpop.eup %8170  ;;  %v3738_v43 = vmul.f32 0.6, %v2958_v37  ;;  %v2962_v44 = vmul.f32 0.6931472, %v8169_v39  ;;  %8190 = vlog2.f32 %v1031_v32 }
 0x3f5   : > { %v8173_v45 = vpop.eup %8172  ;;  %v4587_v46 = vmul.f32 1.442695, %v3737_v40  ;;  %v3739_v47 = vmul.f32 0.6, %v2960_v41  ;;  %v2964_v48 = vmul.f32 0.6931472, %v8171_v42  ;;  %8192 = vlog2.f32 %v1032_v35 }
 0x3f6   : > { %v8175_v49 = vpop.eup %8174  ;;  %v4589_v50 = vmul.f32 1.442695, %v3738_v43  ;;  %v3740_v51 = vmul.f32 0.6, %v2962_v44  ;;  %v2966_v52 = vmul.f32 0.6931472, %v8173_v45  ;;  %8194 = vlog2.f32 %v1033_v38 }
 0x3f7   : > { %v8177_v53 = vpop.eup %8176  ;;  %8196 = vpow2.f32 %v4587_v46  ;;  %v4591_v54 = vmul.f32 1.442695, %v3739_v47  ;;  %v3741_v55 = vmul.f32 0.6, %v2964_v48  ;;  %v2968_v56 = vmul.f32 0.6931472, %v8175_v49 }
 0x3f8   : > { %v8179_v57 = vpop.eup %8178  ;;  %8198 = vpow2.f32 %v4589_v50  ;;  %v4593_v58 = vmul.f32 1.442695, %v3740_v51  ;;  %v3742_v59 = vmul.f32 0.6, %v2966_v52  ;;  %v2970_v60 = vmul.f32 0.6931472, %v8177_v53 }
 0x3f9   : > { %v8181_v61 = vpop.eup %8180  ;;  %8200 = vpow2.f32 %v4591_v54  ;;  %v4595_v62 = vmul.f32 1.442695, %v3741_v55  ;;  %v3743_v63 = vmul.f32 0.6, %v2968_v56  ;;  %v2972_v0 = vmul.f32 0.6931472, %v8179_v57 }
 0x3fa   : > { %v8183_v2 = vpop.eup %8182  ;;  %8202 = vpow2.f32 %v4593_v58  ;;  %v4597_v3 = vmul.f32 1.442695, %v3742_v59  ;;  %v3744_v4 = vmul.f32 0.6, %v2970_v60  ;;  %v2974_v5 = vmul.f32 0.6931472, %v8181_v61 }
 0x3fb   : > { %v8185_v6 = vpop.eup %8184  ;;  %8204 = vpow2.f32 %v4595_v62  ;;  %v4599_v7 = vmul.f32 1.442695, %v3743_v63  ;;  %v3745_v8 = vmul.f32 0.6, %v2972_v0  ;;  %v2976_v9 = vmul.f32 0.6931472, %v8183_v2 }
 0x3fc   : > { %v8187_v10 = vpop.eup %8186  ;;  %8206 = vpow2.f32 %v4597_v3  ;;  %v4601_v11 = vmul.f32 1.442695, %v3744_v4  ;;  %v3746_v12 = vmul.f32 0.6, %v2974_v5  ;;  %v2978_v13 = vmul.f32 0.6931472, %v8185_v6 }
 0x3fd   : > { %v8189_v14 = vpop.eup %8188  ;;  %8208 = vpow2.f32 %v4599_v7  ;;  %v4603_v15 = vmul.f32 1.442695, %v3745_v8  ;;  %v3747_v16 = vmul.f32 0.6, %v2976_v9  ;;  %v2980_v17 = vmul.f32 0.6931472, %v8187_v10 }
 0x3fe   : > { %v8191_v18 = vpop.eup %8190  ;;  %8210 = vpow2.f32 %v4601_v11  ;;  %v4605_v19 = vmul.f32 1.442695, %v3746_v12  ;;  %v3748_v20 = vmul.f32 0.6, %v2978_v13  ;;  %v1894_v26 = vmul.f32 0.6931472, %v8189_v14 }
 0x3ff   : > { %v8193_v21 = vpop.eup %8192  ;;  %8212 = vpow2.f32 %v4603_v15  ;;  %v4607_v22 = vmul.f32 1.442695, %v3747_v16  ;;  %v3749_v23 = vmul.f32 0.6, %v2980_v17  ;;  %v1896_v29 = vmul.f32 0.6931472, %v8191_v18 }
 0x400   : > { %v8195_v24 = vpop.eup %8194  ;;  %8214 = vpow2.f32 %v4605_v19  ;;  %v4609_v25 = vmul.f32 1.442695, %v3748_v20  ;;  %v1898_v33 = vmul.f32 0.6931472, %v8193_v21  ;;  %v490_v38 = vld [vmem:[%s9790_s5 + $0xa28] sm:$0xff]  ;;  %v1034_v41 = vmul.f32 %v9797_v1, %v488_v30  ;;  %v491_v42 = vld [vmem:[%s9790_s5 + $0xa30] sm:$0xff] }
 0x401   : > { %v8197_v27 = vpop.eup %8196  ;;  %8216 = vpow2.f32 %v4607_v22  ;;  %v4611_v28 = vmul.f32 1.442695, %v3749_v23  ;;  %v1900_v37 = vmul.f32 0.6931472, %v8195_v24  ;;  %v1035_v45 = vmul.f32 %v9797_v1, %v489_v34  ;;  %v492_v46 = vld [vmem:[%s9790_s5 + $0xa38] sm:$0xff]  ;;  %v493_v50 = vld [vmem:[%s9790_s5 + $0xa40] sm:$0xff] }
 0x402   : > { %v8199_v31 = vpop.eup %8198  ;;  %v5369_v32 = vmul.f32 0.2, %v8197_v27  ;;  %8218 = vpow2.f32 %v4609_v25  ;;  %v1036_v49 = vmul.f32 %v9797_v1, %v490_v38  ;;  %v1037_v53 = vmul.f32 %v9797_v1, %v491_v42  ;;  %v494_v54 = vld [vmem:[%s9790_s5 + $0xa48] sm:$0xff]  ;;  %v495_v58 = vld [vmem:[%s9790_s5 + $0xa50] sm:$0xff]  ;;  %v496_v62 = vld [vmem:[%s9790_s5 + $0xa58] sm:$0xff] }
 0x403   : > { %v8201_v35 = vpop.eup %8200  ;;  %v5370_v36 = vmul.f32 0.2, %v8199_v31  ;;  %8220 = vpow2.f32 %v4611_v28  ;;  %v1038_v57 = vmul.f32 %v9797_v1, %v492_v46  ;;  %v1039_v61 = vmul.f32 %v9797_v1, %v493_v50  ;;  %v497_v3 = vld [vmem:[%s9790_s5 + $0xa60] sm:$0xff]  ;;  %v498_v7 = vld [vmem:[%s9790_s5 + $0xa68] sm:$0xff]  ;;  %v499_v11 = vld [vmem:[%s9790_s5 + $0xa70] sm:$0xff] }
 0x404   : > { %v8203_v39 = vpop.eup %8202  ;;  %5913 = vst [vmem:[%s9837_s20 + $0x990] sm:$0xff] %v5369_v32  ;;  %v5371_v40 = vmul.f32 0.2, %v8201_v35  ;;  %8222 = vlog2.f32 %v1894_v26  ;;  %v1040_v2 = vmul.f32 %v9797_v1, %v494_v54  ;;  %v1041_v6 = vmul.f32 %v9797_v1, %v495_v58  ;;  %v500_v15 = vld [vmem:[%s9790_s5 + $0xa78] sm:$0xff] }
 0x405   : > { %v8205_v43 = vpop.eup %8204  ;;  %5914 = vst [vmem:[%s9837_s20 + $0x998] sm:$0xff] %v5370_v36  ;;  %v5372_v44 = vmul.f32 0.2, %v8203_v39  ;;  %8224 = vlog2.f32 %v1896_v29  ;;  %v1042_v10 = vmul.f32 %v9797_v1, %v496_v62  ;;  %v1043_v14 = vmul.f32 %v9797_v1, %v497_v3 }
 0x406   : > { %v8207_v47 = vpop.eup %8206  ;;  %5915 = vst [vmem:[%s9837_s20 + $0x9a0] sm:$0xff] %v5371_v40  ;;  %v5373_v48 = vmul.f32 0.2, %v8205_v43  ;;  %8226 = vlog2.f32 %v1898_v33  ;;  %v1044_v18 = vmul.f32 %v9797_v1, %v498_v7  ;;  %v1045_v21 = vmul.f32 %v9797_v1, %v499_v11 }
 0x407   : > { %v8209_v51 = vpop.eup %8208  ;;  %5916 = vst [vmem:[%s9837_s20 + $0x9a8] sm:$0xff] %v5372_v44  ;;  %v5374_v52 = vmul.f32 0.2, %v8207_v47  ;;  %8228 = vlog2.f32 %v1900_v37  ;;  %v1046_v24 = vmul.f32 %v9797_v1, %v500_v15 }
 0x408   : > { %v8211_v55 = vpop.eup %8210  ;;  %5917 = vst [vmem:[%s9837_s20 + $0x9b0] sm:$0xff] %v5373_v48  ;;  %v5375_v56 = vmul.f32 0.2, %v8209_v51  ;;  %8230 = vlog2.f32 %v1034_v41 }
 0x409   : > { %v8213_v59 = vpop.eup %8212  ;;  %5918 = vst [vmem:[%s9837_s20 + $0x9b8] sm:$0xff] %v5374_v52  ;;  %v5376_v60 = vmul.f32 0.2, %v8211_v55  ;;  %8232 = vlog2.f32 %v1035_v45 }
 0x40a   : > { %v8215_v63 = vpop.eup %8214  ;;  %5919 = vst [vmem:[%s9837_s20 + $0x9c0] sm:$0xff] %v5375_v56  ;;  %v5377_v0 = vmul.f32 0.2, %v8213_v59  ;;  %8234 = vlog2.f32 %v1036_v49 }
 0x40b   : > { %v8217_v4 = vpop.eup %8216  ;;  %5920 = vst [vmem:[%s9837_s20 + $0x9c8] sm:$0xff] %v5376_v60  ;;  %v5378_v5 = vmul.f32 0.2, %v8215_v63  ;;  %8236 = vlog2.f32 %v1037_v53 }
 0x40c   : > { %v8219_v8 = vpop.eup %8218  ;;  %5921 = vst [vmem:[%s9837_s20 + $0x9d0] sm:$0xff] %v5377_v0  ;;  %v5379_v9 = vmul.f32 0.2, %v8217_v4  ;;  %8238 = vlog2.f32 %v1038_v57 }
 0x40d   : > { %v8221_v12 = vpop.eup %8220  ;;  %5922 = vst [vmem:[%s9837_s20 + $0x9d8] sm:$0xff] %v5378_v5  ;;  %v5380_v13 = vmul.f32 0.2, %v8219_v8  ;;  %8240 = vlog2.f32 %v1039_v61  ;;  %v501_v61 = vld [vmem:[%s9790_s5 + $0xa80] sm:$0xff] }
 0x40e   : > { %v8223_v16 = vpop.eup %8222  ;;  %5923 = vst [vmem:[%s9837_s20 + $0x9e0] sm:$0xff] %v5379_v9  ;;  %v5381_v17 = vmul.f32 0.2, %v8221_v12  ;;  %8242 = vlog2.f32 %v1040_v2  ;;  %v502_v2 = vld [vmem:[%s9790_s5 + $0xa88] sm:$0xff]  ;;  %v1047_v9 = vmul.f32 %v9797_v1, %v501_v61 }
 0x40f   : > { %v8225_v19 = vpop.eup %8224  ;;  %5924 = vst [vmem:[%s9837_s20 + $0x9e8] sm:$0xff] %v5380_v13  ;;  %v2982_v20 = vmul.f32 0.6931472, %v8223_v16  ;;  %8244 = vlog2.f32 %v1041_v6  ;;  %v503_v6 = vld [vmem:[%s9790_s5 + $0xa90] sm:$0xff]  ;;  %v1048_v13 = vmul.f32 %v9797_v1, %v502_v2 }
 0x410   : > { %v8227_v22 = vpop.eup %8226  ;;  %5925 = vst [vmem:[%s9837_s20 + $0x9f0] sm:$0xff] %v5381_v17  ;;  %v2984_v23 = vmul.f32 0.6931472, %v8225_v19  ;;  %8246 = vlog2.f32 %v1042_v10  ;;  %v504_v10 = vld [vmem:[%s9790_s5 + $0xa98] sm:$0xff]  ;;  %v1049_v16 = vmul.f32 %v9797_v1, %v503_v6 }
 0x411   : > { %v8229_v25 = vpop.eup %8228  ;;  %v3750_v26 = vmul.f32 0.6, %v2982_v20  ;;  %v2986_v27 = vmul.f32 0.6931472, %v8227_v22  ;;  %8248 = vlog2.f32 %v1043_v14  ;;  %v1050_v19 = vmul.f32 %v9797_v1, %v504_v10 }
 0x412   : > { %v8231_v28 = vpop.eup %8230  ;;  %v3751_v29 = vmul.f32 0.6, %v2984_v23  ;;  %v2988_v30 = vmul.f32 0.6931472, %v8229_v25  ;;  %8250 = vlog2.f32 %v1044_v18 }
 0x413   : > { %v8233_v31 = vpop.eup %8232  ;;  %v4613_v32 = vmul.f32 1.442695, %v3750_v26  ;;  %v3752_v33 = vmul.f32 0.6, %v2986_v27  ;;  %8252 = vlog2.f32 %v1045_v21  ;;  %v1902_v39 = vmul.f32 0.6931472, %v8231_v28 }
 0x414   : > { %v8235_v34 = vpop.eup %8234  ;;  %v4615_v35 = vmul.f32 1.442695, %v3751_v29  ;;  %v3753_v36 = vmul.f32 0.6, %v2988_v30  ;;  %8254 = vlog2.f32 %v1046_v24  ;;  %v1904_v42 = vmul.f32 0.6931472, %v8233_v31 }
 0x415   : > { %v8237_v37 = vpop.eup %8236  ;;  %8256 = vpow2.f32 %v4613_v32  ;;  %v4617_v38 = vmul.f32 1.442695, %v3752_v33  ;;  %v1906_v44 = vmul.f32 0.6931472, %v8235_v34 }
 0x416   : > { %v8239_v40 = vpop.eup %8238  ;;  %8258 = vpow2.f32 %v4615_v35  ;;  %v4619_v41 = vmul.f32 1.442695, %v3753_v36  ;;  %v1908_v46 = vmul.f32 0.6931472, %v8237_v37 }
 0x417   : > { %v8241_v43 = vpop.eup %8240  ;;  %8260 = vpow2.f32 %v4617_v38  ;;  %v1910_v48 = vmul.f32 0.6931472, %v8239_v40 }
 0x418   : > { %v8243_v45 = vpop.eup %8242  ;;  %8262 = vpow2.f32 %v4619_v41  ;;  %v1912_v50 = vmul.f32 0.6931472, %v8241_v43 }
 0x419   : > { %v8245_v47 = vpop.eup %8244  ;;  %8264 = vlog2.f32 %v1902_v39  ;;  %v1914_v52 = vmul.f32 0.6931472, %v8243_v45 }
 0x41a   : > { %v8247_v49 = vpop.eup %8246  ;;  %8266 = vlog2.f32 %v1904_v42  ;;  %v1916_v54 = vmul.f32 0.6931472, %v8245_v47 }
 0x41b   : > { %v8249_v51 = vpop.eup %8248  ;;  %8268 = vlog2.f32 %v1906_v44  ;;  %v1918_v56 = vmul.f32 0.6931472, %v8247_v49 }
 0x41c   : > { %v8251_v53 = vpop.eup %8250  ;;  %8270 = vlog2.f32 %v1908_v46  ;;  %v1920_v58 = vmul.f32 0.6931472, %v8249_v51 }
 0x41d   : > { %v8253_v55 = vpop.eup %8252  ;;  %8272 = vlog2.f32 %v1910_v48  ;;  %v1922_v60 = vmul.f32 0.6931472, %v8251_v53 }
 0x41e   : > { %v8255_v57 = vpop.eup %8254  ;;  %8274 = vlog2.f32 %v1912_v50  ;;  %v1924_v0 = vmul.f32 0.6931472, %v8253_v55 }
 0x41f   : > { %v8257_v59 = vpop.eup %8256  ;;  %8276 = vlog2.f32 %v1914_v52  ;;  %v1926_v5 = vmul.f32 0.6931472, %v8255_v57 }
 0x420   : > { %v8259_v62 = vpop.eup %8258  ;;  %v5382_v63 = vmul.f32 0.2, %v8257_v59  ;;  %8278 = vlog2.f32 %v1916_v54 }
 0x421   : > { %v8261_v3 = vpop.eup %8260  ;;  %v5383_v4 = vmul.f32 0.2, %v8259_v62  ;;  %8280 = vlog2.f32 %v1918_v56 }
 0x422   : > { %v8263_v7 = vpop.eup %8262  ;;  %5926 = vst [vmem:[%s9837_s20 + $0x9f8] sm:$0xff] %v5382_v63  ;;  %v5384_v8 = vmul.f32 0.2, %v8261_v3  ;;  %8282 = vlog2.f32 %v1920_v58 }
 0x423   : > { %v8265_v11 = vpop.eup %8264  ;;  %5927 = vst [vmem:[%s9837_s20 + $0xa00] sm:$0xff] %v5383_v4  ;;  %v5385_v12 = vmul.f32 0.2, %v8263_v7  ;;  %8284 = vlog2.f32 %v1922_v60 }
 0x424   : > { %v8267_v14 = vpop.eup %8266  ;;  %5928 = vst [vmem:[%s9837_s20 + $0xa08] sm:$0xff] %v5384_v8  ;;  %v2990_v15 = vmul.f32 0.6931472, %v8265_v11  ;;  %8286 = vlog2.f32 %v1924_v0  ;;  %v505_v11 = vld [vmem:[%s9790_s5 + $0xaa0] sm:$0xff] }
 0x425   : > { %v8269_v17 = vpop.eup %8268  ;;  %5929 = vst [vmem:[%s9837_s20 + $0xa10] sm:$0xff] %v5385_v12  ;;  %v2992_v18 = vmul.f32 0.6931472, %v8267_v14  ;;  %8288 = vlog2.f32 %v1926_v5 }
 0x426   : > { %v8271_v20 = vpop.eup %8270  ;;  %v3754_v21 = vmul.f32 0.6, %v2990_v15  ;;  %v2994_v22 = vmul.f32 0.6931472, %v8269_v17  ;;  %8290 = vlog2.f32 %v1047_v9  ;;  %v506_v15 = vld [vmem:[%s9790_s5 + $0xaa8] sm:$0xff] }
 0x427   : > { %v8273_v23 = vpop.eup %8272  ;;  %v3755_v24 = vmul.f32 0.6, %v2992_v18  ;;  %v2996_v25 = vmul.f32 0.6931472, %v8271_v20  ;;  %8292 = vlog2.f32 %v1048_v13 }
 0x428   : > { %v8275_v26 = vpop.eup %8274  ;;  %v4621_v27 = vmul.f32 1.442695, %v3754_v21  ;;  %v3756_v28 = vmul.f32 0.6, %v2994_v22  ;;  %v2998_v29 = vmul.f32 0.6931472, %v8273_v23  ;;  %8294 = vlog2.f32 %v1049_v16 }
 0x429   : > { %v8277_v30 = vpop.eup %8276  ;;  %v4623_v31 = vmul.f32 1.442695, %v3755_v24  ;;  %v3757_v32 = vmul.f32 0.6, %v2996_v25  ;;  %v3000_v33 = vmul.f32 0.6931472, %v8275_v26  ;;  %8296 = vlog2.f32 %v1050_v19 }
 0x42a   : > { %v8279_v34 = vpop.eup %8278  ;;  %8298 = vpow2.f32 %v4621_v27  ;;  %v4625_v35 = vmul.f32 1.442695, %v3756_v28  ;;  %v3758_v36 = vmul.f32 0.6, %v2998_v29  ;;  %v3002_v37 = vmul.f32 0.6931472, %v8277_v30 }
 0x42b   : > { %v8281_v38 = vpop.eup %8280  ;;  %8300 = vpow2.f32 %v4623_v31  ;;  %v4627_v39 = vmul.f32 1.442695, %v3757_v32  ;;  %v3759_v40 = vmul.f32 0.6, %v3000_v33  ;;  %v3004_v41 = vmul.f32 0.6931472, %v8279_v34 }
 0x42c   : > { %v8283_v42 = vpop.eup %8282  ;;  %8302 = vpow2.f32 %v4625_v35  ;;  %v4629_v43 = vmul.f32 1.442695, %v3758_v36  ;;  %v3760_v44 = vmul.f32 0.6, %v3002_v37  ;;  %v3006_v45 = vmul.f32 0.6931472, %v8281_v38 }
 0x42d   : > { %v8285_v46 = vpop.eup %8284  ;;  %8304 = vpow2.f32 %v4627_v39  ;;  %v4631_v47 = vmul.f32 1.442695, %v3759_v40  ;;  %v3761_v48 = vmul.f32 0.6, %v3004_v41  ;;  %v3008_v49 = vmul.f32 0.6931472, %v8283_v42 }
 0x42e   : > { %v8287_v50 = vpop.eup %8286  ;;  %8306 = vpow2.f32 %v4629_v43  ;;  %v4633_v51 = vmul.f32 1.442695, %v3760_v44  ;;  %v3762_v52 = vmul.f32 0.6, %v3006_v45  ;;  %v3010_v53 = vmul.f32 0.6931472, %v8285_v46 }
 0x42f   : > { %v8289_v54 = vpop.eup %8288  ;;  %8308 = vpow2.f32 %v4631_v47  ;;  %v4635_v55 = vmul.f32 1.442695, %v3761_v48  ;;  %v3763_v56 = vmul.f32 0.6, %v3008_v49  ;;  %v3012_v57 = vmul.f32 0.6931472, %v8287_v50 }
 0x430   : > { %v8291_v58 = vpop.eup %8290  ;;  %8310 = vpow2.f32 %v4633_v51  ;;  %v4637_v59 = vmul.f32 1.442695, %v3762_v52  ;;  %v3764_v60 = vmul.f32 0.6, %v3010_v53  ;;  %v3014_v61 = vmul.f32 0.6931472, %v8289_v54 }
 0x431   : > { %v8293_v62 = vpop.eup %8292  ;;  %8312 = vpow2.f32 %v4635_v55  ;;  %v4639_v63 = vmul.f32 1.442695, %v3763_v56  ;;  %v3765_v0 = vmul.f32 0.6, %v3012_v57  ;;  %v1928_v7 = vmul.f32 0.6931472, %v8291_v58 }
 0x432   : > { %v8295_v2 = vpop.eup %8294  ;;  %8314 = vpow2.f32 %v4637_v59  ;;  %v4641_v3 = vmul.f32 1.442695, %v3764_v60  ;;  %v3766_v4 = vmul.f32 0.6, %v3014_v61  ;;  %v1930_v10 = vmul.f32 0.6931472, %v8293_v62 }
 0x433   : > { %v8297_v5 = vpop.eup %8296  ;;  %8316 = vpow2.f32 %v4639_v63  ;;  %v4643_v6 = vmul.f32 1.442695, %v3765_v0  ;;  %v1932_v14 = vmul.f32 0.6931472, %v8295_v2  ;;  %v507_v19 = vld [vmem:[%s9790_s5 + $0xab0] sm:$0xff]  ;;  %v1051_v22 = vmul.f32 %v9797_v1, %v505_v11  ;;  %v508_v23 = vld [vmem:[%s9790_s5 + $0xab8] sm:$0xff] }
 0x434   : > { %v8299_v8 = vpop.eup %8298  ;;  %8318 = vpow2.f32 %v4641_v3  ;;  %v4645_v9 = vmul.f32 1.442695, %v3766_v4  ;;  %v1934_v18 = vmul.f32 0.6931472, %v8297_v5  ;;  %v1052_v26 = vmul.f32 %v9797_v1, %v506_v15  ;;  %v509_v27 = vld [vmem:[%s9790_s5 + $0xac0] sm:$0xff]  ;;  %v510_v31 = vld [vmem:[%s9790_s5 + $0xac8] sm:$0xff] }
 0x435   : > { %v8301_v12 = vpop.eup %8300  ;;  %v5386_v13 = vmul.f32 0.2, %v8299_v8  ;;  %8320 = vpow2.f32 %v4643_v6  ;;  %v1053_v30 = vmul.f32 %v9797_v1, %v507_v19  ;;  %v1054_v34 = vmul.f32 %v9797_v1, %v508_v23  ;;  %v511_v35 = vld [vmem:[%s9790_s5 + $0xad0] sm:$0xff]  ;;  %v512_v39 = vld [vmem:[%s9790_s5 + $0xad8] sm:$0xff]  ;;  %v513_v43 = vld [vmem:[%s9790_s5 + $0xae0] sm:$0xff] }
 0x436   : > { %v8303_v16 = vpop.eup %8302  ;;  %v5387_v17 = vmul.f32 0.2, %v8301_v12  ;;  %8322 = vpow2.f32 %v4645_v9  ;;  %v1055_v38 = vmul.f32 %v9797_v1, %v509_v27  ;;  %v1056_v42 = vmul.f32 %v9797_v1, %v510_v31  ;;  %v514_v47 = vld [vmem:[%s9790_s5 + $0xae8] sm:$0xff]  ;;  %v515_v51 = vld [vmem:[%s9790_s5 + $0xaf0] sm:$0xff]  ;;  %v516_v55 = vld [vmem:[%s9790_s5 + $0xaf8] sm:$0xff] }
 0x437   : > { %v8305_v20 = vpop.eup %8304  ;;  %5930 = vst [vmem:[%s9837_s20 + $0xa18] sm:$0xff] %v5386_v13  ;;  %v5388_v21 = vmul.f32 0.2, %v8303_v16  ;;  %8324 = vlog2.f32 %v1928_v7  ;;  %v1057_v46 = vmul.f32 %v9797_v1, %v511_v35  ;;  %v1058_v50 = vmul.f32 %v9797_v1, %v512_v39  ;;  %v517_v59 = vld [vmem:[%s9790_s5 + $0xb00] sm:$0xff] }
 0x438   : > { %v8307_v24 = vpop.eup %8306  ;;  %5931 = vst [vmem:[%s9837_s20 + $0xa20] sm:$0xff] %v5387_v17  ;;  %v5389_v25 = vmul.f32 0.2, %v8305_v20  ;;  %8326 = vlog2.f32 %v1930_v10  ;;  %v1059_v54 = vmul.f32 %v9797_v1, %v513_v43  ;;  %v1060_v58 = vmul.f32 %v9797_v1, %v514_v47 }
 0x439   : > { %v8309_v28 = vpop.eup %8308  ;;  %5932 = vst [vmem:[%s9837_s20 + $0xa28] sm:$0xff] %v5388_v21  ;;  %v5390_v29 = vmul.f32 0.2, %v8307_v24  ;;  %8328 = vlog2.f32 %v1932_v14  ;;  %v1061_v62 = vmul.f32 %v9797_v1, %v515_v51  ;;  %v1062_v2 = vmul.f32 %v9797_v1, %v516_v55 }
 0x43a   : > { %v8311_v32 = vpop.eup %8310  ;;  %5933 = vst [vmem:[%s9837_s20 + $0xa30] sm:$0xff] %v5389_v25  ;;  %v5391_v33 = vmul.f32 0.2, %v8309_v28  ;;  %8330 = vlog2.f32 %v1934_v18  ;;  %v1063_v5 = vmul.f32 %v9797_v1, %v517_v59 }
 0x43b   : > { %v8313_v36 = vpop.eup %8312  ;;  %5934 = vst [vmem:[%s9837_s20 + $0xa38] sm:$0xff] %v5390_v29  ;;  %v5392_v37 = vmul.f32 0.2, %v8311_v32  ;;  %8332 = vlog2.f32 %v1051_v22 }
 0x43c   : > { %v8315_v40 = vpop.eup %8314  ;;  %5935 = vst [vmem:[%s9837_s20 + $0xa40] sm:$0xff] %v5391_v33  ;;  %v5393_v41 = vmul.f32 0.2, %v8313_v36  ;;  %8334 = vlog2.f32 %v1052_v26 }
 0x43d   : > { %v8317_v44 = vpop.eup %8316  ;;  %5936 = vst [vmem:[%s9837_s20 + $0xa48] sm:$0xff] %v5392_v37  ;;  %v5394_v45 = vmul.f32 0.2, %v8315_v40  ;;  %8336 = vlog2.f32 %v1053_v30 }
 0x43e   : > { %v8319_v48 = vpop.eup %8318  ;;  %5937 = vst [vmem:[%s9837_s20 + $0xa50] sm:$0xff] %v5393_v41  ;;  %v5395_v49 = vmul.f32 0.2, %v8317_v44  ;;  %8338 = vlog2.f32 %v1054_v34 }
 0x43f   : > { %v8321_v52 = vpop.eup %8320  ;;  %5938 = vst [vmem:[%s9837_s20 + $0xa58] sm:$0xff] %v5394_v45  ;;  %v5396_v53 = vmul.f32 0.2, %v8319_v48  ;;  %8340 = vlog2.f32 %v1055_v38 }
 0x440   : > { %v8323_v56 = vpop.eup %8322  ;;  %5939 = vst [vmem:[%s9837_s20 + $0xa60] sm:$0xff] %v5395_v49  ;;  %v5397_v57 = vmul.f32 0.2, %v8321_v52  ;;  %8342 = vlog2.f32 %v1056_v42  ;;  %v518_v42 = vld [vmem:[%s9790_s5 + $0xb08] sm:$0xff] }
 0x441   : > { %v8325_v60 = vpop.eup %8324  ;;  %5940 = vst [vmem:[%s9837_s20 + $0xa68] sm:$0xff] %v5396_v53  ;;  %v5398_v61 = vmul.f32 0.2, %v8323_v56  ;;  %8344 = vlog2.f32 %v1057_v46  ;;  %v519_v46 = vld [vmem:[%s9790_s5 + $0xb10] sm:$0xff]  ;;  %v1064_v53 = vmul.f32 %v9797_v1, %v518_v42 }
 0x442   : > { %v8327_v63 = vpop.eup %8326  ;;  %5941 = vst [vmem:[%s9837_s20 + $0xa70] sm:$0xff] %v5397_v57  ;;  %v3016_v0 = vmul.f32 0.6931472, %v8325_v60  ;;  %8346 = vlog2.f32 %v1058_v50  ;;  %v520_v50 = vld [vmem:[%s9790_s5 + $0xb18] sm:$0xff]  ;;  %v1065_v57 = vmul.f32 %v9797_v1, %v519_v46 }
 0x443   : > { %v8329_v3 = vpop.eup %8328  ;;  %5942 = vst [vmem:[%s9837_s20 + $0xa78] sm:$0xff] %v5398_v61  ;;  %v3018_v4 = vmul.f32 0.6931472, %v8327_v63  ;;  %8348 = vlog2.f32 %v1059_v54  ;;  %v521_v54 = vld [vmem:[%s9790_s5 + $0xb20] sm:$0xff]  ;;  %v1066_v60 = vmul.f32 %v9797_v1, %v520_v50 }
 0x444   : > { %v8331_v6 = vpop.eup %8330  ;;  %v3767_v7 = vmul.f32 0.6, %v3016_v0  ;;  %v3020_v8 = vmul.f32 0.6931472, %v8329_v3  ;;  %8350 = vlog2.f32 %v1060_v58  ;;  %v1067_v63 = vmul.f32 %v9797_v1, %v521_v54 }
 0x445   : > { %v8333_v9 = vpop.eup %8332  ;;  %v3768_v10 = vmul.f32 0.6, %v3018_v4  ;;  %v3022_v11 = vmul.f32 0.6931472, %v8331_v6  ;;  %8352 = vlog2.f32 %v1061_v62 }
 0x446   : > { %v8335_v12 = vpop.eup %8334  ;;  %v4647_v13 = vmul.f32 1.442695, %v3767_v7  ;;  %v3769_v14 = vmul.f32 0.6, %v3020_v8  ;;  %8354 = vlog2.f32 %v1062_v2  ;;  %v1936_v20 = vmul.f32 0.6931472, %v8333_v9 }
 0x447   : > { %v8337_v15 = vpop.eup %8336  ;;  %v4649_v16 = vmul.f32 1.442695, %v3768_v10  ;;  %v3770_v17 = vmul.f32 0.6, %v3022_v11  ;;  %8356 = vlog2.f32 %v1063_v5  ;;  %v1938_v23 = vmul.f32 0.6931472, %v8335_v12 }
 0x448   : > { %v8339_v18 = vpop.eup %8338  ;;  %8358 = vpow2.f32 %v4647_v13  ;;  %v4651_v19 = vmul.f32 1.442695, %v3769_v14  ;;  %v1940_v25 = vmul.f32 0.6931472, %v8337_v15 }
 0x449   : > { %v8341_v21 = vpop.eup %8340  ;;  %8360 = vpow2.f32 %v4649_v16  ;;  %v4653_v22 = vmul.f32 1.442695, %v3770_v17  ;;  %v1942_v27 = vmul.f32 0.6931472, %v8339_v18 }
 0x44a   : > { %v8343_v24 = vpop.eup %8342  ;;  %8362 = vpow2.f32 %v4651_v19  ;;  %v1944_v29 = vmul.f32 0.6931472, %v8341_v21 }
 0x44b   : > { %v8345_v26 = vpop.eup %8344  ;;  %8364 = vpow2.f32 %v4653_v22  ;;  %v1946_v31 = vmul.f32 0.6931472, %v8343_v24 }
 0x44c   : > { %v8347_v28 = vpop.eup %8346  ;;  %8366 = vlog2.f32 %v1936_v20  ;;  %v1948_v33 = vmul.f32 0.6931472, %v8345_v26 }
 0x44d   : > { %v8349_v30 = vpop.eup %8348  ;;  %8368 = vlog2.f32 %v1938_v23  ;;  %v1950_v35 = vmul.f32 0.6931472, %v8347_v28 }
 0x44e   : > { %v8351_v32 = vpop.eup %8350  ;;  %8370 = vlog2.f32 %v1940_v25  ;;  %v1952_v37 = vmul.f32 0.6931472, %v8349_v30 }
 0x44f   : > { %v8353_v34 = vpop.eup %8352  ;;  %8372 = vlog2.f32 %v1942_v27  ;;  %v1954_v39 = vmul.f32 0.6931472, %v8351_v32 }
 0x450   : > { %v8355_v36 = vpop.eup %8354  ;;  %8374 = vlog2.f32 %v1944_v29  ;;  %v1956_v41 = vmul.f32 0.6931472, %v8353_v34 }
 0x451   : > { %v8357_v38 = vpop.eup %8356  ;;  %8376 = vlog2.f32 %v1946_v31  ;;  %v1958_v45 = vmul.f32 0.6931472, %v8355_v36 }
 0x452   : > { %v8359_v40 = vpop.eup %8358  ;;  %8378 = vlog2.f32 %v1948_v33  ;;  %v1960_v49 = vmul.f32 0.6931472, %v8357_v38 }
 0x453   : > { %v8361_v43 = vpop.eup %8360  ;;  %v5399_v44 = vmul.f32 0.2, %v8359_v40  ;;  %8380 = vlog2.f32 %v1950_v35 }
 0x454   : > { %v8363_v47 = vpop.eup %8362  ;;  %v5400_v48 = vmul.f32 0.2, %v8361_v43  ;;  %8382 = vlog2.f32 %v1952_v37 }
 0x455   : > { %v8365_v51 = vpop.eup %8364  ;;  %5943 = vst [vmem:[%s9837_s20 + $0xa80] sm:$0xff] %v5399_v44  ;;  %v5401_v52 = vmul.f32 0.2, %v8363_v47  ;;  %8384 = vlog2.f32 %v1954_v39 }
 0x456   : > { %v8367_v55 = vpop.eup %8366  ;;  %5944 = vst [vmem:[%s9837_s20 + $0xa88] sm:$0xff] %v5400_v48  ;;  %v5402_v56 = vmul.f32 0.2, %v8365_v51  ;;  %8386 = vlog2.f32 %v1956_v41 }
 0x457   : > { %v8369_v58 = vpop.eup %8368  ;;  %5945 = vst [vmem:[%s9837_s20 + $0xa90] sm:$0xff] %v5401_v52  ;;  %v3024_v59 = vmul.f32 0.6931472, %v8367_v55  ;;  %8388 = vlog2.f32 %v1958_v45  ;;  %v522_v55 = vld [vmem:[%s9790_s5 + $0xb28] sm:$0xff] }
 0x458   : > { %v8371_v61 = vpop.eup %8370  ;;  %5946 = vst [vmem:[%s9837_s20 + $0xa98] sm:$0xff] %v5402_v56  ;;  %v3026_v62 = vmul.f32 0.6931472, %v8369_v58  ;;  %8390 = vlog2.f32 %v1960_v49 }
 0x459   : > { %v8373_v0 = vpop.eup %8372  ;;  %v3771_v2 = vmul.f32 0.6, %v3024_v59  ;;  %v3028_v3 = vmul.f32 0.6931472, %v8371_v61  ;;  %8392 = vlog2.f32 %v1064_v53  ;;  %v523_v59 = vld [vmem:[%s9790_s5 + $0xb30] sm:$0xff] }
 0x45a   : > { %v8375_v4 = vpop.eup %8374  ;;  %v3772_v5 = vmul.f32 0.6, %v3026_v62  ;;  %v3030_v6 = vmul.f32 0.6931472, %v8373_v0  ;;  %8394 = vlog2.f32 %v1065_v57 }
 0x45b   : > { %v8377_v7 = vpop.eup %8376  ;;  %v4655_v8 = vmul.f32 1.442695, %v3771_v2  ;;  %v3773_v9 = vmul.f32 0.6, %v3028_v3  ;;  %v3032_v10 = vmul.f32 0.6931472, %v8375_v4  ;;  %8396 = vlog2.f32 %v1066_v60 }
 0x45c   : > { %v8379_v11 = vpop.eup %8378  ;;  %v4657_v12 = vmul.f32 1.442695, %v3772_v5  ;;  %v3774_v13 = vmul.f32 0.6, %v3030_v6  ;;  %v3034_v14 = vmul.f32 0.6931472, %v8377_v7  ;;  %8398 = vlog2.f32 %v1067_v63 }
 0x45d   : > { %v8381_v15 = vpop.eup %8380  ;;  %8400 = vpow2.f32 %v4655_v8  ;;  %v4659_v16 = vmul.f32 1.442695, %v3773_v9  ;;  %v3775_v17 = vmul.f32 0.6, %v3032_v10  ;;  %v3036_v18 = vmul.f32 0.6931472, %v8379_v11 }
 0x45e   : > { %v8383_v19 = vpop.eup %8382  ;;  %8402 = vpow2.f32 %v4657_v12  ;;  %v4661_v20 = vmul.f32 1.442695, %v3774_v13  ;;  %v3776_v21 = vmul.f32 0.6, %v3034_v14  ;;  %v3038_v22 = vmul.f32 0.6931472, %v8381_v15 }
 0x45f   : > { %v8385_v23 = vpop.eup %8384  ;;  %8404 = vpow2.f32 %v4659_v16  ;;  %v4663_v24 = vmul.f32 1.442695, %v3775_v17  ;;  %v3777_v25 = vmul.f32 0.6, %v3036_v18  ;;  %v3040_v26 = vmul.f32 0.6931472, %v8383_v19 }
 0x460   : > { %v8387_v27 = vpop.eup %8386  ;;  %8406 = vpow2.f32 %v4661_v20  ;;  %v4665_v28 = vmul.f32 1.442695, %v3776_v21  ;;  %v3778_v29 = vmul.f32 0.6, %v3038_v22  ;;  %v3042_v30 = vmul.f32 0.6931472, %v8385_v23 }
 0x461   : > { %v8389_v31 = vpop.eup %8388  ;;  %8408 = vpow2.f32 %v4663_v24  ;;  %v4667_v32 = vmul.f32 1.442695, %v3777_v25  ;;  %v3779_v33 = vmul.f32 0.6, %v3040_v26  ;;  %v3044_v34 = vmul.f32 0.6931472, %v8387_v27 }
 0x462   : > { %v8391_v35 = vpop.eup %8390  ;;  %8410 = vpow2.f32 %v4665_v28  ;;  %v4669_v36 = vmul.f32 1.442695, %v3778_v29  ;;  %v3780_v37 = vmul.f32 0.6, %v3042_v30  ;;  %v3046_v38 = vmul.f32 0.6931472, %v8389_v31 }
 0x463   : > { %v8393_v39 = vpop.eup %8392  ;;  %8412 = vpow2.f32 %v4667_v32  ;;  %v4671_v40 = vmul.f32 1.442695, %v3779_v33  ;;  %v3781_v41 = vmul.f32 0.6, %v3044_v34  ;;  %v3048_v42 = vmul.f32 0.6931472, %v8391_v35 }
 0x464   : > { %v8395_v43 = vpop.eup %8394  ;;  %8414 = vpow2.f32 %v4669_v36  ;;  %v4673_v44 = vmul.f32 1.442695, %v3780_v37  ;;  %v3782_v45 = vmul.f32 0.6, %v3046_v38  ;;  %v1962_v51 = vmul.f32 0.6931472, %v8393_v39 }
 0x465   : > { %v8397_v46 = vpop.eup %8396  ;;  %8416 = vpow2.f32 %v4671_v40  ;;  %v4675_v47 = vmul.f32 1.442695, %v3781_v41  ;;  %v3783_v48 = vmul.f32 0.6, %v3048_v42  ;;  %v1964_v54 = vmul.f32 0.6931472, %v8395_v43 }
 0x466   : > { %v8399_v49 = vpop.eup %8398  ;;  %8418 = vpow2.f32 %v4673_v44  ;;  %v4677_v50 = vmul.f32 1.442695, %v3782_v45  ;;  %v1966_v58 = vmul.f32 0.6931472, %v8397_v46  ;;  %v524_v63 = vld [vmem:[%s9790_s5 + $0xb38] sm:$0xff]  ;;  %v1068_v3 = vmul.f32 %v9797_v1, %v522_v55  ;;  %v525_v4 = vld [vmem:[%s9790_s5 + $0xb40] sm:$0xff] }
 0x467   : > { %v8401_v52 = vpop.eup %8400  ;;  %8420 = vpow2.f32 %v4675_v47  ;;  %v4679_v53 = vmul.f32 1.442695, %v3783_v48  ;;  %v1968_v62 = vmul.f32 0.6931472, %v8399_v49  ;;  %v1069_v7 = vmul.f32 %v9797_v1, %v523_v59  ;;  %v526_v8 = vld [vmem:[%s9790_s5 + $0xb48] sm:$0xff]  ;;  %v527_v12 = vld [vmem:[%s9790_s5 + $0xb50] sm:$0xff] }
 0x468   : > { %v8403_v56 = vpop.eup %8402  ;;  %v5403_v57 = vmul.f32 0.2, %v8401_v52  ;;  %8422 = vpow2.f32 %v4677_v50  ;;  %v1070_v11 = vmul.f32 %v9797_v1, %v524_v63  ;;  %v1071_v15 = vmul.f32 %v9797_v1, %v525_v4  ;;  %v528_v16 = vld [vmem:[%s9790_s5 + $0xb58] sm:$0xff]  ;;  %v529_v20 = vld [vmem:[%s9790_s5 + $0xb60] sm:$0xff]  ;;  %v530_v24 = vld [vmem:[%s9790_s5 + $0xb68] sm:$0xff] }
 0x469   : > { %v8405_v60 = vpop.eup %8404  ;;  %v5404_v61 = vmul.f32 0.2, %v8403_v56  ;;  %8424 = vpow2.f32 %v4679_v53  ;;  %v1072_v19 = vmul.f32 %v9797_v1, %v526_v8  ;;  %v1073_v23 = vmul.f32 %v9797_v1, %v527_v12  ;;  %v531_v28 = vld [vmem:[%s9790_s5 + $0xb70] sm:$0xff]  ;;  %v532_v32 = vld [vmem:[%s9790_s5 + $0xb78] sm:$0xff]  ;;  %v533_v36 = vld [vmem:[%s9790_s5 + $0xb80] sm:$0xff] }
 0x46a   : > { %v8407_v0 = vpop.eup %8406  ;;  %5947 = vst [vmem:[%s9837_s20 + $0xaa0] sm:$0xff] %v5403_v57  ;;  %v5405_v2 = vmul.f32 0.2, %v8405_v60  ;;  %8426 = vlog2.f32 %v1962_v51  ;;  %v1074_v27 = vmul.f32 %v9797_v1, %v528_v16  ;;  %v1075_v31 = vmul.f32 %v9797_v1, %v529_v20  ;;  %v534_v40 = vld [vmem:[%s9790_s5 + $0xb88] sm:$0xff] }
 0x46b   : > { %v8409_v5 = vpop.eup %8408  ;;  %5948 = vst [vmem:[%s9837_s20 + $0xaa8] sm:$0xff] %v5404_v61  ;;  %v5406_v6 = vmul.f32 0.2, %v8407_v0  ;;  %8428 = vlog2.f32 %v1964_v54  ;;  %v1076_v35 = vmul.f32 %v9797_v1, %v530_v24  ;;  %v1077_v39 = vmul.f32 %v9797_v1, %v531_v28 }
 0x46c   : > { %v8411_v9 = vpop.eup %8410  ;;  %5949 = vst [vmem:[%s9837_s20 + $0xab0] sm:$0xff] %v5405_v2  ;;  %v5407_v10 = vmul.f32 0.2, %v8409_v5  ;;  %8430 = vlog2.f32 %v1966_v58  ;;  %v1078_v43 = vmul.f32 %v9797_v1, %v532_v32  ;;  %v1079_v46 = vmul.f32 %v9797_v1, %v533_v36 }
 0x46d   : > { %v8413_v13 = vpop.eup %8412  ;;  %5950 = vst [vmem:[%s9837_s20 + $0xab8] sm:$0xff] %v5406_v6  ;;  %v5408_v14 = vmul.f32 0.2, %v8411_v9  ;;  %8432 = vlog2.f32 %v1968_v62  ;;  %v1080_v49 = vmul.f32 %v9797_v1, %v534_v40 }
 0x46e   : > { %v8415_v17 = vpop.eup %8414  ;;  %5951 = vst [vmem:[%s9837_s20 + $0xac0] sm:$0xff] %v5407_v10  ;;  %v5409_v18 = vmul.f32 0.2, %v8413_v13  ;;  %8434 = vlog2.f32 %v1068_v3 }
 0x46f   : > { %v8417_v21 = vpop.eup %8416  ;;  %5952 = vst [vmem:[%s9837_s20 + $0xac8] sm:$0xff] %v5408_v14  ;;  %v5410_v22 = vmul.f32 0.2, %v8415_v17  ;;  %8436 = vlog2.f32 %v1069_v7 }
 0x470   : > { %v8419_v25 = vpop.eup %8418  ;;  %5953 = vst [vmem:[%s9837_s20 + $0xad0] sm:$0xff] %v5409_v18  ;;  %v5411_v26 = vmul.f32 0.2, %v8417_v21  ;;  %8438 = vlog2.f32 %v1070_v11 }
 0x471   : > { %v8421_v29 = vpop.eup %8420  ;;  %5954 = vst [vmem:[%s9837_s20 + $0xad8] sm:$0xff] %v5410_v22  ;;  %v5412_v30 = vmul.f32 0.2, %v8419_v25  ;;  %8440 = vlog2.f32 %v1071_v15 }
 0x472   : > { %v8423_v33 = vpop.eup %8422  ;;  %5955 = vst [vmem:[%s9837_s20 + $0xae0] sm:$0xff] %v5411_v26  ;;  %v5413_v34 = vmul.f32 0.2, %v8421_v29  ;;  %8442 = vlog2.f32 %v1072_v19 }
 0x473   : > { %v8425_v37 = vpop.eup %8424  ;;  %5956 = vst [vmem:[%s9837_s20 + $0xae8] sm:$0xff] %v5412_v30  ;;  %v5414_v38 = vmul.f32 0.2, %v8423_v33  ;;  %8444 = vlog2.f32 %v1073_v23  ;;  %v535_v23 = vld [vmem:[%s9790_s5 + $0xb90] sm:$0xff] }
 0x474   : > { %v8427_v41 = vpop.eup %8426  ;;  %5957 = vst [vmem:[%s9837_s20 + $0xaf0] sm:$0xff] %v5413_v34  ;;  %v5415_v42 = vmul.f32 0.2, %v8425_v37  ;;  %8446 = vlog2.f32 %v1074_v27  ;;  %v536_v27 = vld [vmem:[%s9790_s5 + $0xb98] sm:$0xff]  ;;  %v1081_v34 = vmul.f32 %v9797_v1, %v535_v23 }
 0x475   : > { %v8429_v44 = vpop.eup %8428  ;;  %5958 = vst [vmem:[%s9837_s20 + $0xaf8] sm:$0xff] %v5414_v38  ;;  %v3050_v45 = vmul.f32 0.6931472, %v8427_v41  ;;  %8448 = vlog2.f32 %v1075_v31  ;;  %v537_v31 = vld [vmem:[%s9790_s5 + $0xba0] sm:$0xff]  ;;  %v1082_v38 = vmul.f32 %v9797_v1, %v536_v27 }
 0x476   : > { %v8431_v47 = vpop.eup %8430  ;;  %5959 = vst [vmem:[%s9837_s20 + $0xb00] sm:$0xff] %v5415_v42  ;;  %v3052_v48 = vmul.f32 0.6931472, %v8429_v44  ;;  %8450 = vlog2.f32 %v1076_v35  ;;  %v538_v35 = vld [vmem:[%s9790_s5 + $0xba8] sm:$0xff]  ;;  %v1083_v41 = vmul.f32 %v9797_v1, %v537_v31 }
 0x477   : > { %v8433_v50 = vpop.eup %8432  ;;  %v3784_v51 = vmul.f32 0.6, %v3050_v45  ;;  %v3054_v52 = vmul.f32 0.6931472, %v8431_v47  ;;  %8452 = vlog2.f32 %v1077_v39  ;;  %v1084_v44 = vmul.f32 %v9797_v1, %v538_v35 }
 0x478   : > { %v8435_v53 = vpop.eup %8434  ;;  %v3785_v54 = vmul.f32 0.6, %v3052_v48  ;;  %v3056_v55 = vmul.f32 0.6931472, %v8433_v50  ;;  %8454 = vlog2.f32 %v1078_v43 }
 0x479   : > { %v8437_v56 = vpop.eup %8436  ;;  %v4681_v57 = vmul.f32 1.442695, %v3784_v51  ;;  %v3786_v58 = vmul.f32 0.6, %v3054_v52  ;;  %8456 = vlog2.f32 %v1079_v46  ;;  %v1970_v0 = vmul.f32 0.6931472, %v8435_v53 }
 0x47a   : > { %v8439_v59 = vpop.eup %8438  ;;  %v4683_v60 = vmul.f32 1.442695, %v3785_v54  ;;  %v3787_v61 = vmul.f32 0.6, %v3056_v55  ;;  %8458 = vlog2.f32 %v1080_v49  ;;  %v1972_v4 = vmul.f32 0.6931472, %v8437_v56 }
 0x47b   : > { %v8441_v62 = vpop.eup %8440  ;;  %8460 = vpow2.f32 %v4681_v57  ;;  %v4685_v63 = vmul.f32 1.442695, %v3786_v58  ;;  %v1974_v6 = vmul.f32 0.6931472, %v8439_v59 }
 0x47c   : > { %v8443_v2 = vpop.eup %8442  ;;  %8462 = vpow2.f32 %v4683_v60  ;;  %v4687_v3 = vmul.f32 1.442695, %v3787_v61  ;;  %v1976_v8 = vmul.f32 0.6931472, %v8441_v62 }
 0x47d   : > { %v8445_v5 = vpop.eup %8444  ;;  %8464 = vpow2.f32 %v4685_v63  ;;  %v1978_v10 = vmul.f32 0.6931472, %v8443_v2 }
 0x47e   : > { %v8447_v7 = vpop.eup %8446  ;;  %8466 = vpow2.f32 %v4687_v3  ;;  %v1980_v12 = vmul.f32 0.6931472, %v8445_v5 }
 0x47f   : > { %v8449_v9 = vpop.eup %8448  ;;  %8468 = vlog2.f32 %v1970_v0  ;;  %v1982_v14 = vmul.f32 0.6931472, %v8447_v7 }
 0x480   : > { %v8451_v11 = vpop.eup %8450  ;;  %8470 = vlog2.f32 %v1972_v4  ;;  %v1984_v16 = vmul.f32 0.6931472, %v8449_v9 }
 0x481   : > { %v8453_v13 = vpop.eup %8452  ;;  %8472 = vlog2.f32 %v1974_v6  ;;  %v1986_v18 = vmul.f32 0.6931472, %v8451_v11 }
 0x482   : > { %v8455_v15 = vpop.eup %8454  ;;  %8474 = vlog2.f32 %v1976_v8  ;;  %v1988_v20 = vmul.f32 0.6931472, %v8453_v13 }
 0x483   : > { %v8457_v17 = vpop.eup %8456  ;;  %8476 = vlog2.f32 %v1978_v10  ;;  %v1990_v22 = vmul.f32 0.6931472, %v8455_v15 }
 0x484   : > { %v8459_v19 = vpop.eup %8458  ;;  %8478 = vlog2.f32 %v1980_v12  ;;  %v1992_v26 = vmul.f32 0.6931472, %v8457_v17 }
 0x485   : > { %v8461_v21 = vpop.eup %8460  ;;  %8480 = vlog2.f32 %v1982_v14  ;;  %v1994_v30 = vmul.f32 0.6931472, %v8459_v19 }
 0x486   : > { %v8463_v24 = vpop.eup %8462  ;;  %v5416_v25 = vmul.f32 0.2, %v8461_v21  ;;  %8482 = vlog2.f32 %v1984_v16 }
 0x487   : > { %v8465_v28 = vpop.eup %8464  ;;  %v5417_v29 = vmul.f32 0.2, %v8463_v24  ;;  %8484 = vlog2.f32 %v1986_v18 }
 0x488   : > { %v8467_v32 = vpop.eup %8466  ;;  %5960 = vst [vmem:[%s9837_s20 + $0xb08] sm:$0xff] %v5416_v25  ;;  %v5418_v33 = vmul.f32 0.2, %v8465_v28  ;;  %8486 = vlog2.f32 %v1988_v20 }
 0x489   : > { %v8469_v36 = vpop.eup %8468  ;;  %5961 = vst [vmem:[%s9837_s20 + $0xb10] sm:$0xff] %v5417_v29  ;;  %v5419_v37 = vmul.f32 0.2, %v8467_v32  ;;  %8488 = vlog2.f32 %v1990_v22 }
 0x48a   : > { %v8471_v39 = vpop.eup %8470  ;;  %5962 = vst [vmem:[%s9837_s20 + $0xb18] sm:$0xff] %v5418_v33  ;;  %v3058_v40 = vmul.f32 0.6931472, %v8469_v36  ;;  %8490 = vlog2.f32 %v1992_v26  ;;  %v539_v36 = vld [vmem:[%s9790_s5 + $0xbb0] sm:$0xff] }
 0x48b   : > { %v8473_v42 = vpop.eup %8472  ;;  %5963 = vst [vmem:[%s9837_s20 + $0xb20] sm:$0xff] %v5419_v37  ;;  %v3060_v43 = vmul.f32 0.6931472, %v8471_v39  ;;  %8492 = vlog2.f32 %v1994_v30 }
 0x48c   : > { %v8475_v45 = vpop.eup %8474  ;;  %v3788_v46 = vmul.f32 0.6, %v3058_v40  ;;  %v3062_v47 = vmul.f32 0.6931472, %v8473_v42  ;;  %8494 = vlog2.f32 %v1081_v34  ;;  %v540_v40 = vld [vmem:[%s9790_s5 + $0xbb8] sm:$0xff] }
 0x48d   : > { %v8477_v48 = vpop.eup %8476  ;;  %v3789_v49 = vmul.f32 0.6, %v3060_v43  ;;  %v3064_v50 = vmul.f32 0.6931472, %v8475_v45  ;;  %8496 = vlog2.f32 %v1082_v38 }
 0x48e   : > { %v8479_v51 = vpop.eup %8478  ;;  %v4689_v52 = vmul.f32 1.442695, %v3788_v46  ;;  %v3790_v53 = vmul.f32 0.6, %v3062_v47  ;;  %v3066_v54 = vmul.f32 0.6931472, %v8477_v48  ;;  %8498 = vlog2.f32 %v1083_v41 }
 0x48f   : > { %v8481_v55 = vpop.eup %8480  ;;  %v4691_v56 = vmul.f32 1.442695, %v3789_v49  ;;  %v3791_v57 = vmul.f32 0.6, %v3064_v50  ;;  %v3068_v58 = vmul.f32 0.6931472, %v8479_v51  ;;  %8500 = vlog2.f32 %v1084_v44 }
 0x490   : > { %v8483_v59 = vpop.eup %8482  ;;  %8502 = vpow2.f32 %v4689_v52  ;;  %v4693_v60 = vmul.f32 1.442695, %v3790_v53  ;;  %v3792_v61 = vmul.f32 0.6, %v3066_v54  ;;  %v3070_v62 = vmul.f32 0.6931472, %v8481_v55 }
 0x491   : > { %v8485_v63 = vpop.eup %8484  ;;  %8504 = vpow2.f32 %v4691_v56  ;;  %v4695_v0 = vmul.f32 1.442695, %v3791_v57  ;;  %v3793_v2 = vmul.f32 0.6, %v3068_v58  ;;  %v3072_v3 = vmul.f32 0.6931472, %v8483_v59 }
 0x492   : > { %v8487_v4 = vpop.eup %8486  ;;  %8506 = vpow2.f32 %v4693_v60  ;;  %v4697_v5 = vmul.f32 1.442695, %v3792_v61  ;;  %v3794_v6 = vmul.f32 0.6, %v3070_v62  ;;  %v3074_v7 = vmul.f32 0.6931472, %v8485_v63 }
 0x493   : > { %v8489_v8 = vpop.eup %8488  ;;  %8508 = vpow2.f32 %v4695_v0  ;;  %v4699_v9 = vmul.f32 1.442695, %v3793_v2  ;;  %v3795_v10 = vmul.f32 0.6, %v3072_v3  ;;  %v3076_v11 = vmul.f32 0.6931472, %v8487_v4 }
 0x494   : > { %v8491_v12 = vpop.eup %8490  ;;  %8510 = vpow2.f32 %v4697_v5  ;;  %v4701_v13 = vmul.f32 1.442695, %v3794_v6  ;;  %v3796_v14 = vmul.f32 0.6, %v3074_v7  ;;  %v3078_v15 = vmul.f32 0.6931472, %v8489_v8 }
 0x495   : > { %v8493_v16 = vpop.eup %8492  ;;  %8512 = vpow2.f32 %v4699_v9  ;;  %v4703_v17 = vmul.f32 1.442695, %v3795_v10  ;;  %v3797_v18 = vmul.f32 0.6, %v3076_v11  ;;  %v3080_v19 = vmul.f32 0.6931472, %v8491_v12 }
 0x496   : > { %v8495_v20 = vpop.eup %8494  ;;  %8514 = vpow2.f32 %v4701_v13  ;;  %v4705_v21 = vmul.f32 1.442695, %v3796_v14  ;;  %v3798_v22 = vmul.f32 0.6, %v3078_v15  ;;  %v3082_v23 = vmul.f32 0.6931472, %v8493_v16 }
 0x497   : > { %v8497_v24 = vpop.eup %8496  ;;  %8516 = vpow2.f32 %v4703_v17  ;;  %v4707_v25 = vmul.f32 1.442695, %v3797_v18  ;;  %v3799_v26 = vmul.f32 0.6, %v3080_v19  ;;  %v1996_v32 = vmul.f32 0.6931472, %v8495_v20 }
 0x498   : > { %v8499_v27 = vpop.eup %8498  ;;  %8518 = vpow2.f32 %v4705_v21  ;;  %v4709_v28 = vmul.f32 1.442695, %v3798_v22  ;;  %v3800_v29 = vmul.f32 0.6, %v3082_v23  ;;  %v1998_v35 = vmul.f32 0.6931472, %v8497_v24 }
 0x499   : > { %v8501_v30 = vpop.eup %8500  ;;  %8520 = vpow2.f32 %v4707_v25  ;;  %v4711_v31 = vmul.f32 1.442695, %v3799_v26  ;;  %v2000_v39 = vmul.f32 0.6931472, %v8499_v27  ;;  %v541_v44 = vld [vmem:[%s9790_s5 + $0xbc0] sm:$0xff]  ;;  %v1085_v47 = vmul.f32 %v9797_v1, %v539_v36  ;;  %v542_v48 = vld [vmem:[%s9790_s5 + $0xbc8] sm:$0xff] }
 0x49a   : > { %v8503_v33 = vpop.eup %8502  ;;  %8522 = vpow2.f32 %v4709_v28  ;;  %v4713_v34 = vmul.f32 1.442695, %v3800_v29  ;;  %v2002_v43 = vmul.f32 0.6931472, %v8501_v30  ;;  %v1086_v51 = vmul.f32 %v9797_v1, %v540_v40  ;;  %v543_v52 = vld [vmem:[%s9790_s5 + $0xbd0] sm:$0xff]  ;;  %v544_v56 = vld [vmem:[%s9790_s5 + $0xbd8] sm:$0xff] }
 0x49b   : > { %v8505_v37 = vpop.eup %8504  ;;  %v5420_v38 = vmul.f32 0.2, %v8503_v33  ;;  %8524 = vpow2.f32 %v4711_v31  ;;  %v1087_v55 = vmul.f32 %v9797_v1, %v541_v44  ;;  %v1088_v59 = vmul.f32 %v9797_v1, %v542_v48  ;;  %v545_v60 = vld [vmem:[%s9790_s5 + $0xbe0] sm:$0xff]  ;;  %v546_v0 = vld [vmem:[%s9790_s5 + $0xbe8] sm:$0xff]  ;;  %v547_v5 = vld [vmem:[%s9790_s5 + $0xbf0] sm:$0xff] }
 0x49c   : > { %v8507_v41 = vpop.eup %8506  ;;  %v5421_v42 = vmul.f32 0.2, %v8505_v37  ;;  %8526 = vpow2.f32 %v4713_v34  ;;  %v1089_v63 = vmul.f32 %v9797_v1, %v543_v52  ;;  %v1090_v4 = vmul.f32 %v9797_v1, %v544_v56  ;;  %v548_v9 = vld [vmem:[%s9790_s5 + $0xbf8] sm:$0xff]  ;;  %v549_v13 = vld [vmem:[%s9790_s5 + $0xc00] sm:$0xff]  ;;  %v550_v17 = vld [vmem:[%s9790_s5 + $0xc08] sm:$0xff] }
 0x49d   : > { %v8509_v45 = vpop.eup %8508  ;;  %5964 = vst [vmem:[%s9837_s20 + $0xb28] sm:$0xff] %v5420_v38  ;;  %v5422_v46 = vmul.f32 0.2, %v8507_v41  ;;  %8528 = vlog2.f32 %v1996_v32  ;;  %v1091_v8 = vmul.f32 %v9797_v1, %v545_v60  ;;  %v1092_v12 = vmul.f32 %v9797_v1, %v546_v0  ;;  %v551_v21 = vld [vmem:[%s9790_s5 + $0xc10] sm:$0xff] }
 0x49e   : > { %v8511_v49 = vpop.eup %8510  ;;  %5965 = vst [vmem:[%s9837_s20 + $0xb30] sm:$0xff] %v5421_v42  ;;  %v5423_v50 = vmul.f32 0.2, %v8509_v45  ;;  %8530 = vlog2.f32 %v1998_v35  ;;  %v1093_v16 = vmul.f32 %v9797_v1, %v547_v5  ;;  %v1094_v20 = vmul.f32 %v9797_v1, %v548_v9 }
 0x49f   : > { %v8513_v53 = vpop.eup %8512  ;;  %5966 = vst [vmem:[%s9837_s20 + $0xb38] sm:$0xff] %v5422_v46  ;;  %v5424_v54 = vmul.f32 0.2, %v8511_v49  ;;  %8532 = vlog2.f32 %v2000_v39  ;;  %v1095_v24 = vmul.f32 %v9797_v1, %v549_v13  ;;  %v1096_v27 = vmul.f32 %v9797_v1, %v550_v17 }
 0x4a0   : > { %v8515_v57 = vpop.eup %8514  ;;  %5967 = vst [vmem:[%s9837_s20 + $0xb40] sm:$0xff] %v5423_v50  ;;  %v5425_v58 = vmul.f32 0.2, %v8513_v53  ;;  %8534 = vlog2.f32 %v2002_v43  ;;  %v1097_v30 = vmul.f32 %v9797_v1, %v551_v21 }
 0x4a1   : > { %v8517_v61 = vpop.eup %8516  ;;  %5968 = vst [vmem:[%s9837_s20 + $0xb48] sm:$0xff] %v5424_v54  ;;  %v5426_v62 = vmul.f32 0.2, %v8515_v57  ;;  %8536 = vlog2.f32 %v1085_v47 }
 0x4a2   : > { %v8519_v2 = vpop.eup %8518  ;;  %5969 = vst [vmem:[%s9837_s20 + $0xb50] sm:$0xff] %v5425_v58  ;;  %v5427_v3 = vmul.f32 0.2, %v8517_v61  ;;  %8538 = vlog2.f32 %v1086_v51 }
 0x4a3   : > { %v8521_v6 = vpop.eup %8520  ;;  %5970 = vst [vmem:[%s9837_s20 + $0xb58] sm:$0xff] %v5426_v62  ;;  %v5428_v7 = vmul.f32 0.2, %v8519_v2  ;;  %8540 = vlog2.f32 %v1087_v55 }
 0x4a4   : > { %v8523_v10 = vpop.eup %8522  ;;  %5971 = vst [vmem:[%s9837_s20 + $0xb60] sm:$0xff] %v5427_v3  ;;  %v5429_v11 = vmul.f32 0.2, %v8521_v6  ;;  %8542 = vlog2.f32 %v1088_v59 }
 0x4a5   : > { %v8525_v14 = vpop.eup %8524  ;;  %5972 = vst [vmem:[%s9837_s20 + $0xb68] sm:$0xff] %v5428_v7  ;;  %v5430_v15 = vmul.f32 0.2, %v8523_v10  ;;  %8544 = vlog2.f32 %v1089_v63 }
 0x4a6   : > { %v8527_v18 = vpop.eup %8526  ;;  %5973 = vst [vmem:[%s9837_s20 + $0xb70] sm:$0xff] %v5429_v11  ;;  %v5431_v19 = vmul.f32 0.2, %v8525_v14  ;;  %8546 = vlog2.f32 %v1090_v4  ;;  %v552_v4 = vld [vmem:[%s9790_s5 + $0xc18] sm:$0xff] }
 0x4a7   : > { %v8529_v22 = vpop.eup %8528  ;;  %5974 = vst [vmem:[%s9837_s20 + $0xb78] sm:$0xff] %v5430_v15  ;;  %v5432_v23 = vmul.f32 0.2, %v8527_v18  ;;  %8548 = vlog2.f32 %v1091_v8  ;;  %v553_v8 = vld [vmem:[%s9790_s5 + $0xc20] sm:$0xff]  ;;  %v1098_v15 = vmul.f32 %v9797_v1, %v552_v4 }
 0x4a8   : > { %v8531_v25 = vpop.eup %8530  ;;  %5975 = vst [vmem:[%s9837_s20 + $0xb80] sm:$0xff] %v5431_v19  ;;  %v3084_v26 = vmul.f32 0.6931472, %v8529_v22  ;;  %8550 = vlog2.f32 %v1092_v12  ;;  %v554_v12 = vld [vmem:[%s9790_s5 + $0xc28] sm:$0xff]  ;;  %v1099_v19 = vmul.f32 %v9797_v1, %v553_v8 }
 0x4a9   : > { %v8533_v28 = vpop.eup %8532  ;;  %5976 = vst [vmem:[%s9837_s20 + $0xb88] sm:$0xff] %v5432_v23  ;;  %v3086_v29 = vmul.f32 0.6931472, %v8531_v25  ;;  %8552 = vlog2.f32 %v1093_v16  ;;  %v555_v16 = vld [vmem:[%s9790_s5 + $0xc30] sm:$0xff]  ;;  %v1100_v22 = vmul.f32 %v9797_v1, %v554_v12 }
 0x4aa   : > { %v8535_v31 = vpop.eup %8534  ;;  %v3801_v32 = vmul.f32 0.6, %v3084_v26  ;;  %v3088_v33 = vmul.f32 0.6931472, %v8533_v28  ;;  %8554 = vlog2.f32 %v1094_v20  ;;  %v1101_v25 = vmul.f32 %v9797_v1, %v555_v16 }
 0x4ab   : > { %v8537_v34 = vpop.eup %8536  ;;  %v3802_v35 = vmul.f32 0.6, %v3086_v29  ;;  %v3090_v36 = vmul.f32 0.6931472, %v8535_v31  ;;  %8556 = vlog2.f32 %v1095_v24 }
 0x4ac   : > { %v8539_v37 = vpop.eup %8538  ;;  %v4715_v38 = vmul.f32 1.442695, %v3801_v32  ;;  %v3803_v39 = vmul.f32 0.6, %v3088_v33  ;;  %8558 = vlog2.f32 %v1096_v27  ;;  %v2004_v45 = vmul.f32 0.6931472, %v8537_v34 }
 0x4ad   : > { %v8541_v40 = vpop.eup %8540  ;;  %v4717_v41 = vmul.f32 1.442695, %v3802_v35  ;;  %v3804_v42 = vmul.f32 0.6, %v3090_v36  ;;  %8560 = vlog2.f32 %v1097_v30  ;;  %v2006_v48 = vmul.f32 0.6931472, %v8539_v37 }
 0x4ae   : > { %v8543_v43 = vpop.eup %8542  ;;  %8562 = vpow2.f32 %v4715_v38  ;;  %v4719_v44 = vmul.f32 1.442695, %v3803_v39  ;;  %v2008_v50 = vmul.f32 0.6931472, %v8541_v40 }
 0x4af   : > { %v8545_v46 = vpop.eup %8544  ;;  %8564 = vpow2.f32 %v4717_v41  ;;  %v4721_v47 = vmul.f32 1.442695, %v3804_v42  ;;  %v2010_v52 = vmul.f32 0.6931472, %v8543_v43 }
 0x4b0   : > { %v8547_v49 = vpop.eup %8546  ;;  %8566 = vpow2.f32 %v4719_v44  ;;  %v2012_v54 = vmul.f32 0.6931472, %v8545_v46 }
 0x4b1   : > { %v8549_v51 = vpop.eup %8548  ;;  %8568 = vpow2.f32 %v4721_v47  ;;  %v2014_v56 = vmul.f32 0.6931472, %v8547_v49 }
 0x4b2   : > { %v8551_v53 = vpop.eup %8550  ;;  %8570 = vlog2.f32 %v2004_v45  ;;  %v2016_v58 = vmul.f32 0.6931472, %v8549_v51 }
 0x4b3   : > { %v8553_v55 = vpop.eup %8552  ;;  %8572 = vlog2.f32 %v2006_v48  ;;  %v2018_v60 = vmul.f32 0.6931472, %v8551_v53 }
 0x4b4   : > { %v8555_v57 = vpop.eup %8554  ;;  %8574 = vlog2.f32 %v2008_v50  ;;  %v2020_v62 = vmul.f32 0.6931472, %v8553_v55 }
 0x4b5   : > { %v8557_v59 = vpop.eup %8556  ;;  %8576 = vlog2.f32 %v2010_v52  ;;  %v2022_v0 = vmul.f32 0.6931472, %v8555_v57 }
 0x4b6   : > { %v8559_v61 = vpop.eup %8558  ;;  %8578 = vlog2.f32 %v2012_v54  ;;  %v2024_v3 = vmul.f32 0.6931472, %v8557_v59 }
 0x4b7   : > { %v8561_v63 = vpop.eup %8560  ;;  %8580 = vlog2.f32 %v2014_v56  ;;  %v2026_v7 = vmul.f32 0.6931472, %v8559_v61 }
 0x4b8   : > { %v8563_v2 = vpop.eup %8562  ;;  %8582 = vlog2.f32 %v2016_v58  ;;  %v2028_v11 = vmul.f32 0.6931472, %v8561_v63 }
 0x4b9   : > { %v8565_v5 = vpop.eup %8564  ;;  %v5433_v6 = vmul.f32 0.2, %v8563_v2  ;;  %8584 = vlog2.f32 %v2018_v60 }
 0x4ba   : > { %v8567_v9 = vpop.eup %8566  ;;  %v5434_v10 = vmul.f32 0.2, %v8565_v5  ;;  %8586 = vlog2.f32 %v2020_v62 }
 0x4bb   : > { %v8569_v13 = vpop.eup %8568  ;;  %5977 = vst [vmem:[%s9837_s20 + $0xb90] sm:$0xff] %v5433_v6  ;;  %v5435_v14 = vmul.f32 0.2, %v8567_v9  ;;  %8588 = vlog2.f32 %v2022_v0 }
 0x4bc   : > { %v8571_v17 = vpop.eup %8570  ;;  %5978 = vst [vmem:[%s9837_s20 + $0xb98] sm:$0xff] %v5434_v10  ;;  %v5436_v18 = vmul.f32 0.2, %v8569_v13  ;;  %8590 = vlog2.f32 %v2024_v3 }
 0x4bd   : > { %v8573_v20 = vpop.eup %8572  ;;  %5979 = vst [vmem:[%s9837_s20 + $0xba0] sm:$0xff] %v5435_v14  ;;  %v3092_v21 = vmul.f32 0.6931472, %v8571_v17  ;;  %8592 = vlog2.f32 %v2026_v7  ;;  %v556_v17 = vld [vmem:[%s9790_s5 + $0xc38] sm:$0xff] }
 0x4be   : > { %v8575_v23 = vpop.eup %8574  ;;  %5980 = vst [vmem:[%s9837_s20 + $0xba8] sm:$0xff] %v5436_v18  ;;  %v3094_v24 = vmul.f32 0.6931472, %v8573_v20  ;;  %8594 = vlog2.f32 %v2028_v11 }
 0x4bf   : > { %v8577_v26 = vpop.eup %8576  ;;  %v3805_v27 = vmul.f32 0.6, %v3092_v21  ;;  %v3096_v28 = vmul.f32 0.6931472, %v8575_v23  ;;  %8596 = vlog2.f32 %v1098_v15  ;;  %v557_v21 = vld [vmem:[%s9790_s5 + $0xc40] sm:$0xff] }
 0x4c0   : > { %v8579_v29 = vpop.eup %8578  ;;  %v3806_v30 = vmul.f32 0.6, %v3094_v24  ;;  %v3098_v31 = vmul.f32 0.6931472, %v8577_v26  ;;  %8598 = vlog2.f32 %v1099_v19 }
 0x4c1   : > { %v8581_v32 = vpop.eup %8580  ;;  %v4723_v33 = vmul.f32 1.442695, %v3805_v27  ;;  %v3807_v34 = vmul.f32 0.6, %v3096_v28  ;;  %v3100_v35 = vmul.f32 0.6931472, %v8579_v29  ;;  %8600 = vlog2.f32 %v1100_v22 }
 0x4c2   : > { %v8583_v36 = vpop.eup %8582  ;;  %v4725_v37 = vmul.f32 1.442695, %v3806_v30  ;;  %v3808_v38 = vmul.f32 0.6, %v3098_v31  ;;  %v3102_v39 = vmul.f32 0.6931472, %v8581_v32  ;;  %8602 = vlog2.f32 %v1101_v25 }
 0x4c3   : > { %v8585_v40 = vpop.eup %8584  ;;  %8604 = vpow2.f32 %v4723_v33  ;;  %v4727_v41 = vmul.f32 1.442695, %v3807_v34  ;;  %v3809_v42 = vmul.f32 0.6, %v3100_v35  ;;  %v3104_v43 = vmul.f32 0.6931472, %v8583_v36 }
 0x4c4   : > { %v8587_v44 = vpop.eup %8586  ;;  %8606 = vpow2.f32 %v4725_v37  ;;  %v4729_v45 = vmul.f32 1.442695, %v3808_v38  ;;  %v3810_v46 = vmul.f32 0.6, %v3102_v39  ;;  %v3106_v47 = vmul.f32 0.6931472, %v8585_v40 }
 0x4c5   : > { %v8589_v48 = vpop.eup %8588  ;;  %8608 = vpow2.f32 %v4727_v41  ;;  %v4731_v49 = vmul.f32 1.442695, %v3809_v42  ;;  %v3811_v50 = vmul.f32 0.6, %v3104_v43  ;;  %v3108_v51 = vmul.f32 0.6931472, %v8587_v44 }
 0x4c6   : > { %v8591_v52 = vpop.eup %8590  ;;  %8610 = vpow2.f32 %v4729_v45  ;;  %v4733_v53 = vmul.f32 1.442695, %v3810_v46  ;;  %v3812_v54 = vmul.f32 0.6, %v3106_v47  ;;  %v3110_v55 = vmul.f32 0.6931472, %v8589_v48 }
 0x4c7   : > { %v8593_v56 = vpop.eup %8592  ;;  %8612 = vpow2.f32 %v4731_v49  ;;  %v4735_v57 = vmul.f32 1.442695, %v3811_v50  ;;  %v3813_v58 = vmul.f32 0.6, %v3108_v51  ;;  %v3112_v59 = vmul.f32 0.6931472, %v8591_v52 }
 0x4c8   : > { %v8595_v60 = vpop.eup %8594  ;;  %8614 = vpow2.f32 %v4733_v53  ;;  %v4737_v61 = vmul.f32 1.442695, %v3812_v54  ;;  %v3814_v62 = vmul.f32 0.6, %v3110_v55  ;;  %v3114_v63 = vmul.f32 0.6931472, %v8593_v56 }
 0x4c9   : > { %v8597_v0 = vpop.eup %8596  ;;  %8616 = vpow2.f32 %v4735_v57  ;;  %v4739_v2 = vmul.f32 1.442695, %v3813_v58  ;;  %v3815_v3 = vmul.f32 0.6, %v3112_v59  ;;  %v3116_v4 = vmul.f32 0.6931472, %v8595_v60 }
 0x4ca   : > { %v8599_v5 = vpop.eup %8598  ;;  %8618 = vpow2.f32 %v4737_v61  ;;  %v4741_v6 = vmul.f32 1.442695, %v3814_v62  ;;  %v3816_v7 = vmul.f32 0.6, %v3114_v63  ;;  %v2030_v13 = vmul.f32 0.6931472, %v8597_v0 }
 0x4cb   : > { %v8601_v8 = vpop.eup %8600  ;;  %8620 = vpow2.f32 %v4739_v2  ;;  %v4743_v9 = vmul.f32 1.442695, %v3815_v3  ;;  %v3817_v10 = vmul.f32 0.6, %v3116_v4  ;;  %v2032_v16 = vmul.f32 0.6931472, %v8599_v5 }
 0x4cc   : > { %v8603_v11 = vpop.eup %8602  ;;  %8622 = vpow2.f32 %v4741_v6  ;;  %v4745_v12 = vmul.f32 1.442695, %v3816_v7  ;;  %v2034_v20 = vmul.f32 0.6931472, %v8601_v8  ;;  %v558_v25 = vld [vmem:[%s9790_s5 + $0xc48] sm:$0xff]  ;;  %v1102_v28 = vmul.f32 %v9797_v1, %v556_v17  ;;  %v559_v29 = vld [vmem:[%s9790_s5 + $0xc50] sm:$0xff] }
 0x4cd   : > { %v8605_v14 = vpop.eup %8604  ;;  %8624 = vpow2.f32 %v4743_v9  ;;  %v4747_v15 = vmul.f32 1.442695, %v3817_v10  ;;  %v2036_v24 = vmul.f32 0.6931472, %v8603_v11  ;;  %v1103_v32 = vmul.f32 %v9797_v1, %v557_v21  ;;  %v560_v33 = vld [vmem:[%s9790_s5 + $0xc58] sm:$0xff]  ;;  %v561_v37 = vld [vmem:[%s9790_s5 + $0xc60] sm:$0xff] }
 0x4ce   : > { %v8607_v18 = vpop.eup %8606  ;;  %v5437_v19 = vmul.f32 0.2, %v8605_v14  ;;  %8626 = vpow2.f32 %v4745_v12  ;;  %v1104_v36 = vmul.f32 %v9797_v1, %v558_v25  ;;  %v1105_v40 = vmul.f32 %v9797_v1, %v559_v29  ;;  %v562_v41 = vld [vmem:[%s9790_s5 + $0xc68] sm:$0xff]  ;;  %v563_v45 = vld [vmem:[%s9790_s5 + $0xc70] sm:$0xff]  ;;  %v564_v49 = vld [vmem:[%s9790_s5 + $0xc78] sm:$0xff] }
 0x4cf   : > { %v8609_v22 = vpop.eup %8608  ;;  %v5438_v23 = vmul.f32 0.2, %v8607_v18  ;;  %8628 = vpow2.f32 %v4747_v15  ;;  %v1106_v44 = vmul.f32 %v9797_v1, %v560_v33  ;;  %v1107_v48 = vmul.f32 %v9797_v1, %v561_v37  ;;  %v565_v53 = vld [vmem:[%s9790_s5 + $0xc80] sm:$0xff]  ;;  %v566_v57 = vld [vmem:[%s9790_s5 + $0xc88] sm:$0xff]  ;;  %v567_v61 = vld [vmem:[%s9790_s5 + $0xc90] sm:$0xff] }
 0x4d0   : > { %v8611_v26 = vpop.eup %8610  ;;  %5981 = vst [vmem:[%s9837_s20 + $0xbb0] sm:$0xff] %v5437_v19  ;;  %v5439_v27 = vmul.f32 0.2, %v8609_v22  ;;  %8630 = vlog2.f32 %v2030_v13  ;;  %v1108_v52 = vmul.f32 %v9797_v1, %v562_v41  ;;  %v1109_v56 = vmul.f32 %v9797_v1, %v563_v45  ;;  %v568_v2 = vld [vmem:[%s9790_s5 + $0xc98] sm:$0xff] }
 0x4d1   : > { %v8613_v30 = vpop.eup %8612  ;;  %5982 = vst [vmem:[%s9837_s20 + $0xbb8] sm:$0xff] %v5438_v23  ;;  %v5440_v31 = vmul.f32 0.2, %v8611_v26  ;;  %8632 = vlog2.f32 %v2032_v16  ;;  %v1110_v60 = vmul.f32 %v9797_v1, %v564_v49  ;;  %v1111_v0 = vmul.f32 %v9797_v1, %v565_v53 }
 0x4d2   : > { %v8615_v34 = vpop.eup %8614  ;;  %5983 = vst [vmem:[%s9837_s20 + $0xbc0] sm:$0xff] %v5439_v27  ;;  %v5441_v35 = vmul.f32 0.2, %v8613_v30  ;;  %8634 = vlog2.f32 %v2034_v20  ;;  %v1112_v5 = vmul.f32 %v9797_v1, %v566_v57  ;;  %v1113_v8 = vmul.f32 %v9797_v1, %v567_v61 }
 0x4d3   : > { %v8617_v38 = vpop.eup %8616  ;;  %5984 = vst [vmem:[%s9837_s20 + $0xbc8] sm:$0xff] %v5440_v31  ;;  %v5442_v39 = vmul.f32 0.2, %v8615_v34  ;;  %8636 = vlog2.f32 %v2036_v24  ;;  %v1114_v11 = vmul.f32 %v9797_v1, %v568_v2 }
 0x4d4   : > { %v8619_v42 = vpop.eup %8618  ;;  %5985 = vst [vmem:[%s9837_s20 + $0xbd0] sm:$0xff] %v5441_v35  ;;  %v5443_v43 = vmul.f32 0.2, %v8617_v38  ;;  %8638 = vlog2.f32 %v1102_v28 }
 0x4d5   : > { %v8621_v46 = vpop.eup %8620  ;;  %5986 = vst [vmem:[%s9837_s20 + $0xbd8] sm:$0xff] %v5442_v39  ;;  %v5444_v47 = vmul.f32 0.2, %v8619_v42  ;;  %8640 = vlog2.f32 %v1103_v32 }
 0x4d6   : > { %v8623_v50 = vpop.eup %8622  ;;  %5987 = vst [vmem:[%s9837_s20 + $0xbe0] sm:$0xff] %v5443_v43  ;;  %v5445_v51 = vmul.f32 0.2, %v8621_v46  ;;  %8642 = vlog2.f32 %v1104_v36 }
 0x4d7   : > { %v8625_v54 = vpop.eup %8624  ;;  %5988 = vst [vmem:[%s9837_s20 + $0xbe8] sm:$0xff] %v5444_v47  ;;  %v5446_v55 = vmul.f32 0.2, %v8623_v50  ;;  %8644 = vlog2.f32 %v1105_v40 }
 0x4d8   : > { %v8627_v58 = vpop.eup %8626  ;;  %5989 = vst [vmem:[%s9837_s20 + $0xbf0] sm:$0xff] %v5445_v51  ;;  %v5447_v59 = vmul.f32 0.2, %v8625_v54  ;;  %8646 = vlog2.f32 %v1106_v44 }
 0x4d9   : > { %v8629_v62 = vpop.eup %8628  ;;  %5990 = vst [vmem:[%s9837_s20 + $0xbf8] sm:$0xff] %v5446_v55  ;;  %v5448_v63 = vmul.f32 0.2, %v8627_v58  ;;  %8648 = vlog2.f32 %v1107_v48  ;;  %v569_v48 = vld [vmem:[%s9790_s5 + $0xca0] sm:$0xff] }
 0x4da   : > { %v8631_v3 = vpop.eup %8630  ;;  %5991 = vst [vmem:[%s9837_s20 + $0xc00] sm:$0xff] %v5447_v59  ;;  %v5449_v4 = vmul.f32 0.2, %v8629_v62  ;;  %8650 = vlog2.f32 %v1108_v52  ;;  %v570_v52 = vld [vmem:[%s9790_s5 + $0xca8] sm:$0xff]  ;;  %v1115_v59 = vmul.f32 %v9797_v1, %v569_v48 }
 0x4db   : > { %v8633_v6 = vpop.eup %8632  ;;  %5992 = vst [vmem:[%s9837_s20 + $0xc08] sm:$0xff] %v5448_v63  ;;  %v3118_v7 = vmul.f32 0.6931472, %v8631_v3  ;;  %8652 = vlog2.f32 %v1109_v56  ;;  %v571_v56 = vld [vmem:[%s9790_s5 + $0xcb0] sm:$0xff]  ;;  %v1116_v63 = vmul.f32 %v9797_v1, %v570_v52 }
 0x4dc   : > { %v8635_v9 = vpop.eup %8634  ;;  %5993 = vst [vmem:[%s9837_s20 + $0xc10] sm:$0xff] %v5449_v4  ;;  %v3120_v10 = vmul.f32 0.6931472, %v8633_v6  ;;  %8654 = vlog2.f32 %v1110_v60  ;;  %v572_v60 = vld [vmem:[%s9790_s5 + $0xcb8] sm:$0xff]  ;;  %v1117_v3 = vmul.f32 %v9797_v1, %v571_v56 }
 0x4dd   : > { %v8637_v12 = vpop.eup %8636  ;;  %v3818_v13 = vmul.f32 0.6, %v3118_v7  ;;  %v3122_v14 = vmul.f32 0.6931472, %v8635_v9  ;;  %8656 = vlog2.f32 %v1111_v0  ;;  %v1118_v6 = vmul.f32 %v9797_v1, %v572_v60 }
 0x4de   : > { %v8639_v15 = vpop.eup %8638  ;;  %v3819_v16 = vmul.f32 0.6, %v3120_v10  ;;  %v3124_v17 = vmul.f32 0.6931472, %v8637_v12  ;;  %8658 = vlog2.f32 %v1112_v5 }
 0x4df   : > { %v8641_v18 = vpop.eup %8640  ;;  %v4749_v19 = vmul.f32 1.442695, %v3818_v13  ;;  %v3820_v20 = vmul.f32 0.6, %v3122_v14  ;;  %8660 = vlog2.f32 %v1113_v8  ;;  %v2038_v26 = vmul.f32 0.6931472, %v8639_v15 }
 0x4e0   : > { %v8643_v21 = vpop.eup %8642  ;;  %v4751_v22 = vmul.f32 1.442695, %v3819_v16  ;;  %v3821_v23 = vmul.f32 0.6, %v3124_v17  ;;  %8662 = vlog2.f32 %v1114_v11  ;;  %v2040_v29 = vmul.f32 0.6931472, %v8641_v18 }
 0x4e1   : > { %v8645_v24 = vpop.eup %8644  ;;  %8664 = vpow2.f32 %v4749_v19  ;;  %v4753_v25 = vmul.f32 1.442695, %v3820_v20  ;;  %v2042_v31 = vmul.f32 0.6931472, %v8643_v21 }
 0x4e2   : > { %v8647_v27 = vpop.eup %8646  ;;  %8666 = vpow2.f32 %v4751_v22  ;;  %v4755_v28 = vmul.f32 1.442695, %v3821_v23  ;;  %v2044_v33 = vmul.f32 0.6931472, %v8645_v24 }
 0x4e3   : > { %v8649_v30 = vpop.eup %8648  ;;  %8668 = vpow2.f32 %v4753_v25  ;;  %v2046_v35 = vmul.f32 0.6931472, %v8647_v27 }
 0x4e4   : > { %v8651_v32 = vpop.eup %8650  ;;  %8670 = vpow2.f32 %v4755_v28  ;;  %v2048_v37 = vmul.f32 0.6931472, %v8649_v30 }
 0x4e5   : > { %v8653_v34 = vpop.eup %8652  ;;  %8672 = vlog2.f32 %v2038_v26  ;;  %v2050_v39 = vmul.f32 0.6931472, %v8651_v32 }
 0x4e6   : > { %v8655_v36 = vpop.eup %8654  ;;  %8674 = vlog2.f32 %v2040_v29  ;;  %v2052_v41 = vmul.f32 0.6931472, %v8653_v34 }
 0x4e7   : > { %v8657_v38 = vpop.eup %8656  ;;  %8676 = vlog2.f32 %v2042_v31  ;;  %v2054_v43 = vmul.f32 0.6931472, %v8655_v36 }
 0x4e8   : > { %v8659_v40 = vpop.eup %8658  ;;  %8678 = vlog2.f32 %v2044_v33  ;;  %v2056_v45 = vmul.f32 0.6931472, %v8657_v38 }
 0x4e9   : > { %v8661_v42 = vpop.eup %8660  ;;  %8680 = vlog2.f32 %v2046_v35  ;;  %v2058_v47 = vmul.f32 0.6931472, %v8659_v40 }
 0x4ea   : > { %v8663_v44 = vpop.eup %8662  ;;  %8682 = vlog2.f32 %v2048_v37  ;;  %v2060_v51 = vmul.f32 0.6931472, %v8661_v42 }
 0x4eb   : > { %v8665_v46 = vpop.eup %8664  ;;  %8684 = vlog2.f32 %v2050_v39  ;;  %v2062_v55 = vmul.f32 0.6931472, %v8663_v44 }
 0x4ec   : > { %v8667_v49 = vpop.eup %8666  ;;  %v5450_v50 = vmul.f32 0.2, %v8665_v46  ;;  %8686 = vlog2.f32 %v2052_v41 }
 0x4ed   : > { %v8669_v53 = vpop.eup %8668  ;;  %v5451_v54 = vmul.f32 0.2, %v8667_v49  ;;  %8688 = vlog2.f32 %v2054_v43 }
 0x4ee   : > { %v8671_v57 = vpop.eup %8670  ;;  %5994 = vst [vmem:[%s9837_s20 + $0xc18] sm:$0xff] %v5450_v50  ;;  %v5452_v58 = vmul.f32 0.2, %v8669_v53  ;;  %8690 = vlog2.f32 %v2056_v45 }
 0x4ef   : > { %v8673_v61 = vpop.eup %8672  ;;  %5995 = vst [vmem:[%s9837_s20 + $0xc20] sm:$0xff] %v5451_v54  ;;  %v5453_v62 = vmul.f32 0.2, %v8671_v57  ;;  %8692 = vlog2.f32 %v2058_v47 }
 0x4f0   : > { %v8675_v0 = vpop.eup %8674  ;;  %5996 = vst [vmem:[%s9837_s20 + $0xc28] sm:$0xff] %v5452_v58  ;;  %v3126_v2 = vmul.f32 0.6931472, %v8673_v61  ;;  %8694 = vlog2.f32 %v2060_v51  ;;  %v573_v61 = vld [vmem:[%s9790_s5 + $0xcc0] sm:$0xff] }
 0x4f1   : > { %v8677_v4 = vpop.eup %8676  ;;  %5997 = vst [vmem:[%s9837_s20 + $0xc30] sm:$0xff] %v5453_v62  ;;  %v3128_v5 = vmul.f32 0.6931472, %v8675_v0  ;;  %8696 = vlog2.f32 %v2062_v55 }
 0x4f2   : > { %v8679_v7 = vpop.eup %8678  ;;  %v3822_v8 = vmul.f32 0.6, %v3126_v2  ;;  %v3130_v9 = vmul.f32 0.6931472, %v8677_v4  ;;  %8698 = vlog2.f32 %v1115_v59  ;;  %v574_v2 = vld [vmem:[%s9790_s5 + $0xcc8] sm:$0xff] }
 0x4f3   : > { %v8681_v10 = vpop.eup %8680  ;;  %v3823_v11 = vmul.f32 0.6, %v3128_v5  ;;  %v3132_v12 = vmul.f32 0.6931472, %v8679_v7  ;;  %8700 = vlog2.f32 %v1116_v63 }
 0x4f4   : > { %v8683_v13 = vpop.eup %8682  ;;  %v4757_v14 = vmul.f32 1.442695, %v3822_v8  ;;  %v3824_v15 = vmul.f32 0.6, %v3130_v9  ;;  %v3134_v16 = vmul.f32 0.6931472, %v8681_v10  ;;  %8702 = vlog2.f32 %v1117_v3 }
 0x4f5   : > { %v8685_v17 = vpop.eup %8684  ;;  %v4759_v18 = vmul.f32 1.442695, %v3823_v11  ;;  %v3825_v19 = vmul.f32 0.6, %v3132_v12  ;;  %v3136_v20 = vmul.f32 0.6931472, %v8683_v13  ;;  %8704 = vlog2.f32 %v1118_v6 }
 0x4f6   : > { %v8687_v21 = vpop.eup %8686  ;;  %8706 = vpow2.f32 %v4757_v14  ;;  %v4761_v22 = vmul.f32 1.442695, %v3824_v15  ;;  %v3826_v23 = vmul.f32 0.6, %v3134_v16  ;;  %v3138_v24 = vmul.f32 0.6931472, %v8685_v17 }
 0x4f7   : > { %v8689_v25 = vpop.eup %8688  ;;  %8708 = vpow2.f32 %v4759_v18  ;;  %v4763_v26 = vmul.f32 1.442695, %v3825_v19  ;;  %v3827_v27 = vmul.f32 0.6, %v3136_v20  ;;  %v3140_v28 = vmul.f32 0.6931472, %v8687_v21 }
 0x4f8   : > { %v8691_v29 = vpop.eup %8690  ;;  %8710 = vpow2.f32 %v4761_v22  ;;  %v4765_v30 = vmul.f32 1.442695, %v3826_v23  ;;  %v3828_v31 = vmul.f32 0.6, %v3138_v24  ;;  %v3142_v32 = vmul.f32 0.6931472, %v8689_v25 }
 0x4f9   : > { %v8693_v33 = vpop.eup %8692  ;;  %8712 = vpow2.f32 %v4763_v26  ;;  %v4767_v34 = vmul.f32 1.442695, %v3827_v27  ;;  %v3829_v35 = vmul.f32 0.6, %v3140_v28  ;;  %v3144_v36 = vmul.f32 0.6931472, %v8691_v29 }
 0x4fa   : > { %v8695_v37 = vpop.eup %8694  ;;  %8714 = vpow2.f32 %v4765_v30  ;;  %v4769_v38 = vmul.f32 1.442695, %v3828_v31  ;;  %v3830_v39 = vmul.f32 0.6, %v3142_v32  ;;  %v3146_v40 = vmul.f32 0.6931472, %v8693_v33 }
 0x4fb   : > { %v8697_v41 = vpop.eup %8696  ;;  %8716 = vpow2.f32 %v4767_v34  ;;  %v4771_v42 = vmul.f32 1.442695, %v3829_v35  ;;  %v3831_v43 = vmul.f32 0.6, %v3144_v36  ;;  %v3148_v44 = vmul.f32 0.6931472, %v8695_v37 }
 0x4fc   : > { %v8699_v45 = vpop.eup %8698  ;;  %8718 = vpow2.f32 %v4769_v38  ;;  %v4773_v46 = vmul.f32 1.442695, %v3830_v39  ;;  %v3832_v47 = vmul.f32 0.6, %v3146_v40  ;;  %v3150_v48 = vmul.f32 0.6931472, %v8697_v41 }
 0x4fd   : > { %v8701_v49 = vpop.eup %8700  ;;  %8720 = vpow2.f32 %v4771_v42  ;;  %v4775_v50 = vmul.f32 1.442695, %v3831_v43  ;;  %v3833_v51 = vmul.f32 0.6, %v3148_v44  ;;  %v2064_v57 = vmul.f32 0.6931472, %v8699_v45 }
 0x4fe   : > { %v8703_v52 = vpop.eup %8702  ;;  %8722 = vpow2.f32 %v4773_v46  ;;  %v4777_v53 = vmul.f32 1.442695, %v3832_v47  ;;  %v3834_v54 = vmul.f32 0.6, %v3150_v48  ;;  %v2066_v60 = vmul.f32 0.6931472, %v8701_v49 }
 0x4ff   : > { %v8705_v55 = vpop.eup %8704  ;;  %8724 = vpow2.f32 %v4775_v50  ;;  %v4779_v56 = vmul.f32 1.442695, %v3833_v51  ;;  %v2068_v0 = vmul.f32 0.6931472, %v8703_v52  ;;  %v575_v6 = vld [vmem:[%s9790_s5 + $0xcd0] sm:$0xff]  ;;  %v1119_v9 = vmul.f32 %v9797_v1, %v573_v61  ;;  %v576_v10 = vld [vmem:[%s9790_s5 + $0xcd8] sm:$0xff] }
 0x500   : > { %v8707_v58 = vpop.eup %8706  ;;  %8726 = vpow2.f32 %v4777_v53  ;;  %v4781_v59 = vmul.f32 1.442695, %v3834_v54  ;;  %v2070_v5 = vmul.f32 0.6931472, %v8705_v55  ;;  %v1120_v13 = vmul.f32 %v9797_v1, %v574_v2  ;;  %v577_v14 = vld [vmem:[%s9790_s5 + $0xce0] sm:$0xff]  ;;  %v578_v18 = vld [vmem:[%s9790_s5 + $0xce8] sm:$0xff] }
 0x501   : > { %v8709_v62 = vpop.eup %8708  ;;  %v5454_v63 = vmul.f32 0.2, %v8707_v58  ;;  %8728 = vpow2.f32 %v4779_v56  ;;  %v1121_v17 = vmul.f32 %v9797_v1, %v575_v6  ;;  %v1122_v21 = vmul.f32 %v9797_v1, %v576_v10  ;;  %v579_v22 = vld [vmem:[%s9790_s5 + $0xcf0] sm:$0xff]  ;;  %v580_v26 = vld [vmem:[%s9790_s5 + $0xcf8] sm:$0xff]  ;;  %v581_v30 = vld [vmem:[%s9790_s5 + $0xd00] sm:$0xff] }
 0x502   : > { %v8711_v3 = vpop.eup %8710  ;;  %v5455_v4 = vmul.f32 0.2, %v8709_v62  ;;  %8730 = vpow2.f32 %v4781_v59  ;;  %v1123_v25 = vmul.f32 %v9797_v1, %v577_v14  ;;  %v1124_v29 = vmul.f32 %v9797_v1, %v578_v18  ;;  %v582_v34 = vld [vmem:[%s9790_s5 + $0xd08] sm:$0xff]  ;;  %v583_v38 = vld [vmem:[%s9790_s5 + $0xd10] sm:$0xff]  ;;  %v584_v42 = vld [vmem:[%s9790_s5 + $0xd18] sm:$0xff] }
 0x503   : > { %v8713_v7 = vpop.eup %8712  ;;  %5998 = vst [vmem:[%s9837_s20 + $0xc38] sm:$0xff] %v5454_v63  ;;  %v5456_v8 = vmul.f32 0.2, %v8711_v3  ;;  %8732 = vlog2.f32 %v2064_v57  ;;  %v1125_v33 = vmul.f32 %v9797_v1, %v579_v22  ;;  %v1126_v37 = vmul.f32 %v9797_v1, %v580_v26  ;;  %v585_v46 = vld [vmem:[%s9790_s5 + $0xd20] sm:$0xff] }
 0x504   : > { %v8715_v11 = vpop.eup %8714  ;;  %5999 = vst [vmem:[%s9837_s20 + $0xc40] sm:$0xff] %v5455_v4  ;;  %v5457_v12 = vmul.f32 0.2, %v8713_v7  ;;  %8734 = vlog2.f32 %v2066_v60  ;;  %v1127_v41 = vmul.f32 %v9797_v1, %v581_v30  ;;  %v1128_v45 = vmul.f32 %v9797_v1, %v582_v34 }
 0x505   : > { %v8717_v15 = vpop.eup %8716  ;;  %6000 = vst [vmem:[%s9837_s20 + $0xc48] sm:$0xff] %v5456_v8  ;;  %v5458_v16 = vmul.f32 0.2, %v8715_v11  ;;  %8736 = vlog2.f32 %v2068_v0  ;;  %v1129_v49 = vmul.f32 %v9797_v1, %v583_v38  ;;  %v1130_v52 = vmul.f32 %v9797_v1, %v584_v42 }
 0x506   : > { %v8719_v19 = vpop.eup %8718  ;;  %6001 = vst [vmem:[%s9837_s20 + $0xc50] sm:$0xff] %v5457_v12  ;;  %v5459_v20 = vmul.f32 0.2, %v8717_v15  ;;  %8738 = vlog2.f32 %v2070_v5  ;;  %v1131_v55 = vmul.f32 %v9797_v1, %v585_v46 }
 0x507   : > { %v8721_v23 = vpop.eup %8720  ;;  %6002 = vst [vmem:[%s9837_s20 + $0xc58] sm:$0xff] %v5458_v16  ;;  %v5460_v24 = vmul.f32 0.2, %v8719_v19  ;;  %8740 = vlog2.f32 %v1119_v9 }
 0x508   : > { %v8723_v27 = vpop.eup %8722  ;;  %6003 = vst [vmem:[%s9837_s20 + $0xc60] sm:$0xff] %v5459_v20  ;;  %v5461_v28 = vmul.f32 0.2, %v8721_v23  ;;  %8742 = vlog2.f32 %v1120_v13 }
 0x509   : > { %v8725_v31 = vpop.eup %8724  ;;  %6004 = vst [vmem:[%s9837_s20 + $0xc68] sm:$0xff] %v5460_v24  ;;  %v5462_v32 = vmul.f32 0.2, %v8723_v27  ;;  %8744 = vlog2.f32 %v1121_v17 }
 0x50a   : > { %v8727_v35 = vpop.eup %8726  ;;  %6005 = vst [vmem:[%s9837_s20 + $0xc70] sm:$0xff] %v5461_v28  ;;  %v5463_v36 = vmul.f32 0.2, %v8725_v31  ;;  %8746 = vlog2.f32 %v1122_v21 }
 0x50b   : > { %v8729_v39 = vpop.eup %8728  ;;  %6006 = vst [vmem:[%s9837_s20 + $0xc78] sm:$0xff] %v5462_v32  ;;  %v5464_v40 = vmul.f32 0.2, %v8727_v35  ;;  %8748 = vlog2.f32 %v1123_v25 }
 0x50c   : > { %v8731_v43 = vpop.eup %8730  ;;  %6007 = vst [vmem:[%s9837_s20 + $0xc80] sm:$0xff] %v5463_v36  ;;  %v5465_v44 = vmul.f32 0.2, %v8729_v39  ;;  %8750 = vlog2.f32 %v1124_v29  ;;  %v586_v29 = vld [vmem:[%s9790_s5 + $0xd28] sm:$0xff] }
 0x50d   : > { %v8733_v47 = vpop.eup %8732  ;;  %6008 = vst [vmem:[%s9837_s20 + $0xc88] sm:$0xff] %v5464_v40  ;;  %v5466_v48 = vmul.f32 0.2, %v8731_v43  ;;  %8752 = vlog2.f32 %v1125_v33  ;;  %v587_v33 = vld [vmem:[%s9790_s5 + $0xd30] sm:$0xff]  ;;  %v1132_v40 = vmul.f32 %v9797_v1, %v586_v29 }
 0x50e   : > { %v8735_v50 = vpop.eup %8734  ;;  %6009 = vst [vmem:[%s9837_s20 + $0xc90] sm:$0xff] %v5465_v44  ;;  %v3152_v51 = vmul.f32 0.6931472, %v8733_v47  ;;  %8754 = vlog2.f32 %v1126_v37  ;;  %v588_v37 = vld [vmem:[%s9790_s5 + $0xd38] sm:$0xff]  ;;  %v1133_v44 = vmul.f32 %v9797_v1, %v587_v33 }
 0x50f   : > { %v8737_v53 = vpop.eup %8736  ;;  %6010 = vst [vmem:[%s9837_s20 + $0xc98] sm:$0xff] %v5466_v48  ;;  %v3154_v54 = vmul.f32 0.6931472, %v8735_v50  ;;  %8756 = vlog2.f32 %v1127_v41  ;;  %v589_v41 = vld [vmem:[%s9790_s5 + $0xd40] sm:$0xff]  ;;  %v1134_v47 = vmul.f32 %v9797_v1, %v588_v37 }
 0x510   : > { %v8739_v56 = vpop.eup %8738  ;;  %v3835_v57 = vmul.f32 0.6, %v3152_v51  ;;  %v3156_v58 = vmul.f32 0.6931472, %v8737_v53  ;;  %8758 = vlog2.f32 %v1128_v45  ;;  %v1135_v50 = vmul.f32 %v9797_v1, %v589_v41 }
 0x511   : > { %v8741_v59 = vpop.eup %8740  ;;  %v3836_v60 = vmul.f32 0.6, %v3154_v54  ;;  %v3158_v61 = vmul.f32 0.6931472, %v8739_v56  ;;  %8760 = vlog2.f32 %v1129_v49 }
 0x512   : > { %v8743_v62 = vpop.eup %8742  ;;  %v4783_v63 = vmul.f32 1.442695, %v3835_v57  ;;  %v3837_v0 = vmul.f32 0.6, %v3156_v58  ;;  %8762 = vlog2.f32 %v1130_v52  ;;  %v2072_v7 = vmul.f32 0.6931472, %v8741_v59 }
 0x513   : > { %v8745_v2 = vpop.eup %8744  ;;  %v4785_v3 = vmul.f32 1.442695, %v3836_v60  ;;  %v3838_v4 = vmul.f32 0.6, %v3158_v61  ;;  %8764 = vlog2.f32 %v1131_v55  ;;  %v2074_v10 = vmul.f32 0.6931472, %v8743_v62 }
 0x514   : > { %v8747_v5 = vpop.eup %8746  ;;  %8766 = vpow2.f32 %v4783_v63  ;;  %v4787_v6 = vmul.f32 1.442695, %v3837_v0  ;;  %v2076_v12 = vmul.f32 0.6931472, %v8745_v2 }
 0x515   : > { %v8749_v8 = vpop.eup %8748  ;;  %8768 = vpow2.f32 %v4785_v3  ;;  %v4789_v9 = vmul.f32 1.442695, %v3838_v4  ;;  %v2078_v14 = vmul.f32 0.6931472, %v8747_v5 }
 0x516   : > { %v8751_v11 = vpop.eup %8750  ;;  %8770 = vpow2.f32 %v4787_v6  ;;  %v2080_v16 = vmul.f32 0.6931472, %v8749_v8 }
 0x517   : > { %v8753_v13 = vpop.eup %8752  ;;  %8772 = vpow2.f32 %v4789_v9  ;;  %v2082_v18 = vmul.f32 0.6931472, %v8751_v11 }
 0x518   : > { %v8755_v15 = vpop.eup %8754  ;;  %8774 = vlog2.f32 %v2072_v7  ;;  %v2084_v20 = vmul.f32 0.6931472, %v8753_v13 }
 0x519   : > { %v8757_v17 = vpop.eup %8756  ;;  %8776 = vlog2.f32 %v2074_v10  ;;  %v2086_v22 = vmul.f32 0.6931472, %v8755_v15 }
 0x51a   : > { %v8759_v19 = vpop.eup %8758  ;;  %8778 = vlog2.f32 %v2076_v12  ;;  %v2088_v24 = vmul.f32 0.6931472, %v8757_v17 }
 0x51b   : > { %v8761_v21 = vpop.eup %8760  ;;  %8780 = vlog2.f32 %v2078_v14  ;;  %v2090_v26 = vmul.f32 0.6931472, %v8759_v19 }
 0x51c   : > { %v8763_v23 = vpop.eup %8762  ;;  %8782 = vlog2.f32 %v2080_v16  ;;  %v2092_v28 = vmul.f32 0.6931472, %v8761_v21 }
 0x51d   : > { %v8765_v25 = vpop.eup %8764  ;;  %8784 = vlog2.f32 %v2082_v18  ;;  %v2094_v32 = vmul.f32 0.6931472, %v8763_v23 }
 0x51e   : > { %v8767_v27 = vpop.eup %8766  ;;  %8786 = vlog2.f32 %v2084_v20  ;;  %v2096_v36 = vmul.f32 0.6931472, %v8765_v25 }
 0x51f   : > { %v8769_v30 = vpop.eup %8768  ;;  %v5467_v31 = vmul.f32 0.2, %v8767_v27  ;;  %8788 = vlog2.f32 %v2086_v22 }
 0x520   : > { %v8771_v34 = vpop.eup %8770  ;;  %v5468_v35 = vmul.f32 0.2, %v8769_v30  ;;  %8790 = vlog2.f32 %v2088_v24 }
 0x521   : > { %v8773_v38 = vpop.eup %8772  ;;  %6011 = vst [vmem:[%s9837_s20 + $0xca0] sm:$0xff] %v5467_v31  ;;  %v5469_v39 = vmul.f32 0.2, %v8771_v34  ;;  %8792 = vlog2.f32 %v2090_v26 }
 0x522   : > { %v8775_v42 = vpop.eup %8774  ;;  %6012 = vst [vmem:[%s9837_s20 + $0xca8] sm:$0xff] %v5468_v35  ;;  %v5470_v43 = vmul.f32 0.2, %v8773_v38  ;;  %8794 = vlog2.f32 %v2092_v28 }
 0x523   : > { %v8777_v45 = vpop.eup %8776  ;;  %6013 = vst [vmem:[%s9837_s20 + $0xcb0] sm:$0xff] %v5469_v39  ;;  %v3160_v46 = vmul.f32 0.6931472, %v8775_v42  ;;  %8796 = vlog2.f32 %v2094_v32  ;;  %v590_v42 = vld [vmem:[%s9790_s5 + $0xd48] sm:$0xff] }
 0x524   : > { %v8779_v48 = vpop.eup %8778  ;;  %6014 = vst [vmem:[%s9837_s20 + $0xcb8] sm:$0xff] %v5470_v43  ;;  %v3162_v49 = vmul.f32 0.6931472, %v8777_v45  ;;  %8798 = vlog2.f32 %v2096_v36 }
 0x525   : > { %v8781_v51 = vpop.eup %8780  ;;  %v3839_v52 = vmul.f32 0.6, %v3160_v46  ;;  %v3164_v53 = vmul.f32 0.6931472, %v8779_v48  ;;  %8800 = vlog2.f32 %v1132_v40  ;;  %v591_v46 = vld [vmem:[%s9790_s5 + $0xd50] sm:$0xff] }
 0x526   : > { %v8783_v54 = vpop.eup %8782  ;;  %v3840_v55 = vmul.f32 0.6, %v3162_v49  ;;  %v3166_v56 = vmul.f32 0.6931472, %v8781_v51  ;;  %8802 = vlog2.f32 %v1133_v44 }
 0x527   : > { %v8785_v57 = vpop.eup %8784  ;;  %v4791_v58 = vmul.f32 1.442695, %v3839_v52  ;;  %v3841_v59 = vmul.f32 0.6, %v3164_v53  ;;  %v3168_v60 = vmul.f32 0.6931472, %v8783_v54  ;;  %8804 = vlog2.f32 %v1134_v47 }
 0x528   : > { %v8787_v61 = vpop.eup %8786  ;;  %v4793_v62 = vmul.f32 1.442695, %v3840_v55  ;;  %v3842_v63 = vmul.f32 0.6, %v3166_v56  ;;  %v3170_v0 = vmul.f32 0.6931472, %v8785_v57  ;;  %8806 = vlog2.f32 %v1135_v50 }
 0x529   : > { %v8789_v2 = vpop.eup %8788  ;;  %8808 = vpow2.f32 %v4791_v58  ;;  %v4795_v3 = vmul.f32 1.442695, %v3841_v59  ;;  %v3843_v4 = vmul.f32 0.6, %v3168_v60  ;;  %v3172_v5 = vmul.f32 0.6931472, %v8787_v61 }
 0x52a   : > { %v8791_v6 = vpop.eup %8790  ;;  %8810 = vpow2.f32 %v4793_v62  ;;  %v4797_v7 = vmul.f32 1.442695, %v3842_v63  ;;  %v3844_v8 = vmul.f32 0.6, %v3170_v0  ;;  %v3174_v9 = vmul.f32 0.6931472, %v8789_v2 }
 0x52b   : > { %v8793_v10 = vpop.eup %8792  ;;  %8812 = vpow2.f32 %v4795_v3  ;;  %v4799_v11 = vmul.f32 1.442695, %v3843_v4  ;;  %v3845_v12 = vmul.f32 0.6, %v3172_v5  ;;  %v3176_v13 = vmul.f32 0.6931472, %v8791_v6 }
 0x52c   : > { %v8795_v14 = vpop.eup %8794  ;;  %8814 = vpow2.f32 %v4797_v7  ;;  %v4801_v15 = vmul.f32 1.442695, %v3844_v8  ;;  %v3846_v16 = vmul.f32 0.6, %v3174_v9  ;;  %v3178_v17 = vmul.f32 0.6931472, %v8793_v10 }
 0x52d   : > { %v8797_v18 = vpop.eup %8796  ;;  %8816 = vpow2.f32 %v4799_v11  ;;  %v4803_v19 = vmul.f32 1.442695, %v3845_v12  ;;  %v3847_v20 = vmul.f32 0.6, %v3176_v13  ;;  %v3180_v21 = vmul.f32 0.6931472, %v8795_v14 }
 0x52e   : > { %v8799_v22 = vpop.eup %8798  ;;  %8818 = vpow2.f32 %v4801_v15  ;;  %v4805_v23 = vmul.f32 1.442695, %v3846_v16  ;;  %v3848_v24 = vmul.f32 0.6, %v3178_v17  ;;  %v3182_v25 = vmul.f32 0.6931472, %v8797_v18 }
 0x52f   : > { %v8801_v26 = vpop.eup %8800  ;;  %8820 = vpow2.f32 %v4803_v19  ;;  %v4807_v27 = vmul.f32 1.442695, %v3847_v20  ;;  %v3849_v28 = vmul.f32 0.6, %v3180_v21  ;;  %v3184_v29 = vmul.f32 0.6931472, %v8799_v22 }
 0x530   : > { %v8803_v30 = vpop.eup %8802  ;;  %8822 = vpow2.f32 %v4805_v23  ;;  %v4809_v31 = vmul.f32 1.442695, %v3848_v24  ;;  %v3850_v32 = vmul.f32 0.6, %v3182_v25  ;;  %v2098_v38 = vmul.f32 0.6931472, %v8801_v26 }
 0x531   : > { %v8805_v33 = vpop.eup %8804  ;;  %8824 = vpow2.f32 %v4807_v27  ;;  %v4811_v34 = vmul.f32 1.442695, %v3849_v28  ;;  %v3851_v35 = vmul.f32 0.6, %v3184_v29  ;;  %v2100_v41 = vmul.f32 0.6931472, %v8803_v30 }
 0x532   : > { %v8807_v36 = vpop.eup %8806  ;;  %8826 = vpow2.f32 %v4809_v31  ;;  %v4813_v37 = vmul.f32 1.442695, %v3850_v32  ;;  %v2102_v45 = vmul.f32 0.6931472, %v8805_v33  ;;  %v592_v50 = vld [vmem:[%s9790_s5 + $0xd58] sm:$0xff]  ;;  %v1136_v53 = vmul.f32 %v9797_v1, %v590_v42  ;;  %v593_v54 = vld [vmem:[%s9790_s5 + $0xd60] sm:$0xff] }
 0x533   : > { %v8809_v39 = vpop.eup %8808  ;;  %8828 = vpow2.f32 %v4811_v34  ;;  %v4815_v40 = vmul.f32 1.442695, %v3851_v35  ;;  %v2104_v49 = vmul.f32 0.6931472, %v8807_v36  ;;  %v1137_v57 = vmul.f32 %v9797_v1, %v591_v46  ;;  %v594_v58 = vld [vmem:[%s9790_s5 + $0xd68] sm:$0xff]  ;;  %v595_v62 = vld [vmem:[%s9790_s5 + $0xd70] sm:$0xff] }
 0x534   : > { %v8811_v43 = vpop.eup %8810  ;;  %v5471_v44 = vmul.f32 0.2, %v8809_v39  ;;  %8830 = vpow2.f32 %v4813_v37  ;;  %v1138_v61 = vmul.f32 %v9797_v1, %v592_v50  ;;  %v1139_v2 = vmul.f32 %v9797_v1, %v593_v54  ;;  %v596_v3 = vld [vmem:[%s9790_s5 + $0xd78] sm:$0xff]  ;;  %v597_v7 = vld [vmem:[%s9790_s5 + $0xd80] sm:$0xff]  ;;  %v598_v11 = vld [vmem:[%s9790_s5 + $0xd88] sm:$0xff] }
 0x535   : > { %v8813_v47 = vpop.eup %8812  ;;  %v5472_v48 = vmul.f32 0.2, %v8811_v43  ;;  %8832 = vpow2.f32 %v4815_v40  ;;  %v1140_v6 = vmul.f32 %v9797_v1, %v594_v58  ;;  %v1141_v10 = vmul.f32 %v9797_v1, %v595_v62  ;;  %v599_v15 = vld [vmem:[%s9790_s5 + $0xd90] sm:$0xff]  ;;  %v600_v19 = vld [vmem:[%s9790_s5 + $0xd98] sm:$0xff]  ;;  %v601_v23 = vld [vmem:[%s9790_s5 + $0xda0] sm:$0xff] }
 0x536   : > { %v8815_v51 = vpop.eup %8814  ;;  %6015 = vst [vmem:[%s9837_s20 + $0xcc0] sm:$0xff] %v5471_v44  ;;  %v5473_v52 = vmul.f32 0.2, %v8813_v47  ;;  %8834 = vlog2.f32 %v2098_v38  ;;  %v1142_v14 = vmul.f32 %v9797_v1, %v596_v3  ;;  %v1143_v18 = vmul.f32 %v9797_v1, %v597_v7  ;;  %v602_v27 = vld [vmem:[%s9790_s5 + $0xda8] sm:$0xff] }
 0x537   : > { %v8817_v55 = vpop.eup %8816  ;;  %6016 = vst [vmem:[%s9837_s20 + $0xcc8] sm:$0xff] %v5472_v48  ;;  %v5474_v56 = vmul.f32 0.2, %v8815_v51  ;;  %8836 = vlog2.f32 %v2100_v41  ;;  %v1144_v22 = vmul.f32 %v9797_v1, %v598_v11  ;;  %v1145_v26 = vmul.f32 %v9797_v1, %v599_v15 }
 0x538   : > { %v8819_v59 = vpop.eup %8818  ;;  %6017 = vst [vmem:[%s9837_s20 + $0xcd0] sm:$0xff] %v5473_v52  ;;  %v5475_v60 = vmul.f32 0.2, %v8817_v55  ;;  %8838 = vlog2.f32 %v2102_v45  ;;  %v1146_v30 = vmul.f32 %v9797_v1, %v600_v19  ;;  %v1147_v33 = vmul.f32 %v9797_v1, %v601_v23 }
 0x539   : > { %v8821_v63 = vpop.eup %8820  ;;  %6018 = vst [vmem:[%s9837_s20 + $0xcd8] sm:$0xff] %v5474_v56  ;;  %v5476_v0 = vmul.f32 0.2, %v8819_v59  ;;  %8840 = vlog2.f32 %v2104_v49  ;;  %v1148_v36 = vmul.f32 %v9797_v1, %v602_v27 }
 0x53a   : > { %v8823_v4 = vpop.eup %8822  ;;  %6019 = vst [vmem:[%s9837_s20 + $0xce0] sm:$0xff] %v5475_v60  ;;  %v5477_v5 = vmul.f32 0.2, %v8821_v63  ;;  %8842 = vlog2.f32 %v1136_v53 }
 0x53b   : > { %v8825_v8 = vpop.eup %8824  ;;  %6020 = vst [vmem:[%s9837_s20 + $0xce8] sm:$0xff] %v5476_v0  ;;  %v5478_v9 = vmul.f32 0.2, %v8823_v4  ;;  %8844 = vlog2.f32 %v1137_v57 }
 0x53c   : > { %v8827_v12 = vpop.eup %8826  ;;  %6021 = vst [vmem:[%s9837_s20 + $0xcf0] sm:$0xff] %v5477_v5  ;;  %v5479_v13 = vmul.f32 0.2, %v8825_v8  ;;  %8846 = vlog2.f32 %v1138_v61 }
 0x53d   : > { %v8829_v16 = vpop.eup %8828  ;;  %6022 = vst [vmem:[%s9837_s20 + $0xcf8] sm:$0xff] %v5478_v9  ;;  %v5480_v17 = vmul.f32 0.2, %v8827_v12  ;;  %8848 = vlog2.f32 %v1139_v2 }
 0x53e   : > { %v8831_v20 = vpop.eup %8830  ;;  %6023 = vst [vmem:[%s9837_s20 + $0xd00] sm:$0xff] %v5479_v13  ;;  %v5481_v21 = vmul.f32 0.2, %v8829_v16  ;;  %8850 = vlog2.f32 %v1140_v6 }
 0x53f   : > { %v8833_v24 = vpop.eup %8832  ;;  %6024 = vst [vmem:[%s9837_s20 + $0xd08] sm:$0xff] %v5480_v17  ;;  %v5482_v25 = vmul.f32 0.2, %v8831_v20  ;;  %8852 = vlog2.f32 %v1141_v10  ;;  %v603_v10 = vld [vmem:[%s9790_s5 + $0xdb0] sm:$0xff] }
 0x540   : > { %v8835_v28 = vpop.eup %8834  ;;  %6025 = vst [vmem:[%s9837_s20 + $0xd10] sm:$0xff] %v5481_v21  ;;  %v5483_v29 = vmul.f32 0.2, %v8833_v24  ;;  %8854 = vlog2.f32 %v1142_v14  ;;  %v604_v14 = vld [vmem:[%s9790_s5 + $0xdb8] sm:$0xff]  ;;  %v1149_v21 = vmul.f32 %v9797_v1, %v603_v10 }
 0x541   : > { %v8837_v31 = vpop.eup %8836  ;;  %6026 = vst [vmem:[%s9837_s20 + $0xd18] sm:$0xff] %v5482_v25  ;;  %v3186_v32 = vmul.f32 0.6931472, %v8835_v28  ;;  %8856 = vlog2.f32 %v1143_v18  ;;  %v605_v18 = vld [vmem:[%s9790_s5 + $0xdc0] sm:$0xff]  ;;  %v1150_v25 = vmul.f32 %v9797_v1, %v604_v14 }
 0x542   : > { %v8839_v34 = vpop.eup %8838  ;;  %6027 = vst [vmem:[%s9837_s20 + $0xd20] sm:$0xff] %v5483_v29  ;;  %v3188_v35 = vmul.f32 0.6931472, %v8837_v31  ;;  %8858 = vlog2.f32 %v1144_v22  ;;  %v606_v22 = vld [vmem:[%s9790_s5 + $0xdc8] sm:$0xff]  ;;  %v1151_v28 = vmul.f32 %v9797_v1, %v605_v18 }
 0x543   : > { %v8841_v37 = vpop.eup %8840  ;;  %v3852_v38 = vmul.f32 0.6, %v3186_v32  ;;  %v3190_v39 = vmul.f32 0.6931472, %v8839_v34  ;;  %8860 = vlog2.f32 %v1145_v26  ;;  %v1152_v31 = vmul.f32 %v9797_v1, %v606_v22 }
 0x544   : > { %v8843_v40 = vpop.eup %8842  ;;  %v3853_v41 = vmul.f32 0.6, %v3188_v35  ;;  %v3192_v42 = vmul.f32 0.6931472, %v8841_v37  ;;  %8862 = vlog2.f32 %v1146_v30 }
 0x545   : > { %v8845_v43 = vpop.eup %8844  ;;  %v4817_v44 = vmul.f32 1.442695, %v3852_v38  ;;  %v3854_v45 = vmul.f32 0.6, %v3190_v39  ;;  %8864 = vlog2.f32 %v1147_v33  ;;  %v2106_v51 = vmul.f32 0.6931472, %v8843_v40 }
 0x546   : > { %v8847_v46 = vpop.eup %8846  ;;  %v4819_v47 = vmul.f32 1.442695, %v3853_v41  ;;  %v3855_v48 = vmul.f32 0.6, %v3192_v42  ;;  %8866 = vlog2.f32 %v1148_v36  ;;  %v2108_v54 = vmul.f32 0.6931472, %v8845_v43 }
 0x547   : > { %v8849_v49 = vpop.eup %8848  ;;  %8868 = vpow2.f32 %v4817_v44  ;;  %v4821_v50 = vmul.f32 1.442695, %v3854_v45  ;;  %v2110_v56 = vmul.f32 0.6931472, %v8847_v46 }
 0x548   : > { %v8851_v52 = vpop.eup %8850  ;;  %8870 = vpow2.f32 %v4819_v47  ;;  %v4823_v53 = vmul.f32 1.442695, %v3855_v48  ;;  %v2112_v58 = vmul.f32 0.6931472, %v8849_v49 }
 0x549   : > { %v8853_v55 = vpop.eup %8852  ;;  %8872 = vpow2.f32 %v4821_v50  ;;  %v2114_v60 = vmul.f32 0.6931472, %v8851_v52 }
 0x54a   : > { %v8855_v57 = vpop.eup %8854  ;;  %8874 = vpow2.f32 %v4823_v53  ;;  %v2116_v62 = vmul.f32 0.6931472, %v8853_v55 }
 0x54b   : > { %v8857_v59 = vpop.eup %8856  ;;  %8876 = vlog2.f32 %v2106_v51  ;;  %v2118_v0 = vmul.f32 0.6931472, %v8855_v57 }
 0x54c   : > { %v8859_v61 = vpop.eup %8858  ;;  %8878 = vlog2.f32 %v2108_v54  ;;  %v2120_v3 = vmul.f32 0.6931472, %v8857_v59 }
 0x54d   : > { %v8861_v63 = vpop.eup %8860  ;;  %8880 = vlog2.f32 %v2110_v56  ;;  %v2122_v5 = vmul.f32 0.6931472, %v8859_v61 }
 0x54e   : > { %v8863_v2 = vpop.eup %8862  ;;  %8882 = vlog2.f32 %v2112_v58  ;;  %v2124_v7 = vmul.f32 0.6931472, %v8861_v63 }
 0x54f   : > { %v8865_v4 = vpop.eup %8864  ;;  %8884 = vlog2.f32 %v2114_v60  ;;  %v2126_v9 = vmul.f32 0.6931472, %v8863_v2 }
 0x550   : > { %v8867_v6 = vpop.eup %8866  ;;  %8886 = vlog2.f32 %v2116_v62  ;;  %v2128_v13 = vmul.f32 0.6931472, %v8865_v4 }
 0x551   : > { %v8869_v8 = vpop.eup %8868  ;;  %8888 = vlog2.f32 %v2118_v0  ;;  %v2130_v17 = vmul.f32 0.6931472, %v8867_v6 }
 0x552   : > { %v8871_v11 = vpop.eup %8870  ;;  %v5484_v12 = vmul.f32 0.2, %v8869_v8  ;;  %8890 = vlog2.f32 %v2120_v3 }
 0x553   : > { %v8873_v15 = vpop.eup %8872  ;;  %v5485_v16 = vmul.f32 0.2, %v8871_v11  ;;  %8892 = vlog2.f32 %v2122_v5 }
 0x554   : > { %v8875_v19 = vpop.eup %8874  ;;  %6028 = vst [vmem:[%s9837_s20 + $0xd28] sm:$0xff] %v5484_v12  ;;  %v5486_v20 = vmul.f32 0.2, %v8873_v15  ;;  %8894 = vlog2.f32 %v2124_v7 }
 0x555   : > { %v8877_v23 = vpop.eup %8876  ;;  %6029 = vst [vmem:[%s9837_s20 + $0xd30] sm:$0xff] %v5485_v16  ;;  %v5487_v24 = vmul.f32 0.2, %v8875_v19  ;;  %8896 = vlog2.f32 %v2126_v9 }
 0x556   : > { %v8879_v26 = vpop.eup %8878  ;;  %6030 = vst [vmem:[%s9837_s20 + $0xd38] sm:$0xff] %v5486_v20  ;;  %v3194_v27 = vmul.f32 0.6931472, %v8877_v23  ;;  %8898 = vlog2.f32 %v2128_v13  ;;  %v607_v23 = vld [vmem:[%s9790_s5 + $0xdd0] sm:$0xff] }
 0x557   : > { %v8881_v29 = vpop.eup %8880  ;;  %6031 = vst [vmem:[%s9837_s20 + $0xd40] sm:$0xff] %v5487_v24  ;;  %v3196_v30 = vmul.f32 0.6931472, %v8879_v26  ;;  %8900 = vlog2.f32 %v2130_v17 }
 0x558   : > { %v8883_v32 = vpop.eup %8882  ;;  %v3856_v33 = vmul.f32 0.6, %v3194_v27  ;;  %v3198_v34 = vmul.f32 0.6931472, %v8881_v29  ;;  %8902 = vlog2.f32 %v1149_v21  ;;  %v608_v27 = vld [vmem:[%s9790_s5 + $0xdd8] sm:$0xff] }
 0x559   : > { %v8885_v35 = vpop.eup %8884  ;;  %v3857_v36 = vmul.f32 0.6, %v3196_v30  ;;  %v3200_v37 = vmul.f32 0.6931472, %v8883_v32  ;;  %8904 = vlog2.f32 %v1150_v25 }
 0x55a   : > { %v8887_v38 = vpop.eup %8886  ;;  %v4825_v39 = vmul.f32 1.442695, %v3856_v33  ;;  %v3858_v40 = vmul.f32 0.6, %v3198_v34  ;;  %v3202_v41 = vmul.f32 0.6931472, %v8885_v35  ;;  %8906 = vlog2.f32 %v1151_v28 }
 0x55b   : > { %v8889_v42 = vpop.eup %8888  ;;  %v4827_v43 = vmul.f32 1.442695, %v3857_v36  ;;  %v3859_v44 = vmul.f32 0.6, %v3200_v37  ;;  %v3204_v45 = vmul.f32 0.6931472, %v8887_v38  ;;  %8908 = vlog2.f32 %v1152_v31 }
 0x55c   : > { %v8891_v46 = vpop.eup %8890  ;;  %8910 = vpow2.f32 %v4825_v39  ;;  %v4829_v47 = vmul.f32 1.442695, %v3858_v40  ;;  %v3860_v48 = vmul.f32 0.6, %v3202_v41  ;;  %v3206_v49 = vmul.f32 0.6931472, %v8889_v42 }
 0x55d   : > { %v8893_v50 = vpop.eup %8892  ;;  %8912 = vpow2.f32 %v4827_v43  ;;  %v4831_v51 = vmul.f32 1.442695, %v3859_v44  ;;  %v3861_v52 = vmul.f32 0.6, %v3204_v45  ;;  %v3208_v53 = vmul.f32 0.6931472, %v8891_v46 }
 0x55e   : > { %v8895_v54 = vpop.eup %8894  ;;  %8914 = vpow2.f32 %v4829_v47  ;;  %v4833_v55 = vmul.f32 1.442695, %v3860_v48  ;;  %v3862_v56 = vmul.f32 0.6, %v3206_v49  ;;  %v3210_v57 = vmul.f32 0.6931472, %v8893_v50 }
 0x55f   : > { %v8897_v58 = vpop.eup %8896  ;;  %8916 = vpow2.f32 %v4831_v51  ;;  %v4835_v59 = vmul.f32 1.442695, %v3861_v52  ;;  %v3863_v60 = vmul.f32 0.6, %v3208_v53  ;;  %v3212_v61 = vmul.f32 0.6931472, %v8895_v54 }
 0x560   : > { %v8899_v62 = vpop.eup %8898  ;;  %8918 = vpow2.f32 %v4833_v55  ;;  %v4837_v63 = vmul.f32 1.442695, %v3862_v56  ;;  %v3864_v0 = vmul.f32 0.6, %v3210_v57  ;;  %v3214_v2 = vmul.f32 0.6931472, %v8897_v58 }
 0x561   : > { %v8901_v3 = vpop.eup %8900  ;;  %8920 = vpow2.f32 %v4835_v59  ;;  %v4839_v4 = vmul.f32 1.442695, %v3863_v60  ;;  %v3865_v5 = vmul.f32 0.6, %v3212_v61  ;;  %v3216_v6 = vmul.f32 0.6931472, %v8899_v62 }
 0x562   : > { %v8903_v7 = vpop.eup %8902  ;;  %8922 = vpow2.f32 %v4837_v63  ;;  %v4841_v8 = vmul.f32 1.442695, %v3864_v0  ;;  %v3866_v9 = vmul.f32 0.6, %v3214_v2  ;;  %v3218_v10 = vmul.f32 0.6931472, %v8901_v3 }
 0x563   : > { %v8905_v11 = vpop.eup %8904  ;;  %8924 = vpow2.f32 %v4839_v4  ;;  %v4843_v12 = vmul.f32 1.442695, %v3865_v5  ;;  %v3867_v13 = vmul.f32 0.6, %v3216_v6  ;;  %v2132_v19 = vmul.f32 0.6931472, %v8903_v7 }
 0x564   : > { %v8907_v14 = vpop.eup %8906  ;;  %8926 = vpow2.f32 %v4841_v8  ;;  %v4845_v15 = vmul.f32 1.442695, %v3866_v9  ;;  %v3868_v16 = vmul.f32 0.6, %v3218_v10  ;;  %v2134_v22 = vmul.f32 0.6931472, %v8905_v11 }
 0x565   : > { %v8909_v17 = vpop.eup %8908  ;;  %8928 = vpow2.f32 %v4843_v12  ;;  %v4847_v18 = vmul.f32 1.442695, %v3867_v13  ;;  %v2136_v26 = vmul.f32 0.6931472, %v8907_v14  ;;  %v609_v31 = vld [vmem:[%s9790_s5 + $0xde0] sm:$0xff]  ;;  %v1153_v34 = vmul.f32 %v9797_v1, %v607_v23  ;;  %v610_v35 = vld [vmem:[%s9790_s5 + $0xde8] sm:$0xff] }
 0x566   : > { %v8911_v20 = vpop.eup %8910  ;;  %8930 = vpow2.f32 %v4845_v15  ;;  %v4849_v21 = vmul.f32 1.442695, %v3868_v16  ;;  %v2138_v30 = vmul.f32 0.6931472, %v8909_v17  ;;  %v1154_v38 = vmul.f32 %v9797_v1, %v608_v27  ;;  %v611_v39 = vld [vmem:[%s9790_s5 + $0xdf0] sm:$0xff]  ;;  %v612_v43 = vld [vmem:[%s9790_s5 + $0xdf8] sm:$0xff] }
 0x567   : > { %v8913_v24 = vpop.eup %8912  ;;  %v5488_v25 = vmul.f32 0.2, %v8911_v20  ;;  %8932 = vpow2.f32 %v4847_v18  ;;  %v1155_v42 = vmul.f32 %v9797_v1, %v609_v31  ;;  %v1156_v46 = vmul.f32 %v9797_v1, %v610_v35  ;;  %v613_v47 = vld [vmem:[%s9790_s5 + $0xe00] sm:$0xff]  ;;  %v614_v51 = vld [vmem:[%s9790_s5 + $0xe08] sm:$0xff]  ;;  %v615_v55 = vld [vmem:[%s9790_s5 + $0xe10] sm:$0xff] }
 0x568   : > { %v8915_v28 = vpop.eup %8914  ;;  %v5489_v29 = vmul.f32 0.2, %v8913_v24  ;;  %8934 = vpow2.f32 %v4849_v21  ;;  %v1157_v50 = vmul.f32 %v9797_v1, %v611_v39  ;;  %v1158_v54 = vmul.f32 %v9797_v1, %v612_v43  ;;  %v616_v59 = vld [vmem:[%s9790_s5 + $0xe18] sm:$0xff]  ;;  %v617_v63 = vld [vmem:[%s9790_s5 + $0xe20] sm:$0xff]  ;;  %v618_v4 = vld [vmem:[%s9790_s5 + $0xe28] sm:$0xff] }
 0x569   : > { %v8917_v32 = vpop.eup %8916  ;;  %6032 = vst [vmem:[%s9837_s20 + $0xd48] sm:$0xff] %v5488_v25  ;;  %v5490_v33 = vmul.f32 0.2, %v8915_v28  ;;  %8936 = vlog2.f32 %v2132_v19  ;;  %v1159_v58 = vmul.f32 %v9797_v1, %v613_v47  ;;  %v1160_v62 = vmul.f32 %v9797_v1, %v614_v51  ;;  %v619_v8 = vld [vmem:[%s9790_s5 + $0xe30] sm:$0xff] }
 0x56a   : > { %v8919_v36 = vpop.eup %8918  ;;  %6033 = vst [vmem:[%s9837_s20 + $0xd50] sm:$0xff] %v5489_v29  ;;  %v5491_v37 = vmul.f32 0.2, %v8917_v32  ;;  %8938 = vlog2.f32 %v2134_v22  ;;  %v1161_v3 = vmul.f32 %v9797_v1, %v615_v55  ;;  %v1162_v7 = vmul.f32 %v9797_v1, %v616_v59 }
 0x56b   : > { %v8921_v40 = vpop.eup %8920  ;;  %6034 = vst [vmem:[%s9837_s20 + $0xd58] sm:$0xff] %v5490_v33  ;;  %v5492_v41 = vmul.f32 0.2, %v8919_v36  ;;  %8940 = vlog2.f32 %v2136_v26  ;;  %v1163_v11 = vmul.f32 %v9797_v1, %v617_v63  ;;  %v1164_v14 = vmul.f32 %v9797_v1, %v618_v4 }
 0x56c   : > { %v8923_v44 = vpop.eup %8922  ;;  %6035 = vst [vmem:[%s9837_s20 + $0xd60] sm:$0xff] %v5491_v37  ;;  %v5493_v45 = vmul.f32 0.2, %v8921_v40  ;;  %8942 = vlog2.f32 %v2138_v30  ;;  %v1165_v17 = vmul.f32 %v9797_v1, %v619_v8 }
 0x56d   : > { %v8925_v48 = vpop.eup %8924  ;;  %6036 = vst [vmem:[%s9837_s20 + $0xd68] sm:$0xff] %v5492_v41  ;;  %v5494_v49 = vmul.f32 0.2, %v8923_v44  ;;  %8944 = vlog2.f32 %v1153_v34 }
 0x56e   : > { %v8927_v52 = vpop.eup %8926  ;;  %6037 = vst [vmem:[%s9837_s20 + $0xd70] sm:$0xff] %v5493_v45  ;;  %v5495_v53 = vmul.f32 0.2, %v8925_v48  ;;  %8946 = vlog2.f32 %v1154_v38 }
 0x56f   : > { %v8929_v56 = vpop.eup %8928  ;;  %6038 = vst [vmem:[%s9837_s20 + $0xd78] sm:$0xff] %v5494_v49  ;;  %v5496_v57 = vmul.f32 0.2, %v8927_v52  ;;  %8948 = vlog2.f32 %v1155_v42 }
 0x570   : > { %v8931_v60 = vpop.eup %8930  ;;  %6039 = vst [vmem:[%s9837_s20 + $0xd80] sm:$0xff] %v5495_v53  ;;  %v5497_v61 = vmul.f32 0.2, %v8929_v56  ;;  %8950 = vlog2.f32 %v1156_v46 }
 0x571   : > { %v8933_v0 = vpop.eup %8932  ;;  %6040 = vst [vmem:[%s9837_s20 + $0xd88] sm:$0xff] %v5496_v57  ;;  %v5498_v2 = vmul.f32 0.2, %v8931_v60  ;;  %8952 = vlog2.f32 %v1157_v50 }
 0x572   : > { %v8935_v5 = vpop.eup %8934  ;;  %6041 = vst [vmem:[%s9837_s20 + $0xd90] sm:$0xff] %v5497_v61  ;;  %v5499_v6 = vmul.f32 0.2, %v8933_v0  ;;  %8954 = vlog2.f32 %v1158_v54  ;;  %v620_v54 = vld [vmem:[%s9790_s5 + $0xe38] sm:$0xff] }
 0x573   : > { %v8937_v9 = vpop.eup %8936  ;;  %6042 = vst [vmem:[%s9837_s20 + $0xd98] sm:$0xff] %v5498_v2  ;;  %v5500_v10 = vmul.f32 0.2, %v8935_v5  ;;  %8956 = vlog2.f32 %v1159_v58  ;;  %v621_v58 = vld [vmem:[%s9790_s5 + $0xe40] sm:$0xff]  ;;  %v1166_v2 = vmul.f32 %v9797_v1, %v620_v54 }
 0x574   : > { %v8939_v12 = vpop.eup %8938  ;;  %6043 = vst [vmem:[%s9837_s20 + $0xda0] sm:$0xff] %v5499_v6  ;;  %v3220_v13 = vmul.f32 0.6931472, %v8937_v9  ;;  %8958 = vlog2.f32 %v1160_v62  ;;  %v622_v62 = vld [vmem:[%s9790_s5 + $0xe48] sm:$0xff]  ;;  %v1167_v6 = vmul.f32 %v9797_v1, %v621_v58 }
 0x575   : > { %v8941_v15 = vpop.eup %8940  ;;  %6044 = vst [vmem:[%s9837_s20 + $0xda8] sm:$0xff] %v5500_v10  ;;  %v3222_v16 = vmul.f32 0.6931472, %v8939_v12  ;;  %8960 = vlog2.f32 %v1161_v3  ;;  %v623_v3 = vld [vmem:[%s9790_s5 + $0xe50] sm:$0xff]  ;;  %v1168_v9 = vmul.f32 %v9797_v1, %v622_v62 }
 0x576   : > { %v8943_v18 = vpop.eup %8942  ;;  %v3869_v19 = vmul.f32 0.6, %v3220_v13  ;;  %v3224_v20 = vmul.f32 0.6931472, %v8941_v15  ;;  %8962 = vlog2.f32 %v1162_v7  ;;  %v1169_v12 = vmul.f32 %v9797_v1, %v623_v3 }
 0x577   : > { %v8945_v21 = vpop.eup %8944  ;;  %v3870_v22 = vmul.f32 0.6, %v3222_v16  ;;  %v3226_v23 = vmul.f32 0.6931472, %v8943_v18  ;;  %8964 = vlog2.f32 %v1163_v11 }
 0x578   : > { %v8947_v24 = vpop.eup %8946  ;;  %v4851_v25 = vmul.f32 1.442695, %v3869_v19  ;;  %v3871_v26 = vmul.f32 0.6, %v3224_v20  ;;  %8966 = vlog2.f32 %v1164_v14  ;;  %v2140_v32 = vmul.f32 0.6931472, %v8945_v21 }
 0x579   : > { %v8949_v27 = vpop.eup %8948  ;;  %v4853_v28 = vmul.f32 1.442695, %v3870_v22  ;;  %v3872_v29 = vmul.f32 0.6, %v3226_v23  ;;  %8968 = vlog2.f32 %v1165_v17  ;;  %v2142_v35 = vmul.f32 0.6931472, %v8947_v24 }
 0x57a   : > { %v8951_v30 = vpop.eup %8950  ;;  %8970 = vpow2.f32 %v4851_v25  ;;  %v4855_v31 = vmul.f32 1.442695, %v3871_v26  ;;  %v2144_v37 = vmul.f32 0.6931472, %v8949_v27 }
 0x57b   : > { %v8953_v33 = vpop.eup %8952  ;;  %8972 = vpow2.f32 %v4853_v28  ;;  %v4857_v34 = vmul.f32 1.442695, %v3872_v29  ;;  %v2146_v39 = vmul.f32 0.6931472, %v8951_v30 }
 0x57c   : > { %v8955_v36 = vpop.eup %8954  ;;  %8974 = vpow2.f32 %v4855_v31  ;;  %v2148_v41 = vmul.f32 0.6931472, %v8953_v33 }
 0x57d   : > { %v8957_v38 = vpop.eup %8956  ;;  %8976 = vpow2.f32 %v4857_v34  ;;  %v2150_v43 = vmul.f32 0.6931472, %v8955_v36 }
 0x57e   : > { %v8959_v40 = vpop.eup %8958  ;;  %8978 = vlog2.f32 %v2140_v32  ;;  %v2152_v45 = vmul.f32 0.6931472, %v8957_v38 }
 0x57f   : > { %v8961_v42 = vpop.eup %8960  ;;  %8980 = vlog2.f32 %v2142_v35  ;;  %v2154_v47 = vmul.f32 0.6931472, %v8959_v40 }
 0x580   : > { %v8963_v44 = vpop.eup %8962  ;;  %8982 = vlog2.f32 %v2144_v37  ;;  %v2156_v49 = vmul.f32 0.6931472, %v8961_v42 }
 0x581   : > { %v8965_v46 = vpop.eup %8964  ;;  %8984 = vlog2.f32 %v2146_v39  ;;  %v2158_v51 = vmul.f32 0.6931472, %v8963_v44 }
 0x582   : > { %v8967_v48 = vpop.eup %8966  ;;  %8986 = vlog2.f32 %v2148_v41  ;;  %v2160_v53 = vmul.f32 0.6931472, %v8965_v46 }
 0x583   : > { %v8969_v50 = vpop.eup %8968  ;;  %8988 = vlog2.f32 %v2150_v43  ;;  %v2162_v57 = vmul.f32 0.6931472, %v8967_v48 }
 0x584   : > { %v8971_v52 = vpop.eup %8970  ;;  %8990 = vlog2.f32 %v2152_v45  ;;  %v2164_v61 = vmul.f32 0.6931472, %v8969_v50 }
 0x585   : > { %v8973_v55 = vpop.eup %8972  ;;  %v5501_v56 = vmul.f32 0.2, %v8971_v52  ;;  %8992 = vlog2.f32 %v2154_v47 }
 0x586   : > { %v8975_v59 = vpop.eup %8974  ;;  %v5502_v60 = vmul.f32 0.2, %v8973_v55  ;;  %8994 = vlog2.f32 %v2156_v49 }
 0x587   : > { %v8977_v63 = vpop.eup %8976  ;;  %6045 = vst [vmem:[%s9837_s20 + $0xdb0] sm:$0xff] %v5501_v56  ;;  %v5503_v0 = vmul.f32 0.2, %v8975_v59  ;;  %8996 = vlog2.f32 %v2158_v51 }
 0x588   : > { %v8979_v4 = vpop.eup %8978  ;;  %6046 = vst [vmem:[%s9837_s20 + $0xdb8] sm:$0xff] %v5502_v60  ;;  %v5504_v5 = vmul.f32 0.2, %v8977_v63  ;;  %8998 = vlog2.f32 %v2160_v53 }
 0x589   : > { %v8981_v7 = vpop.eup %8980  ;;  %6047 = vst [vmem:[%s9837_s20 + $0xdc0] sm:$0xff] %v5503_v0  ;;  %v3228_v8 = vmul.f32 0.6931472, %v8979_v4  ;;  %9000 = vlog2.f32 %v2162_v57  ;;  %v624_v4 = vld [vmem:[%s9790_s5 + $0xe58] sm:$0xff] }
 0x58a   : > { %v8983_v10 = vpop.eup %8982  ;;  %6048 = vst [vmem:[%s9837_s20 + $0xdc8] sm:$0xff] %v5504_v5  ;;  %v3230_v11 = vmul.f32 0.6931472, %v8981_v7  ;;  %9002 = vlog2.f32 %v2164_v61 }
 0x58b   : > { %v8985_v13 = vpop.eup %8984  ;;  %v3873_v14 = vmul.f32 0.6, %v3228_v8  ;;  %v3232_v15 = vmul.f32 0.6931472, %v8983_v10  ;;  %9004 = vlog2.f32 %v1166_v2  ;;  %v625_v8 = vld [vmem:[%s9790_s5 + $0xe60] sm:$0xff] }
 0x58c   : > { %v8987_v16 = vpop.eup %8986  ;;  %v3874_v17 = vmul.f32 0.6, %v3230_v11  ;;  %v3234_v18 = vmul.f32 0.6931472, %v8985_v13  ;;  %9006 = vlog2.f32 %v1167_v6 }
 0x58d   : > { %v8989_v19 = vpop.eup %8988  ;;  %v4859_v20 = vmul.f32 1.442695, %v3873_v14  ;;  %v3875_v21 = vmul.f32 0.6, %v3232_v15  ;;  %v3236_v22 = vmul.f32 0.6931472, %v8987_v16  ;;  %9008 = vlog2.f32 %v1168_v9 }
 0x58e   : > { %v8991_v23 = vpop.eup %8990  ;;  %v4861_v24 = vmul.f32 1.442695, %v3874_v17  ;;  %v3876_v25 = vmul.f32 0.6, %v3234_v18  ;;  %v3238_v26 = vmul.f32 0.6931472, %v8989_v19  ;;  %9010 = vlog2.f32 %v1169_v12 }
 0x58f   : > { %v8993_v27 = vpop.eup %8992  ;;  %9012 = vpow2.f32 %v4859_v20  ;;  %v4863_v28 = vmul.f32 1.442695, %v3875_v21  ;;  %v3877_v29 = vmul.f32 0.6, %v3236_v22  ;;  %v3240_v30 = vmul.f32 0.6931472, %v8991_v23 }
 0x590   : > { %v8995_v31 = vpop.eup %8994  ;;  %9014 = vpow2.f32 %v4861_v24  ;;  %v4865_v32 = vmul.f32 1.442695, %v3876_v25  ;;  %v3878_v33 = vmul.f32 0.6, %v3238_v26  ;;  %v3242_v34 = vmul.f32 0.6931472, %v8993_v27 }
 0x591   : > { %v8997_v35 = vpop.eup %8996  ;;  %9016 = vpow2.f32 %v4863_v28  ;;  %v4867_v36 = vmul.f32 1.442695, %v3877_v29  ;;  %v3879_v37 = vmul.f32 0.6, %v3240_v30  ;;  %v3244_v38 = vmul.f32 0.6931472, %v8995_v31 }
 0x592   : > { %v8999_v39 = vpop.eup %8998  ;;  %9018 = vpow2.f32 %v4865_v32  ;;  %v4869_v40 = vmul.f32 1.442695, %v3878_v33  ;;  %v3880_v41 = vmul.f32 0.6, %v3242_v34  ;;  %v3246_v42 = vmul.f32 0.6931472, %v8997_v35 }
 0x593   : > { %v9001_v43 = vpop.eup %9000  ;;  %9020 = vpow2.f32 %v4867_v36  ;;  %v4871_v44 = vmul.f32 1.442695, %v3879_v37  ;;  %v3881_v45 = vmul.f32 0.6, %v3244_v38  ;;  %v3248_v46 = vmul.f32 0.6931472, %v8999_v39 }
 0x594   : > { %v9003_v47 = vpop.eup %9002  ;;  %9022 = vpow2.f32 %v4869_v40  ;;  %v4873_v48 = vmul.f32 1.442695, %v3880_v41  ;;  %v3882_v49 = vmul.f32 0.6, %v3246_v42  ;;  %v3250_v50 = vmul.f32 0.6931472, %v9001_v43 }
 0x595   : > { %v9005_v51 = vpop.eup %9004  ;;  %9024 = vpow2.f32 %v4871_v44  ;;  %v4875_v52 = vmul.f32 1.442695, %v3881_v45  ;;  %v3883_v53 = vmul.f32 0.6, %v3248_v46  ;;  %v3252_v54 = vmul.f32 0.6931472, %v9003_v47 }
 0x596   : > { %v9007_v55 = vpop.eup %9006  ;;  %9026 = vpow2.f32 %v4873_v48  ;;  %v4877_v56 = vmul.f32 1.442695, %v3882_v49  ;;  %v3884_v57 = vmul.f32 0.6, %v3250_v50  ;;  %v2166_v63 = vmul.f32 0.6931472, %v9005_v51 }
 0x597   : > { %v9009_v58 = vpop.eup %9008  ;;  %9028 = vpow2.f32 %v4875_v52  ;;  %v4879_v59 = vmul.f32 1.442695, %v3883_v53  ;;  %v3885_v60 = vmul.f32 0.6, %v3252_v54  ;;  %v2168_v3 = vmul.f32 0.6931472, %v9007_v55 }
 0x598   : > { %v9011_v61 = vpop.eup %9010  ;;  %9030 = vpow2.f32 %v4877_v56  ;;  %v4881_v62 = vmul.f32 1.442695, %v3884_v57  ;;  %v2170_v7 = vmul.f32 0.6931472, %v9009_v58  ;;  %v626_v12 = vld [vmem:[%s9790_s5 + $0xe68] sm:$0xff]  ;;  %v1170_v15 = vmul.f32 %v9797_v1, %v624_v4  ;;  %v627_v16 = vld [vmem:[%s9790_s5 + $0xe70] sm:$0xff] }
 0x599   : > { %v9013_v0 = vpop.eup %9012  ;;  %9032 = vpow2.f32 %v4879_v59  ;;  %v4883_v2 = vmul.f32 1.442695, %v3885_v60  ;;  %v2172_v11 = vmul.f32 0.6931472, %v9011_v61  ;;  %v1171_v19 = vmul.f32 %v9797_v1, %v625_v8  ;;  %v628_v20 = vld [vmem:[%s9790_s5 + $0xe78] sm:$0xff]  ;;  %v629_v24 = vld [vmem:[%s9790_s5 + $0xe80] sm:$0xff] }
 0x59a   : > { %v9015_v5 = vpop.eup %9014  ;;  %v5505_v6 = vmul.f32 0.2, %v9013_v0  ;;  %9034 = vpow2.f32 %v4881_v62  ;;  %v1172_v23 = vmul.f32 %v9797_v1, %v626_v12  ;;  %v1173_v27 = vmul.f32 %v9797_v1, %v627_v16  ;;  %v630_v28 = vld [vmem:[%s9790_s5 + $0xe88] sm:$0xff]  ;;  %v631_v32 = vld [vmem:[%s9790_s5 + $0xe90] sm:$0xff]  ;;  %v632_v36 = vld [vmem:[%s9790_s5 + $0xe98] sm:$0xff] }
 0x59b   : > { %v9017_v9 = vpop.eup %9016  ;;  %v5506_v10 = vmul.f32 0.2, %v9015_v5  ;;  %9036 = vpow2.f32 %v4883_v2  ;;  %v1174_v31 = vmul.f32 %v9797_v1, %v628_v20  ;;  %v1175_v35 = vmul.f32 %v9797_v1, %v629_v24  ;;  %v633_v40 = vld [vmem:[%s9790_s5 + $0xea0] sm:$0xff]  ;;  %v634_v44 = vld [vmem:[%s9790_s5 + $0xea8] sm:$0xff]  ;;  %v635_v48 = vld [vmem:[%s9790_s5 + $0xeb0] sm:$0xff] }
 0x59c   : > { %v9019_v13 = vpop.eup %9018  ;;  %6049 = vst [vmem:[%s9837_s20 + $0xdd0] sm:$0xff] %v5505_v6  ;;  %v5507_v14 = vmul.f32 0.2, %v9017_v9  ;;  %9038 = vlog2.f32 %v2166_v63  ;;  %v1176_v39 = vmul.f32 %v9797_v1, %v630_v28  ;;  %v1177_v43 = vmul.f32 %v9797_v1, %v631_v32  ;;  %v636_v52 = vld [vmem:[%s9790_s5 + $0xeb8] sm:$0xff] }
 0x59d   : > { %v9021_v17 = vpop.eup %9020  ;;  %6050 = vst [vmem:[%s9837_s20 + $0xdd8] sm:$0xff] %v5506_v10  ;;  %v5508_v18 = vmul.f32 0.2, %v9019_v13  ;;  %9040 = vlog2.f32 %v2168_v3  ;;  %v1178_v47 = vmul.f32 %v9797_v1, %v632_v36  ;;  %v1179_v51 = vmul.f32 %v9797_v1, %v633_v40 }
 0x59e   : > { %v9023_v21 = vpop.eup %9022  ;;  %6051 = vst [vmem:[%s9837_s20 + $0xde0] sm:$0xff] %v5507_v14  ;;  %v5509_v22 = vmul.f32 0.2, %v9021_v17  ;;  %9042 = vlog2.f32 %v2170_v7  ;;  %v1180_v55 = vmul.f32 %v9797_v1, %v634_v44  ;;  %v1181_v58 = vmul.f32 %v9797_v1, %v635_v48 }
 0x59f   : > { %v9025_v25 = vpop.eup %9024  ;;  %6052 = vst [vmem:[%s9837_s20 + $0xde8] sm:$0xff] %v5508_v18  ;;  %v5510_v26 = vmul.f32 0.2, %v9023_v21  ;;  %9044 = vlog2.f32 %v2172_v11  ;;  %v1182_v61 = vmul.f32 %v9797_v1, %v636_v52 }
 0x5a0   : > { %v9027_v29 = vpop.eup %9026  ;;  %6053 = vst [vmem:[%s9837_s20 + $0xdf0] sm:$0xff] %v5509_v22  ;;  %v5511_v30 = vmul.f32 0.2, %v9025_v25  ;;  %9046 = vlog2.f32 %v1170_v15 }
 0x5a1   : > { %v9029_v33 = vpop.eup %9028  ;;  %6054 = vst [vmem:[%s9837_s20 + $0xdf8] sm:$0xff] %v5510_v26  ;;  %v5512_v34 = vmul.f32 0.2, %v9027_v29  ;;  %9048 = vlog2.f32 %v1171_v19 }
 0x5a2   : > { %v9031_v37 = vpop.eup %9030  ;;  %6055 = vst [vmem:[%s9837_s20 + $0xe00] sm:$0xff] %v5511_v30  ;;  %v5513_v38 = vmul.f32 0.2, %v9029_v33  ;;  %9050 = vlog2.f32 %v1172_v23 }
 0x5a3   : > { %v9033_v41 = vpop.eup %9032  ;;  %6056 = vst [vmem:[%s9837_s20 + $0xe08] sm:$0xff] %v5512_v34  ;;  %v5514_v42 = vmul.f32 0.2, %v9031_v37  ;;  %9052 = vlog2.f32 %v1173_v27 }
 0x5a4   : > { %v9035_v45 = vpop.eup %9034  ;;  %6057 = vst [vmem:[%s9837_s20 + $0xe10] sm:$0xff] %v5513_v38  ;;  %v5515_v46 = vmul.f32 0.2, %v9033_v41  ;;  %9054 = vlog2.f32 %v1174_v31 }
 0x5a5   : > { %v9037_v49 = vpop.eup %9036  ;;  %6058 = vst [vmem:[%s9837_s20 + $0xe18] sm:$0xff] %v5514_v42  ;;  %v5516_v50 = vmul.f32 0.2, %v9035_v45  ;;  %9056 = vlog2.f32 %v1175_v35  ;;  %v637_v35 = vld [vmem:[%s9790_s5 + $0xec0] sm:$0xff] }
 0x5a6   : > { %v9039_v53 = vpop.eup %9038  ;;  %6059 = vst [vmem:[%s9837_s20 + $0xe20] sm:$0xff] %v5515_v46  ;;  %v5517_v54 = vmul.f32 0.2, %v9037_v49  ;;  %9058 = vlog2.f32 %v1176_v39  ;;  %v638_v39 = vld [vmem:[%s9790_s5 + $0xec8] sm:$0xff]  ;;  %v1183_v46 = vmul.f32 %v9797_v1, %v637_v35 }
 0x5a7   : > { %v9041_v56 = vpop.eup %9040  ;;  %6060 = vst [vmem:[%s9837_s20 + $0xe28] sm:$0xff] %v5516_v50  ;;  %v3254_v57 = vmul.f32 0.6931472, %v9039_v53  ;;  %9060 = vlog2.f32 %v1177_v43  ;;  %v639_v43 = vld [vmem:[%s9790_s5 + $0xed0] sm:$0xff]  ;;  %v1184_v50 = vmul.f32 %v9797_v1, %v638_v39 }
 0x5a8   : > { %v9043_v59 = vpop.eup %9042  ;;  %6061 = vst [vmem:[%s9837_s20 + $0xe30] sm:$0xff] %v5517_v54  ;;  %v3256_v60 = vmul.f32 0.6931472, %v9041_v56  ;;  %9062 = vlog2.f32 %v1178_v47  ;;  %v640_v47 = vld [vmem:[%s9790_s5 + $0xed8] sm:$0xff]  ;;  %v1185_v53 = vmul.f32 %v9797_v1, %v639_v43 }
 0x5a9   : > { %v9045_v62 = vpop.eup %9044  ;;  %v3886_v63 = vmul.f32 0.6, %v3254_v57  ;;  %v3258_v0 = vmul.f32 0.6931472, %v9043_v59  ;;  %9064 = vlog2.f32 %v1179_v51  ;;  %v1186_v56 = vmul.f32 %v9797_v1, %v640_v47 }
 0x5aa   : > { %v9047_v2 = vpop.eup %9046  ;;  %v3887_v3 = vmul.f32 0.6, %v3256_v60  ;;  %v3260_v4 = vmul.f32 0.6931472, %v9045_v62  ;;  %9066 = vlog2.f32 %v1180_v55 }
 0x5ab   : > { %v9049_v5 = vpop.eup %9048  ;;  %v4885_v6 = vmul.f32 1.442695, %v3886_v63  ;;  %v3888_v7 = vmul.f32 0.6, %v3258_v0  ;;  %9068 = vlog2.f32 %v1181_v58  ;;  %v2174_v13 = vmul.f32 0.6931472, %v9047_v2 }
 0x5ac   : > { %v9051_v8 = vpop.eup %9050  ;;  %v4887_v9 = vmul.f32 1.442695, %v3887_v3  ;;  %v3889_v10 = vmul.f32 0.6, %v3260_v4  ;;  %9070 = vlog2.f32 %v1182_v61  ;;  %v2176_v16 = vmul.f32 0.6931472, %v9049_v5 }
 0x5ad   : > { %v9053_v11 = vpop.eup %9052  ;;  %9072 = vpow2.f32 %v4885_v6  ;;  %v4889_v12 = vmul.f32 1.442695, %v3888_v7  ;;  %v2178_v18 = vmul.f32 0.6931472, %v9051_v8 }
 0x5ae   : > { %v9055_v14 = vpop.eup %9054  ;;  %9074 = vpow2.f32 %v4887_v9  ;;  %v4891_v15 = vmul.f32 1.442695, %v3889_v10  ;;  %v2180_v20 = vmul.f32 0.6931472, %v9053_v11 }
 0x5af   : > { %v9057_v17 = vpop.eup %9056  ;;  %9076 = vpow2.f32 %v4889_v12  ;;  %v2182_v22 = vmul.f32 0.6931472, %v9055_v14 }
 0x5b0   : > { %v9059_v19 = vpop.eup %9058  ;;  %9078 = vpow2.f32 %v4891_v15  ;;  %v2184_v24 = vmul.f32 0.6931472, %v9057_v17 }
 0x5b1   : > { %v9061_v21 = vpop.eup %9060  ;;  %9080 = vlog2.f32 %v2174_v13  ;;  %v2186_v26 = vmul.f32 0.6931472, %v9059_v19 }
 0x5b2   : > { %v9063_v23 = vpop.eup %9062  ;;  %9082 = vlog2.f32 %v2176_v16  ;;  %v2188_v28 = vmul.f32 0.6931472, %v9061_v21 }
 0x5b3   : > { %v9065_v25 = vpop.eup %9064  ;;  %9084 = vlog2.f32 %v2178_v18  ;;  %v2190_v30 = vmul.f32 0.6931472, %v9063_v23 }
 0x5b4   : > { %v9067_v27 = vpop.eup %9066  ;;  %9086 = vlog2.f32 %v2180_v20  ;;  %v2192_v32 = vmul.f32 0.6931472, %v9065_v25 }
 0x5b5   : > { %v9069_v29 = vpop.eup %9068  ;;  %9088 = vlog2.f32 %v2182_v22  ;;  %v2194_v34 = vmul.f32 0.6931472, %v9067_v27 }
 0x5b6   : > { %v9071_v31 = vpop.eup %9070  ;;  %9090 = vlog2.f32 %v2184_v24  ;;  %v2196_v38 = vmul.f32 0.6931472, %v9069_v29 }
 0x5b7   : > { %v9073_v33 = vpop.eup %9072  ;;  %9092 = vlog2.f32 %v2186_v26  ;;  %v2198_v42 = vmul.f32 0.6931472, %v9071_v31 }
 0x5b8   : > { %v9075_v36 = vpop.eup %9074  ;;  %v5518_v37 = vmul.f32 0.2, %v9073_v33  ;;  %9094 = vlog2.f32 %v2188_v28 }
 0x5b9   : > { %v9077_v40 = vpop.eup %9076  ;;  %v5519_v41 = vmul.f32 0.2, %v9075_v36  ;;  %9096 = vlog2.f32 %v2190_v30 }
 0x5ba   : > { %v9079_v44 = vpop.eup %9078  ;;  %6062 = vst [vmem:[%s9837_s20 + $0xe38] sm:$0xff] %v5518_v37  ;;  %v5520_v45 = vmul.f32 0.2, %v9077_v40  ;;  %9098 = vlog2.f32 %v2192_v32 }
 0x5bb   : > { %v9081_v48 = vpop.eup %9080  ;;  %6063 = vst [vmem:[%s9837_s20 + $0xe40] sm:$0xff] %v5519_v41  ;;  %v5521_v49 = vmul.f32 0.2, %v9079_v44  ;;  %9100 = vlog2.f32 %v2194_v34 }
 0x5bc   : > { %v9083_v51 = vpop.eup %9082  ;;  %6064 = vst [vmem:[%s9837_s20 + $0xe48] sm:$0xff] %v5520_v45  ;;  %v3262_v52 = vmul.f32 0.6931472, %v9081_v48  ;;  %9102 = vlog2.f32 %v2196_v38  ;;  %v641_v48 = vld [vmem:[%s9790_s5 + $0xee0] sm:$0xff] }
 0x5bd   : > { %v9085_v54 = vpop.eup %9084  ;;  %6065 = vst [vmem:[%s9837_s20 + $0xe50] sm:$0xff] %v5521_v49  ;;  %v3264_v55 = vmul.f32 0.6931472, %v9083_v51  ;;  %9104 = vlog2.f32 %v2198_v42 }
 0x5be   : > { %v9087_v57 = vpop.eup %9086  ;;  %v3890_v58 = vmul.f32 0.6, %v3262_v52  ;;  %v3266_v59 = vmul.f32 0.6931472, %v9085_v54  ;;  %9106 = vlog2.f32 %v1183_v46  ;;  %v642_v52 = vld [vmem:[%s9790_s5 + $0xee8] sm:$0xff] }
 0x5bf   : > { %v9089_v60 = vpop.eup %9088  ;;  %v3891_v61 = vmul.f32 0.6, %v3264_v55  ;;  %v3268_v62 = vmul.f32 0.6931472, %v9087_v57  ;;  %9108 = vlog2.f32 %v1184_v50 }
 0x5c0   : > { %v9091_v63 = vpop.eup %9090  ;;  %v4893_v0 = vmul.f32 1.442695, %v3890_v58  ;;  %v3892_v2 = vmul.f32 0.6, %v3266_v59  ;;  %v3270_v3 = vmul.f32 0.6931472, %v9089_v60  ;;  %9110 = vlog2.f32 %v1185_v53 }
 0x5c1   : > { %v9093_v4 = vpop.eup %9092  ;;  %v4895_v5 = vmul.f32 1.442695, %v3891_v61  ;;  %v3893_v6 = vmul.f32 0.6, %v3268_v62  ;;  %v3272_v7 = vmul.f32 0.6931472, %v9091_v63  ;;  %9112 = vlog2.f32 %v1186_v56 }
 0x5c2   : > { %v9095_v8 = vpop.eup %9094  ;;  %9114 = vpow2.f32 %v4893_v0  ;;  %v4897_v9 = vmul.f32 1.442695, %v3892_v2  ;;  %v3894_v10 = vmul.f32 0.6, %v3270_v3  ;;  %v3274_v11 = vmul.f32 0.6931472, %v9093_v4 }
 0x5c3   : > { %v9097_v12 = vpop.eup %9096  ;;  %9116 = vpow2.f32 %v4895_v5  ;;  %v4899_v13 = vmul.f32 1.442695, %v3893_v6  ;;  %v3895_v14 = vmul.f32 0.6, %v3272_v7  ;;  %v3276_v15 = vmul.f32 0.6931472, %v9095_v8 }
 0x5c4   : > { %v9099_v16 = vpop.eup %9098  ;;  %9118 = vpow2.f32 %v4897_v9  ;;  %v4901_v17 = vmul.f32 1.442695, %v3894_v10  ;;  %v3896_v18 = vmul.f32 0.6, %v3274_v11  ;;  %v3278_v19 = vmul.f32 0.6931472, %v9097_v12 }
 0x5c5   : > { %v9101_v20 = vpop.eup %9100  ;;  %9120 = vpow2.f32 %v4899_v13  ;;  %v4903_v21 = vmul.f32 1.442695, %v3895_v14  ;;  %v3897_v22 = vmul.f32 0.6, %v3276_v15  ;;  %v3280_v23 = vmul.f32 0.6931472, %v9099_v16 }
 0x5c6   : > { %v9103_v24 = vpop.eup %9102  ;;  %9122 = vpow2.f32 %v4901_v17  ;;  %v4905_v25 = vmul.f32 1.442695, %v3896_v18  ;;  %v3898_v26 = vmul.f32 0.6, %v3278_v19  ;;  %v3282_v27 = vmul.f32 0.6931472, %v9101_v20 }
 0x5c7   : > { %v9105_v28 = vpop.eup %9104  ;;  %9124 = vpow2.f32 %v4903_v21  ;;  %v4907_v29 = vmul.f32 1.442695, %v3897_v22  ;;  %v3899_v30 = vmul.f32 0.6, %v3280_v23  ;;  %v3284_v31 = vmul.f32 0.6931472, %v9103_v24 }
 0x5c8   : > { %v9107_v32 = vpop.eup %9106  ;;  %9126 = vpow2.f32 %v4905_v25  ;;  %v4909_v33 = vmul.f32 1.442695, %v3898_v26  ;;  %v3900_v34 = vmul.f32 0.6, %v3282_v27  ;;  %v3286_v35 = vmul.f32 0.6931472, %v9105_v28 }
 0x5c9   : > { %v9109_v36 = vpop.eup %9108  ;;  %9128 = vpow2.f32 %v4907_v29  ;;  %v4911_v37 = vmul.f32 1.442695, %v3899_v30  ;;  %v3901_v38 = vmul.f32 0.6, %v3284_v31  ;;  %v2200_v44 = vmul.f32 0.6931472, %v9107_v32 }
 0x5ca   : > { %v9111_v39 = vpop.eup %9110  ;;  %9130 = vpow2.f32 %v4909_v33  ;;  %v4913_v40 = vmul.f32 1.442695, %v3900_v34  ;;  %v3902_v41 = vmul.f32 0.6, %v3286_v35  ;;  %v2202_v47 = vmul.f32 0.6931472, %v9109_v36 }
 0x5cb   : > { %v9113_v42 = vpop.eup %9112  ;;  %9132 = vpow2.f32 %v4911_v37  ;;  %v4915_v43 = vmul.f32 1.442695, %v3901_v38  ;;  %v2204_v51 = vmul.f32 0.6931472, %v9111_v39  ;;  %v643_v56 = vld [vmem:[%s9790_s5 + $0xef0] sm:$0xff]  ;;  %v1187_v59 = vmul.f32 %v9797_v1, %v641_v48  ;;  %v644_v60 = vld [vmem:[%s9790_s5 + $0xef8] sm:$0xff] }
 0x5cc   : > { %v9115_v45 = vpop.eup %9114  ;;  %9134 = vpow2.f32 %v4913_v40  ;;  %v4917_v46 = vmul.f32 1.442695, %v3902_v41  ;;  %v2206_v55 = vmul.f32 0.6931472, %v9113_v42  ;;  %v1188_v63 = vmul.f32 %v9797_v1, %v642_v52  ;;  %v645_v0 = vld [vmem:[%s9790_s5 + $0xf00] sm:$0xff]  ;;  %v646_v5 = vld [vmem:[%s9790_s5 + $0xf08] sm:$0xff] }
 0x5cd   : > { %v9117_v49 = vpop.eup %9116  ;;  %v5522_v50 = vmul.f32 0.2, %v9115_v45  ;;  %9136 = vpow2.f32 %v4915_v43  ;;  %v1189_v4 = vmul.f32 %v9797_v1, %v643_v56  ;;  %v1190_v8 = vmul.f32 %v9797_v1, %v644_v60  ;;  %v647_v9 = vld [vmem:[%s9790_s5 + $0xf10] sm:$0xff]  ;;  %v648_v13 = vld [vmem:[%s9790_s5 + $0xf18] sm:$0xff]  ;;  %v649_v17 = vld [vmem:[%s9790_s5 + $0xf20] sm:$0xff] }
 0x5ce   : > { %v9119_v53 = vpop.eup %9118  ;;  %v5523_v54 = vmul.f32 0.2, %v9117_v49  ;;  %9138 = vpow2.f32 %v4917_v46  ;;  %v1191_v12 = vmul.f32 %v9797_v1, %v645_v0  ;;  %v1192_v16 = vmul.f32 %v9797_v1, %v646_v5  ;;  %v650_v21 = vld [vmem:[%s9790_s5 + $0xf28] sm:$0xff]  ;;  %v651_v25 = vld [vmem:[%s9790_s5 + $0xf30] sm:$0xff]  ;;  %v652_v29 = vld [vmem:[%s9790_s5 + $0xf38] sm:$0xff] }
 0x5cf   : > { %v9121_v57 = vpop.eup %9120  ;;  %6066 = vst [vmem:[%s9837_s20 + $0xe58] sm:$0xff] %v5522_v50  ;;  %v5524_v58 = vmul.f32 0.2, %v9119_v53  ;;  %9140 = vlog2.f32 %v2200_v44  ;;  %v1193_v20 = vmul.f32 %v9797_v1, %v647_v9  ;;  %v1194_v24 = vmul.f32 %v9797_v1, %v648_v13  ;;  %v653_v33 = vld [vmem:[%s9790_s5 + $0xf40] sm:$0xff] }
 0x5d0   : > { %v9123_v61 = vpop.eup %9122  ;;  %6067 = vst [vmem:[%s9837_s20 + $0xe60] sm:$0xff] %v5523_v54  ;;  %v5525_v62 = vmul.f32 0.2, %v9121_v57  ;;  %9142 = vlog2.f32 %v2202_v47  ;;  %v1195_v28 = vmul.f32 %v9797_v1, %v649_v17  ;;  %v1196_v32 = vmul.f32 %v9797_v1, %v650_v21 }
 0x5d1   : > { %v9125_v2 = vpop.eup %9124  ;;  %6068 = vst [vmem:[%s9837_s20 + $0xe68] sm:$0xff] %v5524_v58  ;;  %v5526_v3 = vmul.f32 0.2, %v9123_v61  ;;  %9144 = vlog2.f32 %v2204_v51  ;;  %v1197_v36 = vmul.f32 %v9797_v1, %v651_v25  ;;  %v1198_v39 = vmul.f32 %v9797_v1, %v652_v29 }
 0x5d2   : > { %v9127_v6 = vpop.eup %9126  ;;  %6069 = vst [vmem:[%s9837_s20 + $0xe70] sm:$0xff] %v5525_v62  ;;  %v5527_v7 = vmul.f32 0.2, %v9125_v2  ;;  %9146 = vlog2.f32 %v2206_v55  ;;  %v1199_v42 = vmul.f32 %v9797_v1, %v653_v33 }
 0x5d3   : > { %v9129_v10 = vpop.eup %9128  ;;  %6070 = vst [vmem:[%s9837_s20 + $0xe78] sm:$0xff] %v5526_v3  ;;  %v5528_v11 = vmul.f32 0.2, %v9127_v6  ;;  %9148 = vlog2.f32 %v1187_v59 }
 0x5d4   : > { %v9131_v14 = vpop.eup %9130  ;;  %6071 = vst [vmem:[%s9837_s20 + $0xe80] sm:$0xff] %v5527_v7  ;;  %v5529_v15 = vmul.f32 0.2, %v9129_v10  ;;  %9150 = vlog2.f32 %v1188_v63 }
 0x5d5   : > { %v9133_v18 = vpop.eup %9132  ;;  %6072 = vst [vmem:[%s9837_s20 + $0xe88] sm:$0xff] %v5528_v11  ;;  %v5530_v19 = vmul.f32 0.2, %v9131_v14  ;;  %9152 = vlog2.f32 %v1189_v4 }
 0x5d6   : > { %v9135_v22 = vpop.eup %9134  ;;  %6073 = vst [vmem:[%s9837_s20 + $0xe90] sm:$0xff] %v5529_v15  ;;  %v5531_v23 = vmul.f32 0.2, %v9133_v18  ;;  %9154 = vlog2.f32 %v1190_v8 }
 0x5d7   : > { %v9137_v26 = vpop.eup %9136  ;;  %6074 = vst [vmem:[%s9837_s20 + $0xe98] sm:$0xff] %v5530_v19  ;;  %v5532_v27 = vmul.f32 0.2, %v9135_v22  ;;  %9156 = vlog2.f32 %v1191_v12 }
 0x5d8   : > { %v9139_v30 = vpop.eup %9138  ;;  %6075 = vst [vmem:[%s9837_s20 + $0xea0] sm:$0xff] %v5531_v23  ;;  %v5533_v31 = vmul.f32 0.2, %v9137_v26  ;;  %9158 = vlog2.f32 %v1192_v16  ;;  %v654_v16 = vld [vmem:[%s9790_s5 + $0xf48] sm:$0xff] }
 0x5d9   : > { %v9141_v34 = vpop.eup %9140  ;;  %6076 = vst [vmem:[%s9837_s20 + $0xea8] sm:$0xff] %v5532_v27  ;;  %v5534_v35 = vmul.f32 0.2, %v9139_v30  ;;  %9160 = vlog2.f32 %v1193_v20  ;;  %v655_v20 = vld [vmem:[%s9790_s5 + $0xf50] sm:$0xff]  ;;  %v1200_v27 = vmul.f32 %v9797_v1, %v654_v16 }
 0x5da   : > { %v9143_v37 = vpop.eup %9142  ;;  %6077 = vst [vmem:[%s9837_s20 + $0xeb0] sm:$0xff] %v5533_v31  ;;  %v3288_v38 = vmul.f32 0.6931472, %v9141_v34  ;;  %9162 = vlog2.f32 %v1194_v24  ;;  %v656_v24 = vld [vmem:[%s9790_s5 + $0xf58] sm:$0xff]  ;;  %v1201_v31 = vmul.f32 %v9797_v1, %v655_v20 }
 0x5db   : > { %v9145_v40 = vpop.eup %9144  ;;  %6078 = vst [vmem:[%s9837_s20 + $0xeb8] sm:$0xff] %v5534_v35  ;;  %v3290_v41 = vmul.f32 0.6931472, %v9143_v37  ;;  %9164 = vlog2.f32 %v1195_v28  ;;  %v657_v28 = vld [vmem:[%s9790_s5 + $0xf60] sm:$0xff]  ;;  %v1202_v34 = vmul.f32 %v9797_v1, %v656_v24 }
 0x5dc   : > { %v9147_v43 = vpop.eup %9146  ;;  %v3903_v44 = vmul.f32 0.6, %v3288_v38  ;;  %v3292_v45 = vmul.f32 0.6931472, %v9145_v40  ;;  %9166 = vlog2.f32 %v1196_v32  ;;  %v1203_v37 = vmul.f32 %v9797_v1, %v657_v28 }
 0x5dd   : > { %v9149_v46 = vpop.eup %9148  ;;  %v3904_v47 = vmul.f32 0.6, %v3290_v41  ;;  %v3294_v48 = vmul.f32 0.6931472, %v9147_v43  ;;  %9168 = vlog2.f32 %v1197_v36 }
 0x5de   : > { %v9151_v49 = vpop.eup %9150  ;;  %v4919_v50 = vmul.f32 1.442695, %v3903_v44  ;;  %v3905_v51 = vmul.f32 0.6, %v3292_v45  ;;  %9170 = vlog2.f32 %v1198_v39  ;;  %v2208_v57 = vmul.f32 0.6931472, %v9149_v46 }
 0x5df   : > { %v9153_v52 = vpop.eup %9152  ;;  %v4921_v53 = vmul.f32 1.442695, %v3904_v47  ;;  %v3906_v54 = vmul.f32 0.6, %v3294_v48  ;;  %9172 = vlog2.f32 %v1199_v42  ;;  %v2210_v60 = vmul.f32 0.6931472, %v9151_v49 }
 0x5e0   : > { %v9155_v55 = vpop.eup %9154  ;;  %9174 = vpow2.f32 %v4919_v50  ;;  %v4923_v56 = vmul.f32 1.442695, %v3905_v51  ;;  %v2212_v62 = vmul.f32 0.6931472, %v9153_v52 }
 0x5e1   : > { %v9157_v58 = vpop.eup %9156  ;;  %9176 = vpow2.f32 %v4921_v53  ;;  %v4925_v59 = vmul.f32 1.442695, %v3906_v54  ;;  %v2214_v0 = vmul.f32 0.6931472, %v9155_v55 }
 0x5e2   : > { %v9159_v61 = vpop.eup %9158  ;;  %9178 = vpow2.f32 %v4923_v56  ;;  %v2216_v3 = vmul.f32 0.6931472, %v9157_v58 }
 0x5e3   : > { %v9161_v63 = vpop.eup %9160  ;;  %9180 = vpow2.f32 %v4925_v59  ;;  %v2218_v5 = vmul.f32 0.6931472, %v9159_v61 }
 0x5e4   : > { %v9163_v2 = vpop.eup %9162  ;;  %9182 = vlog2.f32 %v2208_v57  ;;  %v2220_v7 = vmul.f32 0.6931472, %v9161_v63 }
 0x5e5   : > { %v9165_v4 = vpop.eup %9164  ;;  %9184 = vlog2.f32 %v2210_v60  ;;  %v2222_v9 = vmul.f32 0.6931472, %v9163_v2 }
 0x5e6   : > { %v9167_v6 = vpop.eup %9166  ;;  %9186 = vlog2.f32 %v2212_v62  ;;  %v2224_v11 = vmul.f32 0.6931472, %v9165_v4 }
 0x5e7   : > { %v9169_v8 = vpop.eup %9168  ;;  %9188 = vlog2.f32 %v2214_v0  ;;  %v2226_v13 = vmul.f32 0.6931472, %v9167_v6 }
 0x5e8   : > { %v9171_v10 = vpop.eup %9170  ;;  %9190 = vlog2.f32 %v2216_v3  ;;  %v2228_v15 = vmul.f32 0.6931472, %v9169_v8 }
 0x5e9   : > { %v9173_v12 = vpop.eup %9172  ;;  %9192 = vlog2.f32 %v2218_v5  ;;  %v2230_v19 = vmul.f32 0.6931472, %v9171_v10 }
 0x5ea   : > { %v9175_v14 = vpop.eup %9174  ;;  %9194 = vlog2.f32 %v2220_v7  ;;  %v2232_v23 = vmul.f32 0.6931472, %v9173_v12 }
 0x5eb   : > { %v9177_v17 = vpop.eup %9176  ;;  %v5535_v18 = vmul.f32 0.2, %v9175_v14  ;;  %9196 = vlog2.f32 %v2222_v9 }
 0x5ec   : > { %v9179_v21 = vpop.eup %9178  ;;  %v5536_v22 = vmul.f32 0.2, %v9177_v17  ;;  %9198 = vlog2.f32 %v2224_v11 }
 0x5ed   : > { %v9181_v25 = vpop.eup %9180  ;;  %6079 = vst [vmem:[%s9837_s20 + $0xec0] sm:$0xff] %v5535_v18  ;;  %v5537_v26 = vmul.f32 0.2, %v9179_v21  ;;  %9200 = vlog2.f32 %v2226_v13 }
 0x5ee   : > { %v9183_v29 = vpop.eup %9182  ;;  %6080 = vst [vmem:[%s9837_s20 + $0xec8] sm:$0xff] %v5536_v22  ;;  %v5538_v30 = vmul.f32 0.2, %v9181_v25  ;;  %9202 = vlog2.f32 %v2228_v15 }
 0x5ef   : > { %v9185_v32 = vpop.eup %9184  ;;  %6081 = vst [vmem:[%s9837_s20 + $0xed0] sm:$0xff] %v5537_v26  ;;  %v3296_v33 = vmul.f32 0.6931472, %v9183_v29  ;;  %9204 = vlog2.f32 %v2230_v19  ;;  %v658_v29 = vld [vmem:[%s9790_s5 + $0xf68] sm:$0xff] }
 0x5f0   : > { %v9187_v35 = vpop.eup %9186  ;;  %6082 = vst [vmem:[%s9837_s20 + $0xed8] sm:$0xff] %v5538_v30  ;;  %v3298_v36 = vmul.f32 0.6931472, %v9185_v32  ;;  %9206 = vlog2.f32 %v2232_v23 }
 0x5f1   : > { %v9189_v38 = vpop.eup %9188  ;;  %v3907_v39 = vmul.f32 0.6, %v3296_v33  ;;  %v3300_v40 = vmul.f32 0.6931472, %v9187_v35  ;;  %9208 = vlog2.f32 %v1200_v27  ;;  %v659_v33 = vld [vmem:[%s9790_s5 + $0xf70] sm:$0xff] }
 0x5f2   : > { %v9191_v41 = vpop.eup %9190  ;;  %v3908_v42 = vmul.f32 0.6, %v3298_v36  ;;  %v3302_v43 = vmul.f32 0.6931472, %v9189_v38  ;;  %9210 = vlog2.f32 %v1201_v31 }
 0x5f3   : > { %v9193_v44 = vpop.eup %9192  ;;  %v4927_v45 = vmul.f32 1.442695, %v3907_v39  ;;  %v3909_v46 = vmul.f32 0.6, %v3300_v40  ;;  %v3304_v47 = vmul.f32 0.6931472, %v9191_v41  ;;  %9212 = vlog2.f32 %v1202_v34 }
 0x5f4   : > { %v9195_v48 = vpop.eup %9194  ;;  %v4929_v49 = vmul.f32 1.442695, %v3908_v42  ;;  %v3910_v50 = vmul.f32 0.6, %v3302_v43  ;;  %v3306_v51 = vmul.f32 0.6931472, %v9193_v44  ;;  %9214 = vlog2.f32 %v1203_v37 }
 0x5f5   : > { %v9197_v52 = vpop.eup %9196  ;;  %9216 = vpow2.f32 %v4927_v45  ;;  %v4931_v53 = vmul.f32 1.442695, %v3909_v46  ;;  %v3911_v54 = vmul.f32 0.6, %v3304_v47  ;;  %v3308_v55 = vmul.f32 0.6931472, %v9195_v48 }
 0x5f6   : > { %v9199_v56 = vpop.eup %9198  ;;  %9218 = vpow2.f32 %v4929_v49  ;;  %v4933_v57 = vmul.f32 1.442695, %v3910_v50  ;;  %v3912_v58 = vmul.f32 0.6, %v3306_v51  ;;  %v3310_v59 = vmul.f32 0.6931472, %v9197_v52 }
 0x5f7   : > { %v9201_v60 = vpop.eup %9200  ;;  %9220 = vpow2.f32 %v4931_v53  ;;  %v4935_v61 = vmul.f32 1.442695, %v3911_v54  ;;  %v3913_v62 = vmul.f32 0.6, %v3308_v55  ;;  %v3312_v63 = vmul.f32 0.6931472, %v9199_v56 }
 0x5f8   : > { %v9203_v0 = vpop.eup %9202  ;;  %9222 = vpow2.f32 %v4933_v57  ;;  %v4937_v2 = vmul.f32 1.442695, %v3912_v58  ;;  %v3914_v3 = vmul.f32 0.6, %v3310_v59  ;;  %v3314_v4 = vmul.f32 0.6931472, %v9201_v60 }
 0x5f9   : > { %v9205_v5 = vpop.eup %9204  ;;  %9224 = vpow2.f32 %v4935_v61  ;;  %v4939_v6 = vmul.f32 1.442695, %v3913_v62  ;;  %v3915_v7 = vmul.f32 0.6, %v3312_v63  ;;  %v3316_v8 = vmul.f32 0.6931472, %v9203_v0 }
 0x5fa   : > { %v9207_v9 = vpop.eup %9206  ;;  %9226 = vpow2.f32 %v4937_v2  ;;  %v4941_v10 = vmul.f32 1.442695, %v3914_v3  ;;  %v3916_v11 = vmul.f32 0.6, %v3314_v4  ;;  %v3318_v12 = vmul.f32 0.6931472, %v9205_v5 }
 0x5fb   : > { %v9209_v13 = vpop.eup %9208  ;;  %9228 = vpow2.f32 %v4939_v6  ;;  %v4943_v14 = vmul.f32 1.442695, %v3915_v7  ;;  %v3917_v15 = vmul.f32 0.6, %v3316_v8  ;;  %v3320_v16 = vmul.f32 0.6931472, %v9207_v9 }
 0x5fc   : > { %v9211_v17 = vpop.eup %9210  ;;  %9230 = vpow2.f32 %v4941_v10  ;;  %v4945_v18 = vmul.f32 1.442695, %v3916_v11  ;;  %v3918_v19 = vmul.f32 0.6, %v3318_v12  ;;  %v2234_v25 = vmul.f32 0.6931472, %v9209_v13 }
 0x5fd   : > { %v9213_v20 = vpop.eup %9212  ;;  %9232 = vpow2.f32 %v4943_v14  ;;  %v4947_v21 = vmul.f32 1.442695, %v3917_v15  ;;  %v3919_v22 = vmul.f32 0.6, %v3320_v16  ;;  %v2236_v28 = vmul.f32 0.6931472, %v9211_v17 }
 0x5fe   : > { %v9215_v23 = vpop.eup %9214  ;;  %9234 = vpow2.f32 %v4945_v18  ;;  %v4949_v24 = vmul.f32 1.442695, %v3918_v19  ;;  %v2238_v32 = vmul.f32 0.6931472, %v9213_v20  ;;  %v660_v37 = vld [vmem:[%s9790_s5 + $0xf78] sm:$0xff]  ;;  %v1204_v40 = vmul.f32 %v9797_v1, %v658_v29  ;;  %v661_v41 = vld [vmem:[%s9790_s5 + $0xf80] sm:$0xff] }
 0x5ff   : > { %v9217_v26 = vpop.eup %9216  ;;  %9236 = vpow2.f32 %v4947_v21  ;;  %v4951_v27 = vmul.f32 1.442695, %v3919_v22  ;;  %v2240_v36 = vmul.f32 0.6931472, %v9215_v23  ;;  %v1205_v44 = vmul.f32 %v9797_v1, %v659_v33  ;;  %v662_v45 = vld [vmem:[%s9790_s5 + $0xf88] sm:$0xff]  ;;  %v663_v49 = vld [vmem:[%s9790_s5 + $0xf90] sm:$0xff] }
 0x600   : > { %v9219_v30 = vpop.eup %9218  ;;  %v5539_v31 = vmul.f32 0.2, %v9217_v26  ;;  %9238 = vpow2.f32 %v4949_v24  ;;  %v1206_v48 = vmul.f32 %v9797_v1, %v660_v37  ;;  %v1207_v52 = vmul.f32 %v9797_v1, %v661_v41  ;;  %v664_v53 = vld [vmem:[%s9790_s5 + $0xf98] sm:$0xff]  ;;  %v665_v57 = vld [vmem:[%s9790_s5 + $0xfa0] sm:$0xff]  ;;  %v666_v61 = vld [vmem:[%s9790_s5 + $0xfa8] sm:$0xff] }
 0x601   : > { %v9221_v34 = vpop.eup %9220  ;;  %v5540_v35 = vmul.f32 0.2, %v9219_v30  ;;  %9240 = vpow2.f32 %v4951_v27  ;;  %v1208_v56 = vmul.f32 %v9797_v1, %v662_v45  ;;  %v1209_v60 = vmul.f32 %v9797_v1, %v663_v49  ;;  %v667_v2 = vld [vmem:[%s9790_s5 + $0xfb0] sm:$0xff]  ;;  %v668_v6 = vld [vmem:[%s9790_s5 + $0xfb8] sm:$0xff]  ;;  %v669_v10 = vld [vmem:[%s9790_s5 + $0xfc0] sm:$0xff] }
 0x602   : > { %v9223_v38 = vpop.eup %9222  ;;  %6083 = vst [vmem:[%s9837_s20 + $0xee0] sm:$0xff] %v5539_v31  ;;  %v5541_v39 = vmul.f32 0.2, %v9221_v34  ;;  %9242 = vlog2.f32 %v2234_v25  ;;  %v1210_v0 = vmul.f32 %v9797_v1, %v664_v53  ;;  %v1211_v5 = vmul.f32 %v9797_v1, %v665_v57  ;;  %v670_v14 = vld [vmem:[%s9790_s5 + $0xfc8] sm:$0xff] }
 0x603   : > { %v9225_v42 = vpop.eup %9224  ;;  %6084 = vst [vmem:[%s9837_s20 + $0xee8] sm:$0xff] %v5540_v35  ;;  %v5542_v43 = vmul.f32 0.2, %v9223_v38  ;;  %9244 = vlog2.f32 %v2236_v28  ;;  %v1212_v9 = vmul.f32 %v9797_v1, %v666_v61  ;;  %v1213_v13 = vmul.f32 %v9797_v1, %v667_v2 }
 0x604   : > { %v9227_v46 = vpop.eup %9226  ;;  %6085 = vst [vmem:[%s9837_s20 + $0xef0] sm:$0xff] %v5541_v39  ;;  %v5543_v47 = vmul.f32 0.2, %v9225_v42  ;;  %9246 = vlog2.f32 %v2238_v32  ;;  %v1214_v17 = vmul.f32 %v9797_v1, %v668_v6  ;;  %v1215_v20 = vmul.f32 %v9797_v1, %v669_v10 }
 0x605   : > { %v9229_v50 = vpop.eup %9228  ;;  %6086 = vst [vmem:[%s9837_s20 + $0xef8] sm:$0xff] %v5542_v43  ;;  %v5544_v51 = vmul.f32 0.2, %v9227_v46  ;;  %9248 = vlog2.f32 %v2240_v36  ;;  %v1216_v23 = vmul.f32 %v9797_v1, %v670_v14 }
 0x606   : > { %v9231_v54 = vpop.eup %9230  ;;  %6087 = vst [vmem:[%s9837_s20 + $0xf00] sm:$0xff] %v5543_v47  ;;  %v5545_v55 = vmul.f32 0.2, %v9229_v50  ;;  %9250 = vlog2.f32 %v1204_v40 }
 0x607   : > { %v9233_v58 = vpop.eup %9232  ;;  %6088 = vst [vmem:[%s9837_s20 + $0xf08] sm:$0xff] %v5544_v51  ;;  %v5546_v59 = vmul.f32 0.2, %v9231_v54  ;;  %9252 = vlog2.f32 %v1205_v44 }
 0x608   : > { %v9235_v62 = vpop.eup %9234  ;;  %6089 = vst [vmem:[%s9837_s20 + $0xf10] sm:$0xff] %v5545_v55  ;;  %v5547_v63 = vmul.f32 0.2, %v9233_v58  ;;  %9254 = vlog2.f32 %v1206_v48 }
 0x609   : > { %v9237_v3 = vpop.eup %9236  ;;  %6090 = vst [vmem:[%s9837_s20 + $0xf18] sm:$0xff] %v5546_v59  ;;  %v5548_v4 = vmul.f32 0.2, %v9235_v62  ;;  %9256 = vlog2.f32 %v1207_v52 }
 0x60a   : > { %v9239_v7 = vpop.eup %9238  ;;  %6091 = vst [vmem:[%s9837_s20 + $0xf20] sm:$0xff] %v5547_v63  ;;  %v5549_v8 = vmul.f32 0.2, %v9237_v3  ;;  %9258 = vlog2.f32 %v1208_v56 }
 0x60b   : > { %v9241_v11 = vpop.eup %9240  ;;  %6092 = vst [vmem:[%s9837_s20 + $0xf28] sm:$0xff] %v5548_v4  ;;  %v5550_v12 = vmul.f32 0.2, %v9239_v7  ;;  %9260 = vlog2.f32 %v1209_v60  ;;  %v671_v60 = vld [vmem:[%s9790_s5 + $0xfd0] sm:$0xff] }
 0x60c   : > { %v9243_v15 = vpop.eup %9242  ;;  %6093 = vst [vmem:[%s9837_s20 + $0xf30] sm:$0xff] %v5549_v8  ;;  %v5551_v16 = vmul.f32 0.2, %v9241_v11  ;;  %9262 = vlog2.f32 %v1210_v0  ;;  %v672_v0 = vld [vmem:[%s9790_s5 + $0xfd8] sm:$0xff]  ;;  %v1217_v8 = vmul.f32 %v9797_v1, %v671_v60 }
 0x60d   : > { %v9245_v18 = vpop.eup %9244  ;;  %6094 = vst [vmem:[%s9837_s20 + $0xf38] sm:$0xff] %v5550_v12  ;;  %v3322_v19 = vmul.f32 0.6931472, %v9243_v15  ;;  %9264 = vlog2.f32 %v1211_v5  ;;  %v673_v5 = vld [vmem:[%s9790_s5 + $0xfe0] sm:$0xff]  ;;  %v1218_v12 = vmul.f32 %v9797_v1, %v672_v0 }
 0x60e   : > { %v9247_v21 = vpop.eup %9246  ;;  %6095 = vst [vmem:[%s9837_s20 + $0xf40] sm:$0xff] %v5551_v16  ;;  %v3324_v22 = vmul.f32 0.6931472, %v9245_v18  ;;  %9266 = vlog2.f32 %v1212_v9  ;;  %v674_v9 = vld [vmem:[%s9790_s5 + $0xfe8] sm:$0xff]  ;;  %v1219_v15 = vmul.f32 %v9797_v1, %v673_v5 }
 0x60f   : > { %v9249_v24 = vpop.eup %9248  ;;  %v3920_v25 = vmul.f32 0.6, %v3322_v19  ;;  %v3326_v26 = vmul.f32 0.6931472, %v9247_v21  ;;  %9268 = vlog2.f32 %v1213_v13  ;;  %v1220_v18 = vmul.f32 %v9797_v1, %v674_v9 }
 0x610   : > { %v9251_v27 = vpop.eup %9250  ;;  %v3921_v28 = vmul.f32 0.6, %v3324_v22  ;;  %v3328_v29 = vmul.f32 0.6931472, %v9249_v24  ;;  %9270 = vlog2.f32 %v1214_v17 }
 0x611   : > { %v9253_v30 = vpop.eup %9252  ;;  %v4953_v31 = vmul.f32 1.442695, %v3920_v25  ;;  %v3922_v32 = vmul.f32 0.6, %v3326_v26  ;;  %9272 = vlog2.f32 %v1215_v20  ;;  %v2242_v38 = vmul.f32 0.6931472, %v9251_v27 }
 0x612   : > { %v9255_v33 = vpop.eup %9254  ;;  %v4955_v34 = vmul.f32 1.442695, %v3921_v28  ;;  %v3923_v35 = vmul.f32 0.6, %v3328_v29  ;;  %9274 = vlog2.f32 %v1216_v23  ;;  %v2244_v41 = vmul.f32 0.6931472, %v9253_v30 }
 0x613   : > { %v9257_v36 = vpop.eup %9256  ;;  %9276 = vpow2.f32 %v4953_v31  ;;  %v4957_v37 = vmul.f32 1.442695, %v3922_v32  ;;  %v2246_v43 = vmul.f32 0.6931472, %v9255_v33 }
 0x614   : > { %v9259_v39 = vpop.eup %9258  ;;  %9278 = vpow2.f32 %v4955_v34  ;;  %v4959_v40 = vmul.f32 1.442695, %v3923_v35  ;;  %v2248_v45 = vmul.f32 0.6931472, %v9257_v36 }
 0x615   : > { %v9261_v42 = vpop.eup %9260  ;;  %9280 = vpow2.f32 %v4957_v37  ;;  %v2250_v47 = vmul.f32 0.6931472, %v9259_v39 }
 0x616   : > { %v9263_v44 = vpop.eup %9262  ;;  %9282 = vpow2.f32 %v4959_v40  ;;  %v2252_v49 = vmul.f32 0.6931472, %v9261_v42 }
 0x617   : > { %v9265_v46 = vpop.eup %9264  ;;  %9284 = vlog2.f32 %v2242_v38  ;;  %v2254_v51 = vmul.f32 0.6931472, %v9263_v44 }
 0x618   : > { %v9267_v48 = vpop.eup %9266  ;;  %9286 = vlog2.f32 %v2244_v41  ;;  %v2256_v53 = vmul.f32 0.6931472, %v9265_v46 }
 0x619   : > { %v9269_v50 = vpop.eup %9268  ;;  %9288 = vlog2.f32 %v2246_v43  ;;  %v2258_v55 = vmul.f32 0.6931472, %v9267_v48 }
 0x61a   : > { %v9271_v52 = vpop.eup %9270  ;;  %9290 = vlog2.f32 %v2248_v45  ;;  %v2260_v57 = vmul.f32 0.6931472, %v9269_v50 }
 0x61b   : > { %v9273_v54 = vpop.eup %9272  ;;  %9292 = vlog2.f32 %v2250_v47  ;;  %v2262_v59 = vmul.f32 0.6931472, %v9271_v52 }
 0x61c   : > { %v9275_v56 = vpop.eup %9274  ;;  %9294 = vlog2.f32 %v2252_v49  ;;  %v2264_v63 = vmul.f32 0.6931472, %v9273_v54 }
 0x61d   : > { %v9277_v58 = vpop.eup %9276  ;;  %9296 = vlog2.f32 %v2254_v51  ;;  %v2266_v4 = vmul.f32 0.6931472, %v9275_v56 }
 0x61e   : > { %v9279_v61 = vpop.eup %9278  ;;  %v5552_v62 = vmul.f32 0.2, %v9277_v58  ;;  %9298 = vlog2.f32 %v2256_v53 }
 0x61f   : > { %v9281_v2 = vpop.eup %9280  ;;  %v5553_v3 = vmul.f32 0.2, %v9279_v61  ;;  %9300 = vlog2.f32 %v2258_v55 }
 0x620   : > { %v9283_v6 = vpop.eup %9282  ;;  %6096 = vst [vmem:[%s9837_s20 + $0xf48] sm:$0xff] %v5552_v62  ;;  %v5554_v7 = vmul.f32 0.2, %v9281_v2  ;;  %9302 = vlog2.f32 %v2260_v57 }
 0x621   : > { %v9285_v10 = vpop.eup %9284  ;;  %6097 = vst [vmem:[%s9837_s20 + $0xf50] sm:$0xff] %v5553_v3  ;;  %v5555_v11 = vmul.f32 0.2, %v9283_v6  ;;  %9304 = vlog2.f32 %v2262_v59 }
 0x622   : > { %v9287_v13 = vpop.eup %9286  ;;  %6098 = vst [vmem:[%s9837_s20 + $0xf58] sm:$0xff] %v5554_v7  ;;  %v3330_v14 = vmul.f32 0.6931472, %v9285_v10  ;;  %9306 = vlog2.f32 %v2264_v63  ;;  %v675_v10 = vld [vmem:[%s9790_s5 + $0xff0] sm:$0xff] }
 0x623   : > { %v9289_v16 = vpop.eup %9288  ;;  %6099 = vst [vmem:[%s9837_s20 + $0xf60] sm:$0xff] %v5555_v11  ;;  %v3332_v17 = vmul.f32 0.6931472, %v9287_v13  ;;  %9308 = vlog2.f32 %v2266_v4 }
 0x624   : > { %v9291_v19 = vpop.eup %9290  ;;  %v3924_v20 = vmul.f32 0.6, %v3330_v14  ;;  %v3334_v21 = vmul.f32 0.6931472, %v9289_v16  ;;  %9310 = vlog2.f32 %v1217_v8  ;;  %v676_v14 = vld [vmem:[%s9790_s5 + $0xff8] sm:$0xff] }
 0x625   : > { %v9293_v22 = vpop.eup %9292  ;;  %v3925_v23 = vmul.f32 0.6, %v3332_v17  ;;  %v3336_v24 = vmul.f32 0.6931472, %v9291_v19  ;;  %9312 = vlog2.f32 %v1218_v12 }
 0x626   : > { %v9295_v25 = vpop.eup %9294  ;;  %v4961_v26 = vmul.f32 1.442695, %v3924_v20  ;;  %v3926_v27 = vmul.f32 0.6, %v3334_v21  ;;  %v3338_v28 = vmul.f32 0.6931472, %v9293_v22  ;;  %9314 = vlog2.f32 %v1219_v15 }
 0x627   : > { %v9297_v29 = vpop.eup %9296  ;;  %v4963_v30 = vmul.f32 1.442695, %v3925_v23  ;;  %v3927_v31 = vmul.f32 0.6, %v3336_v24  ;;  %v3340_v32 = vmul.f32 0.6931472, %v9295_v25  ;;  %9316 = vlog2.f32 %v1220_v18 }
 0x628   : > { %v9299_v33 = vpop.eup %9298  ;;  %9318 = vpow2.f32 %v4961_v26  ;;  %v4965_v34 = vmul.f32 1.442695, %v3926_v27  ;;  %v3928_v35 = vmul.f32 0.6, %v3338_v28  ;;  %v3342_v36 = vmul.f32 0.6931472, %v9297_v29 }
 0x629   : > { %v9301_v37 = vpop.eup %9300  ;;  %9320 = vpow2.f32 %v4963_v30  ;;  %v4967_v38 = vmul.f32 1.442695, %v3927_v31  ;;  %v3929_v39 = vmul.f32 0.6, %v3340_v32  ;;  %v3344_v40 = vmul.f32 0.6931472, %v9299_v33 }
 0x62a   : > { %v9303_v41 = vpop.eup %9302  ;;  %9322 = vpow2.f32 %v4965_v34  ;;  %v4969_v42 = vmul.f32 1.442695, %v3928_v35  ;;  %v3930_v43 = vmul.f32 0.6, %v3342_v36  ;;  %v3346_v44 = vmul.f32 0.6931472, %v9301_v37 }
 0x62b   : > { %v9305_v45 = vpop.eup %9304  ;;  %9324 = vpow2.f32 %v4967_v38  ;;  %v4971_v46 = vmul.f32 1.442695, %v3929_v39  ;;  %v3931_v47 = vmul.f32 0.6, %v3344_v40  ;;  %v3348_v48 = vmul.f32 0.6931472, %v9303_v41 }
 0x62c   : > { %v9307_v49 = vpop.eup %9306  ;;  %9326 = vpow2.f32 %v4969_v42  ;;  %v4973_v50 = vmul.f32 1.442695, %v3930_v43  ;;  %v3932_v51 = vmul.f32 0.6, %v3346_v44  ;;  %v3350_v52 = vmul.f32 0.6931472, %v9305_v45 }
 0x62d   : > { %v9309_v53 = vpop.eup %9308  ;;  %9328 = vpow2.f32 %v4971_v46  ;;  %v4975_v54 = vmul.f32 1.442695, %v3931_v47  ;;  %v3933_v55 = vmul.f32 0.6, %v3348_v48  ;;  %v3352_v56 = vmul.f32 0.6931472, %v9307_v49 }
 0x62e   : > { %v9311_v57 = vpop.eup %9310  ;;  %9330 = vpow2.f32 %v4973_v50  ;;  %v4977_v58 = vmul.f32 1.442695, %v3932_v51  ;;  %v3934_v59 = vmul.f32 0.6, %v3350_v52  ;;  %v3354_v60 = vmul.f32 0.6931472, %v9309_v53 }
 0x62f   : > { %v9313_v61 = vpop.eup %9312  ;;  %9332 = vpow2.f32 %v4975_v54  ;;  %v4979_v62 = vmul.f32 1.442695, %v3933_v55  ;;  %v3935_v63 = vmul.f32 0.6, %v3352_v56  ;;  %v2268_v6 = vmul.f32 0.6931472, %v9311_v57 }
 0x630   : > { %v9315_v0 = vpop.eup %9314  ;;  %9334 = vpow2.f32 %v4977_v58  ;;  %v4981_v2 = vmul.f32 1.442695, %v3934_v59  ;;  %v3936_v3 = vmul.f32 0.6, %v3354_v60  ;;  %v2270_v9 = vmul.f32 0.6931472, %v9313_v61 }
 0x631   : > { %v9317_v4 = vpop.eup %9316  ;;  %9336 = vpow2.f32 %v4979_v62  ;;  %v4983_v5 = vmul.f32 1.442695, %v3935_v63  ;;  %v2272_v13 = vmul.f32 0.6931472, %v9315_v0  ;;  %v677_v18 = vld [vmem:[%s9790_s5 + $0x1000] sm:$0xff]  ;;  %v1221_v21 = vmul.f32 %v9797_v1, %v675_v10  ;;  %v678_v22 = vld [vmem:[%s9790_s5 + $0x1008] sm:$0xff] }
 0x632   : > { %v9319_v7 = vpop.eup %9318  ;;  %9338 = vpow2.f32 %v4981_v2  ;;  %v4985_v8 = vmul.f32 1.442695, %v3936_v3  ;;  %v2274_v17 = vmul.f32 0.6931472, %v9317_v4  ;;  %v1222_v25 = vmul.f32 %v9797_v1, %v676_v14  ;;  %v679_v26 = vld [vmem:[%s9790_s5 + $0x1010] sm:$0xff]  ;;  %v680_v30 = vld [vmem:[%s9790_s5 + $0x1018] sm:$0xff] }
 0x633   : > { %v9321_v11 = vpop.eup %9320  ;;  %v5556_v12 = vmul.f32 0.2, %v9319_v7  ;;  %9340 = vpow2.f32 %v4983_v5  ;;  %v1223_v29 = vmul.f32 %v9797_v1, %v677_v18  ;;  %v1224_v33 = vmul.f32 %v9797_v1, %v678_v22  ;;  %v681_v34 = vld [vmem:[%s9790_s5 + $0x1020] sm:$0xff]  ;;  %v682_v38 = vld [vmem:[%s9790_s5 + $0x1028] sm:$0xff]  ;;  %v683_v42 = vld [vmem:[%s9790_s5 + $0x1030] sm:$0xff] }
 0x634   : > { %v9323_v15 = vpop.eup %9322  ;;  %v5557_v16 = vmul.f32 0.2, %v9321_v11  ;;  %9342 = vpow2.f32 %v4985_v8  ;;  %v1225_v37 = vmul.f32 %v9797_v1, %v679_v26  ;;  %v1226_v41 = vmul.f32 %v9797_v1, %v680_v30  ;;  %v684_v46 = vld [vmem:[%s9790_s5 + $0x1038] sm:$0xff]  ;;  %v685_v50 = vld [vmem:[%s9790_s5 + $0x1040] sm:$0xff]  ;;  %v686_v54 = vld [vmem:[%s9790_s5 + $0x1048] sm:$0xff] }
 0x635   : > { %v9325_v19 = vpop.eup %9324  ;;  %6100 = vst [vmem:[%s9837_s20 + $0xf68] sm:$0xff] %v5556_v12  ;;  %v5558_v20 = vmul.f32 0.2, %v9323_v15  ;;  %9344 = vlog2.f32 %v2268_v6  ;;  %v1227_v45 = vmul.f32 %v9797_v1, %v681_v34  ;;  %v1228_v49 = vmul.f32 %v9797_v1, %v682_v38  ;;  %v687_v58 = vld [vmem:[%s9790_s5 + $0x1050] sm:$0xff] }
 0x636   : > { %v9327_v23 = vpop.eup %9326  ;;  %6101 = vst [vmem:[%s9837_s20 + $0xf70] sm:$0xff] %v5557_v16  ;;  %v5559_v24 = vmul.f32 0.2, %v9325_v19  ;;  %9346 = vlog2.f32 %v2270_v9  ;;  %v1229_v53 = vmul.f32 %v9797_v1, %v683_v42  ;;  %v1230_v57 = vmul.f32 %v9797_v1, %v684_v46 }
 0x637   : > { %v9329_v27 = vpop.eup %9328  ;;  %6102 = vst [vmem:[%s9837_s20 + $0xf78] sm:$0xff] %v5558_v20  ;;  %v5560_v28 = vmul.f32 0.2, %v9327_v23  ;;  %9348 = vlog2.f32 %v2272_v13  ;;  %v1231_v61 = vmul.f32 %v9797_v1, %v685_v50  ;;  %v1232_v0 = vmul.f32 %v9797_v1, %v686_v54 }
 0x638   : > { %v9331_v31 = vpop.eup %9330  ;;  %6103 = vst [vmem:[%s9837_s20 + $0xf80] sm:$0xff] %v5559_v24  ;;  %v5561_v32 = vmul.f32 0.2, %v9329_v27  ;;  %9350 = vlog2.f32 %v2274_v17  ;;  %v1233_v4 = vmul.f32 %v9797_v1, %v687_v58 }
 0x639   : > { %v9333_v35 = vpop.eup %9332  ;;  %6104 = vst [vmem:[%s9837_s20 + $0xf88] sm:$0xff] %v5560_v28  ;;  %v5562_v36 = vmul.f32 0.2, %v9331_v31  ;;  %9352 = vlog2.f32 %v1221_v21 }
 0x63a   : > { %v9335_v39 = vpop.eup %9334  ;;  %6105 = vst [vmem:[%s9837_s20 + $0xf90] sm:$0xff] %v5561_v32  ;;  %v5563_v40 = vmul.f32 0.2, %v9333_v35  ;;  %9354 = vlog2.f32 %v1222_v25 }
 0x63b   : > { %v9337_v43 = vpop.eup %9336  ;;  %6106 = vst [vmem:[%s9837_s20 + $0xf98] sm:$0xff] %v5562_v36  ;;  %v5564_v44 = vmul.f32 0.2, %v9335_v39  ;;  %9356 = vlog2.f32 %v1223_v29 }
 0x63c   : > { %v9339_v47 = vpop.eup %9338  ;;  %6107 = vst [vmem:[%s9837_s20 + $0xfa0] sm:$0xff] %v5563_v40  ;;  %v5565_v48 = vmul.f32 0.2, %v9337_v43  ;;  %9358 = vlog2.f32 %v1224_v33 }
 0x63d   : > { %v9341_v51 = vpop.eup %9340  ;;  %6108 = vst [vmem:[%s9837_s20 + $0xfa8] sm:$0xff] %v5564_v44  ;;  %v5566_v52 = vmul.f32 0.2, %v9339_v47  ;;  %9360 = vlog2.f32 %v1225_v37 }
 0x63e   : > { %v9343_v55 = vpop.eup %9342  ;;  %6109 = vst [vmem:[%s9837_s20 + $0xfb0] sm:$0xff] %v5565_v48  ;;  %v5567_v56 = vmul.f32 0.2, %v9341_v51  ;;  %9362 = vlog2.f32 %v1226_v41  ;;  %v688_v41 = vld [vmem:[%s9790_s5 + $0x1058] sm:$0xff] }
 0x63f   : > { %v9345_v59 = vpop.eup %9344  ;;  %6110 = vst [vmem:[%s9837_s20 + $0xfb8] sm:$0xff] %v5566_v52  ;;  %v5568_v60 = vmul.f32 0.2, %v9343_v55  ;;  %9364 = vlog2.f32 %v1227_v45  ;;  %v689_v45 = vld [vmem:[%s9790_s5 + $0x1060] sm:$0xff]  ;;  %v1234_v52 = vmul.f32 %v9797_v1, %v688_v41 }
 0x640   : > { %v9347_v62 = vpop.eup %9346  ;;  %6111 = vst [vmem:[%s9837_s20 + $0xfc0] sm:$0xff] %v5567_v56  ;;  %v3356_v63 = vmul.f32 0.6931472, %v9345_v59  ;;  %9366 = vlog2.f32 %v1228_v49  ;;  %v690_v49 = vld [vmem:[%s9790_s5 + $0x1068] sm:$0xff]  ;;  %v1235_v56 = vmul.f32 %v9797_v1, %v689_v45 }
 0x641   : > { %v9349_v2 = vpop.eup %9348  ;;  %6112 = vst [vmem:[%s9837_s20 + $0xfc8] sm:$0xff] %v5568_v60  ;;  %v3358_v3 = vmul.f32 0.6931472, %v9347_v62  ;;  %9368 = vlog2.f32 %v1229_v53  ;;  %v691_v53 = vld [vmem:[%s9790_s5 + $0x1070] sm:$0xff]  ;;  %v1236_v59 = vmul.f32 %v9797_v1, %v690_v49 }
 0x642   : > { %v9351_v5 = vpop.eup %9350  ;;  %v3937_v6 = vmul.f32 0.6, %v3356_v63  ;;  %v3360_v7 = vmul.f32 0.6931472, %v9349_v2  ;;  %9370 = vlog2.f32 %v1230_v57  ;;  %v1237_v62 = vmul.f32 %v9797_v1, %v691_v53 }
 0x643   : > { %v9353_v8 = vpop.eup %9352  ;;  %v3938_v9 = vmul.f32 0.6, %v3358_v3  ;;  %v3362_v10 = vmul.f32 0.6931472, %v9351_v5  ;;  %9372 = vlog2.f32 %v1231_v61 }
 0x644   : > { %v9355_v11 = vpop.eup %9354  ;;  %v4987_v12 = vmul.f32 1.442695, %v3937_v6  ;;  %v3939_v13 = vmul.f32 0.6, %v3360_v7  ;;  %9374 = vlog2.f32 %v1232_v0  ;;  %v2276_v19 = vmul.f32 0.6931472, %v9353_v8 }
 0x645   : > { %v9357_v14 = vpop.eup %9356  ;;  %v4989_v15 = vmul.f32 1.442695, %v3938_v9  ;;  %v3940_v16 = vmul.f32 0.6, %v3362_v10  ;;  %9376 = vlog2.f32 %v1233_v4  ;;  %v2278_v22 = vmul.f32 0.6931472, %v9355_v11 }
 0x646   : > { %v9359_v17 = vpop.eup %9358  ;;  %9378 = vpow2.f32 %v4987_v12  ;;  %v4991_v18 = vmul.f32 1.442695, %v3939_v13  ;;  %v2280_v24 = vmul.f32 0.6931472, %v9357_v14 }
 0x647   : > { %v9361_v20 = vpop.eup %9360  ;;  %9380 = vpow2.f32 %v4989_v15  ;;  %v4993_v21 = vmul.f32 1.442695, %v3940_v16  ;;  %v2282_v26 = vmul.f32 0.6931472, %v9359_v17 }
 0x648   : > { %v9363_v23 = vpop.eup %9362  ;;  %9382 = vpow2.f32 %v4991_v18  ;;  %v2284_v28 = vmul.f32 0.6931472, %v9361_v20 }
 0x649   : > { %v9365_v25 = vpop.eup %9364  ;;  %9384 = vpow2.f32 %v4993_v21  ;;  %v2286_v30 = vmul.f32 0.6931472, %v9363_v23 }
 0x64a   : > { %v9367_v27 = vpop.eup %9366  ;;  %9386 = vlog2.f32 %v2276_v19  ;;  %v2288_v32 = vmul.f32 0.6931472, %v9365_v25 }
 0x64b   : > { %v9369_v29 = vpop.eup %9368  ;;  %9388 = vlog2.f32 %v2278_v22  ;;  %v2290_v34 = vmul.f32 0.6931472, %v9367_v27 }
 0x64c   : > { %v9371_v31 = vpop.eup %9370  ;;  %9390 = vlog2.f32 %v2280_v24  ;;  %v2292_v36 = vmul.f32 0.6931472, %v9369_v29 }
 0x64d   : > { %v9373_v33 = vpop.eup %9372  ;;  %9392 = vlog2.f32 %v2282_v26  ;;  %v2294_v38 = vmul.f32 0.6931472, %v9371_v31 }
 0x64e   : > { %v9375_v35 = vpop.eup %9374  ;;  %9394 = vlog2.f32 %v2284_v28  ;;  %v2296_v40 = vmul.f32 0.6931472, %v9373_v33 }
 0x64f   : > { %v9377_v37 = vpop.eup %9376  ;;  %9396 = vlog2.f32 %v2286_v30  ;;  %v2298_v44 = vmul.f32 0.6931472, %v9375_v35 }
 0x650   : > { %v9379_v39 = vpop.eup %9378  ;;  %9398 = vlog2.f32 %v2288_v32  ;;  %v2300_v48 = vmul.f32 0.6931472, %v9377_v37 }
 0x651   : > { %v9381_v42 = vpop.eup %9380  ;;  %v5569_v43 = vmul.f32 0.2, %v9379_v39  ;;  %9400 = vlog2.f32 %v2290_v34 }
 0x652   : > { %v9383_v46 = vpop.eup %9382  ;;  %v5570_v47 = vmul.f32 0.2, %v9381_v42  ;;  %9402 = vlog2.f32 %v2292_v36 }
 0x653   : > { %v9385_v50 = vpop.eup %9384  ;;  %6113 = vst [vmem:[%s9837_s20 + $0xfd0] sm:$0xff] %v5569_v43  ;;  %v5571_v51 = vmul.f32 0.2, %v9383_v46  ;;  %9404 = vlog2.f32 %v2294_v38 }
 0x654   : > { %v9387_v54 = vpop.eup %9386  ;;  %6114 = vst [vmem:[%s9837_s20 + $0xfd8] sm:$0xff] %v5570_v47  ;;  %v5572_v55 = vmul.f32 0.2, %v9385_v50  ;;  %9406 = vlog2.f32 %v2296_v40 }
 0x655   : > { %v9389_v57 = vpop.eup %9388  ;;  %6115 = vst [vmem:[%s9837_s20 + $0xfe0] sm:$0xff] %v5571_v51  ;;  %v3364_v58 = vmul.f32 0.6931472, %v9387_v54  ;;  %9408 = vlog2.f32 %v2298_v44  ;;  %v692_v54 = vld [vmem:[%s9790_s5 + $0x1078] sm:$0xff] }
 0x656   : > { %v9391_v60 = vpop.eup %9390  ;;  %6116 = vst [vmem:[%s9837_s20 + $0xfe8] sm:$0xff] %v5572_v55  ;;  %v3366_v61 = vmul.f32 0.6931472, %v9389_v57  ;;  %9410 = vlog2.f32 %v2300_v48 }
 0x657   : > { %v9393_v63 = vpop.eup %9392  ;;  %v3941_v0 = vmul.f32 0.6, %v3364_v58  ;;  %v3368_v2 = vmul.f32 0.6931472, %v9391_v60  ;;  %9412 = vlog2.f32 %v1234_v52  ;;  %v693_v58 = vld [vmem:[%s9790_s5 + $0x1080] sm:$0xff] }
 0x658   : > { %v9395_v3 = vpop.eup %9394  ;;  %v3942_v4 = vmul.f32 0.6, %v3366_v61  ;;  %v3370_v5 = vmul.f32 0.6931472, %v9393_v63  ;;  %9414 = vlog2.f32 %v1235_v56 }
 0x659   : > { %v9397_v6 = vpop.eup %9396  ;;  %v4995_v7 = vmul.f32 1.442695, %v3941_v0  ;;  %v3943_v8 = vmul.f32 0.6, %v3368_v2  ;;  %v3372_v9 = vmul.f32 0.6931472, %v9395_v3  ;;  %9416 = vlog2.f32 %v1236_v59 }
 0x65a   : > { %v9399_v10 = vpop.eup %9398  ;;  %v4997_v11 = vmul.f32 1.442695, %v3942_v4  ;;  %v3944_v12 = vmul.f32 0.6, %v3370_v5  ;;  %v3374_v13 = vmul.f32 0.6931472, %v9397_v6  ;;  %9418 = vlog2.f32 %v1237_v62 }
 0x65b   : > { %v9401_v14 = vpop.eup %9400  ;;  %9420 = vpow2.f32 %v4995_v7  ;;  %v4999_v15 = vmul.f32 1.442695, %v3943_v8  ;;  %v3945_v16 = vmul.f32 0.6, %v3372_v9  ;;  %v3376_v17 = vmul.f32 0.6931472, %v9399_v10 }
 0x65c   : > { %v9403_v18 = vpop.eup %9402  ;;  %9422 = vpow2.f32 %v4997_v11  ;;  %v5001_v19 = vmul.f32 1.442695, %v3944_v12  ;;  %v3946_v20 = vmul.f32 0.6, %v3374_v13  ;;  %v3378_v21 = vmul.f32 0.6931472, %v9401_v14 }
 0x65d   : > { %v9405_v22 = vpop.eup %9404  ;;  %9424 = vpow2.f32 %v4999_v15  ;;  %v5003_v23 = vmul.f32 1.442695, %v3945_v16  ;;  %v3947_v24 = vmul.f32 0.6, %v3376_v17  ;;  %v3380_v25 = vmul.f32 0.6931472, %v9403_v18 }
 0x65e   : > { %v9407_v26 = vpop.eup %9406  ;;  %9426 = vpow2.f32 %v5001_v19  ;;  %v5005_v27 = vmul.f32 1.442695, %v3946_v20  ;;  %v3948_v28 = vmul.f32 0.6, %v3378_v21  ;;  %v3382_v29 = vmul.f32 0.6931472, %v9405_v22 }
 0x65f   : > { %v9409_v30 = vpop.eup %9408  ;;  %9428 = vpow2.f32 %v5003_v23  ;;  %v5007_v31 = vmul.f32 1.442695, %v3947_v24  ;;  %v3949_v32 = vmul.f32 0.6, %v3380_v25  ;;  %v3384_v33 = vmul.f32 0.6931472, %v9407_v26 }
 0x660   : > { %v9411_v34 = vpop.eup %9410  ;;  %9430 = vpow2.f32 %v5005_v27  ;;  %v5009_v35 = vmul.f32 1.442695, %v3948_v28  ;;  %v3950_v36 = vmul.f32 0.6, %v3382_v29  ;;  %v3386_v37 = vmul.f32 0.6931472, %v9409_v30 }
 0x661   : > { %v9413_v38 = vpop.eup %9412  ;;  %9432 = vpow2.f32 %v5007_v31  ;;  %v5011_v39 = vmul.f32 1.442695, %v3949_v32  ;;  %v3951_v40 = vmul.f32 0.6, %v3384_v33  ;;  %v3388_v41 = vmul.f32 0.6931472, %v9411_v34 }
 0x662   : > { %v9415_v42 = vpop.eup %9414  ;;  %9434 = vpow2.f32 %v5009_v35  ;;  %v5013_v43 = vmul.f32 1.442695, %v3950_v36  ;;  %v3952_v44 = vmul.f32 0.6, %v3386_v37  ;;  %v2302_v50 = vmul.f32 0.6931472, %v9413_v38 }
 0x663   : > { %v9417_v45 = vpop.eup %9416  ;;  %9436 = vpow2.f32 %v5011_v39  ;;  %v5015_v46 = vmul.f32 1.442695, %v3951_v40  ;;  %v3953_v47 = vmul.f32 0.6, %v3388_v41  ;;  %v2304_v53 = vmul.f32 0.6931472, %v9415_v42 }
 0x664   : > { %v9419_v48 = vpop.eup %9418  ;;  %9438 = vpow2.f32 %v5013_v43  ;;  %v5017_v49 = vmul.f32 1.442695, %v3952_v44  ;;  %v2306_v57 = vmul.f32 0.6931472, %v9417_v45  ;;  %v694_v62 = vld [vmem:[%s9790_s5 + $0x1088] sm:$0xff]  ;;  %v1238_v2 = vmul.f32 %v9797_v1, %v692_v54  ;;  %v695_v3 = vld [vmem:[%s9790_s5 + $0x1090] sm:$0xff] }
 0x665   : > { %v9421_v51 = vpop.eup %9420  ;;  %9440 = vpow2.f32 %v5015_v46  ;;  %v5019_v52 = vmul.f32 1.442695, %v3953_v47  ;;  %v2308_v61 = vmul.f32 0.6931472, %v9419_v48  ;;  %v1239_v6 = vmul.f32 %v9797_v1, %v693_v58  ;;  %v696_v7 = vld [vmem:[%s9790_s5 + $0x1098] sm:$0xff]  ;;  %v697_v11 = vld [vmem:[%s9790_s5 + $0x10a0] sm:$0xff] }
 0x666   : > { %v9423_v55 = vpop.eup %9422  ;;  %v5573_v56 = vmul.f32 0.2, %v9421_v51  ;;  %9442 = vpow2.f32 %v5017_v49  ;;  %v1240_v10 = vmul.f32 %v9797_v1, %v694_v62  ;;  %v1241_v14 = vmul.f32 %v9797_v1, %v695_v3  ;;  %v698_v15 = vld [vmem:[%s9790_s5 + $0x10a8] sm:$0xff]  ;;  %v699_v19 = vld [vmem:[%s9790_s5 + $0x10b0] sm:$0xff]  ;;  %v700_v23 = vld [vmem:[%s9790_s5 + $0x10b8] sm:$0xff] }
 0x667   : > { %v9425_v59 = vpop.eup %9424  ;;  %v5574_v60 = vmul.f32 0.2, %v9423_v55  ;;  %9444 = vpow2.f32 %v5019_v52  ;;  %v1242_v18 = vmul.f32 %v9797_v1, %v696_v7  ;;  %v1243_v22 = vmul.f32 %v9797_v1, %v697_v11  ;;  %v701_v27 = vld [vmem:[%s9790_s5 + $0x10c0] sm:$0xff]  ;;  %v702_v31 = vld [vmem:[%s9790_s5 + $0x10c8] sm:$0xff]  ;;  %v703_v35 = vld [vmem:[%s9790_s5 + $0x10d0] sm:$0xff] }
 0x668   : > { %v9427_v63 = vpop.eup %9426  ;;  %6117 = vst [vmem:[%s9837_s20 + $0xff0] sm:$0xff] %v5573_v56  ;;  %v5575_v0 = vmul.f32 0.2, %v9425_v59  ;;  %9446 = vlog2.f32 %v2302_v50  ;;  %v1244_v26 = vmul.f32 %v9797_v1, %v698_v15  ;;  %v1245_v30 = vmul.f32 %v9797_v1, %v699_v19  ;;  %v704_v39 = vld [vmem:[%s9790_s5 + $0x10d8] sm:$0xff] }
 0x669   : > { %v9429_v4 = vpop.eup %9428  ;;  %6118 = vst [vmem:[%s9837_s20 + $0xff8] sm:$0xff] %v5574_v60  ;;  %v5576_v5 = vmul.f32 0.2, %v9427_v63  ;;  %9448 = vlog2.f32 %v2304_v53  ;;  %v1246_v34 = vmul.f32 %v9797_v1, %v700_v23  ;;  %v1247_v38 = vmul.f32 %v9797_v1, %v701_v27 }
 0x66a   : > { %v9431_v8 = vpop.eup %9430  ;;  %6119 = vst [vmem:[%s9837_s20 + $0x1000] sm:$0xff] %v5575_v0  ;;  %v5577_v9 = vmul.f32 0.2, %v9429_v4  ;;  %9450 = vlog2.f32 %v2306_v57  ;;  %v1248_v42 = vmul.f32 %v9797_v1, %v702_v31  ;;  %v1249_v45 = vmul.f32 %v9797_v1, %v703_v35 }
 0x66b   : > { %v9433_v12 = vpop.eup %9432  ;;  %6120 = vst [vmem:[%s9837_s20 + $0x1008] sm:$0xff] %v5576_v5  ;;  %v5578_v13 = vmul.f32 0.2, %v9431_v8  ;;  %9452 = vlog2.f32 %v2308_v61  ;;  %v1250_v48 = vmul.f32 %v9797_v1, %v704_v39 }
 0x66c   : > { %v9435_v16 = vpop.eup %9434  ;;  %6121 = vst [vmem:[%s9837_s20 + $0x1010] sm:$0xff] %v5577_v9  ;;  %v5579_v17 = vmul.f32 0.2, %v9433_v12  ;;  %9454 = vlog2.f32 %v1238_v2 }
 0x66d   : > { %v9437_v20 = vpop.eup %9436  ;;  %6122 = vst [vmem:[%s9837_s20 + $0x1018] sm:$0xff] %v5578_v13  ;;  %v5580_v21 = vmul.f32 0.2, %v9435_v16  ;;  %9456 = vlog2.f32 %v1239_v6 }
 0x66e   : > { %v9439_v24 = vpop.eup %9438  ;;  %6123 = vst [vmem:[%s9837_s20 + $0x1020] sm:$0xff] %v5579_v17  ;;  %v5581_v25 = vmul.f32 0.2, %v9437_v20  ;;  %9458 = vlog2.f32 %v1240_v10 }
 0x66f   : > { %v9441_v28 = vpop.eup %9440  ;;  %6124 = vst [vmem:[%s9837_s20 + $0x1028] sm:$0xff] %v5580_v21  ;;  %v5582_v29 = vmul.f32 0.2, %v9439_v24  ;;  %9460 = vlog2.f32 %v1241_v14 }
 0x670   : > { %v9443_v32 = vpop.eup %9442  ;;  %6125 = vst [vmem:[%s9837_s20 + $0x1030] sm:$0xff] %v5581_v25  ;;  %v5583_v33 = vmul.f32 0.2, %v9441_v28  ;;  %9462 = vlog2.f32 %v1242_v18 }
 0x671   : > { %v9445_v36 = vpop.eup %9444  ;;  %6126 = vst [vmem:[%s9837_s20 + $0x1038] sm:$0xff] %v5582_v29  ;;  %v5584_v37 = vmul.f32 0.2, %v9443_v32  ;;  %9464 = vlog2.f32 %v1243_v22  ;;  %v705_v22 = vld [vmem:[%s9790_s5 + $0x10e0] sm:$0xff] }
 0x672   : > { %v9447_v40 = vpop.eup %9446  ;;  %6127 = vst [vmem:[%s9837_s20 + $0x1040] sm:$0xff] %v5583_v33  ;;  %v5585_v41 = vmul.f32 0.2, %v9445_v36  ;;  %9466 = vlog2.f32 %v1244_v26  ;;  %v706_v26 = vld [vmem:[%s9790_s5 + $0x10e8] sm:$0xff]  ;;  %v1251_v33 = vmul.f32 %v9797_v1, %v705_v22 }
 0x673   : > { %v9449_v43 = vpop.eup %9448  ;;  %6128 = vst [vmem:[%s9837_s20 + $0x1048] sm:$0xff] %v5584_v37  ;;  %v3390_v44 = vmul.f32 0.6931472, %v9447_v40  ;;  %9468 = vlog2.f32 %v1245_v30  ;;  %v707_v30 = vld [vmem:[%s9790_s5 + $0x10f0] sm:$0xff]  ;;  %v1252_v37 = vmul.f32 %v9797_v1, %v706_v26 }
 0x674   : > { %v9451_v46 = vpop.eup %9450  ;;  %6129 = vst [vmem:[%s9837_s20 + $0x1050] sm:$0xff] %v5585_v41  ;;  %v3392_v47 = vmul.f32 0.6931472, %v9449_v43  ;;  %9470 = vlog2.f32 %v1246_v34  ;;  %v708_v34 = vld [vmem:[%s9790_s5 + $0x10f8] sm:$0xff]  ;;  %v1253_v40 = vmul.f32 %v9797_v1, %v707_v30 }
 0x675   : > { %v9453_v49 = vpop.eup %9452  ;;  %v3954_v50 = vmul.f32 0.6, %v3390_v44  ;;  %v3394_v51 = vmul.f32 0.6931472, %v9451_v46  ;;  %9472 = vlog2.f32 %v1247_v38  ;;  %v1254_v43 = vmul.f32 %v9797_v1, %v708_v34 }
 0x676   : > { %v9455_v52 = vpop.eup %9454  ;;  %v3955_v53 = vmul.f32 0.6, %v3392_v47  ;;  %v3396_v54 = vmul.f32 0.6931472, %v9453_v49  ;;  %9474 = vlog2.f32 %v1248_v42 }
 0x677   : > { %v9457_v55 = vpop.eup %9456  ;;  %v5021_v56 = vmul.f32 1.442695, %v3954_v50  ;;  %v3956_v57 = vmul.f32 0.6, %v3394_v51  ;;  %9476 = vlog2.f32 %v1249_v45  ;;  %v2310_v63 = vmul.f32 0.6931472, %v9455_v52 }
 0x678   : > { %v9459_v58 = vpop.eup %9458  ;;  %v5023_v59 = vmul.f32 1.442695, %v3955_v53  ;;  %v3957_v60 = vmul.f32 0.6, %v3396_v54  ;;  %9478 = vlog2.f32 %v1250_v48  ;;  %v2312_v3 = vmul.f32 0.6931472, %v9457_v55 }
 0x679   : > { %v9461_v61 = vpop.eup %9460  ;;  %9480 = vpow2.f32 %v5021_v56  ;;  %v5025_v62 = vmul.f32 1.442695, %v3956_v57  ;;  %v2314_v5 = vmul.f32 0.6931472, %v9459_v58 }
 0x67a   : > { %v9463_v0 = vpop.eup %9462  ;;  %9482 = vpow2.f32 %v5023_v59  ;;  %v5027_v2 = vmul.f32 1.442695, %v3957_v60  ;;  %v2316_v7 = vmul.f32 0.6931472, %v9461_v61 }
 0x67b   : > { %v9465_v4 = vpop.eup %9464  ;;  %9484 = vpow2.f32 %v5025_v62  ;;  %v2318_v9 = vmul.f32 0.6931472, %v9463_v0 }
 0x67c   : > { %v9467_v6 = vpop.eup %9466  ;;  %9486 = vpow2.f32 %v5027_v2  ;;  %v2320_v11 = vmul.f32 0.6931472, %v9465_v4 }
 0x67d   : > { %v9469_v8 = vpop.eup %9468  ;;  %9488 = vlog2.f32 %v2310_v63  ;;  %v2322_v13 = vmul.f32 0.6931472, %v9467_v6 }
 0x67e   : > { %v9471_v10 = vpop.eup %9470  ;;  %9490 = vlog2.f32 %v2312_v3  ;;  %v2324_v15 = vmul.f32 0.6931472, %v9469_v8 }
 0x67f   : > { %v9473_v12 = vpop.eup %9472  ;;  %9492 = vlog2.f32 %v2314_v5  ;;  %v2326_v17 = vmul.f32 0.6931472, %v9471_v10 }
 0x680   : > { %v9475_v14 = vpop.eup %9474  ;;  %9494 = vlog2.f32 %v2316_v7  ;;  %v2328_v19 = vmul.f32 0.6931472, %v9473_v12 }
 0x681   : > { %v9477_v16 = vpop.eup %9476  ;;  %9496 = vlog2.f32 %v2318_v9  ;;  %v2330_v21 = vmul.f32 0.6931472, %v9475_v14 }
 0x682   : > { %v9479_v18 = vpop.eup %9478  ;;  %9498 = vlog2.f32 %v2320_v11  ;;  %v2332_v25 = vmul.f32 0.6931472, %v9477_v16 }
 0x683   : > { %v9481_v20 = vpop.eup %9480  ;;  %9500 = vlog2.f32 %v2322_v13  ;;  %v2334_v29 = vmul.f32 0.6931472, %v9479_v18 }
 0x684   : > { %v9483_v23 = vpop.eup %9482  ;;  %v5586_v24 = vmul.f32 0.2, %v9481_v20  ;;  %9502 = vlog2.f32 %v2324_v15 }
 0x685   : > { %v9485_v27 = vpop.eup %9484  ;;  %v5587_v28 = vmul.f32 0.2, %v9483_v23  ;;  %9504 = vlog2.f32 %v2326_v17 }
 0x686   : > { %v9487_v31 = vpop.eup %9486  ;;  %6130 = vst [vmem:[%s9837_s20 + $0x1058] sm:$0xff] %v5586_v24  ;;  %v5588_v32 = vmul.f32 0.2, %v9485_v27  ;;  %9506 = vlog2.f32 %v2328_v19 }
 0x687   : > { %v9489_v35 = vpop.eup %9488  ;;  %6131 = vst [vmem:[%s9837_s20 + $0x1060] sm:$0xff] %v5587_v28  ;;  %v5589_v36 = vmul.f32 0.2, %v9487_v31  ;;  %9508 = vlog2.f32 %v2330_v21 }
 0x688   : > { %v9491_v38 = vpop.eup %9490  ;;  %6132 = vst [vmem:[%s9837_s20 + $0x1068] sm:$0xff] %v5588_v32  ;;  %v3398_v39 = vmul.f32 0.6931472, %v9489_v35  ;;  %9510 = vlog2.f32 %v2332_v25 }
 0x689   : > { %v9493_v41 = vpop.eup %9492  ;;  %6133 = vst [vmem:[%s9837_s20 + $0x1070] sm:$0xff] %v5589_v36  ;;  %v3400_v42 = vmul.f32 0.6931472, %v9491_v38  ;;  %9512 = vlog2.f32 %v2334_v29 }
 0x68a   : > { %v9495_v44 = vpop.eup %9494  ;;  %v3958_v45 = vmul.f32 0.6, %v3398_v39  ;;  %v3402_v46 = vmul.f32 0.6931472, %v9493_v41  ;;  %9514 = vlog2.f32 %v1251_v33 }
 0x68b   : > { %v9497_v47 = vpop.eup %9496  ;;  %v3959_v48 = vmul.f32 0.6, %v3400_v42  ;;  %v3404_v49 = vmul.f32 0.6931472, %v9495_v44  ;;  %9516 = vlog2.f32 %v1252_v37 }
 0x68c   : > { %v9499_v50 = vpop.eup %9498  ;;  %v5029_v51 = vmul.f32 1.442695, %v3958_v45  ;;  %v3960_v52 = vmul.f32 0.6, %v3402_v46  ;;  %v3406_v53 = vmul.f32 0.6931472, %v9497_v47  ;;  %9518 = vlog2.f32 %v1253_v40 }
 0x68d   : > { %v9501_v54 = vpop.eup %9500  ;;  %v5031_v55 = vmul.f32 1.442695, %v3959_v48  ;;  %v3961_v56 = vmul.f32 0.6, %v3404_v49  ;;  %v3408_v57 = vmul.f32 0.6931472, %v9499_v50  ;;  %9520 = vlog2.f32 %v1254_v43 }
 0x68e   : > { %v9503_v58 = vpop.eup %9502  ;;  %9522 = vpow2.f32 %v5029_v51  ;;  %v5033_v1 = vmul.f32 1.442695, %v3960_v52  ;;  %v3962_v59 = vmul.f32 0.6, %v3406_v53  ;;  %v3410_v60 = vmul.f32 0.6931472, %v9501_v54 }
 0x68f   : > { %v9505_v61 = vpop.eup %9504  ;;  %9524 = vpow2.f32 %v5031_v55  ;;  %v5035_v62 = vmul.f32 1.442695, %v3961_v56  ;;  %v3963_v63 = vmul.f32 0.6, %v3408_v57  ;;  %v3412_v0 = vmul.f32 0.6931472, %v9503_v58 }
 0x690   : > { %v9507_v2 = vpop.eup %9506  ;;  %9526 = vpow2.f32 %v5033_v1  ;;  %v5037_v3 = vmul.f32 1.442695, %v3962_v59  ;;  %v3964_v4 = vmul.f32 0.6, %v3410_v60  ;;  %v3414_v5 = vmul.f32 0.6931472, %v9505_v61 }
 0x691   : > { %v9509_v6 = vpop.eup %9508  ;;  %9528 = vpow2.f32 %v5035_v62  ;;  %v5039_v7 = vmul.f32 1.442695, %v3963_v63  ;;  %v3965_v8 = vmul.f32 0.6, %v3412_v0  ;;  %v3416_v9 = vmul.f32 0.6931472, %v9507_v2 }
 0x692   : > { %v9511_v10 = vpop.eup %9510  ;;  %9530 = vpow2.f32 %v5037_v3  ;;  %v5041_v11 = vmul.f32 1.442695, %v3964_v4  ;;  %v3966_v12 = vmul.f32 0.6, %v3414_v5  ;;  %v3418_v13 = vmul.f32 0.6931472, %v9509_v6 }
 0x693   : > { %v9513_v14 = vpop.eup %9512  ;;  %9532 = vpow2.f32 %v5039_v7  ;;  %v5043_v15 = vmul.f32 1.442695, %v3965_v8  ;;  %v3967_v16 = vmul.f32 0.6, %v3416_v9  ;;  %v3420_v17 = vmul.f32 0.6931472, %v9511_v10 }
 0x694   : > { %v9515_v18 = vpop.eup %9514  ;;  %9534 = vpow2.f32 %v5041_v11  ;;  %v5045_v19 = vmul.f32 1.442695, %v3966_v12  ;;  %v3968_v20 = vmul.f32 0.6, %v3418_v13  ;;  %v3422_v21 = vmul.f32 0.6931472, %v9513_v14 }
 0x695   : > { %v9517_v22 = vpop.eup %9516  ;;  %9536 = vpow2.f32 %v5043_v15  ;;  %v5047_v23 = vmul.f32 1.442695, %v3967_v16  ;;  %v3969_v24 = vmul.f32 0.6, %v3420_v17  ;;  %v2336_v30 = vmul.f32 0.6931472, %v9515_v18 }
 0x696   : > { %v9519_v25 = vpop.eup %9518  ;;  %9538 = vpow2.f32 %v5045_v19  ;;  %v5049_v26 = vmul.f32 1.442695, %v3968_v20  ;;  %v3970_v27 = vmul.f32 0.6, %v3422_v21  ;;  %v2338_v33 = vmul.f32 0.6931472, %v9517_v22 }
 0x697   : > { %v9521_v28 = vpop.eup %9520  ;;  %9540 = vpow2.f32 %v5047_v23  ;;  %v5051_v29 = vmul.f32 1.442695, %v3969_v24  ;;  %v2340_v36 = vmul.f32 0.6931472, %v9519_v25 }
 0x698   : > { %v9523_v31 = vpop.eup %9522  ;;  %9542 = vpow2.f32 %v5049_v26  ;;  %v5053_v32 = vmul.f32 1.442695, %v3970_v27  ;;  %v2342_v39 = vmul.f32 0.6931472, %v9521_v28 }
 0x699   : > { %v9525_v34 = vpop.eup %9524  ;;  %v5590_v35 = vmul.f32 0.2, %v9523_v31  ;;  %9544 = vpow2.f32 %v5051_v29 }
 0x69a   : > { %v9527_v37 = vpop.eup %9526  ;;  %v5591_v38 = vmul.f32 0.2, %v9525_v34  ;;  %9546 = vpow2.f32 %v5053_v32 }
 0x69b   : > { %v9529_v40 = vpop.eup %9528  ;;  %6134 = vst [vmem:[%s9837_s20 + $0x1078] sm:$0xff] %v5590_v35  ;;  %v5592_v41 = vmul.f32 0.2, %v9527_v37  ;;  %9548 = vlog2.f32 %v2336_v30 }
 0x69c   : > { %v9531_v42 = vpop.eup %9530  ;;  %6135 = vst [vmem:[%s9837_s20 + $0x1080] sm:$0xff] %v5591_v38  ;;  %v5593_v43 = vmul.f32 0.2, %v9529_v40  ;;  %9550 = vlog2.f32 %v2338_v33 }
 0x69d   : > { %v9533_v44 = vpop.eup %9532  ;;  %6136 = vst [vmem:[%s9837_s20 + $0x1088] sm:$0xff] %v5592_v41  ;;  %v5594_v45 = vmul.f32 0.2, %v9531_v42  ;;  %9552 = vlog2.f32 %v2340_v36 }
 0x69e   : > { %v9535_v46 = vpop.eup %9534  ;;  %6137 = vst [vmem:[%s9837_s20 + $0x1090] sm:$0xff] %v5593_v43  ;;  %v5595_v47 = vmul.f32 0.2, %v9533_v44  ;;  %9554 = vlog2.f32 %v2342_v39 }
 0x69f   : > { %v9537_v48 = vpop.eup %9536  ;;  %6138 = vst [vmem:[%s9837_s20 + $0x1098] sm:$0xff] %v5594_v45  ;;  %v5596_v49 = vmul.f32 0.2, %v9535_v46 }
 0x6a0   : > { %v9539_v50 = vpop.eup %9538  ;;  %6139 = vst [vmem:[%s9837_s20 + $0x10a0] sm:$0xff] %v5595_v47  ;;  %v5597_v51 = vmul.f32 0.2, %v9537_v48 }
 0x6a1   : > { %v9541_v52 = vpop.eup %9540  ;;  %6140 = vst [vmem:[%s9837_s20 + $0x10a8] sm:$0xff] %v5596_v49  ;;  %v5598_v53 = vmul.f32 0.2, %v9539_v50 }
 0x6a2   : > { %v9543_v54 = vpop.eup %9542  ;;  %6141 = vst [vmem:[%s9837_s20 + $0x10b0] sm:$0xff] %v5597_v51  ;;  %v5599_v55 = vmul.f32 0.2, %v9541_v52 }
 0x6a3   : > { %v9545_v56 = vpop.eup %9544  ;;  %6142 = vst [vmem:[%s9837_s20 + $0x10b8] sm:$0xff] %v5598_v53  ;;  %v5600_v57 = vmul.f32 0.2, %v9543_v54 }
 0x6a4   : > { %v9547_v58 = vpop.eup %9546  ;;  %6143 = vst [vmem:[%s9837_s20 + $0x10c0] sm:$0xff] %v5599_v55  ;;  %v5601_v1 = vmul.f32 0.2, %v9545_v56 }
 0x6a5   : > { %v9549_v59 = vpop.eup %9548  ;;  %6144 = vst [vmem:[%s9837_s20 + $0x10c8] sm:$0xff] %v5600_v57  ;;  %v5602_v60 = vmul.f32 0.2, %v9547_v58 }
 0x6a6   : > { %v9551_v61 = vpop.eup %9550  ;;  %6145 = vst [vmem:[%s9837_s20 + $0x10d0] sm:$0xff] %v5601_v1  ;;  %v3424_v62 = vmul.f32 0.6931472, %v9549_v59 }
 0x6a7   : > { %v9553_v63 = vpop.eup %9552  ;;  %6146 = vst [vmem:[%s9837_s20 + $0x10d8] sm:$0xff] %v5602_v60  ;;  %v3426_v0 = vmul.f32 0.6931472, %v9551_v61 }
 0x6a8   : > { %v9555_v2 = vpop.eup %9554  ;;  %v3971_v3 = vmul.f32 0.6, %v3424_v62  ;;  %v3428_v4 = vmul.f32 0.6931472, %v9553_v63 }
 0x6a9   : > { %v3972_v5 = vmul.f32 0.6, %v3426_v0  ;;  %v3430_v6 = vmul.f32 0.6931472, %v9555_v2 }
 0x6aa   : > { %v5055_v7 = vmul.f32 1.442695, %v3971_v3  ;;  %v3973_v8 = vmul.f32 0.6, %v3428_v4 }
 0x6ab   : > { %v5057_v9 = vmul.f32 1.442695, %v3972_v5  ;;  %v3974_v10 = vmul.f32 0.6, %v3430_v6 }
 0x6ac   : > { %9556 = vpow2.f32 %v5055_v7  ;;  %v5059_v11 = vmul.f32 1.442695, %v3973_v8 }
 0x6ad   : > { %9558 = vpow2.f32 %v5057_v9  ;;  %v5061_v12 = vmul.f32 1.442695, %v3974_v10 }
 0x6ae   : > { %9560 = vpow2.f32 %v5059_v11 }
 0x6af   : > { %9562 = vpow2.f32 %v5061_v12 }
 0x6b6   : > { %v9557_v13 = vpop.eup %9556 }
 0x6b7   : > { %v9559_v14 = vpop.eup %9558  ;;  %v5603_v15 = vmul.f32 0.2, %v9557_v13 }
 0x6b8   : > { %v9561_v16 = vpop.eup %9560  ;;  %v5604_v17 = vmul.f32 0.2, %v9559_v14 }
 0x6b9   : > { %v9563_v18 = vpop.eup %9562  ;;  %6147 = vst [vmem:[%s9837_s20 + $0x10e0] sm:$0xff] %v5603_v15  ;;  %v5605_v19 = vmul.f32 0.2, %v9561_v16 }
 0x6ba   : > { %6148 = vst [vmem:[%s9837_s20 + $0x10e8] sm:$0xff] %v5604_v17  ;;  %v5606_v20 = vmul.f32 0.2, %v9563_v18 }
 0x6bb   : > { %6149 = vst [vmem:[%s9837_s20 + $0x10f0] sm:$0xff] %v5605_v19 }
 0x6bc   : > { %6150 = vst [vmem:[%s9837_s20 + $0x10f8] sm:$0xff] %v5606_v20 }
 0x6bd   : > { %9607 = shalt.err (!%p9604_p2)
}
 0x6be   : > { %s9608_s17 = scalar_lea.hbm %s11436_s7, 69632  ;;  %s9612_s24 = scalar_lea.hbm %s11487_s2, 139264 }
 0x6bf   : > { %p9609_p4 = scmp.ne.s32.totalorder %s11436_s7, %s9608_s17  ;;  %p9613_p9 = scmp.lt.u32.totalorder %s11436_s7, %s11487_s2 }
 0x6c0   : > { %p9614_p1 = scmp.lt.u32.totalorder %s9612_s24, %s9608_s17  ;;  %p9616_p6 = scmp.lt.u32.totalorder %s9608_s17, %s11436_s7 }
 0x6c1   : > { %p9610_p5 = pnand %p9609_p4, %p11493_p11 }
 0x6c2   : > { %p9615_p3 = por %p9614_p1, %p9613_p9 }
 0x6c3   : > { %p9611_p7 = pneg %p9610_p5 }
 0x6c4   : > { %p9617_p12 = por %p9616_p6, %p9615_p3 }
 0x6c6   : > { %p9618_p13 = pnand %p9617_p12, %p9611_p7 }
 0x6c8   : > { %9621 = shalt.err (!%p9618_p13)
}
 0x6c9   : > { %s9666_s30 = smov 128   ;;  %s9667_s5 = smov 8  }
 0x6ca   : > { %6252 = dma.vmem_to_hbm [thread:$0]  (%p11493_p11), %s11438_s3, 69632, %s11436_s7, %s6152_s0, %s9666_s30, %s9666_s30, %s9667_s5  }
 0x6cb PF: > { %s6180_s28 = sand.u32 1, %s9648_s11   ;;  %p11494_p8 = scmp.ne.s32.totalorder %s11491_s22, 0 }
 0x6cc   : > { %p11495_p10 = scmp.ge.s32.totalorder %s9660_s14, 2  ;;  %s6181_s20 = scalar_lea.sflag [#allocation5], %s6180_s28 }
 0x6ce   : > { %p6259_p0 = pnand %p11495_p10, %p11494_p8 }
 0x6d0   : > { %9643 = dma.done.wait (!%p6259_p0), %s6181_s20, 69632  }
 0x6d1   : > { %9645 = vsyncadd (!%p6259_p0), %s6181_s20, 4294897664  ;;  %p16_p2 = scmp.ge.s32.totalorder %s9711_s16, 4   ;;  %s11496_s11 = smov %s9652_s12 }
 0x6d2   : > { %s11497_s12 = smov %s9656_s13  ;;  %s11498_s13 = smov %s9723_s19 }
 0x6d3   : > { %s11499_s14 = smov %s9711_s16  ;;  %18 = sbr.rel (!%p16_p2) target bundleno = 7 (0x7), region = 73 }
 0x6da   :  { %6186 = vsyncpa [#allocation4], 1 }
 0x6db   :  { %6188 = vsyncpa [#allocation4 + $0x1], 1 }
 0x6dc   :  { %6189 = vsyncpa [#allocation5], 1 }
 0x6dd   :  { %6191 = vsyncpa [#allocation5 + $0x1], 1 }

</bundles_post_ra>
